<compile_context>
chip_gen: v6e
topology: v6e:2x2x1
jax: 0.10.0
libtpu: 0.0.40
codegen_flags: <defaults>
</compile_context>

<pallas_src>
import jax
import jax.numpy as jnp
import numpy as np
from jax.experimental import pallas as pl
from jax.experimental.pallas import tpu as pltpu

# MNISTNet instantiation: in_channels=1 / 28x28 is pinned by fc1's 9216 = 64*12*12.
IN_H = IN_W = 28
KH = KW = 3
C1, C2 = 32, 64
POOL = 12                         # 24 // 2
NQ = POOL * POOL                  # 144 pool positions
FEATS = C2 * NQ                   # 9216
HID = 128
NCLASS = 10

GRID_ROWS = IN_H * IN_W           # 784 : flattened (h, w) row index = h*28 + w
TAPS = KH * KW                    # 9
TAPS_PAD = 16                     # conv1 im2col lanes (9 taps + 7 zero lanes)
CONV_OFFS = tuple(di * IN_W + dj for di in range(KH) for dj in range(KW))
A1_PAD = 64                       # >= max tap offset 58, multiple of 16 (bf16 rows)
A2_PAD = 32                       # >= max pool offset 29, multiple of 8  (f32 rows)
SEL_COLS = 640                    # >= max anchor row 638 + 1, multiple of 128

_ANCHORS = tuple(int((q // POOL) * 2 * IN_W + (q % POOL) * 2) for q in range(NQ))
# Wrapped/garbage rows (w>=26 after conv1, h/w>=24 after conv2, cross-image
# taps near each image's last 58 rows) are never selected: anchors + the 4-way
# pool offsets stay strictly inside each image's 784-row segment.
assert max(_ANCHORS) < SEL_COLS <= GRID_ROWS
assert max(_ANCHORS) + IN_W + 1 < GRID_ROWS
assert max(CONV_OFFS) < A1_PAD and IN_W + 1 < A2_PAD


# ------------------- Kernel 1: conv1 + conv2 + max-pool --------------------- #

def _conv_pool_kernel(x_ref, w1_ref, b1_ref, w2_ref, b2_ref, sel_ref, o_ref):
    m = x_ref.shape[0]                     # B * 784 (static)
    nimg = m // GRID_ROWS

    # conv1 + ReLU: one MXU matmul on the prebuilt 9-tap im2col (bf16 in, f32 acc).
    x = x_ref[...].astype(jnp.bfloat16)                                   # (m, 16)
    a1 = jnp.dot(x, w1_ref[...], preferred_element_type=jnp.float32)      # (m, 32)
    a1 = jnp.maximum(a1 + b1_ref[...], 0.0).astype(jnp.bfloat16)

    # conv2 + ReLU: lane-concat the 9 sublane-shifted a1 slices into a
    # (m, 288) bf16 im2col, then a single K=288 MXU matmul (f32 accumulate).
    a1p = jnp.concatenate([a1, jnp.zeros((A1_PAD, C1), jnp.bfloat16)], axis=0)
    im2 = jnp.concatenate([a1p[s:s + m, :] for s in CONV_OFFS], axis=1)   # (m, 288)
    a2 = jnp.dot(im2, w2_ref[...], preferred_element_type=jnp.float32)    # (m, 64)
    a2 = jnp.maximum(a2 + b2_ref[...], 0.0)

    # 2x2 stride-2 max-pool: 4-way shifted max on the flattened row grid.
    a2p = jnp.concatenate([a2, jnp.zeros((A2_PAD, C2), jnp.float32)], axis=0)
    g = jnp.maximum(jnp.maximum(a2p[0:m, :], a2p[1:m + 1, :]),
                    jnp.maximum(a2p[IN_W:IN_W + m, :],
                                a2p[IN_W + 1:IN_W + 1 + m, :]))
    g = g.astype(jnp.bfloat16)                                            # (m, 64)

    # Per image: 0/1 selection matmul picks the 144 stride-2 anchors (rows
    # [0:72) = even pool index q=2j, rows [72:144) = odd), lane-concat into a
    # lane-dense (72, 128) block whose contiguous flatten is feature q*64 + c.
    sel = sel_ref[...]                                                    # (144, 640)
    outs = []
    for b in range(nimg):                                                 # static unroll
        gb = g[b * GRID_ROWS:b * GRID_ROWS + SEL_COLS, :]                 # (640, 64)
        pooled = jnp.dot(sel, gb, preferred_element_type=jnp.float32)     # (144, 64)
        outs.append(jnp.concatenate([pooled[:NQ // 2], pooled[NQ // 2:]], axis=1))
    o_ref[...] = jnp.concatenate(outs, axis=0).astype(jnp.bfloat16)       # (B*72, 128)


def _conv_pool_call(xcol, w1, b1, w2, b2, sel, imgs_per_step):
    rows = xcol.shape[0]
    n_pad = rows // GRID_ROWS
    grid = n_pad // imgs_per_step
    br = imgs_per_step * GRID_ROWS
    orows = imgs_per_step * (NQ // 2)
    return pl.pallas_call(
        _conv_pool_kernel,
        out_shape=jax.ShapeDtypeStruct((n_pad * (NQ // 2), HID), jnp.bfloat16),
        grid=(grid,),
        in_specs=[
            pl.BlockSpec((br, TAPS_PAD), lambda i: (i, 0)),
            pl.BlockSpec((TAPS_PAD, C1), lambda i: (0, 0)),
            pl.BlockSpec((1, C1), lambda i: (0, 0)),
            pl.BlockSpec((TAPS * C1, C2), lambda i: (0, 0)),
            pl.BlockSpec((1, C2), lambda i: (0, 0)),
            pl.BlockSpec((NQ, SEL_COLS), lambda i: (0, 0)),
        ],
        out_specs=pl.BlockSpec((orows, HID), lambda i: (i, 0)),
        compiler_params=pltpu.CompilerParams(
            dimension_semantics=("parallel",),
            vmem_limit_bytes=48 << 20),
    )(xcol, w1, b1, w2, b2, sel)


# ---------------------- Kernel 2: fused fc1 + fc2 --------------------------- #

def _fc_kernel(x_ref, w1_ref, b1_ref, w2_ref, b2_ref, o_ref):
    # Whole K=9216 in one matmul; fc1 weight is VMEM-resident across M tiles.
    h = jnp.dot(x_ref[...], w1_ref[...], preferred_element_type=jnp.float32)
    h = jnp.maximum(h + b1_ref[...], 0.0).astype(jnp.bfloat16)
    o_ref[...] = (jnp.dot(h, w2_ref[...], preferred_element_type=jnp.float32)
                  + b2_ref[...])


def _fc_call(x, w1, b1, w2p, b2p):
    m, k = x.shape
    assert k == FEATS
    if m > 256:
        tm = 256
    elif m > 16:
        tm = 16 * max(1, ((m + 15) // 16) // 2)   # ~half the batch -> >=2 tiles (v7x)
    else:
        tm = 16
    mp = ((m + tm - 1) // tm) * tm
    xpad = jnp.pad(x, ((0, mp - m), (0, 0))) if mp != m else x
    out = pl.pallas_call(
        _fc_kernel,
        out_shape=jax.ShapeDtypeStruct((mp, HID), jnp.float32),
        grid=(mp // tm,),
        in_specs=[
            pl.BlockSpec((tm, FEATS), lambda i: (i, 0)),
            pl.BlockSpec((FEATS, HID), lambda i: (0, 0)),   # fc1 weight: resident
            pl.BlockSpec((1, HID), lambda i: (0, 0)),
            pl.BlockSpec((HID, HID), lambda i: (0, 0)),     # fc2 weight (padded): resident
            pl.BlockSpec((1, HID), lambda i: (0, 0)),
        ],
        out_specs=pl.BlockSpec((tm, HID), lambda i: (i, 0)),
        compiler_params=pltpu.CompilerParams(
            dimension_semantics=("parallel",),
            vmem_limit_bytes=48 << 20),
    )(xpad, w1, b1, w2p, b2p)
    return out[:m]


# ------------------------------- Model glue --------------------------------- #

def init_params(key):
    """Deterministic PyTorch-style (uniform +/- 1/sqrt(fan_in)) init, torch layout."""
    keys = jax.random.split(key, 8)

    def u(k, shape, fan_in):
        bound = 1.0 / jnp.sqrt(float(fan_in))
        return jax.random.uniform(k, shape, jnp.float32, -bound, bound)

    return {
        "conv1_w": u(keys[0], (C1, 1, KH, KW), 1 * KH * KW),
        "conv1_b": u(keys[1], (C1,), 1 * KH * KW),
        "conv2_w": u(keys[2], (C2, C1, KH, KW), C1 * KH * KW),
        "conv2_b": u(keys[3], (C2,), C1 * KH * KW),
        "fc1_w": u(keys[4], (HID, FEATS), FEATS),
        "fc1_b": u(keys[5], (HID,), FEATS),
        "fc2_w": u(keys[6], (NCLASS, HID), HID),
        "fc2_b": u(keys[7], (NCLASS,), HID),
    }


def prepare_params(p):
    """One-time conversion from PyTorch layout to the kernel layout."""
    # Conv weights -> (tap*Cin, Cout) matrices, tap index k = di*3 + dj.
    w1 = p["conv1_w"].transpose(2, 3, 1, 0).reshape(TAPS, C1)
    w1 = jnp.pad(w1, ((0, TAPS_PAD - TAPS), (0, 0)))                 # (16, 32)
    w2 = p["conv2_w"].transpose(2, 3, 1, 0).reshape(TAPS * C1, C2)   # (288, 64)
    # fc1: permute input features from torch's (c, ph, pw) flatten order to the
    # kernel's f = (ph*12 + pw)*64 + c order and transpose to (9216, 128).
    fc1 = p["fc1_w"].reshape(HID, C2, POOL, POOL).transpose(2, 3, 1, 0)
    fc1 = fc1.reshape(FEATS, HID)
    # fc2: transpose and zero-pad the 10 outputs to 128 lanes (lane-dense store).
    fc2 = jnp.zeros((HID, HID), jnp.float32).at[:, :NCLASS].set(p["fc2_w"].T)
    b2 = jnp.zeros((1, HID), jnp.float32).at[0, :NCLASS].set(p["fc2_b"])
    # Pool-selection matrix: row j < 72 picks the anchor of q = 2j, row 72 + j
    # picks q = 2j + 1 (exact 0/1 selection in bf16).
    anchors = np.asarray(_ANCHORS)
    order = np.concatenate([np.arange(0, NQ, 2), np.arange(1, NQ, 2)])
    sel = np.zeros((NQ, SEL_COLS), np.float32)
    sel[np.arange(NQ), anchors[order]] = 1.0
    return {
        "conv1_w": w1.astype(jnp.bfloat16),
        "conv1_b": p["conv1_b"].reshape(1, C1).astype(jnp.float32),
        "conv2_w": jnp.asarray(w2, jnp.bfloat16),
        "conv2_b": p["conv2_b"].reshape(1, C2).astype(jnp.float32),
        "fc1_w": fc1.astype(jnp.bfloat16),
        "fc1_b": p["fc1_b"].reshape(1, HID).astype(jnp.float32),
        "fc2_w": fc2.astype(jnp.bfloat16),
        "fc2_b": b2,
        "pool_sel": jnp.asarray(sel, jnp.bfloat16),
    }


def _pick_image_batch(n):
    if n >= 8:
        return 4            # >= 2 grid steps for v7x's two TensorCores
    return max(1, n // 2)


@jax.jit
def mnist_net_forward(kp, x):
    # x: (N, 1, 28, 28) float32 NCHW (Cin = 1, pinned by fc1's 9216 inputs).
    n = x.shape[0]
    assert x.shape[1:] == (1, IN_H, IN_W), x.shape

    # Build the conv1 9-tap im2col in the wrapper: pure gathers of the
    # zero-padded flattened image (layout plumbing only, no arithmetic).
    xf = x.reshape(n, GRID_ROWS).astype(jnp.float32)
    xp = jnp.pad(xf, ((0, 0), (0, A1_PAD)))                          # (N, 848)
    xcol = jnp.stack([xp[:, s:s + GRID_ROWS] for s in CONV_OFFS], axis=-1)
    xcol = jnp.pad(xcol, ((0, 0), (0, 0), (0, TAPS_PAD - TAPS)))     # (N, 784, 16)

    b = _pick_image_batch(n)
    n_pad = ((n + b - 1) // b) * b
    if n_pad != n:
        xcol = jnp.pad(xcol, ((0, n_pad - n), (0, 0), (0, 0)))
    xcol = xcol.reshape(n_pad * GRID_ROWS, TAPS_PAD)

    packed = _conv_pool_call(xcol, kp["conv1_w"], kp["conv1_b"],
                             kp["conv2_w"], kp["conv2_b"], kp["pool_sel"], b)
    feats = packed[:n * (NQ // 2)].reshape(n, FEATS)                 # (N, 9216) bf16
    logits = _fc_call(feats, kp["fc1_w"], kp["fc1_b"], kp["fc2_w"], kp["fc2_b"])
    return logits[:, :NCLASS]


def reference_forward(p, x):
    """Pure-JAX f32 reference with PyTorch-layout parameters."""
    y = jax.lax.conv_general_dilated(
        x, p["conv1_w"], window_strides=(1, 1), padding="VALID",
        dimension_numbers=("NCHW", "OIHW", "NCHW"))
    y = jax.nn.relu(y + p["conv1_b"][None, :, None, None])
    y = jax.lax.conv_general_dilated(
        y, p["conv2_w"], window_strides=(1, 1), padding="VALID",
        dimension_numbers=("NCHW", "OIHW", "NCHW"))
    y = jax.nn.relu(y + p["conv2_b"][None, :, None, None])
    y = jax.lax.reduce_window(y, -jnp.inf, jax.lax.max,
                              (1, 1, 2, 2), (1, 1, 2, 2), "VALID")
    y = y.reshape(y.shape[0], -1)
    y = jax.nn.relu(y @ p["fc1_w"].T + p["fc1_b"])
    return y @ p["fc2_w"].T + p["fc2_b"]


if __name__ == "__main__":
    key = jax.random.PRNGKey(0)
    pkey, xkey = jax.random.split(key)
    params = init_params(pkey)            # PyTorch layout (f32)
    kparams = prepare_params(params)      # kernel layout (done once, outside jit)
    x = jax.random.normal(xkey, (2, 1, IN_H, IN_W), dtype=jnp.float32)

    out = jax.block_until_ready(mnist_net_forward(kparams, x))
    assert out.shape == (2, NCLASS), out.shape

    ref = reference_forward(params, x)
    np.testing.assert_allclose(np.asarray(out), np.asarray(ref),
                               rtol=5e-2, atol=4e-2)
    print("KERNEL_OK")
</pallas_src>

<mosaic_0001>
module attributes {stable_mosaic.version = 11 : i64} {
  func.func @_conv_pool_kernel(%arg0: i32, %arg1: memref<784x16xf32, #tpu.memory_space<vmem>>, %arg2: memref<16x32xbf16, #tpu.memory_space<vmem>>, %arg3: memref<1x32xf32, #tpu.memory_space<vmem>>, %arg4: memref<288x64xbf16, #tpu.memory_space<vmem>>, %arg5: memref<1x64xf32, #tpu.memory_space<vmem>>, %arg6: memref<144x640xbf16, #tpu.memory_space<vmem>>, %arg7: memref<72x128xbf16, #tpu.memory_space<vmem>>) attributes {dimension_semantics = [#tpu.dimension_semantics<parallel>], iteration_bounds = array<i64: 2>, scalar_prefetch = 0 : i64, scratch_operands = 0 : i64, tpu.core_type = #tpu.core_type<tc>, window_params = [{transform_indices = @transform_0, window_bounds = array<i64: 784, 16>}, {pipeline_mode = #tpu.pipeline_mode<synchronous>, transform_indices = @transform_1, window_bounds = array<i64: 16, 32>}, {pipeline_mode = #tpu.pipeline_mode<synchronous>, transform_indices = @transform_2, window_bounds = array<i64: 1, 32>}, {pipeline_mode = #tpu.pipeline_mode<synchronous>, transform_indices = @transform_3, window_bounds = array<i64: 288, 64>}, {pipeline_mode = #tpu.pipeline_mode<synchronous>, transform_indices = @transform_4, window_bounds = array<i64: 1, 64>}, {pipeline_mode = #tpu.pipeline_mode<synchronous>, transform_indices = @transform_5, window_bounds = array<i64: 144, 640>}, {transform_indices = @transform_6, window_bounds = array<i64: 72, 128>}]} {
    %c0 = arith.constant 0 : index
    %c0_0 = arith.constant 0 : index
    %0 = vector.load %arg1[%c0, %c0_0] : memref<784x16xf32, #tpu.memory_space<vmem>>, vector<784x16xf32>
    %1 = arith.truncf %0 : vector<784x16xf32> to vector<784x16xbf16>
    %c0_1 = arith.constant 0 : index
    %c0_2 = arith.constant 0 : index
    %2 = vector.load %arg2[%c0_1, %c0_2] : memref<16x32xbf16, #tpu.memory_space<vmem>>, vector<16x32xbf16>
    %cst = arith.constant dense<0.000000e+00> : vector<784x32xf32>
    %3 = tpu.matmul %1, %2, %cst {dimension_numbers = #tpu.dot_dimension_numbers<[1], [0], [0], [1], [0, 0, 1, 1], [], []>} : vector<784x16xbf16>, vector<16x32xbf16>, vector<784x32xf32> -> vector<784x32xf32>
    %c0_3 = arith.constant 0 : index
    %c0_4 = arith.constant 0 : index
    %4 = vector.load %arg3[%c0_3, %c0_4] : memref<1x32xf32, #tpu.memory_space<vmem>>, vector<1x32xf32>
    %5 = vector.broadcast %4 : vector<1x32xf32> to vector<784x32xf32>
    %6 = arith.addf %3, %5 : vector<784x32xf32>
    %cst_5 = arith.constant 0.000000e+00 : f32
    %7 = vector.broadcast %cst_5 : f32 to vector<784x32xf32>
    %8 = arith.maximumf %6, %7 : vector<784x32xf32>
    %9 = arith.truncf %8 : vector<784x32xf32> to vector<784x32xbf16>
    %cst_6 = arith.constant 0.000000e+00 : bf16
    %10 = vector.broadcast %cst_6 : bf16 to vector<64x32xbf16>
    %11 = tpu.concatenate %9, %10 in 0 : vector<784x32xbf16>, vector<64x32xbf16> -> vector<848x32xbf16>
    %12 = vector.extract_strided_slice %11 {offsets = [0, 0], sizes = [784, 32], strides = [1, 1]} : vector<848x32xbf16> to vector<784x32xbf16>
    %13 = vector.extract_strided_slice %11 {offsets = [1, 0], sizes = [784, 32], strides = [1, 1]} : vector<848x32xbf16> to vector<784x32xbf16>
    %14 = vector.extract_strided_slice %11 {offsets = [2, 0], sizes = [784, 32], strides = [1, 1]} : vector<848x32xbf16> to vector<784x32xbf16>
    %15 = vector.extract_strided_slice %11 {offsets = [28, 0], sizes = [784, 32], strides = [1, 1]} : vector<848x32xbf16> to vector<784x32xbf16>
    %16 = vector.extract_strided_slice %11 {offsets = [29, 0], sizes = [784, 32], strides = [1, 1]} : vector<848x32xbf16> to vector<784x32xbf16>
    %17 = vector.extract_strided_slice %11 {offsets = [30, 0], sizes = [784, 32], strides = [1, 1]} : vector<848x32xbf16> to vector<784x32xbf16>
    %18 = vector.extract_strided_slice %11 {offsets = [56, 0], sizes = [784, 32], strides = [1, 1]} : vector<848x32xbf16> to vector<784x32xbf16>
    %19 = vector.extract_strided_slice %11 {offsets = [57, 0], sizes = [784, 32], strides = [1, 1]} : vector<848x32xbf16> to vector<784x32xbf16>
    %20 = vector.extract_strided_slice %11 {offsets = [58, 0], sizes = [784, 32], strides = [1, 1]} : vector<848x32xbf16> to vector<784x32xbf16>
    %21 = tpu.concatenate %12, %13, %14, %15, %16, %17, %18, %19, %20 in 1 : vector<784x32xbf16>, vector<784x32xbf16>, vector<784x32xbf16>, vector<784x32xbf16>, vector<784x32xbf16>, vector<784x32xbf16>, vector<784x32xbf16>, vector<784x32xbf16>, vector<784x32xbf16> -> vector<784x288xbf16>
    %c0_7 = arith.constant 0 : index
    %c0_8 = arith.constant 0 : index
    %22 = vector.load %arg4[%c0_7, %c0_8] : memref<288x64xbf16, #tpu.memory_space<vmem>>, vector<288x64xbf16>
    %cst_9 = arith.constant dense<0.000000e+00> : vector<784x64xf32>
    %23 = tpu.matmul %21, %22, %cst_9 {dimension_numbers = #tpu.dot_dimension_numbers<[1], [0], [0], [1], [0, 0, 1, 1], [], []>} : vector<784x288xbf16>, vector<288x64xbf16>, vector<784x64xf32> -> vector<784x64xf32>
    %c0_10 = arith.constant 0 : index
    %c0_11 = arith.constant 0 : index
    %24 = vector.load %arg5[%c0_10, %c0_11] : memref<1x64xf32, #tpu.memory_space<vmem>>, vector<1x64xf32>
    %25 = vector.broadcast %24 : vector<1x64xf32> to vector<784x64xf32>
    %26 = arith.addf %23, %25 : vector<784x64xf32>
    %cst_12 = arith.constant 0.000000e+00 : f32
    %27 = vector.broadcast %cst_12 : f32 to vector<784x64xf32>
    %28 = arith.maximumf %26, %27 : vector<784x64xf32>
    %cst_13 = arith.constant 0.000000e+00 : f32
    %29 = vector.broadcast %cst_13 : f32 to vector<32x64xf32>
    %30 = tpu.concatenate %28, %29 in 0 : vector<784x64xf32>, vector<32x64xf32> -> vector<816x64xf32>
    %31 = vector.extract_strided_slice %30 {offsets = [0, 0], sizes = [784, 64], strides = [1, 1]} : vector<816x64xf32> to vector<784x64xf32>
    %32 = vector.extract_strided_slice %30 {offsets = [1, 0], sizes = [784, 64], strides = [1, 1]} : vector<816x64xf32> to vector<784x64xf32>
    %33 = arith.maximumf %31, %32 : vector<784x64xf32>
    %34 = vector.extract_strided_slice %30 {offsets = [28, 0], sizes = [784, 64], strides = [1, 1]} : vector<816x64xf32> to vector<784x64xf32>
    %35 = vector.extract_strided_slice %30 {offsets = [29, 0], sizes = [784, 64], strides = [1, 1]} : vector<816x64xf32> to vector<784x64xf32>
    %36 = arith.maximumf %34, %35 : vector<784x64xf32>
    %37 = arith.maximumf %33, %36 : vector<784x64xf32>
    %38 = arith.truncf %37 : vector<784x64xf32> to vector<784x64xbf16>
    %c0_14 = arith.constant 0 : index
    %c0_15 = arith.constant 0 : index
    %39 = vector.load %arg6[%c0_14, %c0_15] : memref<144x640xbf16, #tpu.memory_space<vmem>>, vector<144x640xbf16>
    %40 = vector.extract_strided_slice %38 {offsets = [0, 0], sizes = [640, 64], strides = [1, 1]} : vector<784x64xbf16> to vector<640x64xbf16>
    %cst_16 = arith.constant dense<0.000000e+00> : vector<144x64xf32>
    %41 = tpu.matmul %39, %40, %cst_16 {dimension_numbers = #tpu.dot_dimension_numbers<[1], [0], [0], [1], [0, 0, 1, 1], [], []>} : vector<144x640xbf16>, vector<640x64xbf16>, vector<144x64xf32> -> vector<144x64xf32>
    %42 = vector.extract_strided_slice %41 {offsets = [0, 0], sizes = [72, 64], strides = [1, 1]} : vector<144x64xf32> to vector<72x64xf32>
    %43 = vector.extract_strided_slice %41 {offsets = [72, 0], sizes = [72, 64], strides = [1, 1]} : vector<144x64xf32> to vector<72x64xf32>
    %44 = tpu.concatenate %42, %43 in 1 : vector<72x64xf32>, vector<72x64xf32> -> vector<72x128xf32>
    %45 = arith.truncf %44 : vector<72x128xf32> to vector<72x128xbf16>
    %c0_17 = arith.constant 0 : index
    %c0_18 = arith.constant 0 : index
    %46 = vector.load %arg7[%c0_17, %c0_18] : memref<72x128xbf16, #tpu.memory_space<vmem>>, vector<72x128xbf16>
    tpu.vector_store %arg7[%c0_17, %c0_18], %45 {strides = array<i32>} : memref<72x128xbf16, #tpu.memory_space<vmem>>, vector<72x128xbf16>,
    return
  }
  func.func @transform_0(%arg0: i32) -> (i32, i32) {
    %c0_i32 = arith.constant 0 : i32
    %c0_i32_0 = arith.constant 0 : i32
    return %arg0, %c0_i32 : i32, i32
  }
  func.func @transform_1(%arg0: i32) -> (i32, i32) {
    %c0_i32 = arith.constant 0 : i32
    %c0_i32_0 = arith.constant 0 : i32
    %c0_i32_1 = arith.constant 0 : i32
    return %c0_i32, %c0_i32_0 : i32, i32
  }
  func.func @transform_2(%arg0: i32) -> (i32, i32) {
    %c0_i32 = arith.constant 0 : i32
    %c0_i32_0 = arith.constant 0 : i32
    %c0_i32_1 = arith.constant 0 : i32
    return %c0_i32, %c0_i32_0 : i32, i32
  }
  func.func @transform_3(%arg0: i32) -> (i32, i32) {
    %c0_i32 = arith.constant 0 : i32
    %c0_i32_0 = arith.constant 0 : i32
    %c0_i32_1 = arith.constant 0 : i32
    return %c0_i32, %c0_i32_0 : i32, i32
  }
  func.func @transform_4(%arg0: i32) -> (i32, i32) {
    %c0_i32 = arith.constant 0 : i32
    %c0_i32_0 = arith.constant 0 : i32
    %c0_i32_1 = arith.constant 0 : i32
    return %c0_i32, %c0_i32_0 : i32, i32
  }
  func.func @transform_5(%arg0: i32) -> (i32, i32) {
    %c0_i32 = arith.constant 0 : i32
    %c0_i32_0 = arith.constant 0 : i32
    %c0_i32_1 = arith.constant 0 : i32
    return %c0_i32, %c0_i32_0 : i32, i32
  }
  func.func @transform_6(%arg0: i32) -> (i32, i32) {
    %c0_i32 = arith.constant 0 : i32
    %c0_i32_0 = arith.constant 0 : i32
    return %arg0, %c0_i32 : i32, i32
  }
}

module attributes {stable_mosaic.version = 11 : i64} {
  func.func @_fc_kernel(%arg0: i32, %arg1: memref<16x9216xbf16, #tpu.memory_space<vmem>>, %arg2: memref<9216x128xbf16, #tpu.memory_space<vmem>>, %arg3: memref<1x128xf32, #tpu.memory_space<vmem>>, %arg4: memref<128x128xbf16, #tpu.memory_space<vmem>>, %arg5: memref<1x128xf32, #tpu.memory_space<vmem>>, %arg6: memref<16x128xf32, #tpu.memory_space<vmem>>) attributes {dimension_semantics = [#tpu.dimension_semantics<parallel>], iteration_bounds = array<i64: 1>, scalar_prefetch = 0 : i64, scratch_operands = 0 : i64, tpu.core_type = #tpu.core_type<tc>, window_params = [{transform_indices = @transform_0, window_bounds = array<i64: 16, 9216>}, {pipeline_mode = #tpu.pipeline_mode<synchronous>, transform_indices = @transform_1, window_bounds = array<i64: 9216, 128>}, {pipeline_mode = #tpu.pipeline_mode<synchronous>, transform_indices = @transform_2, window_bounds = array<i64: 1, 128>}, {pipeline_mode = #tpu.pipeline_mode<synchronous>, transform_indices = @transform_3, window_bounds = array<i64: 128, 128>}, {pipeline_mode = #tpu.pipeline_mode<synchronous>, transform_indices = @transform_4, window_bounds = array<i64: 1, 128>}, {transform_indices = @transform_5, window_bounds = array<i64: 16, 128>}]} {
    %c0 = arith.constant 0 : index
    %c0_0 = arith.constant 0 : index
    %0 = vector.load %arg1[%c0, %c0_0] : memref<16x9216xbf16, #tpu.memory_space<vmem>>, vector<16x9216xbf16>
    %c0_1 = arith.constant 0 : index
    %c0_2 = arith.constant 0 : index
    %1 = vector.load %arg2[%c0_1, %c0_2] : memref<9216x128xbf16, #tpu.memory_space<vmem>>, vector<9216x128xbf16>
    %cst = arith.constant dense<0.000000e+00> : vector<16x128xf32>
    %2 = tpu.matmul %0, %1, %cst {dimension_numbers = #tpu.dot_dimension_numbers<[1], [0], [0], [1], [0, 0, 1, 1], [], []>} : vector<16x9216xbf16>, vector<9216x128xbf16>, vector<16x128xf32> -> vector<16x128xf32>
    %c0_3 = arith.constant 0 : index
    %c0_4 = arith.constant 0 : index
    %3 = vector.load %arg3[%c0_3, %c0_4] : memref<1x128xf32, #tpu.memory_space<vmem>>, vector<1x128xf32>
    %4 = vector.broadcast %3 : vector<1x128xf32> to vector<16x128xf32>
    %5 = arith.addf %2, %4 : vector<16x128xf32>
    %cst_5 = arith.constant 0.000000e+00 : f32
    %6 = vector.broadcast %cst_5 : f32 to vector<16x128xf32>
    %7 = arith.maximumf %5, %6 : vector<16x128xf32>
    %8 = arith.truncf %7 : vector<16x128xf32> to vector<16x128xbf16>
    %c0_6 = arith.constant 0 : index
    %c0_7 = arith.constant 0 : index
    %9 = vector.load %arg4[%c0_6, %c0_7] : memref<128x128xbf16, #tpu.memory_space<vmem>>, vector<128x128xbf16>
    %cst_8 = arith.constant dense<0.000000e+00> : vector<16x128xf32>
    %10 = tpu.matmul %8, %9, %cst_8 {dimension_numbers = #tpu.dot_dimension_numbers<[1], [0], [0], [1], [0, 0, 1, 1], [], []>} : vector<16x128xbf16>, vector<128x128xbf16>, vector<16x128xf32> -> vector<16x128xf32>
    %c0_9 = arith.constant 0 : index
    %c0_10 = arith.constant 0 : index
    %11 = vector.load %arg5[%c0_9, %c0_10] : memref<1x128xf32, #tpu.memory_space<vmem>>, vector<1x128xf32>
    %12 = vector.broadcast %11 : vector<1x128xf32> to vector<16x128xf32>
    %13 = arith.addf %10, %12 : vector<16x128xf32>
    %c0_11 = arith.constant 0 : index
    %c0_12 = arith.constant 0 : index
    %14 = vector.load %arg6[%c0_11, %c0_12] : memref<16x128xf32, #tpu.memory_space<vmem>>, vector<16x128xf32>
    tpu.vector_store %arg6[%c0_11, %c0_12], %13 {strides = array<i32>} : memref<16x128xf32, #tpu.memory_space<vmem>>, vector<16x128xf32>,
    return
  }
  func.func @transform_0(%arg0: i32) -> (i32, i32) {
    %c0_i32 = arith.constant 0 : i32
    %c0_i32_0 = arith.constant 0 : i32
    return %arg0, %c0_i32 : i32, i32
  }
  func.func @transform_1(%arg0: i32) -> (i32, i32) {
    %c0_i32 = arith.constant 0 : i32
    %c0_i32_0 = arith.constant 0 : i32
    %c0_i32_1 = arith.constant 0 : i32
    return %c0_i32, %c0_i32_0 : i32, i32
  }
  func.func @transform_2(%arg0: i32) -> (i32, i32) {
    %c0_i32 = arith.constant 0 : i32
    %c0_i32_0 = arith.constant 0 : i32
    %c0_i32_1 = arith.constant 0 : i32
    return %c0_i32, %c0_i32_0 : i32, i32
  }
  func.func @transform_3(%arg0: i32) -> (i32, i32) {
    %c0_i32 = arith.constant 0 : i32
    %c0_i32_0 = arith.constant 0 : i32
    %c0_i32_1 = arith.constant 0 : i32
    return %c0_i32, %c0_i32_0 : i32, i32
  }
  func.func @transform_4(%arg0: i32) -> (i32, i32) {
    %c0_i32 = arith.constant 0 : i32
    %c0_i32_0 = arith.constant 0 : i32
    %c0_i32_1 = arith.constant 0 : i32
    return %c0_i32, %c0_i32_0 : i32, i32
  }
  func.func @transform_5(%arg0: i32) -> (i32, i32) {
    %c0_i32 = arith.constant 0 : i32
    %c0_i32_0 = arith.constant 0 : i32
    return %arg0, %c0_i32 : i32, i32
  }
}

</mosaic_0001>

<bundles_post_ra>
// kernel: mnist_net_forward.2
= control target key start
LH: loop header
LB: loop body
LE: loop exit
PB: predicated region body
PF: predicated region fallthrough
CT: control target
= control target key end

     0   :  { %s7687_s21 = smov 0   ;;  %s13568_s0 = inlined_call_operand.vmem [shape: f32[1568,16], index: 0, kind: input, shape index: {}]   ;;  %s13569_s1 = inlined_call_operand.vmem [shape: bf16[16,32], index: 1, kind: input, shape index: {}]   ;;  %s13570_s2 = inlined_call_operand.vmem [shape: f32[1,32], index: 2, kind: input, shape index: {}]   ;;  %s13571_s3 = inlined_call_operand.vmem [shape: bf16[288,64], index: 3, kind: input, shape index: {}]   ;;  %s13572_s4 = inlined_call_operand.vmem [shape: f32[1,64], index: 4, kind: input, shape index: {}]   ;;  %s13573_s5 = inlined_call_operand.vmem [shape: bf16[144,640], index: 5, kind: input, shape index: {}]   ;;  %s13574_s6 = inlined_call_operand.vmem [shape: bf16[144,128], index: 6, kind: output, shape index: {}]  }
   0x1 LB: > { %s6592_s22 = sadd.s32 4294967295, %s7644_s21   ;;  %p6596_p0 = scmp.ge.s32.totalorder %s7644_s21, 1  ;;  %s7644_s21 = sphi %s7687_s21, %s16_s21  }
   0x2   : > { %p213_p1 = scmp.lt.s32.totalorder %s7644_s21, 3 }
   0x4   : > { %p214_p2 = pnand %p6596_p0, %p213_p1 }
   0x6   : > { %217 = sbr.rel (%p214_p2) target bundleno = 1510 (0x5e6), region = 44 }
   0xb   : > { %v7550_v0 = vld [vmem:[%s13569_s1] sm:$0xff]   ;;  %v13581_v1 = vmov 0.0   ;;  %s243_s25 = smul.u32 98, %s6592_s22  ;;  %vm7647_vm0 = vmmov 0   ;;  %vm418_vm1 = vcmask 130048   ;;  %vm2474_vm2 = vcmask 1043456  }
   0xc   : > { %7064 = vmatprep.subr.bf16.mxu0 %v13581_v1  ;;  %7514 = vmatprep.subr.bf16.mxu1 %v13581_v1  ;;  %vm1683_vm3 = vcmask 1046528   ;;  %vm1138_vm4 = vsmask.f32 7424  ;;  %s7649_s11 = smov 64   ;;  %vm2663_vm5 = vsmask.f32 3328 }
   0xd   : > { %7065 = vmatpush3.bf16.msra.mxu0 %v7550_v0  ;;  %7515 = vmatpush3.bf16.msra.mxu1 %v7550_v0  ;;  %p244_p3 = scmp.lt.s32.totalorder %s243_s25, 195  ;;  %vm1881_vm6 = vcmask 1041408   ;;  %s7650_s14 = smov 32   ;;  %vm2277_vm7 = vcmask 1040384   ;;  %vm2078_vm8 = vsmask.f32 1280 }
   0xe   : > { %7066 = vmatprep.mubr.msk.bf16.mxu0 %vm7647_vm0, %v13581_v1  ;;  %7218 = vmatprep.mubr.msk.bf16.mxu1 %vm7647_vm0, %v13581_v1  ;;  %s7651_s17 = smov 96   ;;  %vm2946_vm9 = vcmask 1042432   ;;  %vm3041_vm10 = vcmask 261120   ;;  %vm3140_vm11 = vcmask 523264   ;;  %vm3239_vm12 = vcmask 785408   ;;  %s249_s27 = smul.u32 9, %s6592_s22 }
   0xf   : > { %7262 = vmatprep.subr.bf16.mxu0 %v13581_v1  ;;  %s14543_s25 = smov (!%p244_p3, %s243_s25), 195 }
  0x10   : > { %s6597_s26 = sshll.u32 %s14543_s25, 3  ;;  %p250_p4 = scmp.lt.s32.totalorder %s249_s27, 17 }
  0x11   : > { %s7710_s29 = scalar_lea.vmem %s13568_s0, %s6597_s26 }
  0x12   : > { %v256_v2 = vld [vmem:[%s7710_s29] sm:$0xff]  ;;  %v257_v3 = vld [vmem:[%s7710_s29 + $0x8] sm:$0xff]  ;;  %v258_v8 = vld [vmem:[%s7710_s29 + $0x10] sm:$0xff]  ;;  %s14545_s27 = smov (!%p250_p4, %s249_s27), 17 }
  0x13   : > { %v332_v4 = vld [vmem:[%s7710_s29 + $0x260] sm:$0xff]  ;;  %v354_v5 = vpack.c.bf16 %v257_v3, %v256_v2  ;;  %v333_v6 = vld [vmem:[%s7710_s29 + $0x268] sm:$0xff]  ;;  %v259_v9 = vld [vmem:[%s7710_s29 + $0x18] sm:$0xff] }
  0x14   : > { %v392_v7 = vpack.c.bf16 %v333_v6, %v332_v4  ;;  %v334_v10 = vld [vmem:[%s7710_s29 + $0x270] sm:$0xff]  ;;  %v335_v11 = vld [vmem:[%s7710_s29 + $0x278] sm:$0xff]  ;;  %v355_v12 = vpack.c.bf16 %v259_v9, %v258_v8  ;;  %v260_v14 = vld [vmem:[%s7710_s29 + $0x20] sm:$0xff] }
  0x15   : > { %7067 = vmatmul.mubr.msk.bf16.vlgmr.msra.gmra.mxu0 %vm418_vm1, %v354_v5  ;;  %v393_v13 = vpack.c.bf16 %v335_v11, %v334_v10  ;;  %v261_v15 = vld [vmem:[%s7710_s29 + $0x28] sm:$0xff]  ;;  %v336_v16 = vld [vmem:[%s7710_s29 + $0x280] sm:$0xff]  ;;  %v262_v20 = vld [vmem:[%s7710_s29 + $0x30] sm:$0xff] }
  0x16   : > { %7219 = vmatmul.mubr.msk.bf16.vlgmr.msra.gmra.mxu1 %vm418_vm1, %v392_v7  ;;  %7070 = vmatprep.mubr.msk.bf16.mxu0 %vm7647_vm0, %v13581_v1  ;;  %v337_v17 = vld [vmem:[%s7710_s29 + $0x288] sm:$0xff]  ;;  %v356_v18 = vpack.c.bf16 %v261_v15, %v260_v14  ;;  %v263_v21 = vld [vmem:[%s7710_s29 + $0x38] sm:$0xff]  ;;  %v264_v23 = vld [vmem:[%s7710_s29 + $0x40] sm:$0xff] }
  0x17   : > { %7222 = vmatprep.mubr.msk.bf16.mxu1 %vm7647_vm0, %v13581_v1  ;;  %v394_v19 = vpack.c.bf16 %v337_v17, %v336_v16  ;;  %v357_v22 = vpack.c.bf16 %v263_v21, %v262_v20  ;;  %v265_v24 = vld [vmem:[%s7710_s29 + $0x48] sm:$0xff]  ;;  %v266_v26 = vld [vmem:[%s7710_s29 + $0x50] sm:$0xff]  ;;  %v267_v27 = vld [vmem:[%s7710_s29 + $0x58] sm:$0xff] }
  0x18   : > { %v358_v25 = vpack.c.bf16 %v265_v24, %v264_v23  ;;  %v359_v28 = vpack.c.bf16 %v267_v27, %v266_v26  ;;  %v268_v29 = vld [vmem:[%s7710_s29 + $0x60] sm:$0xff]  ;;  %v269_v30 = vld [vmem:[%s7710_s29 + $0x68] sm:$0xff]  ;;  %v270_v32 = vld [vmem:[%s7710_s29 + $0x70] sm:$0xff] }
  0x19   : > { %v360_v31 = vpack.c.bf16 %v269_v30, %v268_v29  ;;  %v271_v33 = vld [vmem:[%s7710_s29 + $0x78] sm:$0xff]  ;;  %v272_v35 = vld [vmem:[%s7710_s29 + $0x80] sm:$0xff]  ;;  %v273_v36 = vld [vmem:[%s7710_s29 + $0x88] sm:$0xff] }
  0x1a   : > { %v361_v34 = vpack.c.bf16 %v271_v33, %v270_v32  ;;  %v362_v37 = vpack.c.bf16 %v273_v36, %v272_v35  ;;  %v274_v38 = vld [vmem:[%s7710_s29 + $0x90] sm:$0xff]  ;;  %v275_v39 = vld [vmem:[%s7710_s29 + $0x98] sm:$0xff]  ;;  %v276_v41 = vld [vmem:[%s7710_s29 + $0xa0] sm:$0xff] }
  0x1b   : > { %v363_v40 = vpack.c.bf16 %v275_v39, %v274_v38  ;;  %v277_v42 = vld [vmem:[%s7710_s29 + $0xa8] sm:$0xff]  ;;  %v278_v44 = vld [vmem:[%s7710_s29 + $0xb0] sm:$0xff]  ;;  %v279_v45 = vld [vmem:[%s7710_s29 + $0xb8] sm:$0xff] }
  0x1c   : > { %v364_v43 = vpack.c.bf16 %v277_v42, %v276_v41  ;;  %v365_v46 = vpack.c.bf16 %v279_v45, %v278_v44  ;;  %v280_v47 = vld [vmem:[%s7710_s29 + $0xc0] sm:$0xff]  ;;  %v281_v48 = vld [vmem:[%s7710_s29 + $0xc8] sm:$0xff]  ;;  %v282_v50 = vld [vmem:[%s7710_s29 + $0xd0] sm:$0xff] }
  0x1d   : > { %7071 = vmatmul.mubr.msk.bf16.gmra.mxu0 %vm418_vm1, %v355_v12  ;;  %v366_v49 = vpack.c.bf16 %v281_v48, %v280_v47  ;;  %v283_v51 = vld [vmem:[%s7710_s29 + $0xd8] sm:$0xff]  ;;  %v284_v53 = vld [vmem:[%s7710_s29 + $0xe0] sm:$0xff]  ;;  %v285_v54 = vld [vmem:[%s7710_s29 + $0xe8] sm:$0xff] }
  0x1e   : > { %7223 = vmatmul.mubr.msk.bf16.gmra.mxu1 %vm418_vm1, %v393_v13  ;;  %7074 = vmatprep.mubr.msk.bf16.mxu0 %vm7647_vm0, %v13581_v1  ;;  %v367_v52 = vpack.c.bf16 %v283_v51, %v282_v50  ;;  %v368_v55 = vpack.c.bf16 %v285_v54, %v284_v53  ;;  %v286_v56 = vld [vmem:[%s7710_s29 + $0xf0] sm:$0xff]  ;;  %v287_v57 = vld [vmem:[%s7710_s29 + $0xf8] sm:$0xff]  ;;  %v288_v59 = vld [vmem:[%s7710_s29 + $0x100] sm:$0xff] }
  0x1f   : > { %7226 = vmatprep.mubr.msk.bf16.mxu1 %vm7647_vm0, %v13581_v1  ;;  %v369_v58 = vpack.c.bf16 %v287_v57, %v286_v56  ;;  %v289_v60 = vld [vmem:[%s7710_s29 + $0x108] sm:$0xff]  ;;  %v290_v62 = vld [vmem:[%s7710_s29 + $0x110] sm:$0xff]  ;;  %v291_v63 = vld [vmem:[%s7710_s29 + $0x118] sm:$0xff] }
  0x20   : > { %v370_v61 = vpack.c.bf16 %v289_v60, %v288_v59  ;;  %v371_v0 = vpack.c.bf16 %v291_v63, %v290_v62  ;;  %v292_v2 = vld [vmem:[%s7710_s29 + $0x120] sm:$0xff]  ;;  %v293_v3 = vld [vmem:[%s7710_s29 + $0x128] sm:$0xff]  ;;  %v294_v5 = vld [vmem:[%s7710_s29 + $0x130] sm:$0xff] }
  0x21   : > { %v372_v4 = vpack.c.bf16 %v293_v3, %v292_v2  ;;  %v295_v6 = vld [vmem:[%s7710_s29 + $0x138] sm:$0xff]  ;;  %v296_v8 = vld [vmem:[%s7710_s29 + $0x140] sm:$0xff]  ;;  %v297_v9 = vld [vmem:[%s7710_s29 + $0x148] sm:$0xff] }
  0x22   : > { %v373_v7 = vpack.c.bf16 %v295_v6, %v294_v5  ;;  %v374_v10 = vpack.c.bf16 %v297_v9, %v296_v8  ;;  %v298_v11 = vld [vmem:[%s7710_s29 + $0x150] sm:$0xff]  ;;  %v299_v12 = vld [vmem:[%s7710_s29 + $0x158] sm:$0xff]  ;;  %v300_v14 = vld [vmem:[%s7710_s29 + $0x160] sm:$0xff] }
  0x23   : > { %v375_v13 = vpack.c.bf16 %v299_v12, %v298_v11  ;;  %v301_v15 = vld [vmem:[%s7710_s29 + $0x168] sm:$0xff]  ;;  %v7552_v21 = vld [vmem:[%s13571_s3 + $0x38] sm:$0xff]   ;;  %v302_v23 = vld [vmem:[%s7710_s29 + $0x170] sm:$0xff] }
  0x24   : > { %v7551_v16 = vld [vmem:[%s13571_s3 + $0x88] sm:$0xff]   ;;  %v376_v17 = vpack.c.bf16 %v301_v15, %v300_v14  ;;  %v303_v24 = vld [vmem:[%s7710_s29 + $0x178] sm:$0xff]  ;;  %v7554_v26 = vld [vmem:[%s13571_s3 + $0x30] sm:$0xff]  }
  0x25   : > { %7075 = vmatmul.mubr.msk.bf16.gmra.mxu0 %vm418_vm1, %v356_v18  ;;  %v338_v18 = vld [vmem:[%s7710_s29 + $0x290] sm:$0xff]  ;;  %v377_v27 = vpack.c.bf16 %v303_v24, %v302_v23  ;;  %v341_v29 = vld [vmem:[%s7710_s29 + $0x2a8] sm:$0xff]  ;;  %v304_v32 = vld [vmem:[%s7710_s29 + $0x180] sm:$0xff] }
  0x26   : > { %7227 = vmatmul.mubr.msk.bf16.gmra.mxu1 %vm418_vm1, %v394_v19  ;;  %7078 = vmatprep.mubr.msk.bf16.mxu0 %vm7647_vm0, %v13581_v1  ;;  %v339_v19 = vld [vmem:[%s7710_s29 + $0x298] sm:$0xff]  ;;  %v305_v33 = vld [vmem:[%s7710_s29 + $0x188] sm:$0xff]  ;;  %v342_v36 = vld [vmem:[%s7710_s29 + $0x2b0] sm:$0xff] }
  0x27   : > { %7230 = vmatprep.mubr.msk.bf16.mxu1 %vm7647_vm0, %v13581_v1  ;;  %7263 = vmatpush3.bf16.msra.mxu0 %v7551_v16  ;;  %v395_v20 = vpack.c.bf16 %v339_v19, %v338_v18  ;;  %v378_v35 = vpack.c.bf16 %v305_v33, %v304_v32  ;;  %v7557_v39 = vld [vmem:[%s13571_s3 + $0x18] sm:$0xff]   ;;  %v7893_v41 = vld [vmem:[%s13570_s2] ss:$0 sm:$0xff]  ;;  %v7558_v48 = vld [vmem:[%s13571_s3 + $0x10] sm:$0xff]  }
  0x28   : > { %7264 = vmatprep.subr.bf16.mxu0 %v13581_v1  ;;  %v307_v44 = vld [vmem:[%s7710_s29 + $0x198] sm:$0xff]  ;;  %v344_v54 = vld [vmem:[%s7710_s29 + $0x2c0] sm:$0xff]  ;;  %v7559_v62 = vld [vmem:[%s13571_s3 + $0x8] sm:$0xff]  }
  0x29   : > { %v309_v5 = vld [vmem:[%s7710_s29 + $0x1a8] sm:$0xff]  ;;  %v7560_v12 = vld [vmem:[%s13571_s3] sm:$0xff]  }
  0x2d   : > { %7079 = vmatmul.mubr.msk.bf16.gmra.mxu0 %vm418_vm1, %v357_v22  ;;  %v7553_v22 = vld [vmem:[%s13571_s3 + $0x80] sm:$0xff]  }
  0x2e   : > { %7082 = vmatprep.mubr.msk.bf16.mxu0 %vm7647_vm0, %v13581_v1  ;;  %7231 = vmatmul.mubr.msk.bf16.gmra.mxu1 %vm418_vm1, %v395_v20  ;;  %v7940_v20 = vld [vmem:[%s7710_s29 + $0x1b0] sm:$0xff] }
  0x2f   : > { %7265 = vmatpush3.bf16.msra.mxu0 %v7553_v22  ;;  %7234 = vmatprep.mubr.msk.bf16.mxu1 %vm7647_vm0, %v13581_v1 }
  0x35   : > { %7083 = vmatmul.mubr.msk.bf16.gmra.mxu0 %vm418_vm1, %v358_v25  ;;  %v13576_v25 = vmov 0  }
  0x36   : > { %7086 = vmatprep.mubr.msk.bf16.mxu0 %vm7647_vm0, %v13581_v1  ;;  %4067 = vmatprep.subr.bf16.mxu1 %v13576_v25 }
  0x37   : > { %4068 = vmatpush1.bf16.msra.mxu1 %v7552_v21  ;;  %v7943_v21 = vld [vmem:[%s7710_s29 + $0x1b8] sm:$0xff] }
  0x38   : > { %4069 = vmatprep.subr.bf16.mxu1 %v13576_v25 }
  0x3b   : > { %4070 = vmatpush1.bf16.msra.mxu1 %v7554_v26 }
  0x3c   : > { %4071 = vmatprep.subr.bf16.mxu1 %v13576_v25 }
  0x3d   : > { %7087 = vmatmul.mubr.msk.bf16.gmra.mxu0 %vm418_vm1, %v359_v28  ;;  %v340_v28 = vld [vmem:[%s7710_s29 + $0x2a0] sm:$0xff] }
  0x3e   : > { %7090 = vmatprep.mubr.msk.bf16.mxu0 %vm7647_vm0, %v13581_v1  ;;  %v396_v30 = vpack.c.bf16 %v341_v29, %v340_v28 }
  0x40   : > { %7235 = vmatmul.mubr.msk.bf16.gmra.mxu1 %vm418_vm1, %v396_v30 }
  0x41   : > { %7238 = vmatprep.mubr.msk.bf16.mxu1 %vm7647_vm0, %v13581_v1 }
  0x45   : > { %7091 = vmatmul.mubr.msk.bf16.gmra.mxu0 %vm418_vm1, %v360_v31  ;;  %v7555_v31 = vld [vmem:[%s13571_s3 + $0x28] sm:$0xff]  }
  0x46   : > { %7094 = vmatprep.mubr.msk.bf16.mxu0 %vm7647_vm0, %v13581_v1  ;;  %4072 = vmatpush1.bf16.msra.mxu1 %v7555_v31  ;;  %v7561_v31 = vld [vmem:[%s13571_s3 + $0x78] sm:$0xff]  }
  0x47   : > { %4073 = vmatprep.subr.bf16.mxu1 %v13576_v25 }
  0x4d   : > { %7095 = vmatmul.mubr.msk.bf16.gmra.mxu0 %vm418_vm1, %v361_v34  ;;  %v7556_v34 = vld [vmem:[%s13571_s3 + $0x20] sm:$0xff]  }
  0x4e   : > { %7098 = vmatprep.mubr.msk.bf16.mxu0 %vm7647_vm0, %v13581_v1  ;;  %4074 = vmatpush1.bf16.msra.mxu1 %v7556_v34  ;;  %v381_v34 = vpack.c.bf16 %v7943_v21, %v7940_v20  ;;  %v7563_v20 = vld [vmem:[%s13571_s3 + $0x68] sm:$0xff]  }
  0x4f   : > { %4075 = vmatprep.subr.bf16.mxu1 %v13576_v25 }
  0x52   : > { %4076 = vmatpush1.bf16.msra.mxu1 %v7557_v39 }
  0x53   : > { %4077 = vmatprep.subr.bf16.mxu1 %v13576_v25 }
  0x55   : > { %7099 = vmatmul.mubr.msk.bf16.gmra.mxu0 %vm418_vm1, %v362_v37  ;;  %v343_v37 = vld [vmem:[%s7710_s29 + $0x2b8] sm:$0xff] }
  0x56   : > { %7102 = vmatprep.mubr.msk.bf16.mxu0 %vm7647_vm0, %v13581_v1  ;;  %v397_v38 = vpack.c.bf16 %v343_v37, %v342_v36  ;;  %4078 = vmatpush1.bf16.msra.mxu1 %v7558_v48 }
  0x57   : > { %4079 = vmatprep.subr.bf16.mxu1 %v13576_v25 }
  0x58   : > { %7239 = vmatmul.mubr.msk.bf16.gmra.mxu1 %vm418_vm1, %v397_v38 }
  0x59   : > { %7242 = vmatprep.mubr.msk.bf16.mxu1 %vm7647_vm0, %v13581_v1 }
  0x5a   : > { %4080 = vmatpush1.bf16.msra.mxu1 %v7559_v62 }
  0x5b   : > { %4081 = vmatprep.subr.bf16.mxu1 %v13576_v25 }
  0x5d   : > { %7103 = vmatmul.mubr.msk.bf16.gmra.mxu0 %vm418_vm1, %v363_v40 }
  0x5e   : > { %7106 = vmatprep.mubr.msk.bf16.mxu0 %vm7647_vm0, %v13581_v1  ;;  %4082 = vmatpush1.bf16.msra.mxu1 %v7560_v12 }
  0x5f   : > { %4083 = vmatprep.subr.bf16.mxu1 %v13576_v25 }
  0x62   : > { %4084 = vmatpush2.bf16.msra.mxu1 %v7561_v31 }
  0x63   : > { %4085 = vmatprep.subr.bf16.mxu1 %v13576_v25 }
  0x65   : > { %7107 = vmatmul.mubr.msk.bf16.gmra.mxu0 %vm418_vm1, %v364_v43  ;;  %v306_v43 = vld [vmem:[%s7710_s29 + $0x190] sm:$0xff] }
  0x66   : > { %7110 = vmatprep.mubr.msk.bf16.mxu0 %vm7647_vm0, %v13581_v1  ;;  %v379_v50 = vpack.c.bf16 %v307_v44, %v306_v43 }
  0x6d   : > { %7111 = vmatmul.mubr.msk.bf16.gmra.mxu0 %vm418_vm1, %v365_v46 }
  0x6e   : > { %7114 = vmatprep.mubr.msk.bf16.mxu0 %vm7647_vm0, %v13581_v1 }
  0x75   : > { %7115 = vmatmul.mubr.msk.bf16.gmra.mxu0 %vm418_vm1, %v366_v49 }
  0x76   : > { %7118 = vmatprep.mubr.msk.bf16.mxu0 %vm7647_vm0, %v13581_v1 }
  0x7d   : > { %7119 = vmatmul.mubr.msk.bf16.gmra.mxu0 %vm418_vm1, %v367_v52 }
  0x7e   : > { %7122 = vmatprep.mubr.msk.bf16.mxu0 %vm7647_vm0, %v13581_v1 }
  0x85   : > { %7123 = vmatmul.mubr.msk.bf16.gmra.mxu0 %vm418_vm1, %v368_v55  ;;  %v345_v55 = vld [vmem:[%s7710_s29 + $0x2c8] sm:$0xff] }
  0x86   : > { %7126 = vmatprep.mubr.msk.bf16.mxu0 %vm7647_vm0, %v13581_v1  ;;  %v398_v59 = vpack.c.bf16 %v345_v55, %v344_v54 }
  0x88   : > { %7243 = vmatmul.mubr.msk.bf16.gmra.mxu1 %vm418_vm1, %v398_v59 }
  0x89   : > { %7246 = vmatprep.mubr.msk.bf16.mxu1 %vm7647_vm0, %v13581_v1 }
  0x8d   : > { %7127 = vmatmul.mubr.msk.bf16.gmra.mxu0 %vm418_vm1, %v369_v58 }
  0x8e   : > { %7130 = vmatprep.mubr.msk.bf16.mxu0 %vm7647_vm0, %v13581_v1 }
  0x95   : > { %7131 = vmatmul.mubr.msk.bf16.gmra.mxu0 %vm418_vm1, %v370_v61 }
  0x96   : > { %7134 = vmatprep.mubr.msk.bf16.mxu0 %vm7647_vm0, %v13581_v1 }
  0x9d   : > { %7135 = vmatmul.mubr.msk.bf16.gmra.mxu0 %vm418_vm1, %v371_v0 }
  0x9e   : > { %7138 = vmatprep.mubr.msk.bf16.mxu0 %vm7647_vm0, %v13581_v1 }
  0xa5   : > { %7139 = vmatmul.mubr.msk.bf16.gmra.mxu0 %vm418_vm1, %v372_v4  ;;  %v308_v4 = vld [vmem:[%s7710_s29 + $0x1a0] sm:$0xff] }
  0xa6   : > { %7142 = vmatprep.mubr.msk.bf16.mxu0 %vm7647_vm0, %v13581_v1  ;;  %v380_v15 = vpack.c.bf16 %v309_v5, %v308_v4 }
  0xad   : > { %7143 = vmatmul.mubr.msk.bf16.gmra.mxu0 %vm418_vm1, %v373_v7 }
  0xae   : > { %7146 = vmatprep.mubr.msk.bf16.mxu0 %vm7647_vm0, %v13581_v1 }
  0xb5   : > { %7147 = vmatmul.mubr.msk.bf16.gmra.mxu0 %vm418_vm1, %v374_v10 }
  0xb6   : > { %7150 = vmatprep.mubr.msk.bf16.mxu0 %vm7647_vm0, %v13581_v1 }
  0xbd   : > { %7151 = vmatmul.mubr.msk.bf16.gmra.mxu0 %vm418_vm1, %v375_v13  ;;  %v346_v13 = vld [vmem:[%s7710_s29 + $0x2d0] sm:$0xff] }
  0xbe   : > { %7154 = vmatprep.mubr.msk.bf16.mxu0 %vm7647_vm0, %v13581_v1 }
  0xc5   : > { %7155 = vmatmul.mubr.msk.bf16.gmra.mxu0 %vm418_vm1, %v376_v17  ;;  %v347_v17 = vld [vmem:[%s7710_s29 + $0x2d8] sm:$0xff] }
  0xc6   : > { %7158 = vmatprep.mubr.msk.bf16.mxu0 %vm7647_vm0, %v13581_v1  ;;  %v399_v22 = vpack.c.bf16 %v347_v17, %v346_v13 }
  0xc8   : > { %7247 = vmatmul.mubr.msk.bf16.gmra.mxu1 %vm418_vm1, %v399_v22 }
  0xc9   : > { %7250 = vmatprep.mubr.msk.bf16.mxu1 %vm7647_vm0, %v13581_v1 }
  0xcd   : > { %7159 = vmatmul.mubr.msk.bf16.gmra.mxu0 %vm418_vm1, %v377_v27 }
  0xce   : > { %7162 = vmatprep.mubr.msk.bf16.mxu0 %vm7647_vm0, %v13581_v1 }
  0xd5   : > { %v600_v40 = vpop.f32.mrf.mxu0  ;;  %7163 = vmatmul.mubr.msk.bf16.gmra.mxu0 %vm418_vm1, %v378_v35 }
  0xd6   : > { %v904_v42 = vpop.f32.mrf.mxu1  ;;  %7166 = vmatprep.mubr.msk.bf16.mxu0 %vm7647_vm0, %v13581_v1  ;;  %v601_v51 = vadd.f32 %v7893_v41, %v600_v40 }
  0xd7   : > { %v905_v45 = vadd.f32 %v7893_v41, %v904_v42  ;;  %v7068_v46 = vpop.f32.mrf.mxu0 }
  0xd8   : > { %v7220_v47 = vpop.f32.mrf.mxu1  ;;  %v991_v2 = vmax.f32 %v601_v51, 0.0 }
  0xd9   : > { %v603_v49 = vpop.f32.mrf.mxu0  ;;  %v1067_v56 = vmax.f32 %v905_v45, 0.0 }
  0xda   : > { %v604_v52 = vadd.f32 %v7893_v41, %v603_v49  ;;  %v907_v53 = vpop.f32.mrf.mxu1 }
  0xdb   : > { %v908_v57 = vadd.f32 %v7893_v41, %v907_v53  ;;  %v7069_v58 = vpop.f32.mrf.mxu0 }
  0xdc   : > { %v992_v60 = vmax.f32 %v604_v52, 0.0  ;;  %v7221_v61 = vpop.f32.mrf.mxu1  ;;  %v7562_v52 = vld [vmem:[%s13571_s3 + $0x70] sm:$0xff]  }
  0xdd   : > { %v1068_v63 = vmax.f32 %v908_v57, 0.0  ;;  %v608_v0 = vpop.f32.mrf.mxu0  ;;  %7167 = vmatmul.mubr.msk.bf16.gmra.mxu0 %vm418_vm1, %v379_v50  ;;  %4086 = vmatpush2.bf16.msra.mxu1 %v7562_v52 }
  0xde   : > { %v912_v3 = vpop.f32.mrf.mxu1  ;;  %7170 = vmatprep.mubr.msk.bf16.mxu0 %vm7647_vm0, %v13581_v1  ;;  %v7926_v9 = vpack.c.bf16 %v992_v60, %v991_v2  ;;  %v609_v10 = vadd.f32 %v7893_v41, %v608_v0  ;;  %v349_v0 = vld [vmem:[%s7710_s29 + $0x2e8] sm:$0xff]  ;;  %4087 = vmatprep.subr.bf16.mxu1 %v13576_v25 }
  0xdf   : > { %v7923_v6 = vpack.c.bf16 %v1068_v63, %v1067_v56  ;;  %v913_v7 = vadd.f32 %v7893_v41, %v912_v3  ;;  %v7072_v8 = vpop.f32.mrf.mxu0  ;;  %v348_v63 = vld [vmem:[%s7710_s29 + $0x2e0] sm:$0xff] }
  0xe0   : > { %v7224_v11 = vpop.f32.mrf.mxu1  ;;  %v993_v27 = vmax.f32 %v609_v10, 0.0  ;;  %v1142_v30 = vshll.u32 %v7926_v9, 16  ;;  %v1684_v39 = vrot.slane %v7926_v9, 1  ;;  %v1140_v40 = vshrl.u32 %v7926_v9, 16 }
  0xe1   : > { %13814 = vst [vmem:[#allocation2_spill] sm:$0xff] %v7923_v6  ;;  %v611_v14 = vpop.f32.mrf.mxu0  ;;  %v7935_v16 = vshll.u32 %v7923_v6, 16  ;;  %v1069_v23 = vmax.f32 %v913_v7, 0.0  ;;  %v7955_v35 = vshrl.u32 %v7923_v6, 16  ;;  %v13579_v45 = vrot.slane %v7923_v6, 4  ;;  %4088 = vmatpush2.bf16.msra.mxu1 %v7563_v20 }
  0xe2   : > { %v612_v18 = vadd.f32 %v7893_v41, %v611_v14  ;;  %v915_v19 = vpop.f32.mrf.mxu1  ;;  %v1144_v50 = vrot.slane %v1142_v30, 1  ;;  %4089 = vmatprep.subr.bf16.mxu1 %v13576_v25 }
  0xe3   : > { %13815 = vst [vmem:[#allocation3_spill] sm:$0xff] %v7935_v16  ;;  %v916_v24 = vadd.f32 %v7893_v41, %v915_v19  ;;  %v7073_v26 = vpop.f32.mrf.mxu0  ;;  %v13575_v36 = vrot.slane %v7935_v16, 1  ;;  %v2803_v57 = vrot.slane %v7955_v35, 4  ;;  %v2804_v11 = vrot.slane %v7935_v16, 5 }
  0xe4   : > { %v994_v28 = vmax.f32 %v612_v18, 0.0  ;;  %v7225_v29 = vpop.f32.mrf.mxu1  ;;  %v1145_v17 = vor.u32 %v1144_v50, %v1140_v40  ;;  %v400_v19 = vpack.c.bf16 %v349_v0, %v348_v63 }
  0xe5   : > { %v1070_v32 = vmax.f32 %v916_v24, 0.0  ;;  %v616_v33 = vpop.f32.mrf.mxu0  ;;  %7171 = vmatmul.mubr.msk.bf16.gmra.mxu0 %vm418_vm1, %v380_v15  ;;  %v7974_v46 = vor.u32 %v7955_v35, %v13575_v36  ;;  %v313_v24 = vld [vmem:[%s7710_s29 + $0x1c8] sm:$0xff]  ;;  %v8035_v31 = vor.u32 %v2804_v11, %v2803_v57  ;;  %v315_v11 = vld [vmem:[%s7710_s29 + $0x1d8] sm:$0xff] }
  0xe6   : > { %v7959_v37 = vpack.c.bf16 %v994_v28, %v993_v27  ;;  %v920_v38 = vpop.f32.mrf.mxu1  ;;  %7174 = vmatprep.mubr.msk.bf16.mxu0 %vm7647_vm0, %v13581_v1  ;;  %v617_v47 = vadd.f32 %v7893_v41, %v616_v33  ;;  %7251 = vmatmul.mubr.msk.bf16.gmra.mxu1 %vm418_vm1, %v400_v19 }
  0xe7   : > { %v7967_v42 = vpack.c.bf16 %v1070_v32, %v1069_v23  ;;  %v921_v43 = vadd.f32 %v7893_v41, %v920_v38  ;;  %v7076_v44 = vpop.f32.mrf.mxu0  ;;  %v312_v23 = vld [vmem:[%s7710_s29 + $0x1c0] sm:$0xff]  ;;  %13819 = vst [vmem:[#allocation7_spill] sm:$0xff] %v8035_v31  ;;  %v350_v38 = vld [vmem:[%s7710_s29 + $0x2f0] sm:$0xff]  ;;  %7254 = vmatprep.mubr.msk.bf16.mxu1 %vm7647_vm0, %v13581_v1 }
  0xe8   : > { %v7228_v48 = vpop.f32.mrf.mxu1  ;;  %v1685_v49 = vrot.slane %v7959_v37, 1  ;;  %v1147_v51 = vshll.u32 %v7959_v37, 16  ;;  %v995_v8 = vmax.f32 %v617_v47, 0.0  ;;  %v1151_v12 = vshrl.u32 %v7959_v37, 16 }
  0xe9   : > { %13816 = vst [vmem:[#allocation4_spill] sm:$0xff] %v7967_v42  ;;  %v619_v53 = vpop.f32.mrf.mxu0  ;;  %v13578_v54 = vrot.slane %v7967_v42, 4  ;;  %v7985_v55 = vshll.u32 %v7967_v42, 16  ;;  %v7988_v56 = vshrl.u32 %v7967_v42, 16  ;;  %v1071_v58 = vmax.f32 %v921_v43, 0.0  ;;  %v351_v48 = vld [vmem:[%s7710_s29 + $0x2f8] sm:$0xff] }
  0xea   : > { %v620_v59 = vadd.f32 %v7893_v41, %v619_v53  ;;  %v923_v60 = vpop.f32.mrf.mxu1  ;;  %v1686_v61 = vsel %vm1683_vm3, %v1684_v39, %v1685_v49  ;;  %v7995_v62 = vrot.slane %v1147_v51, 1  ;;  %v8013_v18 = vrot.slane %v1147_v51, 7 }
  0xeb   : > { %v924_v2 = vadd.f32 %v7893_v41, %v923_v60  ;;  %v2547_v3 = vsel %vm2474_vm2, %v13579_v45, %v13578_v54  ;;  %1783 = vrot.lane.b32.xlu1 %v1686_v61, %s7649_s11  ;;  %v7077_v4 = vpop.f32.mrf.mxu0  ;;  %v2807_v5 = vrot.slane %v7988_v56, 4  ;;  %v2808_v7 = vrot.slane %v7985_v55, 5 }
  0xec   : > { %v996_v10 = vmax.f32 %v620_v59, 0.0  ;;  %2639 = vrot.lane.b32.xlu0 %v2547_v3, %s7649_s11  ;;  %v7229_v13 = vpop.f32.mrf.mxu1  ;;  %v2079_v26 = vrot.slane %v1151_v12, 6  ;;  %v1150_v28 = vsel %vm1138_vm4, %v1145_v17, %v7995_v62  ;;  %v1882_v32 = vrot.slane %v7959_v37, 6 }
  0xed   : > { %v1072_v14 = vmax.f32 %v924_v2, 0.0  ;;  %v624_v15 = vpop.f32.mrf.mxu0  ;;  %7175 = vmatmul.mubr.msk.bf16.gmra.mxu0 %vm418_vm1, %v381_v34  ;;  %v8020_v22 = vor.u32 %v2808_v7, %v2807_v5  ;;  %v7564_v34 = vld [vmem:[%s13571_s3 + $0x60] sm:$0xff]   ;;  %v382_v40 = vpack.c.bf16 %v313_v24, %v312_v23  ;;  %v401_v61 = vpack.c.bf16 %v351_v48, %v350_v38  ;;  %v7565_v13 = vld [vmem:[%s13571_s3 + $0x58] sm:$0xff]  }
  0xee   : > { %v8018_v21 = vpack.c.bf16 %v996_v10, %v995_v8  ;;  %7178 = vmatprep.mubr.msk.bf16.mxu0 %vm7647_vm0, %v13581_v1  ;;  %v625_v30 = vadd.f32 %v7893_v41, %v624_v15  ;;  %v2081_v47 = vor.u32 %v8013_v18, %v2079_v26  ;;  %4090 = vmatpush2.bf16.msra.mxu1 %v7564_v34  ;;  %v2278_v3 = vrot.slane %v7959_v37, 7  ;;  %v314_v10 = vld [vmem:[%s7710_s29 + $0x1d0] sm:$0xff]  ;;  %v353_v34 = vld [vmem:[%s7710_s29 + $0x308] sm:$0xff] }
  0xef   : > { %13817 = vst [vmem:[#allocation5_spill] sm:$0xff] %v8020_v22  ;;  %v8028_v27 = vpack.c.bf16 %v1072_v14, %v1071_v58  ;;  %v7080_v29 = vpop.f32.mrf.mxu0  ;;  %v2810_v51 = vsel %vm2663_vm5, %v8035_v31, %v8020_v22  ;;  %4091 = vmatprep.subr.bf16.mxu1 %v13576_v25  ;;  %7255 = vmatmul.mubr.msk.bf16.gmra.mxu1 %vm418_vm1, %v401_v61 }
  0xf0   : > { %1535 = vrot.lane.b32.xlu0 %v1150_v28, %s7650_s14  ;;  %v1883_v33 = vrot.slane %v8018_v21, 6  ;;  %v1155_v43 = vshll.u32 %v8018_v21, 16  ;;  %v1159_v44 = vshrl.u32 %v8018_v21, 16  ;;  %v1687_v53 = vrot.slane %v8018_v21, 1  ;;  %v7566_v28 = vld [vmem:[%s13571_s3 + $0x50] sm:$0xff]   ;;  %7258 = vmatprep.mubr.msk.bf16.mxu1 %vm7647_vm0, %v13581_v1 }
  0xf1   : > { %13818 = vst [vmem:[#allocation6_spill] sm:$0xff] %v8028_v27  ;;  %v627_v39 = vpop.f32.mrf.mxu0  ;;  %v2279_v58 = vrot.slane %v8018_v21, 7  ;;  %v997_v63 = vmax.f32 %v625_v30, 0.0  ;;  %v1153_v18 = vor.u32 %v1151_v12, %v7995_v62  ;;  %v383_v23 = vpack.c.bf16 %v315_v11, %v314_v10  ;;  %v352_v62 = vld [vmem:[%s7710_s29 + $0x300] sm:$0xff] }
  0xf2   : > { %v628_v50 = vadd.f32 %v7893_v41, %v627_v39  ;;  %v1884_v52 = vsel %vm1881_vm6, %v1882_v32, %v1883_v33  ;;  %v2083_v59 = vrot.slane %v1155_v43, 7  ;;  %v2082_v60 = vrot.slane %v1159_v44, 6  ;;  %4092 = vmatpush2.bf16.msra.mxu1 %v7565_v13 }
  0xf3   : > { %1980 = vrot.lane.b32.xlu1 %v1884_v52, %s7651_s17  ;;  %v7081_v57 = vpop.f32.mrf.mxu0  ;;  %v1688_v7 = vsel %vm1683_vm3, %v1685_v49, %v1687_v53  ;;  %v8075_v8 = vrot.slane %v1155_v43, 1  ;;  %v2280_v14 = vsel %vm2277_vm7, %v2278_v3, %v2279_v58  ;;  %4093 = vmatprep.subr.bf16.mxu1 %v13576_v25  ;;  %v402_v48 = vpack.c.bf16 %v353_v34, %v352_v62 }
  0xf4   : > { %v998_v0 = vmax.f32 %v628_v50, 0.0  ;;  %2922 = vrot.lane.b32.xlu0 %v2810_v51, %s7651_s17  ;;  %v8065_v4 = vor.u32 %v2083_v59, %v2082_v60  ;;  %v1453_v52 = vrot.slane %v7985_v55, 1  ;;  %v316_v59 = vld [vmem:[%s7710_s29 + $0x1e0] sm:$0xff]  ;;  %v317_v60 = vld [vmem:[%s7710_s29 + $0x1e8] sm:$0xff] }
  0xf5   : > { %v632_v2 = vpop.f32.mrf.mxu0  ;;  %7179 = vmatmul.mubr.msk.bf16.gmra.mxu0 %vm418_vm1, %v382_v40  ;;  %v1158_v29 = vsel %vm1138_vm4, %v1153_v18, %v8075_v8  ;;  %v7568_v18 = vld [vmem:[%s13571_s3 + $0x40] sm:$0xff]  }
  0xf6   : > { %v8068_v5 = vpack.c.bf16 %v998_v0, %v997_v63  ;;  %7182 = vmatprep.mubr.msk.bf16.mxu0 %vm7647_vm0, %v13581_v1  ;;  %v8088_v49 = vsel %vm2078_vm8, %v2081_v47, %v8065_v4  ;;  %v633_v17 = vadd.f32 %v7893_v41, %v632_v2  ;;  %4094 = vmatpush2.bf16.msra.mxu1 %v7566_v28  ;;  %v7567_v63 = vld [vmem:[%s13571_s3 + $0x48] sm:$0xff]  }
  0xf7   : > { %1785 = vrot.lane.b32.xlu1 %v1688_v7, %s7649_s11  ;;  %v7084_v15 = vpop.f32.mrf.mxu0  ;;  %4095 = vmatprep.subr.bf16.mxu1 %v13576_v25 }
  0xf8   : > { %2376 = vrot.lane.b32.xlu0 %v2280_v14, %s7650_s14  ;;  %v2281_v19 = vrot.slane %v8068_v5, 7  ;;  %v8098_v24 = vshll.u32 %v8068_v5, 16  ;;  %v8101_v26 = vshrl.u32 %v8068_v5, 16  ;;  %v1885_v32 = vrot.slane %v8068_v5, 6  ;;  %7259 = vmatmul.mubr.msk.bf16.gmra.mxu1 %vm418_vm1, %v402_v48 }
  0xf9   : > { %v635_v20 = vpop.f32.mrf.mxu0  ;;  %v999_v40 = vmax.f32 %v633_v17, 0.0  ;;  %v1689_v51 = vrot.slane %v8068_v5, 1 }
  0xfa   : > { %v636_v12 = vadd.f32 %v7893_v41, %v635_v20  ;;  %v2282_v30 = vsel %vm2277_vm7, %v2279_v58, %v2281_v19  ;;  %v2086_v39 = vrot.slane %v8101_v26, 6  ;;  %v2087_v47 = vrot.slane %v8098_v24, 7  ;;  %4096 = vmatpush2.bf16.msra.mxu1 %v7567_v63 }
  0xfb   : > { %1537 = vrot.lane.b32.xlu1 %v1158_v29, %s7650_s14  ;;  %v7085_v38 = vpop.f32.mrf.mxu0  ;;  %v1886_v58 = vsel %vm1881_vm6, %v1883_v33, %v1885_v32  ;;  %v2664_v2 = vrot.slane %v8101_v26, 4  ;;  %v2665_v3 = vrot.slane %v8098_v24, 5  ;;  %v8146_v33 = vsel %vm1138_vm4, %v7974_v46, %v1453_v52  ;;  %4097 = vmatprep.subr.bf16.mxu1 %v13576_v25 }
  0xfc   : > { %v1000_v43 = vmax.f32 %v636_v12, 0.0  ;;  %2378 = vrot.lane.b32.xlu0 %v2282_v30, %s7650_s14  ;;  %v8135_v61 = vor.u32 %v2087_v47, %v2086_v39  ;;  %13820 = vst [vmem:[#allocation8_spill] sm:$0xff] %v8146_v33  ;;  %v1690_v15 = vsel %vm1683_vm3, %v1687_v53, %v1689_v51  ;;  %v384_v46 = vpack.c.bf16 %v317_v60, %v316_v59  ;;  %v319_v47 = vld [vmem:[%s7710_s29 + $0x1f8] sm:$0xff] }
  0xfd   : > { %v640_v50 = vpop.f32.mrf.mxu0  ;;  %7183 = vmatmul.mubr.msk.bf16.gmra.mxu0 %vm418_vm1, %v383_v23  ;;  %v1165_v17 = vrot.slane %v8098_v24, 1  ;;  %v1161_v12 = vor.u32 %v1159_v44, %v8075_v8  ;;  %v2666_v29 = vor.u32 %v2665_v3, %v2664_v2  ;;  %v2475_v60 = vrot.slane %v8068_v5, 4 }
  0xfe   : > { %v8124_v57 = vpack.c.bf16 %v1000_v43, %v999_v40  ;;  %7186 = vmatprep.mubr.msk.bf16.mxu0 %vm7647_vm0, %v13581_v1  ;;  %v641_v7 = vadd.f32 %v7893_v41, %v640_v50  ;;  %4098 = vmatpush2.bf16.msra.mxu1 %v7568_v18  ;;  %v318_v43 = vld [vmem:[%s7710_s29 + $0x1f0] sm:$0xff] }
  0xff   : > { %1982 = vrot.lane.b32.xlu1 %v1886_v58, %s7651_s17  ;;  %v7088_v0 = vpop.f32.mrf.mxu0  ;;  %v385_v3 = vpack.c.bf16 %v319_v47, %v318_v43 }
 0x100   : > { %v2283_v10 = vrot.slane %v8124_v57, 7  ;;  %v8151_v11 = vshll.u32 %v8124_v57, 16  ;;  %v8154_v13 = vshrl.u32 %v8124_v57, 16  ;;  %v1001_v30 = vmax.f32 %v641_v7, 0.0 }
 0x101   : > { %v643_v14 = vpop.f32.mrf.mxu0  ;;  %v2476_v40 = vrot.slane %v8124_v57, 4  ;;  %v8204_v0 = vor.u32 %v7988_v56, %v1453_v52  ;;  %v1887_v18 = vrot.slane %v8124_v57, 6 }
 0x102   : > { %v644_v20 = vadd.f32 %v7893_v41, %v643_v14  ;;  %v2284_v23 = vsel %vm2277_vm7, %v2281_v19, %v2283_v10  ;;  %v2667_v28 = vrot.slane %v8154_v13, 4  ;;  %v2668_v53 = vrot.slane %v8151_v11, 5 }
 0x103   : > { %1787 = vrot.lane.b32.xlu1 %v1690_v15, %s7649_s11  ;;  %2380 = vrot.lane.b32.xlu0 %v2284_v23, %s7650_s14  ;;  %v7089_v62 = vpop.f32.mrf.mxu0  ;;  %v8182_v19 = vsel %vm2078_vm8, %v8065_v4, %v8135_v61  ;;  %v2090_v44 = vrot.slane %v8154_v13, 6  ;;  %v2091_v8 = vrot.slane %v8151_v11, 7  ;;  %v1166_v4 = vsel %vm1138_vm4, %v1161_v12, %v1165_v17  ;;  %13822 = vst [vmem:[#allocation10_spill] sm:$0xff] %v8204_v0 }
 0x104   : > { %v1002_v34 = vmax.f32 %v644_v20, 0.0  ;;  %v8177_v38 = vor.u32 %v2668_v53, %v2667_v28  ;;  %v1888_v47 = vsel %vm1881_vm6, %v1885_v32, %v1887_v18 }
 0x105   : > { %v648_v39 = vpop.f32.mrf.mxu0  ;;  %7187 = vmatmul.mubr.msk.bf16.gmra.mxu0 %vm418_vm1, %v384_v46  ;;  %v2092_v63 = vor.u32 %v2091_v8, %v2090_v44  ;;  %v2477_v46 = vsel %vm2474_vm2, %v2475_v60, %v2476_v40  ;;  %v320_v44 = vld [vmem:[%s7710_s29 + $0x200] sm:$0xff]  ;;  %v321_v8 = vld [vmem:[%s7710_s29 + $0x208] sm:$0xff] }
 0x106   : > { %v8190_v48 = vpack.c.bf16 %v1002_v34, %v1001_v30  ;;  %v649_v50 = vadd.f32 %v7893_v41, %v648_v39  ;;  %v2670_v58 = vsel %vm2663_vm5, %v2666_v29, %v8177_v38  ;;  %7190 = vmatprep.mubr.msk.bf16.mxu0 %vm7647_vm0, %v13581_v1  ;;  %v2226_v29 = vrot.slane %v7955_v35, 6 }
 0x107   : > { %1539 = vrot.lane.b32.xlu1 %v1166_v4, %s7650_s14  ;;  %2852 = vrot.lane.b32.xlu0 %v2670_v58, %s7651_s17  ;;  %v7092_v59 = vpop.f32.mrf.mxu0  ;;  %v2227_v30 = vrot.slane %v7935_v16, 7  ;;  %v8228_v39 = vsel %vm2078_vm8, %v8135_v61, %v2092_v63  ;;  %v1691_v35 = vrot.slane %v8124_v57, 1 }
 0x108   : > { %13821 = vst [vmem:[#allocation9_spill] sm:$0xff] %v8190_v48  ;;  %v2478_v2 = vrot.slane %v8190_v48, 4  ;;  %v8208_v7 = vshll.u32 %v8190_v48, 16  ;;  %v1003_v14 = vmax.f32 %v649_v50, 0.0  ;;  %v8213_v20 = vshrl.u32 %v8190_v48, 16 }
 0x109   : > { %v651_v15 = vpop.f32.mrf.mxu0  ;;  %v2285_v28 = vrot.slane %v8190_v48, 7 }
 0x10a   : > { %v652_v23 = vadd.f32 %v7893_v41, %v651_v15  ;;  %v2479_v52 = vsel %vm2474_vm2, %v2476_v40, %v2478_v2  ;;  %v2672_v53 = vrot.slane %v8208_v7, 5  ;;  %v2671_v12 = vrot.slane %v8213_v20, 4 }
 0x10b   : > { %2569 = vrot.lane.b32.xlu1 %v2477_v46, %s7649_s11  ;;  %2571 = vrot.lane.b32.xlu0 %v2479_v52, %s7649_s11  ;;  %v7093_v62 = vpop.f32.mrf.mxu0  ;;  %v2094_v40 = vrot.slane %v8213_v20, 6  ;;  %v2095_v50 = vrot.slane %v8208_v7, 7  ;;  %v2286_v58 = vsel %vm2277_vm7, %v2283_v10, %v2285_v28  ;;  %v1692_v10 = vsel %vm1683_vm3, %v1689_v51, %v1691_v35 }
 0x10c   : > { %v1004_v34 = vmax.f32 %v652_v23, 0.0  ;;  %v8249_v59 = vor.u32 %v2672_v53, %v2671_v12  ;;  %v1173_v46 = vrot.slane %v8151_v11, 1 }
 0x10d   : > { %v656_v43 = vpop.f32.mrf.mxu0  ;;  %7191 = vmatmul.mubr.msk.bf16.gmra.mxu0 %vm418_vm1, %v385_v3  ;;  %v2096_v60 = vor.u32 %v2095_v50, %v2094_v40  ;;  %v8255_v3 = vor.u32 %v2227_v30, %v2226_v29  ;;  %v1169_v30 = vor.u32 %v8101_v26, %v1165_v17  ;;  %v1889_v40 = vrot.slane %v8190_v48, 6  ;;  %v323_v50 = vld [vmem:[%s7710_s29 + $0x218] sm:$0xff] }
 0x10e   : > { %v8241_v4 = vpack.c.bf16 %v1004_v34, %v1003_v14  ;;  %v657_v61 = vadd.f32 %v7893_v41, %v656_v43  ;;  %7194 = vmatprep.mubr.msk.bf16.mxu0 %vm7647_vm0, %v13581_v1  ;;  %v386_v14 = vpack.c.bf16 %v321_v8, %v320_v44  ;;  %v2674_v12 = vsel %vm2663_vm5, %v8177_v38, %v8249_v59  ;;  %v322_v8 = vld [vmem:[%s7710_s29 + $0x210] sm:$0xff] }
 0x10f   : > { %1984 = vrot.lane.b32.xlu1 %v1888_v47, %s7651_s17  ;;  %2382 = vrot.lane.b32.xlu0 %v2286_v58, %s7650_s14  ;;  %v7096_v32 = vpop.f32.mrf.mxu0  ;;  %13824 = vst [vmem:[#allocation12_spill] sm:$0xff] %v8255_v3  ;;  %v8281_v43 = vsel %vm2078_vm8, %v2092_v63, %v2096_v60  ;;  %v1174_v58 = vsel %vm1138_vm4, %v1169_v30, %v1173_v46 }
 0x110   : > { %13823 = vst [vmem:[#allocation11_spill] sm:$0xff] %v8241_v4  ;;  %v8264_v23 = vshll.u32 %v8241_v4, 16  ;;  %v8267_v52 = vshrl.u32 %v8241_v4, 16  ;;  %v1005_v53 = vmax.f32 %v657_v61, 0.0  ;;  %v2480_v29 = vrot.slane %v8241_v4, 4 }
 0x111   : > { %v659_v15 = vpop.f32.mrf.mxu0  ;;  %v2287_v44 = vrot.slane %v8241_v4, 7 }
 0x112   : > { %v660_v62 = vadd.f32 %v7893_v41, %v659_v15  ;;  %v2098_v47 = vrot.slane %v8267_v52, 6  ;;  %v2675_v61 = vrot.slane %v8267_v52, 4  ;;  %v2676_v24 = vrot.slane %v8264_v23, 5 }
 0x113   : > { %1789 = vrot.lane.b32.xlu1 %v1692_v10, %s7649_s11  ;;  %2854 = vrot.lane.b32.xlu0 %v2674_v12, %s7651_s17  ;;  %v7097_v51 = vpop.f32.mrf.mxu0  ;;  %v2099_v26 = vrot.slane %v8264_v23, 7  ;;  %v2481_v32 = vsel %vm2474_vm2, %v2478_v2, %v2480_v29  ;;  %v1890_v10 = vsel %vm1881_vm6, %v1887_v18, %v1889_v40  ;;  %v1693_v2 = vrot.slane %v8190_v48, 1 }
 0x114   : > { %v1006_v34 = vmax.f32 %v660_v62, 0.0  ;;  %v2288_v12 = vsel %vm2277_vm7, %v2285_v28, %v2287_v44  ;;  %v8317_v51 = vor.u32 %v2676_v24, %v2675_v61  ;;  %v324_v61 = vld [vmem:[%s7710_s29 + $0x220] sm:$0xff]  ;;  %v325_v24 = vld [vmem:[%s7710_s29 + $0x228] sm:$0xff] }
 0x115   : > { %v664_v38 = vpop.f32.mrf.mxu0  ;;  %7195 = vmatmul.mubr.msk.bf16.gmra.mxu0 %vm418_vm1, %v386_v14  ;;  %v2100_v15 = vor.u32 %v2099_v26, %v2098_v47 }
 0x116   : > { %v8291_v17 = vpack.c.bf16 %v1006_v34, %v1005_v53  ;;  %v665_v63 = vadd.f32 %v7893_v41, %v664_v38  ;;  %7198 = vmatprep.mubr.msk.bf16.mxu0 %vm7647_vm0, %v13581_v1  ;;  %v387_v53 = vpack.c.bf16 %v323_v50, %v322_v8  ;;  %v2230_v38 = vrot.slane %v7988_v56, 6 }
 0x117   : > { %1541 = vrot.lane.b32.xlu1 %v1174_v58, %s7650_s14  ;;  %2573 = vrot.lane.b32.xlu0 %v2481_v32, %s7649_s11  ;;  %v7100_v14 = vpop.f32.mrf.mxu0  ;;  %v2231_v8 = vrot.slane %v7985_v55, 7  ;;  %v8333_v26 = vsel %vm2078_vm8, %v2096_v60, %v2100_v15  ;;  %v1694_v55 = vsel %vm1683_vm3, %v1691_v35, %v1693_v2  ;;  %v2678_v56 = vsel %vm2663_vm5, %v8249_v59, %v8317_v51 }
 0x118   : > { %13825 = vst [vmem:[#allocation13_spill] sm:$0xff] %v8291_v17  ;;  %v8320_v30 = vshll.u32 %v8291_v17, 16  ;;  %v8323_v34 = vshrl.u32 %v8291_v17, 16  ;;  %v1007_v18 = vmax.f32 %v665_v63, 0.0  ;;  %13826 = vst [vmem:[#allocation14_spill] sm:$0xff] %v8333_v26  ;;  %v1181_v32 = vrot.slane %v8208_v7, 1 }
 0x119   : > { %v667_v62 = vpop.f32.mrf.mxu0  ;;  %v388_v59 = vpack.c.bf16 %v325_v24, %v324_v61 }
 0x11a   : > { %v668_v47 = vadd.f32 %v7893_v41, %v667_v62  ;;  %v2102_v58 = vrot.slane %v8323_v34, 6  ;;  %v2103_v60 = vrot.slane %v8320_v30, 7  ;;  %v8353_v62 = vor.u32 %v2231_v8, %v2230_v38 }
 0x11b   : > { %1986 = vrot.lane.b32.xlu1 %v1890_v10, %s7651_s17  ;;  %2384 = vrot.lane.b32.xlu0 %v2288_v12, %s7650_s14  ;;  %v7101_v28 = vpop.f32.mrf.mxu0  ;;  %v8358_v12 = vshll.u32 %v8028_v27, 16  ;;  %v8366_v38 = vshrl.u32 %v8028_v27, 16  ;;  %v2680_v61 = vrot.slane %v8320_v30, 5 }
 0x11c   : > { %v1008_v50 = vmax.f32 %v668_v47, 0.0  ;;  %v2104_v7 = vor.u32 %v2103_v60, %v2102_v58  ;;  %v1891_v47 = vrot.slane %v8241_v4, 6  ;;  %v2289_v28 = vrot.slane %v8291_v17, 7 }
 0x11d   : > { %v672_v63 = vpop.f32.mrf.mxu0  ;;  %7199 = vmatmul.mubr.msk.bf16.gmra.mxu0 %vm418_vm1, %v387_v53  ;;  %v2482_v53 = vrot.slane %v8291_v17, 4  ;;  %13828 = vst [vmem:[#allocation16_spill] sm:$0xff] %v8358_v12  ;;  %13829 = vst [vmem:[#allocation17_spill] sm:$0xff] %v8366_v38 }
 0x11e   : > { %v8347_v14 = vpack.c.bf16 %v1008_v50, %v1007_v18  ;;  %v673_v10 = vadd.f32 %v7893_v41, %v672_v63  ;;  %7202 = vmatprep.mubr.msk.bf16.mxu0 %vm7647_vm0, %v13581_v1  ;;  %v1177_v18 = vor.u32 %v8154_v13, %v1173_v46  ;;  %v2679_v50 = vrot.slane %v8323_v34, 4 }
 0x11f   : > { %1791 = vrot.lane.b32.xlu1 %v1694_v55, %s7649_s11  ;;  %2856 = vrot.lane.b32.xlu0 %v2678_v56, %s7651_s17  ;;  %v7104_v35 = vpop.f32.mrf.mxu0  ;;  %v2483_v63 = vsel %vm2474_vm2, %v2480_v29, %v2482_v53  ;;  %v13583_v56 = vrot.slane %v8241_v4, 1 }
 0x120   : > { %13827 = vst [vmem:[#allocation15_spill] sm:$0xff] %v8347_v14  ;;  %v8371_v24 = vshll.u32 %v8347_v14, 16  ;;  %v8374_v58 = vshrl.u32 %v8347_v14, 16  ;;  %v1009_v11 = vmax.f32 %v673_v10, 0.0  ;;  %v1182_v46 = vsel %vm1138_vm4, %v1177_v18, %v1181_v32 }
 0x121   : > { %v675_v8 = vpop.f32.mrf.mxu0  ;;  %v1892_v10 = vsel %vm1881_vm6, %v1889_v40, %v1891_v47  ;;  %v8392_v35 = vsel %vm2078_vm8, %v2100_v15, %v2104_v7  ;;  %v2234_v15 = vrot.slane %v8366_v38, 6  ;;  %v1696_v54 = vsel %vm1683_vm3, %v1693_v2, %v13583_v56 }
 0x122   : > { %v676_v13 = vadd.f32 %v7893_v41, %v675_v8  ;;  %13830 = vst [vmem:[#allocation18_spill] sm:$0xff] %v8392_v35  ;;  %v2106_v18 = vrot.slane %v8374_v58, 6  ;;  %v2290_v8 = vsel %vm2277_vm7, %v2287_v44, %v2289_v28  ;;  %v2107_v40 = vrot.slane %v8371_v24, 7 }
 0x123   : > { %1543 = vrot.lane.b32.xlu1 %v1182_v46, %s7650_s14  ;;  %2575 = vrot.lane.b32.xlu0 %v2483_v63, %s7649_s11  ;;  %v7105_v55 = vpop.f32.mrf.mxu0  ;;  %v326_v46 = vld [vmem:[%s7710_s29 + $0x230] sm:$0xff]  ;;  %v327_v63 = vld [vmem:[%s7710_s29 + $0x238] sm:$0xff]  ;;  %v2235_v44 = vrot.slane %v8358_v12, 7  ;;  %v13580_v45 = vrot.slane %v8347_v14, 4 }
 0x124   : > { %v1010_v60 = vmax.f32 %v676_v13, 0.0  ;;  %v8401_v13 = vor.u32 %v2680_v61, %v2679_v50  ;;  %v1189_v61 = vrot.slane %v8264_v23, 1 }
 0x125   : > { %v680_v29 = vpop.f32.mrf.mxu0  ;;  %7203 = vmatmul.mubr.msk.bf16.gmra.mxu0 %vm418_vm1, %v388_v59  ;;  %v8415_v59 = vsel %vm2078_vm8, %v8255_v3, %v8353_v62 }
 0x126   : > { %v8407_v55 = vpack.c.bf16 %v1010_v60, %v1009_v11  ;;  %v681_v36 = vadd.f32 %v7893_v41, %v680_v29  ;;  %7206 = vmatprep.mubr.msk.bf16.mxu0 %vm7647_vm0, %v13581_v1  ;;  %13832 = vst [vmem:[#allocation20_spill] sm:$0xff] %v8415_v59  ;;  %v2108_v11 = vor.u32 %v2107_v40, %v2106_v18 }
 0x127   : > { %1988 = vrot.lane.b32.xlu1 %v1892_v10, %s7651_s17  ;;  %2386 = vrot.lane.b32.xlu0 %v2290_v8, %s7650_s14  ;;  %v7108_v50 = vpop.f32.mrf.mxu0  ;;  %v389_v60 = vpack.c.bf16 %v327_v63, %v326_v46  ;;  %v1185_v29 = vor.u32 %v8213_v20, %v1181_v32  ;;  %v2682_v20 = vsel %vm2663_vm5, %v8317_v51, %v8401_v13  ;;  %v13584_v51 = vrot.slane %v8347_v14, 7 }
 0x128   : > { %13831 = vst [vmem:[#allocation19_spill] sm:$0xff] %v8407_v55  ;;  %v8429_v10 = vshll.u32 %v8407_v55, 16  ;;  %v8432_v8 = vshrl.u32 %v8407_v55, 16  ;;  %v1011_v23 = vmax.f32 %v681_v36, 0.0  ;;  %v8438_v32 = vor.u32 %v2235_v44, %v2234_v15  ;;  %v328_v15 = vld [vmem:[%s7710_s29 + $0x240] sm:$0xff]  ;;  %v329_v44 = vld [vmem:[%s7710_s29 + $0x248] sm:$0xff] }
 0x129   : > { %v683_v25 = vpop.f32.mrf.mxu0  ;;  %v1190_v46 = vsel %vm1138_vm4, %v1185_v29, %v1189_v61  ;;  %v13585_v36 = vrot.slane %v8291_v17, 6  ;;  %v8445_v40 = vsel %vm2078_vm8, %v2104_v7, %v2108_v11  ;;  %v2684_v29 = vrot.slane %v8371_v24, 5 }
 0x12a   : > { %v684_v18 = vadd.f32 %v7893_v41, %v683_v25  ;;  %13833 = vst [vmem:[#allocation21_spill] sm:$0xff] %v8438_v32  ;;  %13834 = vst [vmem:[#allocation22_spill] sm:$0xff] %v8445_v40  ;;  %v2110_v25 = vrot.slane %v8432_v8, 6  ;;  %v2111_v7 = vrot.slane %v8429_v10, 7 }
 0x12b   : > { %1793 = vrot.lane.b32.xlu1 %v1696_v54, %s7649_s11  ;;  %2858 = vrot.lane.b32.xlu0 %v2682_v20, %s7651_s17  ;;  %v7109_v2 = vpop.f32.mrf.mxu0  ;;  %v2485_v54 = vsel %vm2474_vm2, %v2482_v53, %v13580_v45  ;;  %v8468_v53 = vsel %vm2078_vm8, %v8353_v62, %v8438_v32 }
 0x12c   : > { %v1012_v63 = vmax.f32 %v684_v18, 0.0  ;;  %13836 = vst [vmem:[#allocation24_spill] sm:$0xff] %v8468_v53  ;;  %v2112_v45 = vor.u32 %v2111_v7, %v2110_v25  ;;  %v1197_v7 = vrot.slane %v8320_v30, 1 }
 0x12d   : > { %v688_v50 = vpop.f32.mrf.mxu0  ;;  %7207 = vmatmul.mubr.msk.bf16.gmra.mxu0 %vm418_vm1, %v389_v60  ;;  %v2683_v60 = vrot.slane %v8374_v58, 4 }
 0x12e   : > { %v8459_v18 = vpack.c.bf16 %v1012_v63, %v1011_v23  ;;  %v689_v20 = vadd.f32 %v7893_v41, %v688_v50  ;;  %7210 = vmatprep.mubr.msk.bf16.mxu0 %vm7647_vm0, %v13581_v1  ;;  %v390_v23 = vpack.c.bf16 %v329_v44, %v328_v15  ;;  %v1894_v50 = vsel %vm1881_vm6, %v1891_v47, %v13585_v36 }
 0x12f   : > { %1545 = vrot.lane.b32.xlu1 %v1190_v46, %s7650_s14  ;;  %2577 = vrot.lane.b32.xlu0 %v2485_v54, %s7649_s11  ;;  %v7112_v2 = vpop.f32.mrf.mxu0  ;;  %v13586_v1 = vrot.slane %v8291_v17, 1  ;;  %v2292_v54 = vsel %vm2277_vm7, %v2289_v28, %v13584_v51  ;;  %v8490_v47 = vor.u32 %v2684_v29, %v2683_v60  ;;  %v1193_v28 = vor.u32 %v8267_v52, %v1189_v61  ;;  %v330_v60 = vld [vmem:[%s7710_s29 + $0x250] sm:$0xff] }
 0x130   : > { %13835 = vst [vmem:[#allocation23_spill] sm:$0xff] %v8459_v18  ;;  %v8479_v56 = vshll.u32 %v8459_v18, 16  ;;  %v8482_v62 = vshrl.u32 %v8459_v18, 16  ;;  %v1013_v46 = vmax.f32 %v689_v20, 0.0  ;;  %v8496_v20 = vsel %vm2078_vm8, %v2108_v11, %v2112_v45 }
 0x131   : > { %v691_v63 = vpop.f32.mrf.mxu0  ;;  %13837 = vst [vmem:[#allocation25_spill] sm:$0xff] %v8496_v20  ;;  %v13587_v29 = vrot.slane %v8407_v55, 4  ;;  %v13838_v11 = vrot.slane %v8241_v4, 1  ;;  %v2686_v52 = vsel %vm2663_vm5, %v8401_v13, %v8490_v47  ;;  %v13839_v61 = vmov 0.0  }
 0x132   : > { %v692_v25 = vadd.f32 %v7893_v41, %v691_v63  ;;  %v2114_v2 = vrot.slane %v8482_v62, 6  ;;  %v13588_v51 = vrot.slane %v8347_v14, 6  ;;  %v13861_v32 = vrot.slane %v8459_v18, 7 }
 0x133   : > { %1990 = vrot.lane.b32.xlu1 %v1894_v50, %s7651_s17  ;;  %2388 = vrot.lane.b32.xlu0 %v2292_v54, %s7650_s14  ;;  %v7113_v15 = vpop.f32.mrf.mxu0  ;;  %v331_v50 = vld [vmem:[%s7710_s29 + $0x258] sm:$0xff]  ;;  %v2115_v54 = vrot.slane %v8479_v56, 7  ;;  %s6598_s29 = sshll.u32 %s14545_s27, 2 }
 0x134   : > { %v1014_v44 = vmax.f32 %v692_v25, 0.0  ;;  %v1698_v25 = vsel %vm1683_vm3, %v13838_v11, %v13586_v1  ;;  %v13840_v11 = vrot.slane %v8347_v14, 4  ;;  %s253_s7 = scalar_lea.vmem %s13574_s6, %s6598_s29 }
 0x135   : > { %v696_v63 = vpop.f32.mrf.mxu0  ;;  %7211 = vmatmul.mubr.msk.bf16.gmra.mxu0 %vm418_vm1, %v390_v23 }
 0x136   : > { %v8505_v15 = vpack.c.bf16 %v1014_v44, %v1013_v46  ;;  %v697_v30 = vadd.f32 %v7893_v41, %v696_v63  ;;  %7214 = vmatprep.mubr.msk.bf16.mxu0 %vm7647_vm0, %v13839_v61  ;;  %v2116_v46 = vor.u32 %v2115_v54, %v2114_v2  ;;  %v1198_v44 = vsel %vm1138_vm4, %v1193_v28, %v1197_v7 }
 0x137   : > { %1795 = vrot.lane.b32.xlu1 %v1698_v25, %s7649_s11  ;;  %2860 = vrot.lane.b32.xlu0 %v2686_v52, %s7651_s17  ;;  %v7116_v23 = vpop.f32.mrf.mxu0  ;;  %v391_v63 = vpack.c.bf16 %v331_v50, %v330_v60  ;;  %v2487_v13 = vsel %vm2474_vm2, %v13840_v11, %v13587_v29  ;;  %v2687_v60 = vrot.slane %v8432_v8, 4  ;;  %v2688_v50 = vrot.slane %v8429_v10, 5 }
 0x138   : > { %v8529_v25 = vshll.u32 %v8505_v15, 16  ;;  %v8532_v52 = vshrl.u32 %v8505_v15, 16  ;;  %v1015_v2 = vmax.f32 %v697_v30, 0.0  ;;  %v8540_v11 = vsel %vm2078_vm8, %v2112_v45, %v2116_v46  ;;  %v8556_v45 = vld [vmem:[%s13570_s2] ss:$0 sm:$0xff] }
 0x139   : > { %v699_v36 = vpop.f32.mrf.mxu0  ;;  %13841 = vst [vmem:[#allocation26_spill] sm:$0xff] %v8540_v11  ;;  %v1205_v30 = vrot.slane %v8371_v24, 1 }
 0x13a   : > { %v700_v28 = vadd.f32 %v7893_v41, %v699_v36  ;;  %v2118_v29 = vrot.slane %v8532_v52, 6  ;;  %v13842_v41 = vrot.slane %v8291_v17, 6 }
 0x13b   : > { %1547 = vrot.lane.b32.xlu1 %v1198_v44, %s7650_s14  ;;  %2579 = vrot.lane.b32.xlu0 %v2487_v13, %s7649_s11  ;;  %v7117_v54 = vpop.f32.mrf.mxu0  ;;  %v2119_v44 = vrot.slane %v8529_v25, 7  ;;  %v1209_v0 = vor.u32 %v8374_v58, %v1205_v30  ;;  %v13855_v58 = vrot.slane %v8407_v55, 1 }
 0x13c   : > { %v1016_v23 = vmax.f32 %v700_v28, 0.0  ;;  %v1896_v36 = vsel %vm1881_vm6, %v13842_v41, %v13588_v51  ;;  %v13844_v54 = vrot.slane %v8347_v14, 7  ;;  %v8564_v41 = vor.u32 %v2688_v50, %v2687_v60 }
 0x13d   : > { %v704_v1 = vpop.f32.mrf.mxu0  ;;  %7215 = vmatmul.mubr.msk.bf16.gmra.mxu0 %vm418_vm1, %v391_v63  ;;  %v13843_v63 = vrot.slane %v8407_v55, 7  ;;  %v2120_v51 = vor.u32 %v2119_v44, %v2118_v29  ;;  %v1201_v60 = vor.u32 %v8323_v34, %v1197_v7  ;;  %v13845_v44 = vrot.slane %v8347_v14, 1 }
 0x13e   : > { %v8551_v13 = vpack.c.bf16 %v1016_v23, %v1015_v2  ;;  %v705_v28 = vadd.f32 %v8556_v45, %v704_v1  ;;  %7266 = vmatprep.mubr.msk.bf16.mxu0 %vm7647_vm0, %v13839_v61  ;;  %v2948_v23 = vrot.slane %v8124_v57, 5  ;;  %v2947_v1 = vrot.slane %v8068_v5, 5 }
 0x13f   : > { %v2294_v53 = vsel %vm2277_vm7, %v13844_v54, %v13843_v63  ;;  %1992 = vrot.lane.b32.xlu1 %v1896_v36, %s7651_s17  ;;  %v7120_v2 = vpop.f32.mrf.mxu0  ;;  %v2690_v34 = vsel %vm2663_vm5, %v8490_v47, %v8564_v41  ;;  %v8595_v59 = vsel %vm2078_vm8, %v2116_v46, %v2120_v51  ;;  %v13848_v47 = vrot.slane %v8459_v18, 4 }
 0x140   : > { %2390 = vrot.lane.b32.xlu0 %v2294_v53, %s7650_s14  ;;  %v8576_v54 = vshll.u32 %v8551_v13, 16  ;;  %v8579_v53 = vshrl.u32 %v8551_v13, 16  ;;  %v1017_v36 = vmax.f32 %v705_v28, 0.0  ;;  %v13846_v2 = vrot.slane %v8291_v17, 1  ;;  %13847 = vst [vmem:[#allocation27_spill] sm:$0xff] %v8595_v59 }
 0x141   : > { %v707_v63 = vpop.f32.mrf.mxu0  ;;  %v2949_v50 = vsel %vm2946_vm9, %v2947_v1, %v2948_v23 }
 0x142   : > { %v708_v29 = vadd.f32 %v8556_v45, %v707_v63  ;;  %v1700_v24 = vsel %vm1683_vm3, %v13846_v2, %v13845_v44  ;;  %v1206_v63 = vsel %vm1138_vm4, %v1201_v60, %v1205_v30  ;;  %v2122_v16 = vrot.slane %v8579_v53, 6 }
 0x143   : > { %1797 = vrot.lane.b32.xlu1 %v1700_v24, %s7649_s11  ;;  %v7121_v7 = vpop.f32.mrf.mxu0  ;;  %v13849_v2 = vrot.slane %v8407_v55, 4  ;;  %v2123_v60 = vrot.slane %v8576_v54, 7 }
 0x144   : > { %2862 = vrot.lane.b32.xlu0 %v2690_v34, %s7651_s17  ;;  %v1018_v28 = vmax.f32 %v708_v29, 0.0  ;;  %v2692_v7 = vrot.slane %v8479_v56, 5 }
 0x145   : > { %v712_v44 = vpop.f32.mrf.mxu0  ;;  %7267 = vmatmul.mubr.msk.bf16.vlgmr.msra.gmra.mxu0 %vm3041_vm10, %v2949_v50  ;;  %v2489_v24 = vsel %vm2474_vm2, %v13849_v2, %v13848_v47  ;;  %v2691_v50 = vrot.slane %v8482_v62, 4  ;;  %v2950_v2 = vrot.slane %v8190_v48, 5  ;;  %v2124_v1 = vor.u32 %v2123_v60, %v2122_v16 }
 0x146   : > { %v8607_v29 = vpack.c.bf16 %v1018_v28, %v1017_v36  ;;  %v713_v46 = vadd.f32 %v8556_v45, %v712_v44  ;;  %7270 = vmatprep.mubr.msk.bf16.mxu0 %vm7647_vm0, %v13839_v61  ;;  %v13850_v36 = vrot.slane %v8407_v55, 6  ;;  %v13851_v28 = vrot.slane %v8347_v14, 6 }
 0x147   : > { %1549 = vrot.lane.b32.xlu1 %v1206_v63, %s7650_s14  ;;  %v7124_v47 = vpop.f32.mrf.mxu0  ;;  %v13852_v16 = vrot.slane %v8459_v18, 7  ;;  %v13853_v60 = vrot.slane %v8407_v55, 7  ;;  %v8635_v31 = vor.u32 %v2692_v7, %v2691_v50  ;;  %v8643_v12 = vsel %vm2078_vm8, %v2120_v51, %v2124_v1 }
 0x148   : > { %2581 = vrot.lane.b32.xlu0 %v2489_v24, %s7649_s11  ;;  %v1898_v44 = vsel %vm1881_vm6, %v13851_v28, %v13850_v36  ;;  %v8624_v33 = vshll.u32 %v8607_v29, 16  ;;  %v8627_v63 = vshrl.u32 %v8607_v29, 16  ;;  %v1019_v24 = vmax.f32 %v713_v46, 0.0  ;;  %13854 = vst [vmem:[#allocation28_spill] sm:$0xff] %v8643_v12 }
 0x149   : > { %v715_v34 = vpop.f32.mrf.mxu0  ;;  %v2296_v22 = vsel %vm2277_vm7, %v13853_v60, %v13852_v16  ;;  %v2951_v28 = vsel %vm2946_vm9, %v2948_v23, %v2950_v2  ;;  %v13596_v50 = vrot.slane %v8505_v15, 4  ;;  %v2694_v30 = vsel %vm2663_vm5, %v8564_v41, %v8635_v31 }
 0x14a   : > { %v716_v47 = vadd.f32 %v8556_v45, %v715_v34  ;;  %v1213_v34 = vrot.slane %v8429_v10, 1  ;;  %v2126_v38 = vrot.slane %v8627_v63, 6  ;;  %v13856_v10 = vrot.slane %v8347_v14, 1 }
 0x14b   : > { %1994 = vrot.lane.b32.xlu1 %v1898_v44, %s7651_s17  ;;  %v7125_v36 = vpop.f32.mrf.mxu0  ;;  %v2952_v60 = vrot.slane %v8241_v4, 5  ;;  %v13857_v41 = vrot.slane %v8459_v18, 4  ;;  %v13886_v40 = vrot.slane %v8607_v29, 4  ;;  %v13892_v35 = vrot.slane %v8607_v29, 7 }
 0x14c   : > { %2392 = vrot.lane.b32.xlu0 %v2296_v22, %s7650_s14  ;;  %v1020_v46 = vmax.f32 %v716_v47, 0.0  ;;  %v2127_v22 = vrot.slane %v8624_v33, 7  ;;  %v1702_v51 = vsel %vm1683_vm3, %v13856_v10, %v13855_v58  ;;  %v1214_v47 = vsel %vm1138_vm4, %v1209_v0, %v1213_v34 }
 0x14d   : > { %v720_v16 = vpop.f32.mrf.mxu0  ;;  %7271 = vmatmul.mubr.msk.bf16.gmra.mxu0 %vm3041_vm10, %v2951_v28  ;;  %v13600_v36 = vrot.slane %v8459_v18, 6  ;;  %v2695_v10 = vrot.slane %v8532_v52, 4 }
 0x14e   : > { %v8649_v7 = vpack.c.bf16 %v1020_v46, %v1019_v24  ;;  %v721_v23 = vadd.f32 %v8556_v45, %v720_v16  ;;  %7274 = vmatprep.mubr.msk.bf16.mxu0 %vm7647_vm0, %v13839_v61  ;;  %v2128_v24 = vor.u32 %v2127_v22, %v2126_v38  ;;  %v2491_v46 = vsel %vm2474_vm2, %v13857_v41, %v13596_v50 }
 0x14f   : > { %1799 = vrot.lane.b32.xlu1 %v1702_v51, %s7649_s11  ;;  %v7128_v44 = vpop.f32.mrf.mxu0  ;;  %v2696_v51 = vrot.slane %v8529_v25, 5  ;;  %v2953_v41 = vsel %vm2946_vm9, %v2950_v2, %v2952_v60  ;;  %v13860_v2 = vrot.slane %v8505_v15, 7 }
 0x150   : > { %2864 = vrot.lane.b32.xlu0 %v2694_v30, %s7651_s17  ;;  %v8674_v58 = vshll.u32 %v8649_v7, 16  ;;  %v8677_v38 = vshrl.u32 %v8649_v7, 16  ;;  %v1021_v0 = vmax.f32 %v721_v23, 0.0  ;;  %v8686_v50 = vsel %vm2078_vm8, %v2124_v1, %v2128_v24 }
 0x151   : > { %v723_v28 = vpop.f32.mrf.mxu0  ;;  %13858 = vst [vmem:[#allocation29_spill] sm:$0xff] %v8686_v50  ;;  %v8705_v27 = vor.u32 %v2696_v51, %v2695_v10  ;;  %v1221_v51 = vrot.slane %v8479_v56, 1 }
 0x152   : > { %v724_v22 = vadd.f32 %v8556_v45, %v723_v28  ;;  %v2130_v16 = vrot.slane %v8677_v38, 6  ;;  %v13859_v28 = vrot.slane %v8407_v55, 6 }
 0x153   : > { %1551 = vrot.lane.b32.xlu1 %v1214_v47, %s7650_s14  ;;  %v7129_v30 = vpop.f32.mrf.mxu0  ;;  %v1225_v59 = vor.u32 %v8482_v62, %v1221_v51  ;;  %v13873_v62 = vrot.slane %v8459_v18, 1 }
 0x154   : > { %2583 = vrot.lane.b32.xlu0 %v2491_v46, %s7649_s11  ;;  %v1022_v44 = vmax.f32 %v724_v22, 0.0  ;;  %v1900_v47 = vsel %vm1881_vm6, %v13859_v28, %v13600_v36  ;;  %v13601_v46 = vrot.slane %v8459_v18, 1  ;;  %v2131_v22 = vrot.slane %v8674_v58, 7 }
 0x155   : > { %v728_v23 = vpop.f32.mrf.mxu0  ;;  %7275 = vmatmul.mubr.msk.bf16.gmra.mxu0 %vm3041_vm10, %v2953_v41  ;;  %v2298_v41 = vsel %vm2277_vm7, %v13861_v32, %v13860_v2  ;;  %v13862_v32 = vrot.slane %v8407_v55, 1 }
 0x156   : > { %v8697_v30 = vpack.c.bf16 %v1022_v44, %v1021_v0  ;;  %v729_v1 = vadd.f32 %v8556_v45, %v728_v23  ;;  %7278 = vmatprep.mubr.msk.bf16.mxu0 %vm7647_vm0, %v13839_v61  ;;  %v2132_v0 = vor.u32 %v2131_v22, %v2130_v16  ;;  %v2954_v44 = vrot.slane %v8291_v17, 5 }
 0x157   : > { %1996 = vrot.lane.b32.xlu1 %v1900_v47, %s7651_s17  ;;  %v7132_v28 = vpop.f32.mrf.mxu0  ;;  %v1217_v23 = vor.u32 %v8432_v8, %v1213_v34  ;;  %v1704_v10 = vsel %vm1683_vm3, %v13862_v32, %v13601_v46  ;;  %v2698_v8 = vsel %vm2663_vm5, %v8635_v31, %v8705_v27  ;;  %v13602_v34 = vrot.slane %v8551_v13, 4 }
 0x158   : > { %2394 = vrot.lane.b32.xlu0 %v2298_v41, %s7650_s14  ;;  %v8720_v2 = vshll.u32 %v8697_v30, 16  ;;  %v8723_v47 = vshrl.u32 %v8697_v30, 16  ;;  %v1023_v16 = vmax.f32 %v729_v1, 0.0  ;;  %v2955_v28 = vsel %vm2946_vm9, %v2952_v60, %v2954_v44 }
 0x159   : > { %v731_v36 = vpop.f32.mrf.mxu0  ;;  %v8734_v32 = vsel %vm2078_vm8, %v2128_v24, %v2132_v0  ;;  %v1222_v31 = vsel %vm1138_vm4, %v1217_v23, %v1221_v51  ;;  %v13865_v24 = vrot.slane %v8505_v15, 4  ;;  %v2699_v23 = vrot.slane %v8579_v53, 4 }
 0x15a   : > { %v732_v22 = vadd.f32 %v8556_v45, %v731_v36  ;;  %13863 = vst [vmem:[#allocation30_spill] sm:$0xff] %v8734_v32  ;;  %v2134_v1 = vrot.slane %v8723_v47, 6  ;;  %v2956_v46 = vrot.slane %v8347_v14, 5 }
 0x15b   : > { %1801 = vrot.lane.b32.xlu1 %v1704_v10, %s7649_s11  ;;  %v7133_v56 = vpop.f32.mrf.mxu0  ;;  %v2493_v60 = vsel %vm2474_vm2, %v13865_v24, %v13602_v34  ;;  %v13869_v34 = vrot.slane %v8505_v15, 7 }
 0x15c   : > { %2866 = vrot.lane.b32.xlu0 %v2698_v8, %s7651_s17  ;;  %v1024_v41 = vmax.f32 %v732_v22, 0.0  ;;  %v2135_v8 = vrot.slane %v8720_v2, 7  ;;  %v2957_v12 = vsel %vm2946_vm9, %v2954_v44, %v2956_v46  ;;  %v13872_v44 = vrot.slane %v8505_v15, 1 }
 0x15d   : > { %v736_v36 = vpop.f32.mrf.mxu0  ;;  %7279 = vmatmul.mubr.msk.bf16.gmra.mxu0 %vm3041_vm10, %v2955_v28  ;;  %v2700_v28 = vrot.slane %v8576_v54, 5 }
 0x15e   : > { %v8742_v56 = vpack.c.bf16 %v1024_v41, %v1023_v16  ;;  %v8744_v22 = vpop.permute.xlu0 %2639  ;;  %7282 = vmatprep.mubr.msk.bf16.mxu0 %vm7647_vm0, %v13839_v61  ;;  %v2136_v41 = vor.u32 %v2135_v8, %v2134_v1  ;;  %v737_v10 = vadd.f32 %v8556_v45, %v736_v36  ;;  %v13866_v1 = vrot.slane %v8505_v15, 6 }
 0x15f   : > { %13864 = vst [vmem:[#allocation31_spill] sm:$0xff] %v8744_v22  ;;  %1553 = vrot.lane.b32.xlu1 %v1222_v31, %s7650_s14  ;;  %v7136_v16 = vpop.f32.mrf.mxu0  ;;  %v8759_v22 = vpop.permute.xlu1 %1783  ;;  %v13867_v36 = vrot.slane %v8459_v18, 6  ;;  %v8781_v32 = vor.u32 %v2700_v28, %v2699_v23 }
 0x160   : > { %2585 = vrot.lane.b32.xlu0 %v2493_v60, %s7649_s11  ;;  %v8763_v42 = vshll.u32 %v8742_v56, 16  ;;  %v8766_v6 = vshrl.u32 %v8742_v56, 16  ;;  %v13868_v16 = vrot.slane %v8551_v13, 7 }
 0x161   : > { %v739_v24 = vpop.f32.mrf.mxu0  ;;  %v1902_v8 = vsel %vm1881_vm6, %v13867_v36, %v13866_v1  ;;  %v1229_v1 = vrot.slane %v8529_v25, 1  ;;  %v1706_v25 = vsel %vm1683_vm3, %v13873_v62, %v13872_v44  ;;  %v2702_v51 = vsel %vm2663_vm5, %v8705_v27, %v8781_v32 }
 0x162   : > { %v8768_v31 = vpop.permute.xlu0 %1535  ;;  %v740_v60 = vadd.f32 %v8556_v45, %v739_v24  ;;  %v2300_v3 = vsel %vm2277_vm7, %v13869_v34, %v13868_v16  ;;  %v1025_v24 = vmax.f32 %v737_v10, 0.0  ;;  %v8792_v34 = vsel %vm2078_vm8, %v2132_v0, %v2136_v41 }
 0x163   : > { %1998 = vrot.lane.b32.xlu1 %v1902_v8, %s7651_s17  ;;  %v7137_v50 = vpop.f32.mrf.mxu0  ;;  %13870 = vst [vmem:[#allocation32_spill] sm:$0xff] %v8792_v34  ;;  %v2138_v23 = vrot.slane %v8766_v6, 6  ;;  %v1230_v44 = vsel %vm1138_vm4, %v1225_v59, %v1229_v1 }
 0x164   : > { %2396 = vrot.lane.b32.xlu0 %v2300_v3, %s7650_s14  ;;  %v1026_v36 = vmax.f32 %v740_v60, 0.0  ;;  %v2139_v3 = vrot.slane %v8763_v42, 7  ;;  %v2958_v60 = vrot.slane %v8407_v55, 5 }
 0x165   : > { %v8788_v11 = vpop.permute.xlu1 %1980  ;;  %v744_v14 = vpop.f32.mrf.mxu0  ;;  %7283 = vmatmul.mubr.msk.bf16.gmra.mxu0 %vm3041_vm10, %v2957_v12 }
 0x166   : > { %v8796_v50 = vpop.permute.xlu0 %2922  ;;  %7286 = vmatprep.mubr.msk.bf16.mxu0 %vm7647_vm0, %v13839_v61  ;;  %v8811_v10 = vor.u32 %v2139_v3, %v2138_v23  ;;  %v745_v28 = vadd.f32 %v8556_v45, %v744_v14  ;;  %v8815_v8 = vpack.c.bf16 %v1026_v36, %v1025_v24  ;;  %v13874_v3 = vrot.slane %v8607_v29, 4 }
 0x167   : > { %13871 = vst [vmem:[#allocation33_spill] sm:$0xff] %v8796_v50  ;;  %1803 = vrot.lane.b32.xlu1 %v1706_v25, %s7649_s11  ;;  %v7140_v0 = vpop.f32.mrf.mxu0  ;;  %v13875_v14 = vrot.slane %v8551_v13, 4  ;;  %v2703_v36 = vrot.slane %v8627_v63, 4  ;;  %v2959_v62 = vsel %vm2946_vm9, %v2956_v46, %v2958_v60  ;;  %v13877_v46 = vrot.slane %v8551_v13, 6 }
 0x168   : > { %2868 = vrot.lane.b32.xlu0 %v2702_v51, %s7651_s17  ;;  %v2704_v51 = vrot.slane %v8624_v33, 5  ;;  %v1027_v0 = vmax.f32 %v745_v28, 0.0 }
 0x169   : > { %v8817_v16 = vpop.permute.xlu1 %1785  ;;  %v747_v27 = vpop.f32.mrf.mxu0  ;;  %v2495_v24 = vsel %vm2474_vm2, %v13875_v14, %v13874_v3 }
 0x16a   : > { %v8822_v12 = vpop.permute.xlu0 %2376  ;;  %v748_v23 = vadd.f32 %v8556_v45, %v747_v27  ;;  %v8837_v27 = vsel %vm2078_vm8, %v2136_v41, %v8811_v10  ;;  %v13878_v41 = vrot.slane %v8505_v15, 6 }
 0x16b   : > { %1555 = vrot.lane.b32.xlu1 %v1230_v44, %s7650_s14  ;;  %v7141_v59 = vpop.f32.mrf.mxu0  ;;  %13876 = vst [vmem:[#allocation34_spill] sm:$0xff] %v8837_v27  ;;  %v8844_v44 = vshll.u32 %v8815_v8, 16  ;;  %v8860_v27 = vor.u32 %v2704_v51, %v2703_v36  ;;  %v13882_v51 = vrot.slane %v8551_v13, 1 }
 0x16c   : > { %2587 = vrot.lane.b32.xlu0 %v2495_v24, %s7649_s11  ;;  %v1028_v25 = vmax.f32 %v748_v23, 0.0  ;;  %v8847_v24 = vshrl.u32 %v8815_v8, 16  ;;  %v1904_v23 = vsel %vm1881_vm6, %v13878_v41, %v13877_v46  ;;  %v13879_v59 = vrot.slane %v8607_v29, 7 }
 0x16d   : > { %v8839_v50 = vpop.permute.xlu1 %1537  ;;  %v752_v3 = vpop.f32.mrf.mxu0  ;;  %7287 = vmatmul.mubr.msk.bf16.gmra.mxu0 %vm3041_vm10, %v2959_v62  ;;  %v13880_v62 = vrot.slane %v8551_v13, 7  ;;  %v2960_v46 = vrot.slane %v8459_v18, 5  ;;  %v1233_v41 = vor.u32 %v8532_v52, %v1229_v1  ;;  %v2706_v52 = vsel %vm2663_vm5, %v8781_v32, %v8860_v27 }
 0x16e   : > { %v753_v28 = vadd.f32 %v8556_v45, %v752_v3  ;;  %7290 = vmatprep.mubr.msk.bf16.mxu0 %vm7647_vm0, %v13839_v61  ;;  %v8866_v34 = vpack.c.bf16 %v1028_v25, %v1027_v0  ;;  %v8868_v55 = vpop.permute.xlu0 %2378  ;;  %v2142_v25 = vrot.slane %v8847_v24, 6  ;;  %v2143_v0 = vrot.slane %v8844_v44, 7 }
 0x16f   : > { %v2302_v14 = vsel %vm2277_vm7, %v13880_v62, %v13879_v59  ;;  %2000 = vrot.lane.b32.xlu1 %v1904_v23, %s7651_s17  ;;  %v7144_v3 = vpop.f32.mrf.mxu0  ;;  %v13883_v59 = vrot.slane %v8505_v15, 1  ;;  %v13613_v1 = vrot.slane %v8649_v7, 4 }
 0x170   : > { %2398 = vrot.lane.b32.xlu0 %v2302_v14, %s7650_s14  ;;  %13881 = vst [vmem:[#allocation35_spill] sm:$0xff] %v8866_v34  ;;  %v1237_v14 = vrot.slane %v8576_v54, 1  ;;  %v1029_v62 = vmax.f32 %v753_v28, 0.0  ;;  %v2961_v54 = vsel %vm2946_vm9, %v2958_v60, %v2960_v46  ;;  %v8891_v18 = vshll.u32 %v8866_v34, 16 }
 0x171   : > { %v8872_v20 = vpop.permute.xlu1 %1982  ;;  %v755_v36 = vpop.f32.mrf.mxu0  ;;  %v1708_v23 = vsel %vm1683_vm3, %v13883_v59, %v13882_v51  ;;  %v8894_v28 = vshrl.u32 %v8866_v34, 16  ;;  %v2497_v4 = vsel %vm2474_vm2, %v13886_v40, %v13613_v1 }
 0x172   : > { %v756_v3 = vadd.f32 %v8556_v45, %v755_v36  ;;  %v1238_v32 = vsel %vm1138_vm4, %v1233_v41, %v1237_v14  ;;  %v2707_v41 = vrot.slane %v8677_v38, 4 }
 0x173   : > { %1805 = vrot.lane.b32.xlu1 %v1708_v23, %s7649_s11  ;;  %v7145_v51 = vpop.f32.mrf.mxu0  ;;  %v2146_v40 = vrot.slane %v8894_v28, 6 }
 0x174   : > { %2870 = vrot.lane.b32.xlu0 %v2706_v52, %s7651_s17  ;;  %v1030_v59 = vmax.f32 %v756_v3, 0.0  ;;  %v2144_v52 = vor.u32 %v2143_v0, %v2142_v25 }
 0x175   : > { %v8896_v36 = vpop.permute.xlu1 %1787  ;;  %v8898_v17 = vpop.permute.xlu0 %2380  ;;  %7291 = vmatmul.mubr.msk.bf16.gmra.mxu0 %vm3041_vm10, %v2961_v54  ;;  %v2708_v54 = vrot.slane %v8674_v58, 5 }
 0x176   : > { %v8904_v60 = vpack.c.bf16 %v1030_v59, %v1029_v62  ;;  %v8906_v51 = vpop.f32.mrf.mxu0  ;;  %7294 = vmatprep.mubr.msk.bf16.mxu0 %vm7647_vm0, %v13839_v61  ;;  %v8921_v25 = vsel %vm2078_vm8, %v8811_v10, %v2144_v52  ;;  %v2147_v59 = vrot.slane %v8891_v18, 7  ;;  %v13889_v10 = vrot.slane %v8607_v29, 6 }
 0x177   : > { %13885 = vst [vmem:[#allocation37_spill] sm:$0xff] %v8906_v51  ;;  %1557 = vrot.lane.b32.xlu1 %v1238_v32, %s7650_s14  ;;  %13887 = vst [vmem:[#allocation38_spill] sm:$0xff] %v8921_v25  ;;  %v13891_v25 = vrot.slane %v8649_v7, 7  ;;  %v1709_v51 = vrot.slane %v8607_v29, 1  ;;  %v8947_v26 = vor.u32 %v2708_v54, %v2707_v41  ;;  %v3389_v41 = vsel %vm3041_vm10, %v8088_v49, %v8822_v12 }
 0x178   : > { %13884 = vst [vmem:[#allocation36_spill] sm:$0xff] %v8904_v60  ;;  %2589 = vrot.lane.b32.xlu0 %v2497_v4, %s7649_s11  ;;  %v7148_v0 = vpop.f32.mrf.mxu0  ;;  %v8929_v23 = vshll.u32 %v8904_v60, 16  ;;  %v8932_v32 = vshrl.u32 %v8904_v60, 16  ;;  %v13893_v60 = vrot.slane %v8505_v15, 5  ;;  %v13617_v12 = vrot.slane %v8697_v30, 4 }
 0x179   : > { %v8926_v1 = vpop.permute.xlu1 %1539  ;;  %v2853_v3 = vpop.permute.xlu0 %2852  ;;  %v13890_v0 = vrot.slane %v8551_v13, 6  ;;  %v2304_v48 = vsel %vm2277_vm7, %v13892_v35, %v13891_v25  ;;  %v1241_v35 = vor.u32 %v8579_v53, %v1237_v14  ;;  %v2148_v25 = vor.u32 %v2147_v59, %v2146_v40 }
 0x17a   : > { %v8934_v4 = vpop.f32.mrf.mxu0  ;;  %v13894_v53 = vrot.slane %v8551_v13, 1  ;;  %v2710_v49 = vsel %vm2663_vm5, %v8860_v27, %v8947_v26 }
 0x17b   : > { %13888 = vst [vmem:[#allocation39_spill] sm:$0xff] %v8934_v4  ;;  %v1906_v62 = vsel %vm1881_vm6, %v13890_v0, %v13889_v10  ;;  %v3043_v10 = vsel %vm3041_vm10, %v7926_v9, %v8768_v31  ;;  %v2963_v4 = vsel %vm2946_vm9, %v2960_v46, %v13893_v60  ;;  %v2150_v9 = vrot.slane %v8932_v32, 6 }
 0x17c   : > { %2002 = vrot.lane.b32.xlu1 %v1906_v62, %s7651_s17  ;;  %2400 = vrot.lane.b32.xlu0 %v2304_v48, %s7650_s14  ;;  %v7149_v0 = vpop.f32.mrf.mxu0  ;;  %v1245_v48 = vrot.slane %v8624_v33, 1  ;;  %v2151_v31 = vrot.slane %v8929_v23, 7  ;;  %v1710_v14 = vsel %vm1683_vm3, %v13894_v53, %v1709_v51  ;;  %v3142_v60 = vsel %vm3140_vm11, %v3043_v10, %v8759_v22 }
 0x17d   : > { %v2570_v54 = vpop.permute.xlu1 %2569  ;;  %v2572_v62 = vpop.permute.xlu0 %2571  ;;  %7295 = vmatmul.mubr.msk.bf16.gmra.mxu0 %vm3041_vm10, %v2963_v4  ;;  %v3241_v4 = vsel %vm3239_vm12, %v3142_v60, %v8788_v11  ;;  %v1907_v11 = vrot.slane %v8649_v7, 6 }
 0x17e   : > { %v3535_v0 = vsel %vm3140_vm11, %v3389_v41, %v2570_v54  ;;  %v768_v46 = vpop.f32.mrf.mxu0  ;;  %7298 = vmatprep.mubr.msk.bf16.mxu0 %vm7647_vm0, %v13839_v61  ;;  %v2964_v41 = vrot.slane %v8551_v13, 5  ;;  %v8987_v54 = vsel %vm2078_vm8, %v2144_v52, %v2148_v25  ;;  %v8989_v53 = vor.u32 %v2151_v31, %v2150_v9 }
 0x17f   : > { %v769_v40 = vadd.f32 %v8556_v45, %v768_v46  ;;  %v3631_v59 = vsel %vm3239_vm12, %v3535_v0, %v2853_v3  ;;  %v1246_v3 = vsel %vm1138_vm4, %v1241_v35, %v1245_v48  ;;  %v13895_v46 = vrot.slane %v8649_v7, 4 }
 0x180   : > { %1807 = vrot.lane.b32.xlu1 %v1710_v14, %s7649_s11  ;;  %2872 = vrot.lane.b32.xlu0 %v2710_v49, %s7651_s17  ;;  %v7152_v27 = vpop.f32.mrf.mxu0  ;;  %v2305_v9 = vrot.slane %v8697_v30, 7  ;;  %v2711_v31 = vrot.slane %v8723_v47, 4  ;;  %v2712_v14 = vrot.slane %v8720_v2, 5  ;;  %v3045_v35 = vsel %vm3041_vm10, %v7959_v37, %v8839_v50 }
 0x181   : > { %4099 = vmatprep.mubr.bf16.mxu1 %v3631_v59  ;;  %v8991_v22 = vpop.permute.xlu1 %1984  ;;  %v8993_v10 = vpop.permute.xlu0 %2382  ;;  %v2499_v52 = vsel %vm2474_vm2, %v13895_v46, %v13617_v12  ;;  %v1033_v49 = vmax.f32 %v769_v40, 0.0  ;;  %v3392_v59 = vsel %vm3041_vm10, %v8182_v19, %v8868_v55  ;;  %v13896_v27 = vrot.slane %v8505_v15, 5 }
 0x182   : > { %4100 = vmatmul.mubr.bf16.vlgmr.msra.gmra.mxu1 %v3241_v4  ;;  %v771_v0 = vpop.f32.mrf.mxu0  ;;  %v3537_v40 = vsel %vm3140_vm11, %v3392_v59, %v2572_v62  ;;  %v9026_v37 = vsel %vm2078_vm8, %v2148_v25, %v8989_v53  ;;  %v13898_v50 = vrot.slane %v8607_v29, 6  ;;  %v928_v25 = vpop.f32.mrf.mxu1 }
 0x183   : > { %v772_v60 = vadd.f32 %v8556_v45, %v771_v0  ;;  %v2965_v46 = vsel %vm2946_vm9, %v13896_v27, %v2964_v41  ;;  %13897 = vst [vmem:[#allocation40_spill] sm:$0xff] %v9026_v37 }
 0x184   : > { %1559 = vrot.lane.b32.xlu1 %v1246_v3, %s7650_s14  ;;  %2591 = vrot.lane.b32.xlu0 %v2499_v52, %s7649_s11  ;;  %v7153_v4 = vpop.f32.mrf.mxu0  ;;  %v13620_v52 = vrot.slane %v8649_v7, 1  ;;  %v1908_v62 = vsel %vm1881_vm6, %v13898_v50, %v1907_v11  ;;  %v7232_v50 = vpop.f32.mrf.mxu1 }
 0x185   : > { %v1034_v0 = vmax.f32 %v772_v60, 0.0  ;;  %v9020_v12 = vpop.permute.xlu1 %1789  ;;  %v2855_v3 = vpop.permute.xlu0 %2854  ;;  %7299 = vmatmul.mubr.msk.bf16.gmra.mxu0 %vm3041_vm10, %v2965_v46  ;;  %v13899_v60 = vrot.slane %v8649_v7, 7  ;;  %v9039_v4 = vor.u32 %v2712_v14, %v2711_v31  ;;  %v13621_v14 = vrot.slane %v8607_v29, 5 }
 0x186   : > { %v776_v19 = vpop.f32.mrf.mxu0  ;;  %v3634_v55 = vsel %vm3239_vm12, %v3537_v40, %v2855_v3  ;;  %7302 = vmatprep.mubr.msk.bf16.mxu0 %vm7647_vm0, %v13839_v61  ;;  %v3144_v40 = vsel %vm3140_vm11, %v3045_v35, %v8817_v16  ;;  %v13618_v35 = vrot.slane %v8742_v56, 4  ;;  %v13901_v50 = vrot.slane %v8697_v30, 4 }
 0x187   : > { %v2306_v59 = vsel %vm2277_vm7, %v13899_v60, %v2305_v9  ;;  %v9043_v27 = vpack.c.bf16 %v1034_v0, %v1033_v49  ;;  %v777_v46 = vadd.f32 %v8556_v45, %v776_v19  ;;  %4107 = vmatprep.mubr.bf16.mxu1 %v3634_v55  ;;  %v3244_v31 = vsel %vm3239_vm12, %v3144_v40, %v8872_v20  ;;  %v931_v55 = vpop.f32.mrf.mxu1 }
 0x188   : > { %2004 = vrot.lane.b32.xlu1 %v1908_v62, %s7651_s17  ;;  %2402 = vrot.lane.b32.xlu0 %v2306_v59, %s7650_s14  ;;  %v7156_v3 = vpop.f32.mrf.mxu0  ;;  %v1249_v0 = vor.u32 %v8627_v63, %v1245_v48  ;;  %v13619_v19 = vrot.slane %v8674_v58, 1  ;;  %v1712_v20 = vsel %vm1683_vm3, %v1709_v51, %v13620_v52  ;;  %v2714_v33 = vsel %vm2663_vm5, %v8947_v26, %v9039_v4 }
 0x189   : > { %13900 = vst [vmem:[#allocation41_spill] sm:$0xff] %v9043_v27  ;;  %v9053_v60 = vpop.permute.xlu1 %1541  ;;  %v2574_v49 = vpop.permute.xlu0 %2573  ;;  %v1035_v62 = vmax.f32 %v777_v46, 0.0  ;;  %v2967_v48 = vsel %vm2946_vm9, %v2964_v41, %v13621_v14  ;;  %v1909_v41 = vrot.slane %v8697_v30, 6  ;;  %v929_v52 = vadd.f32 %v8556_v45, %v928_v25 }
 0x18a   : > { %4108 = vmatmul.mubr.bf16.gmra.mxu1 %v3244_v31  ;;  %v779_v16 = vpop.f32.mrf.mxu0  ;;  %v7233_v51 = vpop.f32.mrf.mxu1  ;;  %v1254_v31 = vsel %vm1138_vm4, %v1249_v0, %v13619_v19  ;;  %v3047_v0 = vsel %vm3041_vm10, %v8018_v21, %v8926_v1  ;;  %v2968_v19 = vrot.slane %v8649_v7, 5 }
 0x18b   : > { %v780_v59 = vadd.f32 %v8556_v45, %v779_v16  ;;  %v2501_v16 = vsel %vm2474_vm2, %v13901_v50, %v13618_v35  ;;  %v2715_v51 = vrot.slane %v8766_v6, 4  ;;  %v3395_v50 = vsel %vm3041_vm10, %v8228_v39, %v8898_v17 }
 0x18c   : > { %1809 = vrot.lane.b32.xlu1 %v1712_v20, %s7649_s11  ;;  %2874 = vrot.lane.b32.xlu0 %v2714_v33, %s7651_s17  ;;  %v7157_v63 = vpop.f32.mrf.mxu0  ;;  %v13625_v20 = vrot.slane %v8742_v56, 7  ;;  %v936_v33 = vpop.f32.mrf.mxu1  ;;  %v3539_v1 = vsel %vm3140_vm11, %v3395_v50, %v2574_v49  ;;  %v1910_v17 = vsel %vm1881_vm6, %v1907_v11, %v1909_v41  ;;  %v3146_v49 = vsel %vm3140_vm11, %v3047_v0, %v8896_v36 }
 0x18d   : > { %v1036_v40 = vmax.f32 %v780_v59, 0.0  ;;  %v9074_v3 = vpop.permute.xlu1 %1986  ;;  %v9076_v46 = vpop.permute.xlu0 %2384  ;;  %7303 = vmatmul.mubr.msk.bf16.gmra.mxu0 %vm3041_vm10, %v2967_v48  ;;  %v2716_v59 = vrot.slane %v8763_v42, 5  ;;  %v3247_v50 = vsel %vm3239_vm12, %v3146_v49, %v8991_v22  ;;  %v13903_v36 = vrot.slane %v8607_v29, 5 }
 0x18e   : > { %v784_v26 = vpop.f32.mrf.mxu0  ;;  %7306 = vmatprep.mubr.msk.bf16.mxu0 %vm7647_vm0, %v13839_v61  ;;  %v7236_v21 = vpop.f32.mrf.mxu1  ;;  %v2308_v25 = vsel %vm2277_vm7, %v2305_v9, %v13625_v20  ;;  %v1073_v0 = vmax.f32 %v929_v52, 0.0  ;;  %v13623_v52 = vrot.slane %v8720_v2, 1 }
 0x18f   : > { %v9095_v63 = vpack.c.bf16 %v1036_v40, %v1035_v62  ;;  %v785_v48 = vadd.f32 %v8556_v45, %v784_v26  ;;  %v932_v26 = vadd.f32 %v8556_v45, %v931_v55  ;;  %v9128_v11 = vor.u32 %v2716_v59, %v2715_v51 }
 0x190   : > { %1561 = vrot.lane.b32.xlu1 %v1254_v31, %s7650_s14  ;;  %2593 = vrot.lane.b32.xlu0 %v2501_v16, %s7649_s11  ;;  %v7160_v35 = vpop.f32.mrf.mxu0  ;;  %v13622_v31 = vrot.slane %v8697_v30, 1  ;;  %v2969_v9 = vsel %vm2946_vm9, %v13903_v36, %v2968_v19  ;;  %v13904_v51 = vrot.slane %v8649_v7, 1 }
 0x191   : > { %13902 = vst [vmem:[#allocation42_spill] sm:$0xff] %v9095_v63  ;;  %v9107_v62 = vpop.permute.xlu1 %1791  ;;  %v2857_v40 = vpop.permute.xlu0 %2856  ;;  %v1037_v55 = vmax.f32 %v785_v48, 0.0  ;;  %v1074_v22 = vmax.f32 %v932_v26, 0.0 }
 0x192   : > { %v787_v14 = vpop.f32.mrf.mxu0  ;;  %v3637_v39 = vsel %vm3239_vm12, %v3539_v1, %v2857_v40  ;;  %v939_v35 = vpop.f32.mrf.mxu1 }
 0x193   : > { %v788_v16 = vadd.f32 %v8556_v45, %v787_v14  ;;  %4115 = vmatprep.mubr.bf16.mxu1 %v3637_v39  ;;  %v1714_v39 = vsel %vm1683_vm3, %v13904_v51, %v13622_v31  ;;  %v9162_v36 = vpack.c.bf16 %v1074_v22, %v1073_v0  ;;  %v2719_v0 = vrot.slane %v8847_v24, 4 }
 0x194   : > { %2006 = vrot.lane.b32.xlu1 %v1910_v17, %s7651_s17  ;;  %2404 = vrot.lane.b32.xlu0 %v2308_v25, %s7650_s14  ;;  %v7161_v21 = vpop.f32.mrf.mxu0  ;;  %v7237_v14 = vpop.f32.mrf.mxu1  ;;  %v13905_v17 = vrot.slane %v8674_v58, 1  ;;  %v13624_v58 = vrot.slane %v8815_v8, 4  ;;  %v3398_v31 = vsel %vm3041_vm10, %v8281_v43, %v8993_v10 }
 0x195   : > { %4116 = vmatmul.mubr.bf16.gmra.mxu1 %v3247_v50  ;;  %v1038_v48 = vmax.f32 %v788_v16, 0.0  ;;  %v9136_v1 = vpop.permute.xlu1 %1543  ;;  %v2576_v40 = vpop.permute.xlu0 %2575  ;;  %7307 = vmatmul.mubr.msk.bf16.gmra.mxu0 %vm3041_vm10, %v2969_v9  ;;  %v2718_v50 = vsel %vm2663_vm5, %v9039_v4, %v9128_v11  ;;  %v2970_v21 = vrot.slane %v8697_v30, 5  ;;  %13907 = vst [vmem:[#allocation44_spill] sm:$0xff] %v9162_v36  ;;  %v940_v4 = vadd.f32 %v8556_v45, %v939_v35 }
 0x196   : > { %v792_v59 = vpop.f32.mrf.mxu0  ;;  %v1257_v25 = vor.u32 %v8677_v38, %v13905_v17  ;;  %7310 = vmatprep.mubr.msk.bf16.mxu0 %vm7647_vm0, %v13839_v61  ;;  %v9150_v49 = vpop.f32.mrf.mxu1  ;;  %v2309_v17 = vrot.slane %v8815_v8, 7  ;;  %v13908_v35 = vrot.slane %v8742_v56, 4 }
 0x197   : > { %v9152_v16 = vpack.c.bf16 %v1038_v48, %v1037_v55  ;;  %v793_v26 = vadd.f32 %v8556_v45, %v792_v59  ;;  %v937_v55 = vadd.f32 %v8556_v45, %v936_v33  ;;  %v1911_v59 = vrot.slane %v8742_v56, 6 }
 0x198   : > { %1811 = vrot.lane.b32.xlu1 %v1714_v39, %s7649_s11  ;;  %2876 = vrot.lane.b32.xlu0 %v2718_v50, %s7651_s17  ;;  %v7164_v38 = vpop.f32.mrf.mxu0  ;;  %v7240_v9 = vpop.f32.mrf.mxu1  ;;  %v1262_v39 = vsel %vm1138_vm4, %v1257_v25, %v13623_v52  ;;  %v2720_v33 = vrot.slane %v8844_v44, 5  ;;  %v3049_v50 = vsel %vm3041_vm10, %v8068_v5, %v9053_v60  ;;  %v2503_v25 = vsel %vm2474_vm2, %v13908_v35, %v13624_v58 }
 0x199   : > { %13906 = vst [vmem:[#allocation43_spill] sm:$0xff] %v9152_v16  ;;  %v9165_v14 = vpop.permute.xlu1 %1988  ;;  %v9167_v48 = vpop.permute.xlu0 %2386  ;;  %v1039_v38 = vmax.f32 %v793_v26, 0.0  ;;  %v2971_v5 = vsel %vm2946_vm9, %v2968_v19, %v2970_v21  ;;  %v13626_v60 = vrot.slane %v8742_v56, 1  ;;  %v1075_v26 = vmax.f32 %v937_v55, 0.0 }
 0x19a   : > { %v795_v51 = vpop.f32.mrf.mxu0  ;;  %v947_v22 = vpop.f32.mrf.mxu1  ;;  %v1912_v43 = vsel %vm1881_vm6, %v1909_v41, %v1911_v59  ;;  %v1076_v10 = vmax.f32 %v940_v4, 0.0  ;;  %v3148_v55 = vsel %vm3140_vm11, %v3049_v50, %v9020_v12 }
 0x19b   : > { %v796_v9 = vadd.f32 %v8556_v45, %v795_v51  ;;  %v3250_v4 = vsel %vm3239_vm12, %v3148_v55, %v9074_v3  ;;  %v13913_v3 = vrot.slane %v8697_v30, 1 }
 0x19c   : > { %1563 = vrot.lane.b32.xlu1 %v1262_v39, %s7650_s14  ;;  %2595 = vrot.lane.b32.xlu0 %v2503_v25, %s7649_s11  ;;  %v7165_v52 = vpop.f32.mrf.mxu0  ;;  %v7241_v51 = vpop.f32.mrf.mxu1  ;;  %v3541_v39 = vsel %vm3140_vm11, %v3398_v31, %v2576_v40  ;;  %v13909_v31 = vrot.slane %v8742_v56, 7 }
 0x19d   : > { %v1040_v35 = vmax.f32 %v796_v9, 0.0  ;;  %v9198_v58 = vpop.permute.xlu1 %1793  ;;  %v2859_v20 = vpop.permute.xlu0 %2858  ;;  %7311 = vmatmul.mubr.msk.bf16.gmra.mxu0 %vm3041_vm10, %v2971_v5  ;;  %v9214_v9 = vor.u32 %v2720_v33, %v2719_v0  ;;  %v13627_v0 = vrot.slane %v8742_v56, 5  ;;  %v9228_v33 = vpack.c.bf16 %v1076_v10, %v1075_v26 }
 0x19e   : > { %v800_v19 = vpop.f32.mrf.mxu0  ;;  %v3640_v52 = vsel %vm3239_vm12, %v3541_v39, %v2859_v20  ;;  %v2310_v40 = vsel %vm2277_vm7, %v13909_v31, %v2309_v17  ;;  %7314 = vmatprep.mubr.msk.bf16.mxu0 %vm7647_vm0, %v13839_v61  ;;  %v9218_v25 = vpop.f32.mrf.mxu1  ;;  %v13912_v51 = vrot.slane %v8720_v2, 1 }
 0x19f   : > { %v9220_v41 = vpack.c.bf16 %v1040_v35, %v1039_v38  ;;  %v801_v20 = vadd.f32 %v8556_v45, %v800_v19  ;;  %4123 = vmatprep.mubr.bf16.mxu1 %v3640_v52  ;;  %13911 = vst [vmem:[#allocation46_spill] sm:$0xff] %v9228_v33  ;;  %v1269_v35 = vrot.slane %v8763_v42, 1  ;;  %v1716_v19 = vsel %vm1683_vm3, %v13913_v3, %v13626_v60 }
 0x1a0   : > { %2008 = vrot.lane.b32.xlu1 %v1912_v43, %s7651_s17  ;;  %2406 = vrot.lane.b32.xlu0 %v2310_v40, %s7650_s14  ;;  %v7168_v12 = vpop.f32.mrf.mxu0  ;;  %v7244_v50 = vpop.f32.mrf.mxu1  ;;  %v1265_v39 = vor.u32 %v8723_v47, %v13912_v51  ;;  %v2722_v2 = vsel %vm2663_vm5, %v9128_v11, %v9214_v9  ;;  %v13628_v42 = vrot.slane %v8866_v34, 4  ;;  %v2973_v31 = vsel %vm2946_vm9, %v2970_v21, %v13627_v0 }
 0x1a1   : > { %13910 = vst [vmem:[#allocation45_spill] sm:$0xff] %v9220_v41  ;;  %4124 = vmatmul.mubr.bf16.gmra.mxu1 %v3250_v4  ;;  %v9230_v5 = vpop.permute.xlu1 %1545  ;;  %v2578_v38 = vpop.permute.xlu0 %2577  ;;  %v1041_v26 = vmax.f32 %v801_v20, 0.0  ;;  %v945_v12 = vadd.f32 %v8556_v45, %v9150_v49  ;;  %v948_v50 = vadd.f32 %v8556_v45, %v947_v22  ;;  %v13630_v21 = vrot.slane %v8866_v34, 7 }
 0x1a2   : > { %v803_v43 = vpop.f32.mrf.mxu0  ;;  %v9241_v52 = vpop.f32.mrf.mxu1  ;;  %v1270_v11 = vsel %vm1138_vm4, %v1265_v39, %v1269_v35  ;;  %v2723_v3 = vrot.slane %v8894_v28, 4  ;;  %v3051_v49 = vsel %vm3041_vm10, %v8124_v57, %v9136_v1  ;;  %v2974_v57 = vrot.slane %v8815_v8, 5 }
 0x1a3   : > { %v804_v10 = vadd.f32 %v8556_v45, %v803_v43  ;;  %v13631_v43 = vrot.slane %v8815_v8, 6  ;;  %v1078_v0 = vmax.f32 %v948_v50, 0.0 }
 0x1a4   : > { %1813 = vrot.lane.b32.xlu1 %v1716_v19, %s7649_s11  ;;  %2878 = vrot.lane.b32.xlu0 %v2722_v2, %s7651_s17  ;;  %v7169_v47 = vpop.f32.mrf.mxu0  ;;  %v7245_v40 = vpop.f32.mrf.mxu1  ;;  %v2724_v19 = vrot.slane %v8891_v18, 5  ;;  %v13915_v2 = vrot.slane %v8815_v8, 4 }
 0x1a5   : > { %v1042_v55 = vmax.f32 %v804_v10, 0.0  ;;  %v9255_v20 = vpop.permute.xlu1 %1990  ;;  %v9257_v4 = vpop.permute.xlu0 %2388  ;;  %7315 = vmatmul.mubr.msk.bf16.gmra.mxu0 %vm3041_vm10, %v2973_v31  ;;  %v13916_v31 = vld [vmem:[#allocation14_spill] sm:$0xff] }
 0x1a6   : > { %v808_v51 = vpop.f32.mrf.mxu0  ;;  %7318 = vmatprep.mubr.msk.bf16.mxu0 %vm7647_vm0, %v13839_v61  ;;  %v9270_v10 = vpop.f32.mrf.mxu1  ;;  %v2505_v47 = vsel %vm2474_vm2, %v13915_v2, %v13628_v42  ;;  %v3401_v40 = vsel %vm3041_vm10, %v13916_v31, %v9076_v46  ;;  %v1914_v46 = vsel %vm1881_vm6, %v1911_v59, %v13631_v43 }
 0x1a7   : > { %v9275_v39 = vpack.c.bf16 %v1042_v55, %v1041_v26  ;;  %v809_v22 = vadd.f32 %v8556_v45, %v808_v51  ;;  %v3543_v45 = vsel %vm3140_vm11, %v3401_v40, %v2578_v38  ;;  %v1077_v51 = vmax.f32 %v945_v12, 0.0  ;;  %v9308_v12 = vld [vmem:[%s13570_s2] ss:$0 sm:$0xff] }
 0x1a8   : > { %1565 = vrot.lane.b32.xlu1 %v1270_v11, %s7650_s14  ;;  %2597 = vrot.lane.b32.xlu0 %v2505_v47, %s7649_s11  ;;  %v7172_v60 = vpop.f32.mrf.mxu0  ;;  %v7248_v1 = vpop.f32.mrf.mxu1  ;;  %v13629_v11 = vrot.slane %v8815_v8, 1  ;;  %v9301_v38 = vor.u32 %v2724_v19, %v2723_v3  ;;  %v13917_v19 = vrot.slane %v8742_v56, 5 }
 0x1a9   : > { %13914 = vst [vmem:[#allocation47_spill] sm:$0xff] %v9275_v39  ;;  %v9290_v26 = vpop.permute.xlu1 %1795  ;;  %v2861_v55 = vpop.permute.xlu0 %2860  ;;  %v3150_v60 = vsel %vm3140_vm11, %v3051_v49, %v9107_v62  ;;  %v1043_v31 = vmax.f32 %v809_v22, 0.0  ;;  %v2312_v62 = vsel %vm2277_vm7, %v2309_v17, %v13630_v21  ;;  %v13924_v21 = vld [vmem:[#allocation9_spill] sm:$0xff] }
 0x1aa   : > { %v811_v2 = vpop.f32.mrf.mxu0  ;;  %v3643_v42 = vsel %vm3239_vm12, %v3543_v45, %v2861_v55  ;;  %v9303_v47 = vpop.f32.mrf.mxu1  ;;  %v3253_v59 = vsel %vm3239_vm12, %v3150_v60, %v9165_v14  ;;  %v2975_v49 = vsel %vm2946_vm9, %v13917_v19, %v2974_v57  ;;  %v13918_v14 = vrot.slane %v8742_v56, 1 }
 0x1ab   : > { %v812_v50 = vadd.f32 %v9308_v12, %v811_v2  ;;  %4131 = vmatprep.mubr.bf16.mxu1 %v3643_v42  ;;  %v1273_v42 = vor.u32 %v8766_v6, %v1269_v35  ;;  %v13634_v55 = vrot.slane %v8844_v44, 1  ;;  %v9333_v2 = vpack.c.bf16 %v1078_v0, %v1077_v51  ;;  %v13921_v35 = vld [vmem:[#allocation39_spill] sm:$0xff]  ;;  %v13923_v51 = vld [vmem:[#allocation36_spill] sm:$0xff] }
 0x1ac   : > { %2010 = vrot.lane.b32.xlu1 %v1914_v46, %s7651_s17  ;;  %2408 = vrot.lane.b32.xlu0 %v2312_v62, %s7650_s14  ;;  %v7173_v3 = vpop.f32.mrf.mxu0  ;;  %v7249_v22 = vpop.f32.mrf.mxu1  ;;  %v1718_v17 = vsel %vm1683_vm3, %v13918_v14, %v13629_v11  ;;  %v13920_v46 = vld [vmem:[#allocation37_spill] sm:$0xff]  ;;  %v764_v60 = vadd.f32 %v9308_v12, %v13921_v35  ;;  %v2726_v62 = vsel %vm2663_vm5, %v9214_v9, %v9301_v38 }
 0x1ad   : > { %4132 = vmatmul.mubr.bf16.gmra.mxu1 %v3253_v59  ;;  %v1044_v40 = vmax.f32 %v812_v50, 0.0  ;;  %v9324_v1 = vpop.permute.xlu1 %1547  ;;  %v2580_v45 = vpop.permute.xlu0 %2579  ;;  %7319 = vmatmul.mubr.msk.bf16.gmra.mxu0 %vm3041_vm10, %v2975_v49  ;;  %13919 = vst [vmem:[#allocation14_spill] sm:$0xff] %v9333_v2  ;;  %v761_v6 = vadd.f32 %v9308_v12, %v13920_v46  ;;  %v13633_v59 = vrot.slane %v8866_v34, 5  ;;  %v953_v49 = vadd.f32 %v9308_v12, %v9218_v25 }
 0x1ae   : > { %v816_v50 = vpop.f32.mrf.mxu0  ;;  %7322 = vmatprep.mubr.msk.bf16.mxu0 %vm7647_vm0, %v13839_v61  ;;  %v9352_v22 = vpop.f32.mrf.mxu1  ;;  %v1278_v25 = vsel %vm1138_vm4, %v1273_v42, %v13634_v55  ;;  %v1032_v11 = vmax.f32 %v764_v60, 0.0  ;;  %v3053_v46 = vsel %vm3041_vm10, %v13924_v21, %v9230_v5  ;;  %v13927_v5 = vld [vmem:[#allocation18_spill] sm:$0xff] }
 0x1af   : > { %v9345_v3 = vpack.c.bf16 %v1044_v40, %v1043_v31  ;;  %v817_v0 = vadd.f32 %v9308_v12, %v816_v50  ;;  %v2727_v31 = vrot.slane %v8932_v32, 4  ;;  %v2728_v40 = vrot.slane %v8929_v23, 5 }
 0x1b0   : > { %1815 = vrot.lane.b32.xlu1 %v1718_v17, %s7649_s11  ;;  %2880 = vrot.lane.b32.xlu0 %v2726_v62, %s7651_s17  ;;  %v7176_v9 = vpop.f32.mrf.mxu0  ;;  %v956_v62 = vadd.f32 %v9308_v12, %v9241_v52  ;;  %v2977_v14 = vsel %vm2946_vm9, %v2974_v57, %v13633_v59  ;;  %v7252_v19 = vpop.f32.mrf.mxu1  ;;  %v13925_v50 = vrot.slane %v13923_v51, 4  ;;  %v13926_v52 = vrot.slane %v8866_v34, 4 }
 0x1b1   : > { %13922 = vst [vmem:[#allocation37_spill] sm:$0xff] %v9345_v3  ;;  %v9359_v35 = vpop.permute.xlu1 %1992  ;;  %v1031_v9 = vmax.f32 %v761_v6, 0.0  ;;  %v1045_v2 = vmax.f32 %v817_v0, 0.0  ;;  %v1079_v60 = vmax.f32 %v953_v49, 0.0  ;;  %v3404_v21 = vsel %vm3041_vm10, %v13927_v5, %v9167_v48 }
 0x1b2   : > { %v9361_v17 = vpop.permute.xlu0 %2390  ;;  %v819_v43 = vpop.f32.mrf.mxu0  ;;  %v2507_v6 = vsel %vm2474_vm2, %v13926_v52, %v13925_v50  ;;  %v13928_v0 = vrot.slane %v8866_v34, 6  ;;  %v13931_v59 = vrot.slane %v8866_v34, 7  ;;  %v9396_v49 = vor.u32 %v2728_v40, %v2727_v31 }
 0x1b3   : > { %v820_v42 = vadd.f32 %v9308_v12, %v819_v43  ;;  %v13929_v43 = vrot.slane %v8815_v8, 6  ;;  %v9398_v52 = vpop.f32.mrf.mxu1  ;;  %v3545_v48 = vsel %vm3140_vm11, %v3404_v21, %v2580_v45  ;;  %v9406_v55 = vpack.c.bf16 %v1032_v11, %v1031_v9 }
 0x1b4   : > { %1567 = vrot.lane.b32.xlu1 %v1278_v25, %s7650_s14  ;;  %2599 = vrot.lane.b32.xlu0 %v2507_v6, %s7649_s11  ;;  %v7177_v57 = vpop.f32.mrf.mxu0  ;;  %v13930_v25 = vrot.slane %v13923_v51, 7  ;;  %v961_v45 = vadd.f32 %v9308_v12, %v9270_v10 }
 0x1b5   : > { %v1916_v19 = vsel %vm1881_vm6, %v13929_v43, %v13928_v0  ;;  %v1046_v6 = vmax.f32 %v820_v42, 0.0  ;;  %v9401_v5 = vpop.permute.xlu1 %1797  ;;  %7323 = vmatmul.mubr.msk.bf16.gmra.mxu0 %vm3041_vm10, %v2977_v14  ;;  %v3152_v0 = vsel %vm3140_vm11, %v3053_v46, %v9198_v58  ;;  %v1080_v43 = vmax.f32 %v956_v62, 0.0  ;;  %13932 = vst [vmem:[#allocation39_spill] sm:$0xff] %v9406_v55  ;;  %v7253_v40 = vpop.f32.mrf.mxu1 }
 0x1b6   : > { %v2314_v50 = vsel %vm2277_vm7, %v13931_v59, %v13930_v25  ;;  %v2863_v57 = vpop.permute.xlu0 %2862  ;;  %v824_v33 = vpop.f32.mrf.mxu0  ;;  %v3256_v31 = vsel %vm3239_vm12, %v3152_v0, %v9255_v20  ;;  %7326 = vmatprep.mubr.msk.bf16.mxu0 %vm7647_vm0, %v13839_v61  ;;  %v13636_v20 = vrot.slane %v13923_v51, 5  ;;  %v13935_v62 = vrot.slane %v8844_v44, 1 }
 0x1b7   : > { %v3646_v59 = vsel %vm3239_vm12, %v3545_v48, %v2863_v57  ;;  %v9415_v14 = vpack.c.bf16 %v1046_v6, %v1045_v2  ;;  %v825_v58 = vadd.f32 %v9308_v12, %v824_v33  ;;  %v9419_v11 = vpack.c.bf16 %v1080_v43, %v1079_v60  ;;  %v9427_v9 = vpop.f32.mrf.mxu1 }
 0x1b8   : > { %4139 = vmatprep.mubr.bf16.mxu1 %v3646_v59  ;;  %2012 = vrot.lane.b32.xlu1 %v1916_v19, %s7651_s17  ;;  %v7180_v46 = vpop.f32.mrf.mxu0  ;;  %v1281_v10 = vor.u32 %v8847_v24, %v13935_v62  ;;  %v1285_v2 = vrot.slane %v8891_v18, 1  ;;  %v964_v60 = vadd.f32 %v9308_v12, %v9303_v47  ;;  %v13936_v19 = vrot.slane %v8866_v34, 1 }
 0x1b9   : > { %13933 = vst [vmem:[#allocation9_spill] sm:$0xff] %v9415_v14  ;;  %13934 = vst [vmem:[#allocation18_spill] sm:$0xff] %v9419_v11  ;;  %2410 = vrot.lane.b32.xlu0 %v2314_v50, %s7650_s14  ;;  %4140 = vmatmul.mubr.bf16.gmra.mxu1 %v3256_v31  ;;  %v9429_v33 = vpop.permute.xlu1 %1549  ;;  %v13937_v25 = vrot.slane %v8815_v8, 1  ;;  %v13637_v44 = vrot.slane %v9406_v55, 4  ;;  %v9440_v24 = vshll.u32 %v9406_v55, 16  ;;  %v9443_v18 = vshrl.u32 %v9406_v55, 16  ;;  %v7256_v48 = vpop.f32.mrf.mxu1 }
 0x1ba   : > { %v2582_v42 = vpop.permute.xlu0 %2581  ;;  %v827_v21 = vpop.f32.mrf.mxu0  ;;  %v1047_v6 = vmax.f32 %v825_v58, 0.0  ;;  %v2730_v47 = vsel %vm2663_vm5, %v9301_v38, %v9396_v49  ;;  %v1081_v0 = vmax.f32 %v961_v45, 0.0  ;;  %v13938_v59 = vrot.slane %v8866_v34, 5 }
 0x1bb   : > { %v1720_v50 = vsel %vm1683_vm3, %v13937_v25, %v13936_v19  ;;  %v828_v57 = vadd.f32 %v9308_v12, %v827_v21  ;;  %v1286_v40 = vsel %vm1138_vm4, %v1281_v10, %v1285_v2  ;;  %v9457_v58 = vpop.f32.mrf.mxu1  ;;  %v13638_v38 = vrot.slane %v13923_v51, 6 }
 0x1bc   : > { %1817 = vrot.lane.b32.xlu1 %v1720_v50, %s7649_s11  ;;  %v7181_v43 = vpop.f32.mrf.mxu0  ;;  %v2979_v31 = vsel %vm2946_vm9, %v13938_v59, %v13636_v20  ;;  %v1082_v19 = vmax.f32 %v964_v60, 0.0  ;;  %v13939_v50 = vrot.slane %v13923_v51, 4  ;;  %v13940_v59 = vld [vmem:[#allocation11_spill] sm:$0xff] }
 0x1bd   : > { %2882 = vrot.lane.b32.xlu0 %v2730_v47, %s7651_s17  ;;  %v1048_v46 = vmax.f32 %v828_v57, 0.0  ;;  %v9459_v62 = vpop.permute.xlu1 %1994  ;;  %7327 = vmatmul.mubr.msk.bf16.gmra.mxu0 %vm3041_vm10, %v2979_v31  ;;  %v2731_v57 = vrot.slane %v9443_v18, 4  ;;  %v2732_v47 = vrot.slane %v9440_v24, 5  ;;  %v7257_v43 = vpop.f32.mrf.mxu1  ;;  %v3055_v60 = vsel %vm3041_vm10, %v13940_v59, %v9324_v1 }
 0x1be   : > { %v9461_v21 = vpop.permute.xlu0 %2392  ;;  %v832_v25 = vpop.f32.mrf.mxu0  ;;  %v2509_v10 = vsel %vm2474_vm2, %v13939_v50, %v13637_v44  ;;  %7330 = vmatprep.mubr.msk.bf16.mxu0 %vm7647_vm0, %v13839_v61  ;;  %v9483_v50 = vpack.c.bf16 %v1082_v19, %v1081_v0  ;;  %v13943_v44 = vld [vmem:[#allocation22_spill] sm:$0xff]  ;;  %v969_v1 = vadd.f32 %v9308_v12, %v9352_v22  ;;  %v13945_v22 = vrot.slane %v9406_v55, 7 }
 0x1bf   : > { %v9479_v31 = vpack.c.bf16 %v1048_v46, %v1047_v6  ;;  %v833_v20 = vadd.f32 %v9308_v12, %v832_v25  ;;  %v3407_v45 = vsel %vm3041_vm10, %v13943_v44, %v9257_v4  ;;  %v9492_v6 = vpop.f32.mrf.mxu1  ;;  %v1289_v44 = vor.u32 %v8894_v28, %v1285_v2 }
 0x1c0   : > { %1569 = vrot.lane.b32.xlu1 %v1286_v40, %s7650_s14  ;;  %13942 = vst [vmem:[#allocation48_spill] sm:$0xff] %v9483_v50  ;;  %v7184_v48 = vpop.f32.mrf.mxu0  ;;  %v3547_v46 = vsel %vm3140_vm11, %v3407_v45, %v2582_v42  ;;  %v13944_v40 = vrot.slane %v8866_v34, 6  ;;  %v3154_v45 = vsel %vm3140_vm11, %v3055_v60, %v9290_v26  ;;  %v13947_v59 = vrot.slane %v13923_v51, 1 }
 0x1c1   : > { %13941 = vst [vmem:[#allocation11_spill] sm:$0xff] %v9479_v31  ;;  %2601 = vrot.lane.b32.xlu0 %v2509_v10, %s7649_s11  ;;  %v9495_v25 = vpop.permute.xlu1 %1799  ;;  %v13946_v48 = vrot.slane %v13923_v51, 7  ;;  %v13948_v43 = vrot.slane %v8866_v34, 1  ;;  %v1049_v28 = vmax.f32 %v833_v20, 0.0  ;;  %v13949_v60 = vrot.slane %v9406_v55, 5 }
 0x1c2   : > { %v2865_v0 = vpop.permute.xlu0 %2864  ;;  %v1918_v4 = vsel %vm1881_vm6, %v13944_v40, %v13638_v38  ;;  %v835_v19 = vpop.f32.mrf.mxu0 }
 0x1c3   : > { %v3649_v10 = vsel %vm3239_vm12, %v3547_v46, %v2865_v0  ;;  %v2316_v42 = vsel %vm2277_vm7, %v13946_v48, %v13945_v22  ;;  %v1722_v40 = vsel %vm1683_vm3, %v13948_v43, %v13947_v59  ;;  %v7260_v38 = vpop.f32.mrf.mxu1  ;;  %v836_v2 = vadd.f32 %v9308_v12, %v835_v19 }
 0x1c4   : > { %4147 = vmatprep.mubr.bf16.mxu1 %v3649_v10  ;;  %2014 = vrot.lane.b32.xlu1 %v1918_v4, %s7651_s17  ;;  %v3259_v46 = vsel %vm3239_vm12, %v3154_v45, %v9359_v35  ;;  %v9520_v0 = vor.u32 %v2732_v47, %v2731_v57  ;;  %v7185_v26 = vpop.f32.mrf.mxu0  ;;  %v13950_v43 = vrot.slane %v13923_v51, 5  ;;  %v13640_v38 = vrot.slane %v8929_v23, 1 }
 0x1c5   : > { %2412 = vrot.lane.b32.xlu0 %v2316_v42, %s7650_s14  ;;  %4148 = vmatmul.mubr.bf16.gmra.mxu1 %v3259_v46  ;;  %v1083_v19 = vmax.f32 %v969_v1, 0.0  ;;  %v972_v4 = vadd.f32 %v9308_v12, %v9398_v52  ;;  %v9531_v10 = vpop.f32.mrf.mxu1  ;;  %v1050_v35 = vmax.f32 %v836_v2, 0.0  ;;  %v9533_v57 = vpop.permute.xlu1 %1551  ;;  %v9538_v48 = vshll.u32 %v9043_v27, 16 }
 0x1c6   : > { %v2981_v20 = vsel %vm2946_vm9, %v13950_v43, %v13949_v60  ;;  %v2584_v47 = vpop.permute.xlu0 %2583  ;;  %v9541_v42 = vshrl.u32 %v9043_v27, 16  ;;  %v840_v1 = vpop.f32.mrf.mxu0  ;;  %v13644_v45 = vrot.slane %v9043_v27, 4  ;;  %v977_v59 = vadd.f32 %v9308_v12, %v9427_v9 }
 0x1c7   : > { %7331 = vmatmul.mubr.msk.bf16.gmra.mxu0 %vm3041_vm10, %v2981_v20  ;;  %v1084_v52 = vmax.f32 %v972_v4, 0.0  ;;  %v2154_v2 = vrot.slane %v9443_v18, 6  ;;  %v7261_v46 = vpop.f32.mrf.mxu1  ;;  %v9549_v26 = vpack.c.bf16 %v1050_v35, %v1049_v28  ;;  %v841_v60 = vadd.f32 %v9308_v12, %v840_v1 }
 0x1c8   : > { %7334 = vmatprep.mubr.msk.bf16.mxu0 %vm7647_vm0, %v13839_v61  ;;  %1819 = vrot.lane.b32.xlu1 %v1722_v40, %s7649_s11  ;;  %v2734_v43 = vsel %vm2663_vm5, %v9396_v49, %v9520_v0  ;;  %v7188_v4 = vpop.f32.mrf.mxu0  ;;  %v980_v28 = vadd.f32 %v9308_v12, %v9457_v58  ;;  %v2155_v35 = vrot.slane %v9440_v24, 7  ;;  %v1294_v49 = vsel %vm1138_vm4, %v1289_v44, %v13640_v38  ;;  %v13956_v38 = vld [vmem:[#allocation13_spill] sm:$0xff] }
 0x1c9   : > { %13951 = vst [vmem:[#allocation22_spill] sm:$0xff] %v9549_v26  ;;  %2884 = vrot.lane.b32.xlu0 %v2734_v43, %s7651_s17  ;;  %v9559_v22 = vpack.c.bf16 %v1084_v52, %v1083_v19  ;;  %v9564_v1 = vpop.permute.xlu1 %1996  ;;  %v2735_v46 = vrot.slane %v9541_v42, 4  ;;  %v2736_v43 = vrot.slane %v9538_v48, 5  ;;  %v13953_v19 = vrot.slane %v9406_v55, 4 }
 0x1ca   : > { %v9566_v40 = vpop.permute.xlu0 %2394  ;;  %v843_v4 = vpop.f32.mrf.mxu0  ;;  %v13954_v52 = vrot.slane %v9406_v55, 6  ;;  %v13955_v9 = vrot.slane %v13923_v51, 6  ;;  %v1085_v44 = vmax.f32 %v977_v59, 0.0  ;;  %v3057_v50 = vsel %vm3041_vm10, %v13956_v38, %v9429_v33 }
 0x1cb   : > { %13952 = vst [vmem:[#allocation49_spill] sm:$0xff] %v9559_v22  ;;  %v2511_v58 = vsel %vm2474_vm2, %v13953_v19, %v13644_v45  ;;  %v1051_v11 = vmax.f32 %v841_v60, 0.0  ;;  %v844_v34 = vadd.f32 %v9308_v12, %v843_v4  ;;  %v13957_v19 = vrot.slane %v9043_v27, 5 }
 0x1cc   : > { %v1920_v20 = vsel %vm1881_vm6, %v13955_v9, %v13954_v52  ;;  %1571 = vrot.lane.b32.xlu1 %v1294_v49, %s7650_s14  ;;  %v13958_v45 = vrot.slane %v9406_v55, 5  ;;  %v13959_v9 = vld [vmem:[#allocation25_spill] sm:$0xff]  ;;  %v7189_v59 = vpop.f32.mrf.mxu0  ;;  %v13960_v33 = vrot.slane %v9043_v27, 7  ;;  %v13961_v38 = vrot.slane %v9406_v55, 7 }
 0x1cd   : > { %v3410_v52 = vsel %vm3041_vm10, %v13959_v9, %v9361_v17  ;;  %2603 = vrot.lane.b32.xlu0 %v2511_v58, %s7649_s11  ;;  %v1086_v49 = vmax.f32 %v980_v28, 0.0  ;;  %v9603_v4 = vor.u32 %v2155_v35, %v2154_v2  ;;  %v1052_v36 = vmax.f32 %v844_v34, 0.0 }
 0x1ce   : > { %v2983_v37 = vsel %vm2946_vm9, %v13958_v45, %v13957_v19  ;;  %v2318_v60 = vsel %vm2277_vm7, %v13961_v38, %v13960_v33  ;;  %v3549_v22 = vsel %vm3140_vm11, %v3410_v52, %v2584_v47  ;;  %v9606_v45 = vpop.permute.xlu1 %1801  ;;  %v2867_v19 = vpop.permute.xlu0 %2866  ;;  %v9609_v17 = vor.u32 %v2736_v43, %v2735_v46 }
 0x1cf   : > { %7335 = vmatmul.mubr.msk.bf16.gmra.mxu0 %vm3041_vm10, %v2983_v37  ;;  %v985_v58 = vadd.f32 %v9308_v12, %v9492_v6  ;;  %v848_v9 = vpop.f32.mrf.mxu0  ;;  %v3652_v59 = vsel %vm3239_vm12, %v3549_v22, %v2867_v19  ;;  %v3156_v2 = vsel %vm3140_vm11, %v3057_v50, %v9401_v5  ;;  %v9618_v34 = vpack.c.bf16 %v1086_v49, %v1085_v44 }
 0x1d0   : > { %7338 = vmatprep.mubr.msk.bf16.mxu0 %vm7647_vm0, %v13839_v61  ;;  %v9623_v37 = vsel %vm2078_vm8, %v8989_v53, %v9603_v4  ;;  %v9625_v47 = vpack.c.bf16 %v1052_v36, %v1051_v11  ;;  %v849_v6 = vadd.f32 %v9308_v12, %v848_v9  ;;  %4155 = vmatprep.mubr.bf16.mxu1 %v3652_v59  ;;  %v2984_v22 = vrot.slane %v9095_v63, 5 }
 0x1d1   : > { %13962 = vst [vmem:[#allocation13_spill] sm:$0xff] %v9618_v34  ;;  %13963 = vst [vmem:[#allocation25_spill] sm:$0xff] %v9623_v37  ;;  %2016 = vrot.lane.b32.xlu1 %v1920_v20, %s7651_s17  ;;  %v3262_v5 = vsel %vm3239_vm12, %v3156_v2, %v9459_v62  ;;  %2414 = vrot.lane.b32.xlu0 %v2318_v60, %s7650_s14  ;;  %v7192_v50 = vpop.f32.mrf.mxu0  ;;  %v13965_v28 = vrot.slane %v8929_v23, 1  ;;  %v1087_v36 = vmax.f32 %v985_v58, 0.0  ;;  %v13966_v46 = vrot.slane %v9406_v55, 1 }
 0x1d2   : > { %13964 = vst [vmem:[#allocation50_spill] sm:$0xff] %v9625_v47  ;;  %4156 = vmatmul.mubr.bf16.gmra.mxu1 %v3262_v5  ;;  %v988_v11 = vadd.f32 %v9308_v12, %v9531_v10  ;;  %v9638_v35 = vpop.permute.xlu1 %1553  ;;  %v2586_v20 = vpop.permute.xlu0 %2585  ;;  %v13967_v62 = vrot.slane %v13923_v51, 1  ;;  %v13647_v44 = vrot.slane %v9440_v24, 1  ;;  %v2158_v52 = vrot.slane %v9541_v42, 6 }
 0x1d3   : > { %v1297_v53 = vor.u32 %v8932_v32, %v13965_v28  ;;  %v2159_v23 = vrot.slane %v9538_v48, 7  ;;  %v851_v32 = vpop.f32.mrf.mxu0  ;;  %v13646_v33 = vrot.slane %v9095_v63, 4  ;;  %v9650_v10 = vshll.u32 %v9095_v63, 16 }
 0x1d4   : > { %v1724_v43 = vsel %vm1683_vm3, %v13967_v62, %v13966_v46  ;;  %v9653_v38 = vshrl.u32 %v9095_v63, 16  ;;  %v1088_v60 = vmax.f32 %v988_v11, 0.0  ;;  %v1053_v49 = vmax.f32 %v849_v6, 0.0 }
 0x1d5   : > { %v852_v19 = vadd.f32 %v9308_v12, %v851_v32  ;;  %1821 = vrot.lane.b32.xlu1 %v1724_v43, %s7649_s11  ;;  %v2738_v58 = vsel %vm2663_vm5, %v9520_v0, %v9609_v17  ;;  %v7193_v9 = vpop.f32.mrf.mxu0  ;;  %v13968_v59 = vrot.slane %v9043_v27, 5  ;;  %v1302_v0 = vsel %vm1138_vm4, %v1297_v53, %v13647_v44  ;;  %v13971_v53 = vld [vmem:[#allocation15_spill] sm:$0xff] }
 0x1d6   : > { %2886 = vrot.lane.b32.xlu0 %v2738_v58, %s7651_s17  ;;  %v9666_v5 = vpack.c.bf16 %v1088_v60, %v1087_v36  ;;  %v9668_v50 = vpop.permute.xlu1 %1998  ;;  %v9670_v28 = vpop.permute.xlu0 %2396  ;;  %v13649_v11 = vrot.slane %v9043_v27, 6  ;;  %v2160_v46 = vor.u32 %v2159_v23, %v2158_v52  ;;  %v13970_v36 = vrot.slane %v9043_v27, 4 }
 0x1d7   : > { %v2985_v2 = vsel %vm2946_vm9, %v13968_v59, %v2984_v22  ;;  %v1054_v6 = vmax.f32 %v852_v19, 0.0  ;;  %v856_v62 = vpop.f32.mrf.mxu0  ;;  %v13648_v32 = vrot.slane %v9095_v63, 7  ;;  %v2739_v60 = vrot.slane %v9653_v38, 4  ;;  %v13974_v59 = vld [vmem:[#allocation26_spill] sm:$0xff] }
 0x1d8   : > { %13969 = vst [vmem:[#allocation51_spill] sm:$0xff] %v9666_v5  ;;  %7339 = vmatmul.mubr.msk.bf16.gmra.mxu0 %vm3041_vm10, %v2985_v2  ;;  %v2513_v43 = vsel %vm2474_vm2, %v13970_v36, %v13646_v33  ;;  %v2740_v19 = vrot.slane %v9650_v10, 5  ;;  %v3059_v52 = vsel %vm3041_vm10, %v13971_v53, %v9533_v57  ;;  %v857_v58 = vadd.f32 %v9308_v12, %v856_v62 }
 0x1d9   : > { %7342 = vmatprep.mubr.msk.bf16.mxu0 %vm7647_vm0, %v13839_v61  ;;  %v9690_v23 = vpack.c.bf16 %v1054_v6, %v1053_v49  ;;  %1573 = vrot.lane.b32.xlu1 %v1302_v0, %s7650_s14  ;;  %v9696_v9 = vsel %vm2078_vm8, %v9603_v4, %v2160_v46  ;;  %v3413_v2 = vsel %vm3041_vm10, %v13974_v59, %v9461_v21  ;;  %v7196_v36 = vpop.f32.mrf.mxu0  ;;  %v2986_v33 = vrot.slane %v9152_v16, 5 }
 0x1da   : > { %13973 = vst [vmem:[#allocation52_spill] sm:$0xff] %v9696_v9  ;;  %2605 = vrot.lane.b32.xlu0 %v2513_v43, %s7649_s11  ;;  %v2162_v57 = vrot.slane %v9653_v38, 6  ;;  %v2163_v49 = vrot.slane %v9650_v10, 7  ;;  %v3551_v6 = vsel %vm3140_vm11, %v3413_v2, %v2586_v20  ;;  %v9706_v0 = vpop.permute.xlu1 %1803  ;;  %v2869_v62 = vpop.permute.xlu0 %2868  ;;  %v13975_v21 = vrot.slane %v9406_v55, 6 }
 0x1db   : > { %13972 = vst [vmem:[#allocation15_spill] sm:$0xff] %v9690_v23  ;;  %v859_v53 = vpop.f32.mrf.mxu0  ;;  %v3655_v44 = vsel %vm3239_vm12, %v3551_v6, %v2869_v62  ;;  %v13976_v59 = vrot.slane %v9043_v27, 7  ;;  %v3158_v2 = vsel %vm3140_vm11, %v3059_v52, %v9495_v25  ;;  %v1055_v36 = vmax.f32 %v857_v58, 0.0 }
 0x1dc   : > { %v1922_v43 = vsel %vm1881_vm6, %v13975_v21, %v13649_v11  ;;  %v860_v4 = vadd.f32 %v9308_v12, %v859_v53  ;;  %4163 = vmatprep.mubr.bf16.mxu1 %v3655_v44  ;;  %v3265_v6 = vsel %vm3239_vm12, %v3158_v2, %v9564_v1  ;;  %v9726_v62 = vor.u32 %v2740_v19, %v2739_v60 }
 0x1dd   : > { %v2320_v20 = vsel %vm2277_vm7, %v13976_v59, %v13648_v32  ;;  %2018 = vrot.lane.b32.xlu1 %v1922_v43, %s7651_s17  ;;  %v7197_v21 = vpop.f32.mrf.mxu0  ;;  %4164 = vmatmul.mubr.bf16.gmra.mxu1 %v3265_v6  ;;  %v2987_v59 = vsel %vm2946_vm9, %v2984_v22, %v2986_v33  ;;  %v9732_v25 = vor.u32 %v2163_v49, %v2162_v57  ;;  %v13978_v1 = vrot.slane %v9440_v24, 1 }
 0x1de   : > { %2416 = vrot.lane.b32.xlu0 %v2320_v20, %s7650_s14  ;;  %v1056_v52 = vmax.f32 %v860_v4, 0.0  ;;  %v9734_v58 = vpop.permute.xlu1 %1555  ;;  %v2588_v44 = vpop.permute.xlu0 %2587  ;;  %v1309_v19 = vrot.slane %v9538_v48, 1  ;;  %v13979_v43 = vrot.slane %v9043_v27, 1  ;;  %v13980_v20 = vrot.slane %v9406_v55, 1 }
 0x1df   : > { %13977 = vst [vmem:[#allocation26_spill] sm:$0xff] %v9732_v25  ;;  %v1305_v60 = vor.u32 %v9443_v18, %v13978_v1  ;;  %v864_v53 = vpop.f32.mrf.mxu0  ;;  %v9749_v57 = vshll.u32 %v9152_v16, 16  ;;  %v9752_v49 = vshrl.u32 %v9152_v16, 16  ;;  %v9756_v24 = vsel %vm2078_vm8, %v2160_v46, %v9732_v25 }
 0x1e0   : > { %7343 = vmatmul.mubr.msk.bf16.gmra.mxu0 %vm3041_vm10, %v2987_v59  ;;  %v1726_v22 = vsel %vm1683_vm3, %v13980_v20, %v13979_v43  ;;  %13983 = vst [vmem:[#allocation55_spill] sm:$0xff] %v9756_v24  ;;  %v9758_v18 = vpack.c.bf16 %v1056_v52, %v1055_v36  ;;  %v865_v48 = vadd.f32 %v9308_v12, %v864_v53  ;;  %v13651_v2 = vrot.slane %v9152_v16, 4  ;;  %v13985_v20 = vld [vmem:[#allocation19_spill] sm:$0xff] }
 0x1e1   : > { %7346 = vmatprep.mubr.msk.bf16.mxu0 %vm7647_vm0, %v13839_v61  ;;  %13981 = vst [vmem:[#allocation53_spill] sm:$0xff] %v9749_v57  ;;  %13982 = vst [vmem:[#allocation54_spill] sm:$0xff] %v9752_v49  ;;  %1823 = vrot.lane.b32.xlu1 %v1726_v22, %s7649_s11  ;;  %v2742_v4 = vsel %vm2663_vm5, %v9609_v17, %v9726_v62  ;;  %v7200_v6 = vpop.f32.mrf.mxu0  ;;  %v2988_v21 = vrot.slane %v9220_v41, 5  ;;  %v1310_v1 = vsel %vm1138_vm4, %v1305_v60, %v1309_v19  ;;  %v13987_v53 = vld [vmem:[#allocation27_spill] sm:$0xff] }
 0x1e2   : > { %13984 = vst [vmem:[#allocation56_spill] sm:$0xff] %v9758_v18  ;;  %2888 = vrot.lane.b32.xlu0 %v2742_v4, %s7651_s17  ;;  %v9768_v59 = vpop.permute.xlu1 %2000  ;;  %v9770_v46 = vpop.permute.xlu0 %2398  ;;  %v2743_v17 = vrot.slane %v9752_v49, 4  ;;  %v2744_v43 = vrot.slane %v9749_v57, 5  ;;  %v3061_v22 = vsel %vm3041_vm10, %v13985_v20, %v9638_v35  ;;  %v1057_v4 = vmax.f32 %v865_v48, 0.0 }
 0x1e3   : > { %v867_v52 = vpop.f32.mrf.mxu0  ;;  %v13986_v32 = vrot.slane %v9095_v63, 4  ;;  %v3416_v11 = vsel %vm3041_vm10, %v13987_v53, %v9566_v40  ;;  %v2989_v35 = vsel %vm2946_vm9, %v2986_v33, %v2988_v21  ;;  %v13988_v5 = vrot.slane %v9095_v63, 6 }
 0x1e4   : > { %v868_v6 = vadd.f32 %v9308_v12, %v867_v52  ;;  %v3553_v48 = vsel %vm3140_vm11, %v3416_v11, %v2588_v44  ;;  %v13653_v40 = vrot.slane %v9095_v63, 1  ;;  %v13990_v33 = vrot.slane %v9152_v16, 7 }
 0x1e5   : > { %1575 = vrot.lane.b32.xlu1 %v1310_v1, %s7650_s14  ;;  %v2515_v60 = vsel %vm2474_vm2, %v13986_v32, %v13651_v2  ;;  %v7201_v36 = vpop.f32.mrf.mxu0  ;;  %v13989_v32 = vrot.slane %v9043_v27, 6  ;;  %v13991_v11 = vrot.slane %v9095_v63, 7  ;;  %v14025_v9 = vrot.slane %v9479_v31, 5 }
 0x1e6   : > { %2607 = vrot.lane.b32.xlu0 %v2515_v60, %s7649_s11  ;;  %v1058_v52 = vmax.f32 %v868_v6, 0.0  ;;  %v9793_v20 = vpop.permute.xlu1 %1805  ;;  %v2871_v1 = vpop.permute.xlu0 %2870  ;;  %v3160_v6 = vsel %vm3140_vm11, %v3061_v22, %v9606_v45  ;;  %v9810_v60 = vor.u32 %v2744_v43, %v2743_v17  ;;  %v2990_v45 = vrot.slane %v9275_v39, 5 }
 0x1e7   : > { %v1924_v2 = vsel %vm1881_vm6, %v13989_v32, %v13988_v5  ;;  %v872_v53 = vpop.f32.mrf.mxu0  ;;  %v3658_v36 = vsel %vm3239_vm12, %v3553_v48, %v2871_v1  ;;  %v2322_v44 = vsel %vm2277_vm7, %v13991_v11, %v13990_v33  ;;  %v3268_v48 = vsel %vm3239_vm12, %v3160_v6, %v9668_v50 }
 0x1e8   : > { %7347 = vmatmul.mubr.msk.bf16.gmra.mxu0 %vm3041_vm10, %v2989_v35  ;;  %v9814_v5 = vpack.c.bf16 %v1058_v52, %v1057_v4  ;;  %v873_v35 = vadd.f32 %v9308_v12, %v872_v53  ;;  %4171 = vmatprep.mubr.bf16.mxu1 %v3658_v36  ;;  %v1313_v22 = vor.u32 %v9541_v42, %v1309_v19  ;;  %v1317_v4 = vrot.slane %v9650_v10, 1 }
 0x1e9   : > { %7350 = vmatprep.mubr.msk.bf16.mxu0 %vm7647_vm0, %v13839_v61  ;;  %2020 = vrot.lane.b32.xlu1 %v1924_v2, %s7651_s17  ;;  %v7204_v1 = vpop.f32.mrf.mxu0  ;;  %v13993_v2 = vrot.slane %v9043_v27, 1  ;;  %v13652_v32 = vrot.slane %v9220_v41, 4  ;;  %v9833_v53 = vshrl.u32 %v9220_v41, 16  ;;  %v2746_v42 = vsel %vm2663_vm5, %v9726_v62, %v9810_v60 }
 0x1ea   : > { %13992 = vst [vmem:[#allocation19_spill] sm:$0xff] %v9814_v5  ;;  %2418 = vrot.lane.b32.xlu0 %v2322_v44, %s7650_s14  ;;  %4172 = vmatmul.mubr.bf16.gmra.mxu1 %v3268_v48  ;;  %v9822_v17 = vpop.permute.xlu1 %1557  ;;  %v2590_v43 = vpop.permute.xlu0 %2589  ;;  %v1059_v36 = vmax.f32 %v873_v35, 0.0  ;;  %v9841_v10 = vshll.u32 %v9220_v41, 16  ;;  %v2991_v11 = vsel %vm2946_vm9, %v2988_v21, %v2990_v45  ;;  %v1318_v48 = vsel %vm1138_vm4, %v1313_v22, %v1317_v4  ;;  %v13997_v22 = vld [vmem:[#allocation23_spill] sm:$0xff] }
 0x1eb   : > { %v875_v52 = vpop.f32.mrf.mxu0  ;;  %v1728_v50 = vsel %vm1683_vm3, %v13993_v2, %v13653_v40  ;;  %13994 = vst [vmem:[#allocation27_spill] sm:$0xff] %v9833_v53  ;;  %v14037_v37 = vrot.slane %v9549_v26, 5 }
 0x1ec   : > { %v876_v33 = vadd.f32 %v9308_v12, %v875_v52  ;;  %13995 = vst [vmem:[#allocation57_spill] sm:$0xff] %v9841_v10  ;;  %v13996_v52 = vrot.slane %v9152_v16, 4 }
 0x1ed   : > { %1825 = vrot.lane.b32.xlu1 %v1728_v50, %s7649_s11  ;;  %v7205_v19 = vpop.f32.mrf.mxu0  ;;  %v2992_v50 = vrot.slane %v9345_v3, 5 }
 0x1ee   : > { %2890 = vrot.lane.b32.xlu0 %v2746_v42, %s7651_s17  ;;  %v1060_v44 = vmax.f32 %v876_v33, 0.0  ;;  %v9845_v6 = vpop.permute.xlu1 %2002  ;;  %v9847_v35 = vpop.permute.xlu0 %2400  ;;  %v2517_v2 = vsel %vm2474_vm2, %v13996_v52, %v13652_v32  ;;  %v2747_v33 = vrot.slane %v9833_v53, 4  ;;  %v3063_v42 = vsel %vm3041_vm10, %v13997_v22, %v9734_v58  ;;  %v13999_v32 = vld [vmem:[#allocation28_spill] sm:$0xff] }
 0x1ef   : > { %v880_v62 = vpop.f32.mrf.mxu0  ;;  %v2748_v52 = vrot.slane %v9841_v10, 5  ;;  %v3419_v40 = vsel %vm3041_vm10, %v13999_v32, %v9670_v28  ;;  %v14002_v28 = vrot.slane %v9220_v41, 7  ;;  %v14003_v32 = vrot.slane %v9152_v16, 7 }
 0x1f0   : > { %7351 = vmatmul.mubr.msk.bf16.gmra.mxu0 %vm3041_vm10, %v2991_v11  ;;  %v9865_v19 = vpack.c.bf16 %v1060_v44, %v1059_v36  ;;  %v881_v11 = vadd.f32 %v9308_v12, %v880_v62  ;;  %v3555_v1 = vsel %vm3140_vm11, %v3419_v40, %v2590_v43  ;;  %v14000_v36 = vrot.slane %v9152_v16, 6 }
 0x1f1   : > { %7354 = vmatprep.mubr.msk.bf16.mxu0 %vm7647_vm0, %v13839_v61  ;;  %1577 = vrot.lane.b32.xlu1 %v1318_v48, %s7650_s14  ;;  %v7208_v21 = vpop.f32.mrf.mxu0  ;;  %v14001_v44 = vrot.slane %v9095_v63, 6  ;;  %v13656_v62 = vrot.slane %v9152_v16, 1  ;;  %v2324_v40 = vsel %vm2277_vm7, %v14003_v32, %v14002_v28  ;;  %v3162_v43 = vsel %vm3140_vm11, %v3063_v42, %v9706_v0 }
 0x1f2   : > { %13998 = vst [vmem:[#allocation23_spill] sm:$0xff] %v9865_v19  ;;  %2609 = vrot.lane.b32.xlu0 %v2517_v2, %s7649_s11  ;;  %v9875_v27 = vpop.permute.xlu1 %1807  ;;  %v2873_v58 = vpop.permute.xlu0 %2872  ;;  %v2993_v2 = vsel %vm2946_vm9, %v2990_v45, %v2992_v50  ;;  %v1061_v21 = vmax.f32 %v881_v11, 0.0  ;;  %v1321_v45 = vor.u32 %v9653_v38, %v1317_v4  ;;  %v9913_v11 = vshll.u32 %v9275_v39, 16 }
 0x1f3   : > { %v1926_v48 = vsel %vm1881_vm6, %v14001_v44, %v14000_v36  ;;  %v883_v22 = vpop.f32.mrf.mxu0  ;;  %v3661_v34 = vsel %vm3239_vm12, %v3555_v1, %v2873_v58  ;;  %v3271_v1 = vsel %vm3239_vm12, %v3162_v43, %v9768_v59  ;;  %v9896_v58 = vor.u32 %v2748_v52, %v2747_v33 }
 0x1f4   : > { %v884_v24 = vadd.f32 %v9308_v12, %v883_v22  ;;  %4179 = vmatprep.mubr.bf16.mxu1 %v3661_v34  ;;  %v1325_v34 = vrot.slane %v9749_v57, 1  ;;  %v14004_v59 = vrot.slane %v9095_v63, 1  ;;  %14005 = vst [vmem:[#allocation28_spill] sm:$0xff] %v9913_v11  ;;  %v9916_v52 = vshrl.u32 %v9275_v39, 16 }
 0x1f5   : > { %2022 = vrot.lane.b32.xlu1 %v1926_v48, %s7651_s17  ;;  %v7209_v36 = vpop.f32.mrf.mxu0  ;;  %4180 = vmatmul.mubr.bf16.gmra.mxu1 %v3271_v1  ;;  %v2750_v48 = vsel %vm2663_vm5, %v9810_v60, %v9896_v58  ;;  %v13657_v22 = vrot.slane %v9275_v39, 4  ;;  %v14012_v63 = vrot.slane %v9220_v41, 7  ;;  %v10185_v57 = vshll.u32 %v9865_v19, 16 }
 0x1f6   : > { %2420 = vrot.lane.b32.xlu0 %v2324_v40, %s7650_s14  ;;  %v1062_v44 = vmax.f32 %v884_v24, 0.0  ;;  %v9899_v28 = vpop.permute.xlu1 %1559  ;;  %v2592_v0 = vpop.permute.xlu0 %2591  ;;  %v1730_v33 = vsel %vm1683_vm3, %v14004_v59, %v13656_v62  ;;  %v2994_v24 = vrot.slane %v9415_v14, 5  ;;  %14006 = vst [vmem:[#allocation58_spill] sm:$0xff] %v9916_v52  ;;  %v1326_v43 = vsel %vm1138_vm4, %v1321_v45, %v1325_v34  ;;  %v14009_v62 = vld [vmem:[#allocation29_spill] sm:$0xff] }
 0x1f7   : > { %v888_v42 = vpop.f32.mrf.mxu0  ;;  %v2751_v60 = vrot.slane %v9916_v52, 4  ;;  %v14008_v45 = vrot.slane %v9220_v41, 4 }
 0x1f8   : > { %7355 = vmatmul.mubr.msk.bf16.gmra.mxu0 %vm3041_vm10, %v2993_v2  ;;  %v9918_v38 = vpack.c.bf16 %v1062_v44, %v1061_v21  ;;  %v889_v4 = vadd.f32 %v9308_v12, %v888_v42  ;;  %v1927_v2 = vrot.slane %v9220_v41, 6  ;;  %v2995_v36 = vsel %vm2946_vm9, %v2992_v50, %v2994_v24 }
 0x1f9   : > { %7358 = vmatprep.mubr.msk.bf16.mxu0 %vm7647_vm0, %v13839_v61  ;;  %1827 = vrot.lane.b32.xlu1 %v1730_v33, %s7649_s11  ;;  %v7212_v32 = vpop.f32.mrf.mxu0  ;;  %v2752_v42 = vrot.slane %v9913_v11, 5  ;;  %v3065_v50 = vsel %vm3041_vm10, %v8505_v15, %v9822_v17 }
 0x1fa   : > { %14007 = vst [vmem:[#allocation59_spill] sm:$0xff] %v9918_v38  ;;  %2892 = vrot.lane.b32.xlu0 %v2750_v48, %s7651_s17  ;;  %v9927_v40 = vpop.permute.xlu1 %2004  ;;  %v9931_v21 = vpop.permute.xlu0 %2402  ;;  %v1063_v59 = vmax.f32 %v889_v4, 0.0  ;;  %v2519_v48 = vsel %vm2474_vm2, %v14008_v45, %v13657_v22  ;;  %v3422_v4 = vsel %vm3041_vm10, %v14009_v62, %v9770_v46  ;;  %v13660_v22 = vrot.slane %v9220_v41, 1 }
 0x1fb   : > { %v891_v1 = vpop.f32.mrf.mxu0  ;;  %v3557_v15 = vsel %vm3140_vm11, %v3422_v4, %v2592_v0  ;;  %v9964_v62 = vor.u32 %v2752_v42, %v2751_v60  ;;  %v3164_v4 = vsel %vm3140_vm11, %v3065_v50, %v9793_v20  ;;  %v1329_v42 = vor.u32 %v9752_v49, %v1325_v34 }
 0x1fc   : > { %v892_v33 = vadd.f32 %v9308_v12, %v891_v1  ;;  %v3274_v60 = vsel %vm3239_vm12, %v3164_v4, %v9845_v6  ;;  %v14014_v20 = vrot.slane %v9152_v16, 1  ;;  %v10002_v4 = vshrl.u32 %v9345_v3, 16 }
 0x1fd   : > { %1579 = vrot.lane.b32.xlu1 %v1326_v43, %s7650_s14  ;;  %v7213_v32 = vpop.f32.mrf.mxu0  ;;  %v14010_v43 = vrot.slane %v9152_v16, 6  ;;  %v2754_v6 = vsel %vm2663_vm5, %v9896_v58, %v9964_v62  ;;  %v14024_v16 = vrot.slane %v9549_v26, 5 }
 0x1fe   : > { %2611 = vrot.lane.b32.xlu0 %v2519_v48, %s7649_s11  ;;  %v1064_v1 = vmax.f32 %v892_v33, 0.0  ;;  %v9951_v44 = vpop.permute.xlu1 %1809  ;;  %v2875_v17 = vpop.permute.xlu0 %2874  ;;  %v14011_v32 = vrot.slane %v9275_v39, 7  ;;  %v1732_v50 = vsel %vm1683_vm3, %v14014_v20, %v13660_v22  ;;  %14016 = vst [vmem:[#allocation61_spill] sm:$0xff] %v10002_v4  ;;  %v2755_v22 = vrot.slane %v10002_v4, 4 }
 0x1ff   : > { %v1928_v45 = vsel %vm1881_vm6, %v14010_v43, %v1927_v2  ;;  %v896_v48 = vpop.f32.mrf.mxu0  ;;  %v3664_v0 = vsel %vm3239_vm12, %v3557_v15, %v2875_v17  ;;  %v13659_v15 = vrot.slane %v9275_v39, 6 }
 0x200   : > { %7359 = vmatmul.mubr.msk.bf16.gmra.mxu0 %vm3041_vm10, %v2995_v36  ;;  %v2326_v46 = vsel %vm2277_vm7, %v14012_v63, %v14011_v32  ;;  %v13661_v36 = vrot.slane %v9479_v31, 5  ;;  %v9969_v33 = vpack.c.bf16 %v1064_v1, %v1063_v59  ;;  %v897_v43 = vadd.f32 %v9308_v12, %v896_v48  ;;  %4187 = vmatprep.mubr.bf16.mxu1 %v3664_v0 }
 0x201   : > { %7362 = vmatprep.mubr.msk.bf16.mxu0 %vm7647_vm0, %v13839_v61  ;;  %2024 = vrot.lane.b32.xlu1 %v1928_v45, %s7651_s17  ;;  %v7216_v63 = vpop.f32.mrf.mxu0  ;;  %v1333_v59 = vrot.slane %v9841_v10, 1  ;;  %v13663_v48 = vrot.slane %v9345_v3, 4  ;;  %v9999_v0 = vshll.u32 %v9345_v3, 16  ;;  %v10082_v10 = vshrl.u32 %v9625_v47, 16 }
 0x202   : > { %14013 = vst [vmem:[#allocation29_spill] sm:$0xff] %v9969_v33  ;;  %2422 = vrot.lane.b32.xlu0 %v2326_v46, %s7650_s14  ;;  %4188 = vmatmul.mubr.bf16.gmra.mxu1 %v3274_v60  ;;  %v9981_v1 = vpop.permute.xlu1 %1561  ;;  %v2594_v45 = vpop.permute.xlu0 %2593  ;;  %v2997_v34 = vsel %vm2946_vm9, %v2994_v24, %v13661_v36  ;;  %v1065_v32 = vmax.f32 %v897_v43, 0.0  ;;  %v13667_v24 = vrot.slane %v9345_v3, 7  ;;  %v1733_v43 = vrot.slane %v9275_v39, 1 }
 0x203   : > { %v899_v17 = vpop.f32.mrf.mxu0  ;;  %14015 = vst [vmem:[#allocation60_spill] sm:$0xff] %v9999_v0  ;;  %v1334_v63 = vsel %vm1138_vm4, %v1329_v42, %v1333_v59  ;;  %v2756_v36 = vrot.slane %v9999_v0, 5  ;;  %v3067_v42 = vsel %vm3041_vm10, %v8551_v13, %v9899_v28  ;;  %v10057_v28 = vshll.u32 %v9549_v26, 16 }
 0x204   : > { %v900_v46 = vadd.f32 %v9308_v12, %v899_v17  ;;  %v1930_v12 = vsel %vm1881_vm6, %v1927_v2, %v13659_v15  ;;  %v1337_v17 = vor.u32 %v9833_v53, %v1333_v59  ;;  %v10027_v2 = vshrl.u32 %v9415_v14, 16 }
 0x205   : > { %1829 = vrot.lane.b32.xlu1 %v1732_v50, %s7649_s11  ;;  %v7217_v58 = vpop.f32.mrf.mxu0  ;;  %v14020_v59 = vrot.slane %v9275_v39, 4 }
 0x206   : > { %2894 = vrot.lane.b32.xlu0 %v2754_v6, %s7651_s17  ;;  %v1066_v60 = vmax.f32 %v900_v46, 0.0  ;;  %v10007_v20 = vpop.permute.xlu1 %2006  ;;  %v10015_v50 = vpop.permute.xlu0 %2404  ;;  %v1341_v46 = vrot.slane %v9913_v11, 1  ;;  %14018 = vst [vmem:[#allocation63_spill] sm:$0xff] %v10027_v2 }
 0x207   : > { %v10017_v6 = vpop.f32.mrf.mxu0  ;;  %v2521_v15 = vsel %vm2474_vm2, %v14020_v59, %v13663_v48  ;;  %v14022_v48 = vld [vmem:[#allocation30_spill] sm:$0xff] }
 0x208   : > { %7363 = vmatmul.mubr.msk.bf16.gmra.mxu0 %vm3041_vm10, %v2997_v34  ;;  %v10024_v34 = vshll.u32 %v9415_v14, 16  ;;  %v10029_v58 = vpack.c.bf16 %v1066_v60, %v1065_v32  ;;  %v1345_v59 = vor.u32 %v9916_v52, %v1341_v46  ;;  %v3425_v11 = vsel %vm3041_vm10, %v14022_v48, %v9847_v35 }
 0x209   : > { %7366 = vmatprep.mubr.msk.bf16.mxu0 %vm7647_vm0, %v13839_v61  ;;  %1581 = vrot.lane.b32.xlu1 %v1334_v63, %s7650_s14  ;;  %v7268_v32 = vpop.f32.mrf.mxu0  ;;  %v14021_v63 = vrot.slane %v9275_v39, 7  ;;  %v2999_v35 = vsel %vm2946_vm9, %v14025_v9, %v14024_v16  ;;  %v2759_v48 = vrot.slane %v10027_v2, 4  ;;  %v13673_v52 = vrot.slane %v9999_v0, 1 }
 0x20a   : > { %14017 = vst [vmem:[#allocation62_spill] sm:$0xff] %v10024_v34  ;;  %14019 = vst [vmem:[#allocation64_spill] sm:$0xff] %v10029_v58  ;;  %2613 = vrot.lane.b32.xlu0 %v2521_v15, %s7649_s11  ;;  %v10053_v55 = vpop.permute.xlu1 %1811  ;;  %v10060_v15 = vshrl.u32 %v9549_v26, 16  ;;  %v3559_v32 = vsel %vm3140_vm11, %v3425_v11, %v2594_v45  ;;  %v2760_v13 = vrot.slane %v10024_v34, 5  ;;  %v3166_v11 = vsel %vm3140_vm11, %v3067_v42, %v9875_v27 }
 0x20b   : > { %v2328_v60 = vsel %vm2277_vm7, %v14021_v63, %v13667_v24  ;;  %v2877_v63 = vpop.permute.xlu0 %2876  ;;  %v10063_v24 = vpop.f32.mrf.mxu0  ;;  %v2757_v45 = vor.u32 %v2756_v36, %v2755_v22  ;;  %v3277_v16 = vsel %vm3239_vm12, %v3166_v11, %v9927_v40  ;;  %v13674_v9 = vrot.slane %v9415_v14, 4 }
 0x20c   : > { %14023 = vst [vmem:[#allocation30_spill] sm:$0xff] %v10063_v24  ;;  %v3667_v51 = vsel %vm3239_vm12, %v3559_v32, %v2877_v63  ;;  %v2191_v22 = vrot.slane %v10057_v28, 7  ;;  %v14027_v42 = vrot.slane %v9220_v41, 1  ;;  %v1342_v32 = vsel %vm1138_vm4, %v1337_v17, %v1341_v46 }
 0x20d   : > { %2026 = vrot.lane.b32.xlu1 %v1930_v12, %s7651_s17  ;;  %4195 = vmatprep.mubr.bf16.mxu1 %v3667_v51  ;;  %v7269_v25 = vpop.f32.mrf.mxu0  ;;  %v10089_v51 = vshll.u32 %v9625_v47, 16  ;;  %v2758_v11 = vsel %vm2663_vm5, %v9964_v62, %v2757_v45  ;;  %v14029_v27 = vrot.slane %v9275_v39, 6  ;;  %v14030_v17 = vrot.slane %v9345_v3, 1 }
 0x20e   : > { %2424 = vrot.lane.b32.xlu0 %v2328_v60, %s7650_s14  ;;  %4196 = vmatmul.mubr.bf16.gmra.mxu1 %v3277_v16  ;;  %v10084_v12 = vpop.permute.xlu1 %1563  ;;  %v2190_v25 = vrot.slane %v10060_v15, 6  ;;  %v1734_v60 = vsel %vm1683_vm3, %v14027_v42, %v1733_v43  ;;  %v14028_v16 = vrot.slane %v9345_v3, 6  ;;  %v14031_v62 = vrot.slane %v9345_v3, 4 }
 0x20f   : > { %v2596_v40 = vpop.permute.xlu0 %2595  ;;  %v10093_v36 = vpop.f32.mrf.mxu0  ;;  %v10115_v46 = vsel %vm1683_vm3, %v1733_v43, %v14030_v17  ;;  %v10132_v43 = vshrl.u32 %v9690_v23, 16  ;;  %v14036_v41 = vrot.slane %v9625_v47, 5 }
 0x210   : > { %7367 = vmatmul.mubr.msk.bf16.gmra.mxu0 %vm3041_vm10, %v2999_v35  ;;  %14026 = vst [vmem:[#allocation65_spill] sm:$0xff] %v10093_v36  ;;  %v10102_v35 = vor.u32 %v2760_v13, %v2759_v48  ;;  %v1932_v42 = vsel %vm1881_vm6, %v14029_v27, %v14028_v16  ;;  %v10120_v13 = vsel %vm1138_vm4, %v1345_v59, %v13673_v52  ;;  %v10129_v27 = vshll.u32 %v9690_v23, 16 }
 0x211   : > { %7370 = vmatprep.mubr.msk.bf16.mxu0 %vm7647_vm0, %v13839_v61  ;;  %1831 = vrot.lane.b32.xlu1 %v1734_v60, %s7649_s11  ;;  %v7272_v48 = vpop.f32.mrf.mxu0  ;;  %v2523_v60 = vsel %vm2474_vm2, %v14031_v62, %v13674_v9  ;;  %v2194_v16 = vrot.slane %v10082_v10, 6  ;;  %v14032_v59 = vrot.slane %v9415_v14, 7  ;;  %v10143_v63 = vor.u32 %v2191_v22, %v2190_v25 }
 0x212   : > { %2896 = vrot.lane.b32.xlu0 %v2758_v11, %s7651_s17  ;;  %v10135_v17 = vpop.permute.xlu1 %2008  ;;  %v14033_v11 = vrot.slane %v9345_v3, 7  ;;  %v2195_v62 = vrot.slane %v10089_v51, 7  ;;  %v3001_v53 = vsel %vm2946_vm9, %v14037_v37, %v14036_v41  ;;  %v2762_v36 = vsel %vm2663_vm5, %v2757_v45, %v10102_v35 }
 0x213   : > { %14034 = vst [vmem:[#allocation66_spill] sm:$0xff] %v10143_v63  ;;  %v10146_v9 = vpop.permute.xlu0 %2406  ;;  %v10148_v39 = vpop.f32.mrf.mxu0  ;;  %v10159_v25 = vshrl.u32 %v9758_v18, 16  ;;  %v3069_v22 = vsel %vm3041_vm10, %v8607_v29, %v9981_v1  ;;  %v10167_v52 = vshll.u32 %v9758_v18, 16  ;;  %v10170_v41 = vshll.u32 %v9814_v5, 16  ;;  %v14042_v1 = vld [vmem:[#allocation32_spill] sm:$0xff] }
 0x214   : > { %v2330_v48 = vsel %vm2277_vm7, %v14033_v11, %v14032_v59  ;;  %14035 = vst [vmem:[#allocation67_spill] sm:$0xff] %v10148_v39  ;;  %v10174_v45 = vshrl.u32 %v9814_v5, 16  ;;  %v2196_v59 = vor.u32 %v2195_v62, %v2194_v16  ;;  %v2198_v39 = vrot.slane %v10132_v43, 6  ;;  %14043 = vst [vmem:[#allocation32_spill] sm:$0xff] %v10185_v57 }
 0x215   : > { %14038 = vst [vmem:[#allocation68_spill] sm:$0xff] %v10159_v25  ;;  %1583 = vrot.lane.b32.xlu1 %v1342_v32, %s7650_s14  ;;  %14039 = vst [vmem:[#allocation69_spill] sm:$0xff] %v10167_v52  ;;  %v7273_v37 = vpop.f32.mrf.mxu0  ;;  %v2199_v29 = vrot.slane %v10129_v27, 7  ;;  %v3428_v32 = vsel %vm3041_vm10, %v14042_v1, %v9931_v21  ;;  %v10191_v16 = vshll.u32 %v9918_v38, 16  ;;  %v3168_v21 = vsel %vm3140_vm11, %v3069_v22, %v9951_v44 }
 0x216   : > { %14040 = vst [vmem:[#allocation70_spill] sm:$0xff] %v10170_v41  ;;  %2615 = vrot.lane.b32.xlu0 %v2523_v60, %s7649_s11  ;;  %14041 = vst [vmem:[#allocation71_spill] sm:$0xff] %v10174_v45  ;;  %v10181_v11 = vpop.permute.xlu1 %1813  ;;  %v10188_v60 = vshrl.u32 %v9865_v19, 16  ;;  %v3561_v62 = vsel %vm3140_vm11, %v3428_v32, %v2596_v40  ;;  %v2202_v1 = vrot.slane %v10159_v25, 6  ;;  %v3280_v40 = vsel %vm3239_vm12, %v3168_v21, %v10007_v20 }
 0x217   : > { %v2879_v37 = vpop.permute.xlu0 %2878  ;;  %v10194_v24 = vpop.f32.mrf.mxu0  ;;  %v10209_v32 = vshll.u32 %v9969_v33, 16  ;;  %v10213_v44 = vsel %vm2078_vm8, %v10143_v63, %v2196_v59  ;;  %v2203_v20 = vrot.slane %v10167_v52, 7  ;;  %v2206_v21 = vrot.slane %v10174_v45, 6 }
 0x218   : > { %7371 = vmatmul.mubr.msk.bf16.gmra.mxu0 %vm3041_vm10, %v3001_v53  ;;  %14044 = vst [vmem:[#allocation72_spill] sm:$0xff] %v10188_v60  ;;  %14045 = vst [vmem:[#allocation73_spill] sm:$0xff] %v10194_v24  ;;  %v10201_v53 = vshrl.u32 %v9918_v38, 16  ;;  %v3670_v49 = vsel %vm3239_vm12, %v3561_v62, %v2879_v37  ;;  %v10217_v24 = vshrl.u32 %v9969_v33, 16  ;;  %v10220_v62 = vshrl.u32 %v10029_v58, 16 }
 0x219   : > { %7374 = vmatprep.mubr.msk.bf16.mxu0 %vm7647_vm0, %v13839_v61  ;;  %2028 = vrot.lane.b32.xlu1 %v1932_v42, %s7651_s17  ;;  %14046 = vst [vmem:[#allocation74_spill] sm:$0xff] %v10209_v32  ;;  %14047 = vst [vmem:[#allocation75_spill] sm:$0xff] %v10213_v44  ;;  %v7276_v22 = vpop.f32.mrf.mxu0  ;;  %v2200_v42 = vor.u32 %v2199_v29, %v2198_v39  ;;  %v2207_v44 = vrot.slane %v10170_v41, 7  ;;  %v14051_v25 = vrot.slane %v9690_v23, 5  ;;  %v14052_v39 = vrot.slane %v9625_v47, 5 }
 0x21a   : > { %4203 = vmatprep.mubr.bf16.mxu1 %v3670_v49  ;;  %2426 = vrot.lane.b32.xlu0 %v2330_v48, %s7650_s14  ;;  %14048 = vst [vmem:[#allocation76_spill] sm:$0xff] %v10217_v24  ;;  %14049 = vst [vmem:[#allocation77_spill] sm:$0xff] %v10220_v62  ;;  %v10223_v37 = vpop.permute.xlu1 %1565  ;;  %v2210_v49 = vrot.slane %v10188_v60, 6  ;;  %v2211_v48 = vrot.slane %v10185_v57, 7  ;;  %v2204_v41 = vor.u32 %v2203_v20, %v2202_v1  ;;  %v10245_v60 = vshll.u32 %v9479_v31, 16 }
 0x21b   : > { %4204 = vmatmul.mubr.bf16.gmra.mxu1 %v3280_v40  ;;  %v2598_v22 = vpop.permute.xlu0 %2597  ;;  %v10229_v63 = vpop.f32.mrf.mxu0  ;;  %v3003_v29 = vsel %vm2946_vm9, %v14052_v39, %v14051_v25  ;;  %v10237_v40 = vshll.u32 %v10029_v58, 16  ;;  %v10240_v45 = vsel %vm2078_vm8, %v2196_v59, %v2200_v42  ;;  %v2208_v57 = vor.u32 %v2207_v44, %v2206_v21 }
 0x21c   : > { %14050 = vst [vmem:[#allocation78_spill] sm:$0xff] %v10229_v63  ;;  %14054 = vst [vmem:[#allocation80_spill] sm:$0xff] %v10240_v45  ;;  %v10248_v63 = vshrl.u32 %v9479_v31, 16  ;;  %v2212_v52 = vor.u32 %v2211_v48, %v2210_v49  ;;  %v10252_v39 = vsel %vm2078_vm8, %v2200_v42, %v2204_v41  ;;  %v2214_v59 = vrot.slane %v10201_v53, 6 }
 0x21d   : > { %14053 = vst [vmem:[#allocation79_spill] sm:$0xff] %v10237_v40  ;;  %1833 = vrot.lane.b32.xlu1 %v10115_v46, %s7649_s11  ;;  %14055 = vst [vmem:[#allocation81_spill] sm:$0xff] %v10245_v60  ;;  %v7277_v25 = vpop.f32.mrf.mxu0  ;;  %v2215_v1 = vrot.slane %v10191_v16, 7  ;;  %v2218_v46 = vrot.slane %v10217_v24, 6  ;;  %v10261_v45 = vsel %vm2078_vm8, %v2204_v41, %v2208_v57  ;;  %v2222_v42 = vrot.slane %v10220_v62, 6 }
 0x21e   : > { %14056 = vst [vmem:[#allocation82_spill] sm:$0xff] %v10248_v63  ;;  %2898 = vrot.lane.b32.xlu0 %v2762_v36, %s7651_s17  ;;  %14057 = vst [vmem:[#allocation83_spill] sm:$0xff] %v10252_v39  ;;  %v10257_v20 = vpop.permute.xlu1 %2010  ;;  %v10264_v44 = vsel %vm2078_vm8, %v2208_v57, %v2212_v52  ;;  %v2219_v36 = vrot.slane %v10209_v32, 7  ;;  %v2223_v25 = vrot.slane %v10237_v40, 7  ;;  %v14060_v57 = vrot.slane %v9479_v31, 4  ;;  %v14063_v32 = vld [vmem:[#allocation34_spill] sm:$0xff] }
 0x21f   : > { %14058 = vst [vmem:[#allocation84_spill] sm:$0xff] %v10261_v45  ;;  %14059 = vst [vmem:[#allocation85_spill] sm:$0xff] %v10264_v44  ;;  %v10268_v21 = vpop.permute.xlu0 %2408  ;;  %v10270_v49 = vpop.f32.mrf.mxu0  ;;  %v2216_v41 = vor.u32 %v2215_v1, %v2214_v59  ;;  %v14061_v44 = vrot.slane %v9415_v14, 4  ;;  %v2763_v39 = vrot.slane %v10248_v63, 4  ;;  %v2764_v48 = vrot.slane %v10245_v60, 5 }
 0x220   : > { %7375 = vmatmul.mubr.msk.bf16.gmra.mxu0 %vm3041_vm10, %v3003_v29  ;;  %v3004_v29 = vrot.slane %v9758_v18, 5  ;;  %v2220_v62 = vor.u32 %v2219_v36, %v2218_v46  ;;  %v3071_v59 = vsel %vm3041_vm10, %v8649_v7, %v10084_v12  ;;  %v2224_v40 = vor.u32 %v2223_v25, %v2222_v42 }
 0x221   : > { %7378 = vmatprep.mubr.msk.bf16.mxu0 %vm7647_vm0, %v13839_v61  ;;  %1585 = vrot.lane.b32.xlu1 %v10120_v13, %s7650_s14  ;;  %v2525_v45 = vsel %vm2474_vm2, %v14061_v44, %v14060_v57  ;;  %v7280_v1 = vpop.f32.mrf.mxu0  ;;  %v10291_v13 = vsel %vm2078_vm8, %v2212_v52, %v2216_v41  ;;  %v3431_v44 = vsel %vm3041_vm10, %v14063_v32, %v10015_v50  ;;  %v14064_v24 = vrot.slane %v9415_v14, 6 }
 0x222   : > { %2617 = vrot.lane.b32.xlu0 %v2525_v45, %s7649_s11  ;;  %14062 = vst [vmem:[#allocation86_spill] sm:$0xff] %v10291_v13  ;;  %v10296_v57 = vpop.permute.xlu1 %1815  ;;  %v14065_v46 = vrot.slane %v9345_v3, 6  ;;  %v10305_v12 = vsel %vm2078_vm8, %v2216_v41, %v2220_v62  ;;  %v3563_v52 = vsel %vm3140_vm11, %v3431_v44, %v2598_v22  ;;  %v14067_v50 = vrot.slane %v9690_v23, 5  ;;  %v14069_v1 = vld [vmem:[#allocation12_spill] sm:$0xff] }
 0x223   : > { %14066 = vst [vmem:[#allocation34_spill] sm:$0xff] %v10305_v12  ;;  %v2881_v45 = vpop.permute.xlu0 %2880  ;;  %v10308_v42 = vpop.f32.mrf.mxu0  ;;  %v10314_v25 = vsel %vm2078_vm8, %v2220_v62, %v2224_v40  ;;  %v14071_v22 = vrot.slane %v9479_v31, 7  ;;  %v14072_v41 = vrot.slane %v9415_v14, 7  ;;  %v10329_v7 = vor.u32 %v2764_v48, %v2763_v39 }
 0x224   : > { %v1934_v36 = vsel %vm1881_vm6, %v14065_v46, %v14064_v24  ;;  %v3005_v32 = vsel %vm2946_vm9, %v14067_v50, %v3004_v29  ;;  %14068 = vst [vmem:[#allocation87_spill] sm:$0xff] %v10314_v25  ;;  %v10318_v24 = vsel %vm2078_vm8, %v2224_v40, %v14069_v1  ;;  %v3673_v46 = vsel %vm3239_vm12, %v3563_v52, %v2881_v45 }
 0x225   : > { %14070 = vst [vmem:[#allocation12_spill] sm:$0xff] %v10318_v24  ;;  %2030 = vrot.lane.b32.xlu1 %v1934_v36, %s7651_s17  ;;  %v2332_v44 = vsel %vm2277_vm7, %v14072_v41, %v14071_v22  ;;  %v3170_v50 = vsel %vm3140_vm11, %v3071_v59, %v10053_v55  ;;  %4211 = vmatprep.mubr.bf16.mxu1 %v3673_v46  ;;  %v7281_v62 = vpop.f32.mrf.mxu0  ;;  %v14073_v1 = vrot.slane %v9415_v14, 1  ;;  %v14074_v55 = vrot.slane %v9345_v3, 1  ;;  %v14094_v3 = vld [vmem:[#allocation6_spill] sm:$0xff] }
 0x226   : > { %2428 = vrot.lane.b32.xlu0 %v2332_v44, %s7650_s14  ;;  %v3283_v40 = vsel %vm3239_vm12, %v3170_v50, %v10135_v17  ;;  %v10334_v36 = vpop.permute.xlu1 %1567  ;;  %v14075_v48 = vrot.slane %v9999_v0, 1  ;;  %v1357_v17 = vrot.slane %v10024_v34, 1  ;;  %v2766_v46 = vsel %vm2663_vm5, %v10102_v35, %v10329_v7 }
 0x227   : > { %4212 = vmatmul.mubr.bf16.gmra.mxu1 %v3283_v40  ;;  %v2600_v52 = vpop.permute.xlu0 %2599  ;;  %v10337_v45 = vpop.f32.mrf.mxu0  ;;  %v1738_v39 = vsel %vm1683_vm3, %v14074_v55, %v14073_v1  ;;  %v2526_v22 = vrot.slane %v9549_v26, 4  ;;  %v14077_v35 = vrot.slane %v9479_v31, 4  ;;  %v14078_v55 = vld [vmem:[#allocation38_spill] sm:$0xff]  ;;  %v14080_v25 = vrot.slane %v9479_v31, 6 }
 0x228   : > { %7379 = vmatmul.mubr.msk.bf16.gmra.mxu0 %vm3041_vm10, %v3005_v32  ;;  %v1353_v59 = vor.u32 %v10002_v4, %v14075_v48  ;;  %v3006_v32 = vrot.slane %v9814_v5, 5  ;;  %v14104_v34 = vrot.slane %v9690_v23, 7  ;;  %v14124_v4 = vld [vmem:[#allocation65_spill] sm:$0xff] }
 0x229   : > { %7382 = vmatprep.mubr.msk.bf16.mxu0 %vm7647_vm0, %v13839_v61  ;;  %1835 = vrot.lane.b32.xlu1 %v1738_v39, %s7649_s11  ;;  %v7284_v41 = vpop.f32.mrf.mxu0  ;;  %v2527_v39 = vsel %vm2474_vm2, %v14077_v35, %v2526_v22 }
 0x22a   : > { %2900 = vrot.lane.b32.xlu0 %v2766_v46, %s7651_s17  ;;  %v10357_v44 = vpop.permute.xlu1 %2012  ;;  %v1358_v40 = vsel %vm1138_vm4, %v1353_v59, %v1357_v17  ;;  %v3007_v1 = vsel %vm2946_vm9, %v3004_v29, %v3006_v32  ;;  %v2767_v46 = vrot.slane %v10060_v15, 4  ;;  %v2768_v41 = vrot.slane %v10057_v28, 5 }
 0x22b   : > { %v10359_v50 = vpop.permute.xlu0 %2410  ;;  %v10361_v62 = vpop.f32.mrf.mxu0  ;;  %v3073_v59 = vsel %vm3041_vm10, %v8697_v30, %v10223_v37  ;;  %v14081_v30 = vrot.slane %v9415_v14, 6 }
 0x22c   : > { %14076 = vst [vmem:[#allocation88_spill] sm:$0xff] %v10361_v62 }
 0x22d   : > { %1587 = vrot.lane.b32.xlu1 %v1358_v40, %s7650_s14  ;;  %v7285_v29 = vpop.f32.mrf.mxu0  ;;  %v3434_v40 = vsel %vm3041_vm10, %v14078_v55, %v10146_v9  ;;  %v1936_v37 = vsel %vm1881_vm6, %v14081_v30, %v14080_v25  ;;  %v3008_v9 = vrot.slane %v9865_v19, 5  ;;  %v14083_v55 = vrot.slane %v9479_v31, 7 }
 0x22e   : > { %2619 = vrot.lane.b32.xlu0 %v2527_v39, %s7649_s11  ;;  %v10380_v24 = vpop.permute.xlu1 %1817  ;;  %v3565_v35 = vsel %vm3140_vm11, %v3434_v40, %v2600_v52  ;;  %v1739_v39 = vrot.slane %v9479_v31, 1  ;;  %v14082_v52 = vrot.slane %v9549_v26, 7  ;;  %v3172_v25 = vsel %vm3140_vm11, %v3073_v59, %v10181_v11 }
 0x22f   : > { %v2883_v48 = vpop.permute.xlu0 %2882  ;;  %v10384_v12 = vpop.f32.mrf.mxu0  ;;  %v10404_v40 = vor.u32 %v2768_v41, %v2767_v46  ;;  %v3009_v11 = vsel %vm2946_vm9, %v3006_v32, %v3008_v9  ;;  %v1361_v46 = vor.u32 %v10027_v2, %v1357_v17  ;;  %v1365_v41 = vrot.slane %v10245_v60, 1 }
 0x230   : > { %7383 = vmatmul.mubr.msk.bf16.gmra.mxu0 %vm3041_vm10, %v3007_v1  ;;  %14079 = vst [vmem:[#allocation38_spill] sm:$0xff] %v10384_v12  ;;  %v3676_v1 = vsel %vm3239_vm12, %v3565_v35, %v2883_v48  ;;  %v2334_v29 = vsel %vm2277_vm7, %v14083_v55, %v14082_v52  ;;  %v3286_v48 = vsel %vm3239_vm12, %v3172_v25, %v10257_v20  ;;  %v14085_v52 = vrot.slane %v9415_v14, 1 }
 0x231   : > { %7386 = vmatprep.mubr.msk.bf16.mxu0 %vm7647_vm0, %v13839_v61  ;;  %2032 = vrot.lane.b32.xlu1 %v1936_v37, %s7651_s17  ;;  %v7288_v30 = vpop.f32.mrf.mxu0  ;;  %v2770_v20 = vsel %vm2663_vm5, %v10329_v7, %v10404_v40  ;;  %v13701_v59 = vrot.slane %v9625_v47, 4  ;;  %v1366_v25 = vsel %vm1138_vm4, %v1361_v46, %v1365_v41  ;;  %v3075_v46 = vsel %vm3041_vm10, %v8742_v56, %v10334_v36 }
 0x232   : > { %4219 = vmatprep.mubr.bf16.mxu1 %v3676_v1  ;;  %2430 = vrot.lane.b32.xlu0 %v2334_v29, %s7650_s14  ;;  %v10409_v35 = vpop.permute.xlu1 %1569  ;;  %v1740_v55 = vsel %vm1683_vm3, %v14085_v52, %v1739_v39  ;;  %v1937_v30 = vrot.slane %v9549_v26, 6  ;;  %v14088_v14 = vrot.slane %v9479_v31, 6  ;;  %v14089_v36 = vrot.slane %v9918_v38, 5 }
 0x233   : > { %4220 = vmatmul.mubr.bf16.gmra.mxu1 %v3286_v48  ;;  %v2602_v37 = vpop.permute.xlu0 %2601  ;;  %v10411_v13 = vpop.f32.mrf.mxu0  ;;  %v2529_v48 = vsel %vm2474_vm2, %v2526_v22, %v13701_v59 }
 0x234   : > { %14084 = vst [vmem:[#allocation89_spill] sm:$0xff] %v10411_v13  ;;  %v1938_v56 = vsel %vm1881_vm6, %v14088_v14, %v1937_v30  ;;  %v14130_v13 = vld [vmem:[#allocation35_spill] sm:$0xff] }
 0x235   : > { %1837 = vrot.lane.b32.xlu1 %v1740_v55, %s7649_s11  ;;  %v7289_v1 = vpop.f32.mrf.mxu0  ;;  %v2771_v55 = vrot.slane %v10082_v10, 4 }
 0x236   : > { %2902 = vrot.lane.b32.xlu0 %v2770_v20, %s7651_s17  ;;  %v10425_v29 = vpop.permute.xlu1 %2014  ;;  %v1741_v1 = vrot.slane %v9549_v26, 1 }
 0x237   : > { %v10428_v32 = vpop.permute.xlu0 %2412  ;;  %v10430_v17 = vpop.f32.mrf.mxu0 }
 0x238   : > { %7387 = vmatmul.mubr.msk.bf16.gmra.mxu0 %vm3041_vm10, %v3009_v11  ;;  %14086 = vst [vmem:[#allocation90_spill] sm:$0xff] %v10430_v17  ;;  %v2772_v11 = vrot.slane %v10089_v51, 5 }
 0x239   : > { %7390 = vmatprep.mubr.msk.bf16.mxu0 %vm7647_vm0, %v13839_v61  ;;  %1589 = vrot.lane.b32.xlu1 %v1366_v25, %s7650_s14  ;;  %v7292_v20 = vpop.f32.mrf.mxu0  ;;  %v3437_v25 = vsel %vm3041_vm10, %v8987_v54, %v10268_v21  ;;  %v14091_v54 = vrot.slane %v9625_v47, 7  ;;  %v14092_v21 = vrot.slane %v9549_v26, 7 }
 0x23a   : > { %2621 = vrot.lane.b32.xlu0 %v2529_v48, %s7649_s11  ;;  %v10452_v22 = vpop.permute.xlu1 %1819  ;;  %v3567_v59 = vsel %vm3140_vm11, %v3437_v25, %v2602_v37  ;;  %v3011_v48 = vsel %vm2946_vm9, %v3008_v9, %v14089_v36  ;;  %v14090_v20 = vld [vmem:[#allocation2_spill] sm:$0xff]  ;;  %v3174_v25 = vsel %vm3140_vm11, %v3075_v46, %v10296_v57  ;;  %v10473_v14 = vor.u32 %v2772_v11, %v2771_v55 }
 0x23b   : > { %v2885_v52 = vpop.permute.xlu0 %2884  ;;  %v10455_v7 = vpop.f32.mrf.mxu0  ;;  %v2336_v37 = vsel %vm2277_vm7, %v14092_v21, %v14091_v54  ;;  %v1369_v57 = vor.u32 %v10248_v63, %v1365_v41  ;;  %v1939_v55 = vrot.slane %v9625_v47, 6  ;;  %v2776_v41 = vrot.slane %v10129_v27, 5 }
 0x23c   : > { %14087 = vst [vmem:[#allocation91_spill] sm:$0xff] %v10455_v7  ;;  %v3679_v60 = vsel %vm3239_vm12, %v3567_v59, %v2885_v52  ;;  %v3289_v59 = vsel %vm3239_vm12, %v3174_v25, %v10357_v44  ;;  %v1742_v52 = vsel %vm1683_vm3, %v1739_v39, %v1741_v1  ;;  %v14097_v25 = vrot.slane %v9625_v47, 1 }
 0x23d   : > { %2034 = vrot.lane.b32.xlu1 %v1938_v56, %s7651_s17  ;;  %4227 = vmatprep.mubr.bf16.mxu1 %v3679_v60  ;;  %v7293_v9 = vpop.f32.mrf.mxu0  ;;  %v14093_v56 = vld [vmem:[#allocation4_spill] sm:$0xff]  ;;  %v1373_v60 = vrot.slane %v10057_v28, 1  ;;  %v2774_v28 = vsel %vm2663_vm5, %v10404_v40, %v10473_v14  ;;  %v1940_v31 = vsel %vm1881_vm6, %v1937_v30, %v1939_v55 }
 0x23e   : > { %2432 = vrot.lane.b32.xlu0 %v2336_v37, %s7650_s14  ;;  %v3018_v36 = vrot.slane %v14093_v56, 5  ;;  %4228 = vmatmul.mubr.bf16.gmra.mxu1 %v3289_v59  ;;  %v10481_v54 = vpop.permute.xlu1 %1571  ;;  %v10503_v37 = vld [vmem:[%s13572_s4] ss:$0 sm:$0xff]  ;;  %v1381_v59 = vrot.slane %v10089_v51, 1  ;;  %v14098_v51 = vrot.slane %v14094_v3, 5  ;;  %v14100_v56 = vrot.slane %v9690_v23, 4 }
 0x23f   : > { %v2604_v44 = vpop.permute.xlu0 %2603  ;;  %v10488_v46 = vpop.f32.mrf.mxu0  ;;  %v1377_v9 = vor.u32 %v10060_v15, %v1373_v60  ;;  %v1374_v11 = vsel %vm1138_vm4, %v1369_v57, %v1373_v60  ;;  %v1744_v15 = vsel %vm1683_vm3, %v1741_v1, %v14097_v25  ;;  %v14101_v57 = vrot.slane %v9625_v47, 4 }
 0x240   : > { %7391 = vmatmul.mubr.msk.bf16.gmra.mxu0 %vm3041_vm10, %v3011_v48  ;;  %14095 = vst [vmem:[#allocation6_spill] sm:$0xff] %v10488_v46  ;;  %v2775_v48 = vrot.slane %v10132_v43, 4  ;;  %v14102_v60 = vrot.slane %v9969_v33, 5  ;;  %v14103_v1 = vrot.slane %v9918_v38, 5 }
 0x241   : > { %7394 = vmatprep.mubr.msk.bf16.mxu0 %vm7647_vm0, %v13839_v61  ;;  %1839 = vrot.lane.b32.xlu1 %v1742_v52, %s7649_s11  ;;  %v7296_v21 = vpop.f32.mrf.mxu0  ;;  %v14096_v52 = vrot.slane %v14090_v20, 5  ;;  %v2531_v30 = vsel %vm2474_vm2, %v14101_v57, %v14100_v56  ;;  %v10553_v57 = vsel %vm1138_vm4, %v1377_v9, %v1381_v59 }
 0x242   : > { %2904 = vrot.lane.b32.xlu0 %v2774_v28, %s7651_s17  ;;  %v4101_v40 = vpop.f32.mrf.mxu1  ;;  %v10524_v21 = vsel %vm2946_vm9, %v3018_v36, %v14098_v51  ;;  %v3013_v25 = vsel %vm2946_vm9, %v14103_v1, %v14102_v60 }
 0x243   : > { %v10512_v39 = vsel %vm2946_vm9, %v14096_v52, %v3018_v36  ;;  %v10514_v26 = vpop.permute.xlu1 %2016  ;;  %v4102_v28 = vadd.f32 %v10503_v37, %v4101_v40  ;;  %v10527_v52 = vpop.permute.xlu0 %2414  ;;  %v10541_v36 = vor.u32 %v2776_v41, %v2775_v48  ;;  %v3077_v40 = vsel %vm3041_vm10, %v8815_v8, %v10409_v35 }
 0x244   : > { %v10529_v63 = vpop.f32.mrf.mxu0  ;;  %v4103_v51 = vpop.f32.mrf.mxu1  ;;  %v3176_v35 = vsel %vm3140_vm11, %v3077_v40, %v10380_v24  ;;  %v14112_v40 = vrot.slane %v9690_v23, 6 }
 0x245   : > { %14099 = vst [vmem:[#allocation92_spill] sm:$0xff] %v10529_v63  ;;  %1591 = vrot.lane.b32.xlu1 %v1374_v11, %s7650_s14  ;;  %v14105_v63 = vrot.slane %v9625_v47, 7  ;;  %v10557_v48 = vadd.f32 %v10017_v6, %v4102_v28  ;;  %v14106_v11 = vld [vmem:[#allocation44_spill] sm:$0xff]  ;;  %v13715_v6 = vrot.slane %v9758_v18, 4 }
 0x246   : > { %2623 = vrot.lane.b32.xlu0 %v2531_v30, %s7649_s11  ;;  %v7297_v8 = vpop.f32.mrf.mxu0  ;;  %v10562_v41 = vshll.u32 %v14106_v11, 16  ;;  %v10565_v1 = vshrl.u32 %v14106_v11, 16  ;;  %v4104_v9 = vpop.f32.mrf.mxu1  ;;  %v14110_v30 = vld [vmem:[#allocation54_spill] sm:$0xff] }
 0x247   : > { %v2338_v56 = vsel %vm2277_vm7, %v14105_v63, %v14104_v34  ;;  %v14109_v34 = vld [vmem:[#allocation40_spill] sm:$0xff]  ;;  %v10570_v51 = vpop.permute.xlu1 %1821  ;;  %v2166_v8 = vrot.slane %v14110_v30, 6  ;;  %v4105_v2 = vadd.f32 %v10503_v37, %v4104_v9  ;;  %v14113_v9 = vld [vmem:[#allocation30_spill] sm:$0xff] }
 0x248   : > { %14107 = vst [vmem:[#allocation93_spill] sm:$0xff] %v10562_v41  ;;  %14108 = vst [vmem:[#allocation94_spill] sm:$0xff] %v10565_v1  ;;  %v3440_v63 = vsel %vm3041_vm10, %v14109_v34, %v10359_v50  ;;  %7395 = vmatmul.mubr.msk.bf16.gmra.mxu0 %vm3041_vm10, %v3013_v25  ;;  %v2887_v46 = vpop.permute.xlu0 %2886  ;;  %v10580_v50 = vpop.f32.mrf.mxu0  ;;  %v2778_v25 = vsel %vm2663_vm5, %v10473_v14, %v10541_v36  ;;  %v3292_v34 = vsel %vm3239_vm12, %v3176_v35, %v10425_v29 }
 0x249   : > { %v3569_v60 = vsel %vm3140_vm11, %v3440_v63, %v2604_v44  ;;  %14111 = vst [vmem:[#allocation40_spill] sm:$0xff] %v10580_v50  ;;  %7398 = vmatprep.mubr.msk.bf16.mxu0 %vm7647_vm0, %v13839_v61  ;;  %v4106_v30 = vpop.f32.mrf.mxu1  ;;  %2036 = vrot.lane.b32.xlu1 %v1940_v31, %s7651_s17  ;;  %v13716_v44 = vrot.slane %v10029_v58, 5  ;;  %v10595_v63 = vsel %vm1881_vm6, %v1939_v55, %v14112_v40  ;;  %v4891_v14 = vmax.f32 %v10557_v48, 0.0  ;;  %v14123_v50 = vld [vmem:[#allocation69_spill] sm:$0xff] }
 0x24a   : > { %v3682_v24 = vsel %vm3239_vm12, %v3569_v60, %v2887_v46  ;;  %v10599_v28 = vadd.f32 %v14113_v9, %v4105_v2  ;;  %2434 = vrot.lane.b32.xlu0 %v2338_v56, %s7650_s14  ;;  %v7300_v29 = vpop.f32.mrf.mxu0  ;;  %v2238_v46 = vrot.slane %v10565_v1, 6  ;;  %v2239_v31 = vrot.slane %v10562_v41, 7  ;;  %v14115_v2 = vld [vmem:[#allocation53_spill] sm:$0xff] }
 0x24b   : > { %4235 = vmatprep.mubr.bf16.mxu1 %v3682_v24  ;;  %v4109_v60 = vpop.f32.mrf.mxu1  ;;  %v10604_v35 = vpop.permute.xlu1 %1573  ;;  %v14114_v55 = vrot.slane %v9690_v23, 4  ;;  %v2167_v30 = vrot.slane %v14115_v2, 7  ;;  %v1385_v24 = vor.u32 %v10082_v10, %v1381_v59  ;;  %v1389_v56 = vrot.slane %v10129_v27, 1 }
 0x24c   : > { %4236 = vmatmul.mubr.bf16.gmra.mxu1 %v3292_v34  ;;  %v4892_v40 = vmax.f32 %v10599_v28, 0.0  ;;  %v4110_v9 = vadd.f32 %v10503_v37, %v4109_v60  ;;  %v2606_v34 = vpop.permute.xlu0 %2605  ;;  %v10616_v29 = vpop.f32.mrf.mxu0  ;;  %v14117_v41 = vrot.slane %v9969_v33, 5  ;;  %v14119_v2 = vrot.slane %v9690_v23, 7  ;;  %v14131_v33 = vld [vmem:[#allocation67_spill] sm:$0xff] }
 0x24d   : > { %v2533_v48 = vsel %vm2474_vm2, %v14114_v55, %v13715_v6  ;;  %14116 = vst [vmem:[#allocation54_spill] sm:$0xff] %v10616_v29  ;;  %v14118_v55 = vrot.slane %v9758_v18, 7  ;;  %v4111_v27 = vpop.f32.mrf.mxu1  ;;  %1841 = vrot.lane.b32.xlu1 %v1744_v15, %s7649_s11  ;;  %v14120_v59 = vrot.slane %v9690_v23, 1  ;;  %v14121_v28 = vrot.slane %v9625_v47, 1  ;;  %v14122_v6 = vld [vmem:[#allocation68_spill] sm:$0xff] }
 0x24e   : > { %v3015_v1 = vsel %vm2946_vm9, %v14117_v41, %v13716_v44  ;;  %v2779_v29 = vrot.slane %v14122_v6, 4  ;;  %v2780_v41 = vrot.slane %v14123_v50, 5  ;;  %v5058_v7 = vrot.slane %v4891_v14, 1  ;;  %2906 = vrot.lane.b32.xlu0 %v2778_v25, %s7651_s17  ;;  %v7301_v15 = vpop.f32.mrf.mxu0  ;;  %v14125_v44 = vld [vmem:[#allocation46_spill] sm:$0xff] }
 0x24f   : > { %v2340_v10 = vsel %vm2277_vm7, %v14119_v2, %v14118_v55  ;;  %v10634_v60 = vsel %vm1683_vm3, %v14121_v28, %v14120_v59  ;;  %v5059_v0 = vrot.slane %v4892_v40, 1  ;;  %v10640_v55 = vadd.f32 %v14124_v4, %v4110_v9  ;;  %v4112_v27 = vpop.f32.mrf.mxu1  ;;  %v10645_v47 = vpop.permute.xlu1 %2018  ;;  %v14129_v15 = vld [vmem:[#allocation27_spill] sm:$0xff] }
 0x250   : > { %v10643_v2 = vor.u32 %v2239_v31, %v2238_v46  ;;  %7399 = vmatmul.mubr.msk.bf16.gmra.mxu0 %vm3041_vm10, %v3015_v1  ;;  %v10648_v59 = vor.u32 %v2167_v30, %v2166_v8  ;;  %v10651_v28 = vsel %vm1138_vm4, %v1385_v24, %v1389_v56  ;;  %v10654_v17 = vshll.u32 %v14125_v44, 16  ;;  %v10662_v9 = vpop.permute.xlu0 %2416  ;;  %v10664_v1 = vpop.f32.mrf.mxu0 }
 0x251   : > { %v10657_v4 = vshrl.u32 %v14125_v44, 16  ;;  %v5060_v25 = vsel %vm1683_vm3, %v5058_v7, %v5059_v0  ;;  %v4893_v46 = vmax.f32 %v10640_v55, 0.0  ;;  %v4113_v31 = vadd.f32 %v10503_v37, %v4112_v27  ;;  %14128 = vst [vmem:[#allocation68_spill] sm:$0xff] %v10664_v1  ;;  %7402 = vmatprep.mubr.msk.bf16.mxu0 %vm7647_vm0, %v13839_v61  ;;  %v4114_v24 = vpop.f32.mrf.mxu1  ;;  %1593 = vrot.lane.b32.xlu1 %v10553_v57, %s7650_s14  ;;  %v14132_v57 = vld [vmem:[#allocation25_spill] sm:$0xff] }
 0x252   : > { %14126 = vst [vmem:[#allocation30_spill] sm:$0xff] %v10654_v17  ;;  %v10669_v30 = vmax.f32 %v4891_v14, %v5060_v25  ;;  %v10673_v7 = vor.u32 %v2780_v41, %v2779_v29  ;;  %v2170_v27 = vrot.slane %v14129_v15, 6  ;;  %v3079_v1 = vsel %vm3041_vm10, %v14130_v13, %v10481_v54  ;;  %2625 = vrot.lane.b32.xlu0 %v2533_v48, %s7649_s11  ;;  %v7304_v14 = vpop.f32.mrf.mxu0  ;;  %v14133_v24 = vld [vmem:[#allocation57_spill] sm:$0xff] }
 0x253   : > { %14127 = vst [vmem:[#allocation53_spill] sm:$0xff] %v10657_v4  ;;  %v5061_v12 = vrot.slane %v4893_v46, 1  ;;  %v10681_v62 = vadd.f32 %v14131_v33, %v4113_v31  ;;  %v3443_v29 = vsel %vm3041_vm10, %v14132_v57, %v10428_v32  ;;  %v10688_v41 = vpop.permute.xlu1 %1823  ;;  %v2171_v15 = vrot.slane %v14133_v24, 7 }
 0x254   : > { %v2242_v8 = vrot.slane %v10657_v4, 6  ;;  %v2243_v13 = vrot.slane %v10654_v17, 7  ;;  %v3571_v54 = vsel %vm3140_vm11, %v3443_v29, %v2606_v34  ;;  %v2889_v31 = vpop.permute.xlu0 %2888  ;;  %v10696_v14 = vpop.f32.mrf.mxu0  ;;  %v1393_v25 = vor.u32 %v10132_v43, %v1389_v56 }
 0x255   : > { %v5062_v33 = vsel %vm1683_vm3, %v5059_v0, %v5061_v12  ;;  %v13722_v48 = vmax.f32 %v10681_v62, 0.0  ;;  %14134 = vst [vmem:[#allocation69_spill] sm:$0xff] %v10696_v14  ;;  %v3178_v32 = vsel %vm3140_vm11, %v3079_v1, %v10452_v22  ;;  %v3685_v24 = vsel %vm3239_vm12, %v3571_v54, %v2889_v31  ;;  %2038 = vrot.lane.b32.xlu1 %v10595_v63, %s7651_s17  ;;  %v4117_v22 = vpop.f32.mrf.mxu1  ;;  %v14137_v63 = vld [vmem:[#allocation21_spill] sm:$0xff] }
 0x256   : > { %v10701_v57 = vmax.f32 %v4892_v40, %v5062_v33  ;;  %v3295_v34 = vsel %vm3239_vm12, %v3178_v32, %v10514_v26  ;;  %4243 = vmatprep.mubr.bf16.mxu1 %v3685_v24  ;;  %2436 = vrot.lane.b32.xlu0 %v2340_v10, %s7650_s14  ;;  %v7305_v43 = vpop.f32.mrf.mxu0  ;;  %v14135_v56 = vrot.slane %v14090_v20, 5  ;;  %v14136_v40 = vrot.slane %v10029_v58, 5  ;;  %v14139_v10 = vld [vmem:[#allocation71_spill] sm:$0xff]  ;;  %v14140_v32 = vld [vmem:[#allocation70_spill] sm:$0xff]  ;;  %v14145_v0 = vld [vmem:[#allocation73_spill] sm:$0xff] }
 0x257   : > { %v5063_v29 = vrot.slane %v13722_v48, 1  ;;  %v10720_v33 = vsel %vm2078_vm8, %v14137_v63, %v10643_v2  ;;  %v4118_v26 = vadd.f32 %v10503_v37, %v4117_v22  ;;  %4244 = vmatmul.mubr.bf16.gmra.mxu1 %v3295_v34  ;;  %v10723_v54 = vpop.permute.xlu1 %1575  ;;  %v2783_v31 = vrot.slane %v14139_v10, 4  ;;  %v14142_v63 = vld [vmem:[#allocation26_spill] sm:$0xff] }
 0x258   : > { %v3017_v1 = vsel %vm2946_vm9, %v14136_v40, %v14135_v56  ;;  %14138 = vst [vmem:[#allocation65_spill] sm:$0xff] %v10720_v33  ;;  %v2784_v24 = vrot.slane %v14140_v32, 5  ;;  %v10728_v43 = vor.u32 %v2243_v13, %v2242_v8  ;;  %v2608_v40 = vpop.permute.xlu0 %2607  ;;  %v10731_v48 = vpop.f32.mrf.mxu0  ;;  %v10736_v22 = vsel %vm2078_vm8, %v14142_v63, %v10648_v59  ;;  %v14165_v20 = vld [vmem:[#allocation78_spill] sm:$0xff] }
 0x259   : > { %7403 = vmatmul.mubr.msk.bf16.gmra.mxu0 %vm3041_vm10, %v3017_v1  ;;  %v5064_v56 = vsel %vm1683_vm3, %v5061_v12, %v5063_v29  ;;  %14141 = vst [vmem:[#allocation27_spill] sm:$0xff] %v10731_v48  ;;  %v14143_v34 = vrot.slane %v9758_v18, 6  ;;  %v14144_v1 = vrot.slane %v9690_v23, 6  ;;  %v10749_v55 = vadd.f32 %v14145_v0, %v4118_v26  ;;  %v4119_v33 = vpop.f32.mrf.mxu1  ;;  %1843 = vrot.lane.b32.xlu1 %v10634_v60, %s7649_s11 }
 0x25a   : > { %7406 = vmatprep.mubr.msk.bf16.mxu0 %vm7647_vm0, %v13839_v61  ;;  %v10746_v12 = vmax.f32 %v4893_v46, %v5064_v56  ;;  %v2782_v63 = vsel %vm2663_vm5, %v10541_v36, %v10673_v7  ;;  %v10756_v17 = vor.u32 %v2171_v15, %v2170_v27  ;;  %v14148_v46 = vrot.slane %v9758_v18, 4 }
 0x25b   : > { %v1944_v8 = vsel %vm1881_vm6, %v14144_v1, %v14143_v34  ;;  %2908 = vrot.lane.b32.xlu0 %v2782_v63, %s7651_s17  ;;  %v7308_v34 = vpop.f32.mrf.mxu0  ;;  %v14147_v1 = vrot.slane %v9814_v5, 4  ;;  %v14149_v33 = vrot.slane %v9814_v5, 7  ;;  %v14150_v26 = vrot.slane %v9758_v18, 7 }
 0x25c   : > { %14146 = vst [vmem:[#allocation35_spill] sm:$0xff] %v10756_v17  ;;  %v14151_v56 = vrot.slane %v9758_v18, 1  ;;  %v14152_v36 = vrot.slane %v9690_v23, 1  ;;  %v14153_v15 = vrot.slane %v14123_v50, 1  ;;  %v4895_v34 = vmax.f32 %v10749_v55, 0.0  ;;  %v10795_v23 = vpop.permute.xlu0 %2418 }
 0x25d   : > { %v2535_v0 = vsel %vm2474_vm2, %v14148_v46, %v14147_v1  ;;  %v2342_v60 = vsel %vm2277_vm7, %v14150_v26, %v14149_v33  ;;  %v4120_v1 = vpop.f32.mrf.mxu1  ;;  %v10782_v46 = vpop.permute.xlu1 %2020  ;;  %v10784_v13 = vor.u32 %v2784_v24, %v2783_v31  ;;  %v14154_v33 = vld [vmem:[#allocation14_spill] sm:$0xff]  ;;  %v14158_v55 = vrot.slane %v9814_v5, 6  ;;  %1595 = vrot.lane.b32.xlu1 %v10651_v28, %s7650_s14 }
 0x25e   : > { %v10774_v27 = vsel %vm1683_vm3, %v14152_v36, %v14151_v56  ;;  %v10779_v63 = vsel %vm1138_vm4, %v1393_v25, %v14153_v15  ;;  %v10787_v26 = vshrl.u32 %v14154_v33, 16  ;;  %v10792_v56 = vsel %vm2078_vm8, %v10643_v2, %v10728_v43  ;;  %v10797_v25 = vpop.f32.mrf.mxu0  ;;  %v14166_v28 = vld [vmem:[#allocation18_spill] sm:$0xff] }
 0x25f   : > { %14156 = vst [vmem:[#allocation25_spill] sm:$0xff] %v10792_v56  ;;  %v4121_v36 = vadd.f32 %v10503_v37, %v4120_v1  ;;  %14157 = vst [vmem:[#allocation57_spill] sm:$0xff] %v10797_v25  ;;  %v14159_v15 = vrot.slane %v9758_v18, 6  ;;  %v10808_v4 = vshll.u32 %v14154_v33, 16  ;;  %v5065_v2 = vrot.slane %v4895_v34, 1  ;;  %v4122_v56 = vpop.f32.mrf.mxu1  ;;  %v14162_v25 = vld [vmem:[#allocation32_spill] sm:$0xff]  ;;  %2627 = vrot.lane.b32.xlu0 %v2535_v0, %s7649_s11 }
 0x260   : > { %14155 = vst [vmem:[#allocation67_spill] sm:$0xff] %v10787_v26  ;;  %v10815_v1 = vsel %vm2078_vm8, %v10648_v59, %v10756_v17  ;;  %v2788_v48 = vrot.slane %v14162_v25, 5  ;;  %v7309_v56 = vpop.f32.mrf.mxu0  ;;  %v10827_v33 = vshll.u32 %v14166_v28, 16  ;;  %v10830_v59 = vshrl.u32 %v14166_v28, 16  ;;  %v14169_v17 = vld [vmem:[#allocation52_spill] sm:$0xff] }
 0x261   : > { %v10804_v31 = vsel %vm1881_vm6, %v14159_v15, %v14158_v55  ;;  %14160 = vst [vmem:[#allocation21_spill] sm:$0xff] %v10808_v4  ;;  %14161 = vst [vmem:[#allocation71_spill] sm:$0xff] %v10815_v1  ;;  %v14164_v15 = vld [vmem:[#allocation36_spill] sm:$0xff]  ;;  %v10823_v58 = vadd.f32 %v14165_v20, %v4121_v36  ;;  %v3446_v55 = vsel %vm3041_vm10, %v14169_v17, %v10527_v52  ;;  %v10836_v1 = vpop.permute.xlu1 %1825  ;;  %7407 = vmatmul.mubr.msk.bf16.gmra.mxu0 %vm3041_vm10, %v10512_v39  ;;  %v2891_v17 = vpop.permute.xlu0 %2890 }
 0x262   : > { %v3081_v24 = vsel %vm3041_vm10, %v14164_v15, %v10604_v35  ;;  %14167 = vst [vmem:[#allocation70_spill] sm:$0xff] %v10827_v33  ;;  %14168 = vst [vmem:[#allocation26_spill] sm:$0xff] %v10830_v59  ;;  %v5066_v14 = vsel %vm1683_vm3, %v5063_v29, %v5065_v2  ;;  %v14170_v20 = vld [vmem:[#allocation72_spill] sm:$0xff]  ;;  %v2246_v0 = vrot.slane %v10787_v26, 6  ;;  %v14171_v36 = vmax.f32 %v10681_v62, 0.0  ;;  %v10848_v52 = vpop.f32.mrf.mxu0  ;;  %7410 = vmatprep.mubr.msk.bf16.mxu0 %vm7647_vm0, %v13839_v61 }
 0x263   : > { %v2787_v35 = vrot.slane %v14170_v20, 4  ;;  %v3573_v56 = vsel %vm3140_vm11, %v3446_v55, %v2608_v40  ;;  %v13736_v28 = vmax.f32 %v10823_v58, 0.0  ;;  %14172 = vst [vmem:[#allocation73_spill] sm:$0xff] %v10848_v52  ;;  %v2247_v39 = vrot.slane %v10808_v4, 7  ;;  %2040 = vrot.lane.b32.xlu1 %v1944_v8, %s7651_s17  ;;  %2438 = vrot.lane.b32.xlu0 %v2342_v60, %s7650_s14  ;;  %v4125_v52 = vpop.f32.mrf.mxu1 }
 0x264   : > { %v10844_v15 = vmax.f32 %v14171_v36, %v5066_v14  ;;  %v3180_v29 = vsel %vm3140_vm11, %v3081_v24, %v10570_v51  ;;  %v3688_v26 = vsel %vm3239_vm12, %v3573_v56, %v2891_v17  ;;  %v7312_v36 = vpop.f32.mrf.mxu0  ;;  %v2250_v51 = vrot.slane %v10830_v59, 6 }
 0x265   : > { %v3298_v40 = vsel %vm3239_vm12, %v3180_v29, %v10645_v47  ;;  %v5067_v55 = vrot.slane %v13736_v28, 1  ;;  %4251 = vmatprep.mubr.bf16.mxu1 %v3688_v26  ;;  %v2251_v24 = vrot.slane %v10827_v33, 7  ;;  %v4126_v8 = vadd.f32 %v10503_v37, %v4125_v52  ;;  %v10867_v56 = vpop.permute.xlu1 %1577  ;;  %v2610_v36 = vpop.permute.xlu0 %2609 }
 0x266   : > { %4252 = vmatmul.mubr.bf16.gmra.mxu1 %v3298_v40  ;;  %v14173_v17 = vrot.slane %v14123_v50, 1  ;;  %v1405_v29 = vrot.slane %v14140_v32, 1  ;;  %v13737_v26 = vrot.slane %v9865_v19, 6  ;;  %v10875_v28 = vpop.f32.mrf.mxu0  ;;  %v13738_v14 = vrot.slane %v14106_v11, 5 }
 0x267   : > { %v5068_v60 = vsel %vm1683_vm3, %v5065_v2, %v5067_v55  ;;  %14174 = vst [vmem:[#allocation32_spill] sm:$0xff] %v10875_v28  ;;  %v10878_v62 = vor.u32 %v2788_v48, %v2787_v35  ;;  %v2248_v52 = vor.u32 %v2247_v39, %v2246_v0  ;;  %v10883_v50 = vadd.f32 %v10270_v49, %v4126_v8 }
 0x268   : > { %v1401_v47 = vor.u32 %v14122_v6, %v14173_v17  ;;  %v10880_v40 = vmax.f32 %v4895_v34, %v5068_v60  ;;  %v4127_v6 = vpop.f32.mrf.mxu1  ;;  %1845 = vrot.lane.b32.xlu1 %v10774_v27, %s7649_s11  ;;  %v2786_v32 = vsel %vm2663_vm5, %v10673_v7, %v10784_v13  ;;  %v14175_v2 = vrot.slane %v9814_v5, 1  ;;  %v7313_v34 = vpop.f32.mrf.mxu0 }
 0x269   : > { %v14176_v17 = vrot.slane %v9758_v18, 1  ;;  %2910 = vrot.lane.b32.xlu0 %v2786_v32, %s7651_s17  ;;  %v14177_v49 = vrot.slane %v9865_v19, 4  ;;  %v14178_v35 = vrot.slane %v9814_v5, 4  ;;  %v14179_v0 = vrot.slane %v9865_v19, 7  ;;  %7411 = vmatmul.mubr.msk.bf16.gmra.mxu0 %vm3041_vm10, %v10524_v21 }
 0x26a   : > { %v14180_v7 = vrot.slane %v9814_v5, 7  ;;  %v10910_v8 = vsel %vm2078_vm8, %v10728_v43, %v2248_v52  ;;  %v10912_v60 = vor.u32 %v2251_v24, %v2250_v51  ;;  %v13740_v6 = vmax.f32 %v10883_v50, 0.0  ;;  %v4128_v32 = vpop.f32.mrf.mxu1  ;;  %7414 = vmatprep.mubr.msk.bf16.mxu0 %vm7647_vm0, %v13839_v61 }
 0x26b   : > { %v10895_v48 = vsel %vm1683_vm3, %v14176_v17, %v14175_v2  ;;  %v2537_v27 = vsel %vm2474_vm2, %v14178_v35, %v14177_v49  ;;  %14181 = vst [vmem:[#allocation36_spill] sm:$0xff] %v10910_v8  ;;  %v10915_v2 = vpop.permute.xlu1 %2022  ;;  %v10920_v17 = vsel %vm1138_vm4, %v1401_v47, %v1405_v29  ;;  %v14182_v34 = vrot.slane %v9814_v5, 6  ;;  %v10931_v49 = vpop.permute.xlu0 %2420 }
 0x26c   : > { %v2344_v39 = vsel %vm2277_vm7, %v14180_v7, %v14179_v0  ;;  %v4129_v24 = vadd.f32 %v10503_v37, %v4128_v32  ;;  %v10933_v35 = vpop.f32.mrf.mxu0  ;;  %v14184_v21 = vrot.slane %v14094_v3, 5  ;;  %v2790_v0 = vsel %vm2663_vm5, %v10784_v13, %v10878_v62  ;;  %v14185_v32 = vld [vmem:[#allocation39_spill] sm:$0xff]  ;;  %v4130_v8 = vpop.f32.mrf.mxu1  ;;  %1597 = vrot.lane.b32.xlu1 %v10779_v63, %s7650_s14 }
 0x26d   : > { %v10927_v43 = vsel %vm1881_vm6, %v14182_v34, %v13737_v26  ;;  %14183 = vst [vmem:[#allocation78_spill] sm:$0xff] %v10933_v35  ;;  %v3083_v34 = vsel %vm3041_vm10, %v14185_v32, %v10723_v54  ;;  %v5482_v26 = vrot.slane %v10880_v40, 4  ;;  %v5069_v51 = vrot.slane %v13740_v6, 1  ;;  %2629 = vrot.lane.b32.xlu0 %v2537_v27, %s7649_s11  ;;  %v14186_v32 = vld [vmem:[#allocation48_spill] sm:$0xff]  ;;  %v14188_v8 = vld [vmem:[#allocation55_spill] sm:$0xff]  ;;  %v14192_v35 = vld [vmem:[#allocation49_spill] sm:$0xff] }
 0x26e   : > { %v3023_v47 = vsel %vm2946_vm9, %v14184_v21, %v13738_v14  ;;  %v10956_v14 = vadd.f32 %v10308_v42, %v4129_v24  ;;  %v7316_v13 = vpop.f32.mrf.mxu0  ;;  %v10961_v54 = vor.u32 %v14139_v10, %v1405_v29  ;;  %v10964_v18 = vshrl.u32 %v14186_v32, 16 }
 0x26f   : > { %v3449_v63 = vsel %vm3041_vm10, %v14188_v8, %v10662_v9  ;;  %v5481_v6 = vrot.slane %v10844_v15, 4  ;;  %v5070_v42 = vsel %vm1683_vm3, %v5067_v55, %v5069_v51  ;;  %v10971_v24 = vpop.permute.xlu1 %1827  ;;  %v10974_v27 = vshll.u32 %v14186_v32, 16  ;;  %v2893_v8 = vpop.permute.xlu0 %2892 }
 0x270   : > { %14187 = vst [vmem:[#allocation52_spill] sm:$0xff] %v10964_v18  ;;  %v3182_v10 = vsel %vm3140_vm11, %v3083_v34, %v10688_v41  ;;  %v14190_v29 = vmax.f32 %v10823_v58, 0.0  ;;  %v3575_v7 = vsel %vm3140_vm11, %v3449_v63, %v2610_v36  ;;  %v13743_v9 = vmax.f32 %v10956_v14, 0.0  ;;  %v10984_v21 = vpop.f32.mrf.mxu0  ;;  %2042 = vrot.lane.b32.xlu1 %v10804_v31, %s7651_s17  ;;  %v4133_v63 = vpop.f32.mrf.mxu1 }
 0x271   : > { %14189 = vst [vmem:[#allocation72_spill] sm:$0xff] %v10974_v27  ;;  %14191 = vst [vmem:[#allocation39_spill] sm:$0xff] %v10984_v21  ;;  %v3691_v55 = vsel %vm3239_vm12, %v3575_v7, %v2893_v8  ;;  %v10990_v33 = vshrl.u32 %v14192_v35, 16  ;;  %v5483_v41 = vsel %vm2474_vm2, %v5481_v6, %v5482_v26  ;;  %v10995_v58 = vsel %vm2078_vm8, %v2248_v52, %v10912_v60 }
 0x272   : > { %v10980_v13 = vmax.f32 %v14190_v29, %v5070_v42  ;;  %14194 = vst [vmem:[#allocation55_spill] sm:$0xff] %v10995_v58  ;;  %v3301_v36 = vsel %vm3239_vm12, %v3182_v10, %v10782_v46  ;;  %v5071_v7 = vrot.slane %v13743_v9, 1  ;;  %4259 = vmatprep.mubr.bf16.mxu1 %v3691_v55  ;;  %2440 = vrot.lane.b32.xlu0 %v2344_v39, %s7650_s14  ;;  %v7317_v31 = vpop.f32.mrf.mxu0  ;;  %v2254_v42 = vrot.slane %v10964_v18, 6  ;;  %v4135_v58 = vpop.f32.mrf.mxu1  ;;  %v14202_v18 = vld [vmem:[#allocation13_spill] sm:$0xff] }
 0x273   : > { %14193 = vst [vmem:[#allocation48_spill] sm:$0xff] %v10990_v33  ;;  %v4134_v6 = vadd.f32 %v10503_v37, %v4133_v63  ;;  %4260 = vmatmul.mubr.bf16.gmra.mxu1 %v3301_v36  ;;  %v11005_v52 = vpop.permute.xlu1 %1579  ;;  %7415 = vmatmul.mubr.msk.bf16.gmra.mxu0 %vm3041_vm10, %v3023_v47  ;;  %v14195_v46 = vrot.slane %v9918_v38, 4  ;;  %v14196_v10 = vrot.slane %v9865_v19, 4  ;;  %v11014_v8 = vshll.u32 %v14192_v35, 16  ;;  %v2612_v31 = vpop.permute.xlu0 %2611  ;;  %v14210_v58 = vld [vmem:[#allocation41_spill] sm:$0xff] }
 0x274   : > { %v5484_v34 = vrot.slane %v10980_v13, 4  ;;  %v5722_v39 = vmax.f32 %v10669_v30, %v5483_v41  ;;  %v5072_v55 = vsel %vm1683_vm3, %v5069_v51, %v5071_v7  ;;  %v11018_v63 = vpop.f32.mrf.mxu0  ;;  %7418 = vmatprep.mubr.msk.bf16.mxu0 %vm7647_vm0, %v13839_v61  ;;  %v14199_v47 = vrot.slane %v9918_v38, 7  ;;  %1847 = vrot.lane.b32.xlu1 %v10895_v48, %s7649_s11 }
 0x275   : > { %v2539_v29 = vsel %vm2474_vm2, %v14196_v10, %v14195_v46  ;;  %14197 = vst [vmem:[#allocation49_spill] sm:$0xff] %v11014_v8  ;;  %14198 = vst [vmem:[#allocation95_spill] sm:$0xff] %v11018_v63  ;;  %v14200_v36 = vrot.slane %v9865_v19, 7  ;;  %v2255_v10 = vrot.slane %v10974_v27, 7  ;;  %v14201_v30 = vmax.f32 %v10883_v50, 0.0 }
 0x276   : > { %v5485_v46 = vsel %vm2474_vm2, %v5482_v26, %v5484_v34  ;;  %v11034_v51 = vadd.f32 %v10337_v45, %v4134_v6  ;;  %v2791_v63 = vrot.slane %v10201_v53, 4  ;;  %v11040_v21 = vshll.u32 %v14202_v18, 16  ;;  %2912 = vrot.lane.b32.xlu0 %v2790_v0, %s7651_s17  ;;  %v7320_v26 = vpop.f32.mrf.mxu0  ;;  %v4136_v6 = vpop.f32.mrf.mxu1 }
 0x277   : > { %v2346_v9 = vsel %vm2277_vm7, %v14200_v36, %v14199_v47  ;;  %v11031_v41 = vmax.f32 %v14201_v30, %v5072_v55  ;;  %v11044_v47 = vshrl.u32 %v14202_v18, 16  ;;  %v5723_v50 = vmax.f32 %v10701_v57, %v5485_v46  ;;  %v11050_v36 = vpop.permute.xlu1 %2024  ;;  %v11055_v27 = vpop.permute.xlu0 %2422 }
 0x278   : > { %14203 = vst [vmem:[#allocation13_spill] sm:$0xff] %v11040_v21  ;;  %v2256_v55 = vor.u32 %v2255_v10, %v2254_v42  ;;  %v2258_v45 = vrot.slane %v10990_v33, 6  ;;  %v4899_v48 = vmax.f32 %v11034_v51, 0.0  ;;  %v2792_v30 = vrot.slane %v10191_v16, 5  ;;  %v11057_v59 = vpop.f32.mrf.mxu0  ;;  %v4138_v33 = vpop.f32.mrf.mxu1  ;;  %1599 = vrot.lane.b32.xlu1 %v10920_v17, %s7650_s14 }
 0x279   : > { %14204 = vst [vmem:[#allocation96_spill] sm:$0xff] %v11044_v47  ;;  %v2259_v0 = vrot.slane %v11014_v8, 7  ;;  %v4137_v26 = vadd.f32 %v10503_v37, %v4136_v6  ;;  %14205 = vst [vmem:[#allocation97_spill] sm:$0xff] %v11057_v59  ;;  %v14206_v57 = vrot.slane %v14125_v44, 5  ;;  %v14207_v42 = vrot.slane %v14106_v11, 5 }
 0x27a   : > { %v11064_v10 = vpack.c.bf16 %v5723_v50, %v5722_v39  ;;  %v11068_v51 = vsel %vm2078_vm8, %v10912_v60, %v2256_v55  ;;  %v3085_v6 = vsel %vm3041_vm10, %v14210_v58, %v10867_v56  ;;  %v5073_v8 = vrot.slane %v4899_v48, 1  ;;  %v14212_v50 = vld [vmem:[#allocation88_spill] sm:$0xff]  ;;  %2631 = vrot.lane.b32.xlu0 %v2539_v29, %s7649_s11  ;;  %v7321_v60 = vpop.f32.mrf.mxu0 }
 0x27b   : > { %v3025_v46 = vsel %vm2946_vm9, %v14207_v42, %v14206_v57  ;;  %14209 = vst [vmem:[#allocation99_spill] sm:$0xff] %v11068_v51  ;;  %v14211_v59 = vrot.slane %v11031_v41, 4  ;;  %v2260_v39 = vor.u32 %v2259_v0, %v2258_v45  ;;  %v11081_v57 = vadd.f32 %v14212_v50, %v4137_v26  ;;  %v14213_v45 = vld [vmem:[#allocation14_spill] sm:$0xff] }
 0x27c   : > { %14208 = vst [vmem:[#allocation98_spill] sm:$0xff] %v11064_v10  ;;  %v2262_v33 = vrot.slane %v11044_v47, 6  ;;  %v2263_v58 = vrot.slane %v11040_v21, 7  ;;  %v3452_v17 = vsel %vm3041_vm10, %v10736_v22, %v10795_v23  ;;  %7419 = vmatmul.mubr.msk.bf16.gmra.mxu0 %vm3041_vm10, %v3025_v46  ;;  %v13755_v29 = vrot.slane %v14213_v45, 5  ;;  %v2895_v23 = vpop.permute.xlu0 %2894  ;;  %v11105_v22 = vpop.f32.mrf.mxu0  ;;  %2044 = vrot.lane.b32.xlu1 %v10927_v43, %s7651_s17  ;;  %v14233_v51 = vld [vmem:[#allocation74_spill] sm:$0xff] }
 0x27d   : > { %v11078_v28 = vsel %vm2474_vm2, %v5484_v34, %v14211_v59  ;;  %v5074_v59 = vsel %vm1683_vm3, %v5071_v7, %v5073_v8  ;;  %v11092_v34 = vpop.permute.xlu1 %1829  ;;  %v11097_v0 = vsel %vm2078_vm8, %v2256_v55, %v2260_v39  ;;  %v14215_v26 = vmax.f32 %v10956_v14, 0.0  ;;  %14216 = vst [vmem:[#allocation88_spill] sm:$0xff] %v11105_v22  ;;  %7422 = vmatprep.mubr.msk.bf16.mxu0 %vm7647_vm0, %v13839_v61  ;;  %v14237_v22 = vld [vmem:[#allocation89_spill] sm:$0xff] }
 0x27e   : > { %14214 = vst [vmem:[#allocation41_spill] sm:$0xff] %v11097_v0  ;;  %v3577_v50 = vsel %vm3140_vm11, %v3452_v17, %v2612_v31  ;;  %v13754_v60 = vmax.f32 %v11081_v57, 0.0  ;;  %v11109_v7 = vor.u32 %v2263_v58, %v2262_v33  ;;  %v3184_v55 = vsel %vm3140_vm11, %v3085_v6, %v10836_v1  ;;  %2442 = vrot.lane.b32.xlu0 %v2346_v9, %s7650_s14  ;;  %v7324_v33 = vpop.f32.mrf.mxu0  ;;  %v4141_v1 = vpop.f32.mrf.mxu1  ;;  %v14217_v6 = vld [vmem:[#allocation29_spill] sm:$0xff]  ;;  %v14224_v58 = vld [vmem:[#allocation38_spill] sm:$0xff] }
 0x27f   : > { %v11101_v42 = vmax.f32 %v14215_v26, %v5074_v59  ;;  %v3694_v46 = vsel %vm3239_vm12, %v3577_v50, %v2895_v23  ;;  %v11116_v14 = vor.u32 %v2792_v30, %v2791_v63  ;;  %v3304_v17 = vsel %vm3239_vm12, %v3184_v55, %v10915_v2  ;;  %v14219_v30 = vld [vmem:[#allocation28_spill] sm:$0xff] }
 0x280   : > { %v5075_v59 = vrot.slane %v13754_v60, 1  ;;  %4267 = vmatprep.mubr.bf16.mxu1 %v3694_v46  ;;  %v11127_v43 = vsel %vm2078_vm8, %v2260_v39, %v11109_v7  ;;  %v4142_v2 = vadd.f32 %v10503_v37, %v4141_v1  ;;  %v14220_v23 = vrot.slane %v9865_v19, 1  ;;  %v2614_v33 = vpop.permute.xlu0 %2613  ;;  %v11140_v39 = vpop.f32.mrf.mxu0 }
 0x281   : > { %14218 = vst [vmem:[#allocation100_spill] sm:$0xff] %v11127_v43  ;;  %v5488_v63 = vrot.slane %v11101_v42, 4  ;;  %4268 = vmatmul.mubr.bf16.gmra.mxu1 %v3304_v17  ;;  %v11132_v50 = vpop.permute.xlu1 %1581  ;;  %v14221_v9 = vrot.slane %v9814_v5, 1  ;;  %14222 = vst [vmem:[#allocation28_spill] sm:$0xff] %v11140_v39  ;;  %v14223_v26 = vrot.slane %v14125_v44, 5  ;;  %v14226_v60 = vrot.slane %v14162_v25, 1 }
 0x282   : > { %v5076_v46 = vsel %vm1683_vm3, %v5073_v8, %v5075_v59  ;;  %v11152_v31 = vadd.f32 %v14224_v58, %v4142_v2  ;;  %v2794_v8 = vsel %vm2663_vm5, %v10878_v62, %v11116_v14  ;;  %v14227_v58 = vrot.slane %v14217_v6, 4  ;;  %v14234_v5 = vld [vmem:[#allocation42_spill] sm:$0xff] }
 0x283   : > { %v1752_v55 = vsel %vm1683_vm3, %v14221_v9, %v14220_v23  ;;  %v3027_v1 = vsel %vm2946_vm9, %v14223_v26, %v13755_v29  ;;  %v11149_v56 = vmax.f32 %v4899_v48, %v5076_v46  ;;  %v4143_v23 = vpop.f32.mrf.mxu1  ;;  %v14225_v9 = vld [vmem:[#allocation51_spill] sm:$0xff]  ;;  %2914 = vrot.lane.b32.xlu0 %v2794_v8, %s7651_s17  ;;  %v7325_v26 = vpop.f32.mrf.mxu0  ;;  %v1414_v48 = vsel %vm1138_vm4, %v10961_v54, %v14226_v60  ;;  %v14229_v54 = vld [vmem:[#allocation76_spill] sm:$0xff] }
 0x284   : > { %1849 = vrot.lane.b32.xlu1 %v1752_v55, %s7649_s11  ;;  %v11159_v43 = vshrl.u32 %v14225_v9, 16  ;;  %v14228_v2 = vrot.slane %v9918_v38, 4  ;;  %v11173_v62 = vshll.u32 %v14225_v9, 16  ;;  %7423 = vmatmul.mubr.msk.bf16.gmra.mxu0 %vm3041_vm10, %v3027_v1  ;;  %v2795_v60 = vrot.slane %v14229_v54, 4  ;;  %v11185_v46 = vpop.permute.xlu0 %2424  ;;  %v14232_v23 = vld [vmem:[#allocation18_spill] sm:$0xff] }
 0x285   : > { %v4144_v26 = vpop.f32.mrf.mxu1  ;;  %v11177_v29 = vpop.permute.xlu1 %2026  ;;  %v14230_v17 = vrot.slane %v11031_v41, 4  ;;  %7426 = vmatprep.mubr.msk.bf16.mxu0 %vm7647_vm0, %v13839_v61  ;;  %v2796_v10 = vrot.slane %v14233_v51, 5  ;;  %v3087_v21 = vsel %vm3041_vm10, %v14234_v5, %v11005_v52  ;;  %v14238_v52 = vmax.f32 %v10746_v12, %v11078_v28 }
 0x286   : > { %v2541_v55 = vsel %vm2474_vm2, %v14228_v2, %v14227_v58  ;;  %v4145_v2 = vadd.f32 %v10503_v37, %v4144_v26  ;;  %v11187_v0 = vpop.f32.mrf.mxu0  ;;  %v2266_v8 = vrot.slane %v11159_v43, 6  ;;  %v14243_v12 = vrot.slane %v14217_v6, 7 }
 0x287   : > { %v5489_v58 = vsel %vm2474_vm2, %v14230_v17, %v5488_v63  ;;  %14231 = vst [vmem:[#allocation38_spill] sm:$0xff] %v11187_v0  ;;  %v14235_v17 = vmax.f32 %v11152_v31, 0.0  ;;  %v4146_v47 = vpop.f32.mrf.mxu1  ;;  %v14236_v0 = vrot.slane %v11149_v56, 4  ;;  %2633 = vrot.lane.b32.xlu0 %v2541_v55, %s7649_s11  ;;  %v14241_v55 = vrot.slane %v9918_v38, 6 }
 0x288   : > { %v5725_v1 = vmax.f32 %v10844_v15, %v5489_v58  ;;  %1601 = vrot.lane.b32.xlu1 %v1414_v48, %s7650_s14  ;;  %v11207_v4 = vadd.f32 %v14237_v22, %v4145_v2  ;;  %v7328_v15 = vpop.f32.mrf.mxu0  ;;  %v2267_v48 = vrot.slane %v11173_v62, 7  ;;  %v14242_v2 = vrot.slane %v9865_v19, 6 }
 0x289   : > { %v5077_v26 = vrot.slane %v14235_v17, 1  ;;  %v11203_v39 = vsel %vm2474_vm2, %v5488_v63, %v14236_v0  ;;  %v14240_v0 = vld [vmem:[#allocation71_spill] sm:$0xff]  ;;  %v11222_v58 = vpop.permute.xlu1 %1831  ;;  %v14244_v28 = vrot.slane %v9918_v38, 7  ;;  %v2897_v15 = vpop.permute.xlu0 %2896 }
 0x28a   : > { %v5726_v5 = vmax.f32 %v10880_v40, %v11203_v39  ;;  %v11215_v47 = vpack.c.bf16 %v5725_v1, %v14238_v52  ;;  %v3455_v63 = vsel %vm3041_vm10, %v14240_v0, %v10931_v49  ;;  %v1950_v40 = vsel %vm1881_vm6, %v14242_v2, %v14241_v55  ;;  %v11240_v52 = vpop.f32.mrf.mxu0 }
 0x28b   : > { %v5078_v22 = vsel %vm1683_vm3, %v5075_v59, %v5077_v26  ;;  %v2348_v39 = vsel %vm2277_vm7, %v14244_v28, %v14243_v12  ;;  %v14245_v1 = vmax.f32 %v11081_v57, 0.0  ;;  %v3579_v49 = vsel %vm3140_vm11, %v3455_v63, %v2614_v33  ;;  %v14249_v28 = vld [vmem:[#allocation58_spill] sm:$0xff] }
 0x28c   : > { %14239 = vst [vmem:[#allocation51_spill] sm:$0xff] %v11215_v47  ;;  %v14246_v0 = vrot.slane %v14232_v23, 5  ;;  %v14247_v55 = vrot.slane %v14213_v45, 5  ;;  %v3186_v12 = vsel %vm3140_vm11, %v3087_v21, %v10971_v24  ;;  %v3697_v57 = vsel %vm3239_vm12, %v3579_v49, %v2897_v15  ;;  %2046 = vrot.lane.b32.xlu1 %v1950_v40, %s7651_s17  ;;  %2444 = vrot.lane.b32.xlu0 %v2348_v39, %s7650_s14 }
 0x28d   : > { %v11236_v17 = vmax.f32 %v14245_v1, %v5078_v22  ;;  %v11251_v22 = vor.u32 %v2796_v10, %v2795_v60  ;;  %v11253_v33 = vor.u32 %v2267_v48, %v2266_v8  ;;  %v3307_v63 = vsel %vm3239_vm12, %v3186_v12, %v11050_v36  ;;  %4275 = vmatprep.mubr.bf16.mxu1 %v3697_v57  ;;  %v7329_v10 = vpop.f32.mrf.mxu0  ;;  %v4149_v8 = vpop.f32.mrf.mxu1 }
 0x28e   : > { %v3029_v2 = vsel %vm2946_vm9, %v14247_v55, %v14246_v0  ;;  %v14250_v1 = vrot.slane %v14249_v28, 6  ;;  %v14251_v59 = vrot.slane %v14219_v30, 7  ;;  %v14252_v21 = vmax.f32 %v11207_v4, 0.0  ;;  %4276 = vmatmul.mubr.bf16.gmra.mxu1 %v3307_v63  ;;  %v11268_v36 = vpop.permute.xlu1 %1583  ;;  %v2616_v55 = vpop.permute.xlu0 %2615  ;;  %v14260_v28 = vld [vmem:[#allocation90_spill] sm:$0xff] }
 0x28f   : > { %14248 = vst [vmem:[#allocation76_spill] sm:$0xff] %v11253_v33  ;;  %v5492_v0 = vrot.slane %v11236_v17, 4  ;;  %v4150_v60 = vadd.f32 %v10503_v37, %v4149_v8  ;;  %7427 = vmatmul.mubr.msk.bf16.gmra.mxu0 %vm3041_vm10, %v3029_v2  ;;  %v14253_v30 = vrot.slane %v9918_v38, 1  ;;  %v14254_v48 = vrot.slane %v9865_v19, 1  ;;  %v11281_v12 = vpop.f32.mrf.mxu0  ;;  %v14261_v8 = vld [vmem:[#allocation35_spill] sm:$0xff] }
 0x290   : > { %v11261_v47 = vor.u32 %v14251_v59, %v14250_v1  ;;  %v5079_v24 = vrot.slane %v14252_v21, 1  ;;  %v14255_v49 = vrot.slane %v14162_v25, 1  ;;  %v13764_v39 = vrot.slane %v10191_v16, 1  ;;  %14256 = vst [vmem:[#allocation74_spill] sm:$0xff] %v11281_v12  ;;  %7430 = vmatprep.mubr.msk.bf16.mxu0 %vm7647_vm0, %v13839_v61  ;;  %v4151_v21 = vpop.f32.mrf.mxu1  ;;  %v14351_v12 = vld [vmem:[#allocation66_spill] sm:$0xff] }
 0x291   : > { %v1754_v40 = vsel %vm1683_vm3, %v14254_v48, %v14253_v30  ;;  %v13766_v2 = vrot.slane %v14186_v32, 5  ;;  %v14257_v57 = vrot.slane %v11149_v56, 4  ;;  %v11292_v25 = vsel %vm2078_vm8, %v11109_v7, %v11253_v33  ;;  %v7332_v7 = vpop.f32.mrf.mxu0 }
 0x292   : > { %v1417_v59 = vor.u32 %v14170_v20, %v14255_v49  ;;  %v5080_v15 = vsel %vm1683_vm3, %v5077_v26, %v5079_v24  ;;  %14258 = vst [vmem:[#allocation42_spill] sm:$0xff] %v11292_v25  ;;  %v14259_v20 = vmax.f32 %v11152_v31, 0.0  ;;  %v11299_v1 = vadd.f32 %v14260_v28, %v4150_v60  ;;  %1851 = vrot.lane.b32.xlu1 %v1754_v40, %s7649_s11  ;;  %v4152_v49 = vpop.f32.mrf.mxu1  ;;  %v14262_v40 = vld [vmem:[#allocation64_spill] sm:$0xff]  ;;  %v11317_v28 = vpop.permute.xlu0 %2426 }
 0x293   : > { %v5493_v63 = vsel %vm2474_vm2, %v14257_v57, %v5492_v0  ;;  %v2798_v10 = vsel %vm2663_vm5, %v11116_v14, %v11251_v22  ;;  %v2177_v30 = vsel %vm2078_vm8, %v14261_v8, %v11261_v47  ;;  %v2542_v57 = vrot.slane %v14262_v40, 4  ;;  %v11319_v21 = vpop.f32.mrf.mxu0  ;;  %v14266_v8 = vld [vmem:[#allocation61_spill] sm:$0xff] }
 0x294   : > { %v11296_v26 = vmax.f32 %v14259_v20, %v5080_v15  ;;  %2916 = vrot.lane.b32.xlu0 %v2798_v10, %s7651_s17  ;;  %v5727_v31 = vmax.f32 %v10980_v13, %v5493_v63  ;;  %v4903_v60 = vmax.f32 %v11299_v1, 0.0  ;;  %v11312_v15 = vpop.permute.xlu1 %2028  ;;  %v4153_v20 = vadd.f32 %v10503_v37, %v4152_v49  ;;  %14263 = vst [vmem:[#allocation89_spill] sm:$0xff] %v11319_v21  ;;  %v4154_v49 = vpop.f32.mrf.mxu1 }
 0x295   : > { %v1422_v13 = vsel %vm1138_vm4, %v1417_v59, %v13764_v39  ;;  %v14264_v63 = vrot.slane %v14232_v23, 5  ;;  %v2178_v7 = vrot.slane %v14266_v8, 6  ;;  %v14267_v33 = vrot.slane %v14217_v6, 4  ;;  %v14268_v39 = vld [vmem:[#allocation43_spill] sm:$0xff]  ;;  %v7333_v8 = vpop.f32.mrf.mxu0 }
 0x296   : > { %v5494_v48 = vrot.slane %v11296_v26, 4  ;;  %v11329_v10 = vpack.c.bf16 %v5727_v31, %v5726_v5  ;;  %v5081_v14 = vrot.slane %v4903_v60, 1  ;;  %1603 = vrot.lane.b32.xlu1 %v1422_v13, %s7650_s14  ;;  %v3089_v19 = vsel %vm3041_vm10, %v14268_v39, %v11132_v50  ;;  %v14270_v31 = vld [vmem:[#allocation91_spill] sm:$0xff] }
 0x297   : > { %v3031_v1 = vsel %vm2946_vm9, %v14264_v63, %v13766_v2  ;;  %v2543_v25 = vsel %vm2474_vm2, %v14267_v33, %v2542_v57  ;;  %v14269_v63 = vld [vmem:[#allocation60_spill] sm:$0xff]  ;;  %v11344_v2 = vadd.f32 %v14270_v31, %v4153_v20  ;;  %v3458_v33 = vsel %vm3041_vm10, %v2177_v30, %v11055_v27  ;;  %v2899_v30 = vpop.permute.xlu0 %2898  ;;  %v11367_v8 = vpop.f32.mrf.mxu0 }
 0x298   : > { %14265 = vst [vmem:[#allocation71_spill] sm:$0xff] %v11329_v10  ;;  %v11337_v59 = vsel %vm2474_vm2, %v5492_v0, %v5494_v48  ;;  %v2179_v5 = vrot.slane %v14269_v63, 7  ;;  %2635 = vrot.lane.b32.xlu0 %v2543_v25, %s7649_s11  ;;  %v5082_v0 = vsel %vm1683_vm3, %v5079_v24, %v5081_v14  ;;  %v11352_v49 = vpop.permute.xlu1 %1833  ;;  %7431 = vmatmul.mubr.msk.bf16.gmra.mxu0 %vm3041_vm10, %v3031_v1  ;;  %v14271_v50 = vrot.slane %v14217_v6, 6 }
 0x299   : > { %v14272_v39 = vrot.slane %v9918_v38, 6  ;;  %v13767_v25 = vrot.slane %v14217_v6, 1  ;;  %v14273_v63 = vmax.f32 %v11207_v4, 0.0  ;;  %v3581_v27 = vsel %vm3140_vm11, %v3458_v33, %v2616_v55  ;;  %14274 = vst [vmem:[#allocation58_spill] sm:$0xff] %v11367_v8  ;;  %7434 = vmatprep.mubr.msk.bf16.mxu0 %vm7647_vm0, %v13839_v61  ;;  %v14275_v4 = vld [vmem:[#allocation2_spill] sm:$0xff] }
 0x29a   : > { %v13768_v24 = vmax.f32 %v11344_v2, 0.0 }
 0x29b   : > { %v1952_v20 = vsel %vm1881_vm6, %v14272_v39, %v14271_v50  ;;  %v11363_v31 = vmax.f32 %v14273_v63, %v5082_v0  ;;  %v3188_v50 = vsel %vm3140_vm11, %v3089_v19, %v11092_v34  ;;  %v3700_v39 = vsel %vm3239_vm12, %v3581_v27, %v2899_v30  ;;  %v7336_v19 = vpop.f32.mrf.mxu0  ;;  %v4157_v34 = vpop.f32.mrf.mxu1 }
 0x29c   : > { %2048 = vrot.lane.b32.xlu1 %v1952_v20, %s7651_s17  ;;  %v14276_v0 = vrot.slane %v14275_v4, 4  ;;  %v3310_v33 = vsel %vm3239_vm12, %v3188_v50, %v11177_v29  ;;  %v11381_v63 = vor.u32 %v2179_v5, %v2178_v7  ;;  %v5083_v1 = vrot.slane %v13768_v24, 1  ;;  %4283 = vmatprep.mubr.bf16.mxu1 %v3700_v39  ;;  %v11388_v27 = vpop.permute.xlu1 %1585  ;;  %v2618_v50 = vpop.permute.xlu0 %2617 }
 0x29d   : > { %v5496_v13 = vrot.slane %v11363_v31, 4  ;;  %v4158_v20 = vadd.f32 %v10503_v37, %v4157_v34  ;;  %4284 = vmatmul.mubr.bf16.gmra.mxu1 %v3310_v33  ;;  %v14277_v29 = vrot.slane %v10191_v16, 1  ;;  %v1429_v5 = vrot.slane %v14233_v51, 1  ;;  %v11396_v39 = vpop.f32.mrf.mxu0  ;;  %v4159_v34 = vpop.f32.mrf.mxu1 }
 0x29e   : > { %v2545_v55 = vsel %vm2474_vm2, %v2542_v57, %v14276_v0  ;;  %v2349_v57 = vrot.slane %v14262_v40, 7  ;;  %v5084_v30 = vsel %vm1683_vm3, %v5081_v14, %v5083_v1  ;;  %14278 = vst [vmem:[#allocation90_spill] sm:$0xff] %v11396_v39  ;;  %v14279_v37 = vrot.slane %v9918_v38, 1  ;;  %v14282_v14 = vld [vmem:[#allocation6_spill] sm:$0xff]  ;;  %v14286_v34 = vld [vmem:[#allocation63_spill] sm:$0xff] }
 0x29f   : > { %2637 = vrot.lane.b32.xlu0 %v2545_v55, %s7649_s11  ;;  %v1425_v7 = vor.u32 %v10201_v53, %v14277_v29  ;;  %v14280_v55 = vrot.slane %v14192_v35, 5  ;;  %v14281_v33 = vrot.slane %v14186_v32, 5  ;;  %v5497_v53 = vsel %vm2474_vm2, %v5494_v48, %v5496_v13  ;;  %v7337_v24 = vpop.f32.mrf.mxu0  ;;  %v14285_v48 = vld [vmem:[#allocation79_spill] sm:$0xff] }
 0x2a0   : > { %v1756_v0 = vsel %vm1683_vm3, %v14279_v37, %v13767_v25  ;;  %v11409_v51 = vmax.f32 %v4903_v60, %v5084_v30  ;;  %v11412_v19 = vadd.f32 %v14282_v14, %v4158_v20  ;;  %v14283_v29 = vrot.slane %v14217_v6, 7  ;;  %v11430_v24 = vpop.permute.xlu1 %2030  ;;  %v11436_v30 = vld [vmem:[%s13572_s4] ss:$0 sm:$0xff] }
 0x2a1   : > { %v3033_v16 = vsel %vm2946_vm9, %v14281_v33, %v14280_v55  ;;  %1853 = vrot.lane.b32.xlu1 %v1756_v0, %s7649_s11  ;;  %v14284_v55 = vld [vmem:[#allocation77_spill] sm:$0xff]  ;;  %v2800_v60 = vrot.slane %v14285_v48, 5  ;;  %v5729_v20 = vmax.f32 %v11101_v42, %v5497_v53  ;;  %v2181_v0 = vsel %vm2078_vm8, %v11261_v47, %v11381_v63  ;;  %v11439_v53 = vpop.permute.xlu0 %2428  ;;  %v11441_v47 = vpop.f32.mrf.mxu0 }
 0x2a2   : > { %v2350_v37 = vsel %vm2277_vm7, %v14283_v29, %v2349_v57  ;;  %v2799_v33 = vrot.slane %v14284_v55, 4  ;;  %v5498_v14 = vrot.slane %v11409_v51, 4  ;;  %v4905_v25 = vmax.f32 %v11412_v19, 0.0  ;;  %7435 = vmatmul.mubr.msk.bf16.gmra.mxu0 %vm3041_vm10, %v3033_v16  ;;  %14287 = vst [vmem:[#allocation35_spill] sm:$0xff] %v11441_v47  ;;  %v14291_v19 = vld [vmem:[#allocation45_spill] sm:$0xff] }
 0x2a3   : > { %2446 = vrot.lane.b32.xlu0 %v2350_v37, %s7650_s14  ;;  %v4160_v37 = vpop.f32.mrf.mxu1  ;;  %v1430_v29 = vsel %vm1138_vm4, %v1425_v7, %v1429_v5  ;;  %7438 = vmatprep.mubr.msk.bf16.mxu0 %vm7647_vm0, %v13839_v61  ;;  %v14288_v16 = vmax.f32 %v11031_v41, %v11337_v59  ;;  %v13772_v7 = vrot.slane %v14262_v40, 6  ;;  %v3091_v8 = vsel %vm3041_vm10, %v14291_v19, %v11268_v36  ;;  %v14292_v41 = vld [vmem:[#allocation92_spill] sm:$0xff] }
 0x2a4   : > { %v4161_v42 = vadd.f32 %v11436_v30, %v4160_v37  ;;  %v5085_v38 = vrot.slane %v4905_v25, 1  ;;  %v14290_v37 = vrot.slane %v14275_v4, 7  ;;  %v11458_v21 = vsel %vm2474_vm2, %v5496_v13, %v5498_v14 }
 0x2a5   : > { %v11450_v10 = vpack.c.bf16 %v5729_v20, %v14288_v16  ;;  %v4162_v39 = vpop.f32.mrf.mxu1  ;;  %1605 = vrot.lane.b32.xlu1 %v1430_v29, %s7650_s14  ;;  %v11467_v20 = vor.u32 %v2800_v60, %v2799_v33  ;;  %v3461_v29 = vsel %vm3041_vm10, %v2181_v0, %v11185_v46  ;;  %v11474_v16 = vpop.permute.xlu1 %1835  ;;  %v14293_v36 = vrot.slane %v14217_v6, 6 }
 0x2a6   : > { %v2352_v47 = vsel %vm2277_vm7, %v2349_v57, %v14290_v37  ;;  %v11464_v59 = vadd.f32 %v14292_v41, %v4161_v42  ;;  %v7340_v39 = vpop.f32.mrf.mxu0  ;;  %v5730_v57 = vmax.f32 %v11149_v56, %v11458_v21  ;;  %v5086_v13 = vsel %vm1683_vm3, %v5083_v1, %v5085_v38  ;;  %v2901_v21 = vpop.permute.xlu0 %2900 }
 0x2a7   : > { %14289 = vst [vmem:[#allocation61_spill] sm:$0xff] %v11450_v10  ;;  %2448 = vrot.lane.b32.xlu0 %v2352_v47, %s7650_s14  ;;  %v1954_v42 = vsel %vm1881_vm6, %v14293_v36, %v13772_v7  ;;  %v1433_v47 = vor.u32 %v14229_v54, %v1429_v5  ;;  %v14294_v33 = vmax.f32 %v11344_v2, 0.0  ;;  %v3583_v56 = vsel %vm3140_vm11, %v3461_v29, %v2618_v50  ;;  %v14298_v5 = vld [vmem:[#allocation62_spill] sm:$0xff] }
 0x2a8   : > { %v13770_v46 = vmax.f32 %v11464_v59, 0.0  ;;  %v11488_v1 = vpop.f32.mrf.mxu0  ;;  %v14296_v0 = vrot.slane %v14202_v18, 5  ;;  %v14297_v19 = vrot.slane %v14192_v35, 5  ;;  %v3190_v54 = vsel %vm3140_vm11, %v3091_v8, %v11222_v58  ;;  %v4165_v8 = vpop.f32.mrf.mxu1 }
 0x2a9   : > { %v11484_v60 = vmax.f32 %v14294_v33, %v5086_v13  ;;  %14295 = vst [vmem:[#allocation43_spill] sm:$0xff] %v11488_v1  ;;  %v2183_v2 = vrot.slane %v14298_v5, 7  ;;  %v3703_v41 = vsel %vm3239_vm12, %v3583_v56, %v2901_v21  ;;  %2050 = vrot.lane.b32.xlu1 %v1954_v42, %s7651_s17  ;;  %v2802_v50 = vsel %vm2663_vm5, %v11251_v22, %v11467_v20  ;;  %v11511_v33 = vpop.permute.xlu1 %1587 }
 0x2aa   : > { %v3035_v37 = vsel %vm2946_vm9, %v14297_v19, %v14296_v0  ;;  %v3313_v39 = vsel %vm3239_vm12, %v3190_v54, %v11312_v15  ;;  %v5087_v13 = vrot.slane %v13770_v46, 1  ;;  %4291 = vmatprep.mubr.bf16.mxu1 %v3703_v41  ;;  %v7341_v58 = vpop.f32.mrf.mxu0  ;;  %v13771_v36 = vrot.slane %v14285_v48, 1  ;;  %v14300_v15 = vld [vmem:[#allocation4_spill] sm:$0xff]  ;;  %v2620_v19 = vpop.permute.xlu0 %2619 }
 0x2ab   : > { %v5500_v29 = vrot.slane %v11484_v60, 4  ;;  %2918 = vrot.lane.b32.xlu0 %v2802_v50, %s7651_s17  ;;  %v4166_v42 = vadd.f32 %v11436_v30, %v4165_v8  ;;  %4292 = vmatmul.mubr.bf16.gmra.mxu1 %v3313_v39  ;;  %v14299_v22 = vrot.slane %v14094_v3, 4  ;;  %v14301_v56 = vrot.slane %v14300_v15, 4  ;;  %v14303_v39 = vld [vmem:[#allocation40_spill] sm:$0xff]  ;;  %v14304_v8 = vld [vmem:[#allocation17_spill] sm:$0xff] }
 0x2ac   : > { %7439 = vmatmul.mubr.msk.bf16.gmra.mxu0 %vm3041_vm10, %v3035_v37  ;;  %v5088_v0 = vsel %vm1683_vm3, %v5085_v38, %v5087_v13  ;;  %v11520_v54 = vpop.f32.mrf.mxu0  ;;  %v1438_v5 = vsel %vm1138_vm4, %v1433_v47, %v13771_v36  ;;  %v13774_v37 = vrot.slane %v14225_v9, 5  ;;  %v4167_v38 = vpop.f32.mrf.mxu1  ;;  %v14306_v47 = vrot.slane %v14286_v34, 6 }
 0x2ad   : > { %v2549_v21 = vsel %vm2474_vm2, %v14301_v56, %v14299_v22  ;;  %14302 = vst [vmem:[#allocation60_spill] sm:$0xff] %v11520_v54  ;;  %7442 = vmatprep.mubr.msk.bf16.mxu0 %vm7647_vm0, %v13839_v61  ;;  %v5501_v41 = vsel %vm2474_vm2, %v5498_v14, %v5500_v29  ;;  %v11529_v50 = vmax.f32 %v4905_v25, %v5088_v0  ;;  %v2811_v22 = vrot.slane %v14304_v8, 4  ;;  %v14305_v56 = vld [vmem:[#allocation16_spill] sm:$0xff]  ;;  %v14311_v54 = vld [vmem:[#allocation7_spill] sm:$0xff] }
 0x2ae   : > { %v11532_v58 = vadd.f32 %v14303_v39, %v4166_v42  ;;  %1607 = vrot.lane.b32.xlu1 %v1438_v5, %s7650_s14  ;;  %v2812_v46 = vrot.slane %v14305_v56, 5  ;;  %v11539_v36 = vor.u32 %v2183_v2, %v14306_v47  ;;  %v7344_v7 = vpop.f32.mrf.mxu0  ;;  %v1757_v25 = vrot.slane %v14262_v40, 1  ;;  %v4168_v5 = vpop.f32.mrf.mxu1 }
 0x2af   : > { %2641 = vrot.lane.b32.xlu0 %v2549_v21, %s7649_s11  ;;  %v5731_v14 = vmax.f32 %v11236_v17, %v5501_v41  ;;  %v5502_v42 = vrot.slane %v11529_v50, 4  ;;  %v11546_v39 = vpop.permute.xlu1 %2032  ;;  %v4169_v2 = vadd.f32 %v11436_v30, %v4168_v5  ;;  %v11551_v47 = vpop.permute.xlu0 %2430  ;;  %v14308_v21 = vrot.slane %v14217_v6, 1 }
 0x2b0   : > { %v4907_v0 = vmax.f32 %v11532_v58, 0.0  ;;  %v11553_v7 = vpop.f32.mrf.mxu0  ;;  %v14309_v41 = vrot.slane %v14202_v18, 5  ;;  %v4170_v34 = vpop.f32.mrf.mxu1  ;;  %v2806_v5 = vsel %vm2663_vm5, %v11467_v20, %v14311_v54  ;;  %v2185_v6 = vsel %vm2078_vm8, %v11381_v63, %v11539_v36 }
 0x2b1   : > { %14307 = vst [vmem:[#allocation91_spill] sm:$0xff] %v11553_v7  ;;  %v1758_v17 = vsel %vm1683_vm3, %v14308_v21, %v1757_v25  ;;  %v11563_v10 = vpack.c.bf16 %v5731_v14, %v5730_v57  ;;  %v11569_v7 = vor.u32 %v2812_v46, %v2811_v22  ;;  %v11572_v21 = vsel %vm2474_vm2, %v5500_v29, %v5502_v42  ;;  %v14312_v57 = vld [vmem:[#allocation47_spill] sm:$0xff]  ;;  %v14313_v34 = vld [vmem:[#allocation54_spill] sm:$0xff] }
 0x2b2   : > { %v3037_v58 = vsel %vm2946_vm9, %v14309_v41, %v13774_v37  ;;  %v5089_v38 = vrot.slane %v4907_v0, 1  ;;  %1855 = vrot.lane.b32.xlu1 %v1758_v17, %s7649_s11  ;;  %v3093_v14 = vsel %vm3041_vm10, %v14312_v57, %v11388_v27  ;;  %v11581_v41 = vadd.f32 %v14313_v34, %v4169_v2  ;;  %v7345_v20 = vpop.f32.mrf.mxu0 }
 0x2b3   : > { %14310 = vst [vmem:[#allocation6_spill] sm:$0xff] %v11563_v10  ;;  %2920 = vrot.lane.b32.xlu0 %v2806_v5, %s7651_s17  ;;  %v5732_v46 = vmax.f32 %v11296_v26, %v11572_v21  ;;  %v3464_v29 = vsel %vm3041_vm10, %v2185_v6, %v11317_v28  ;;  %v11589_v22 = vpop.permute.xlu1 %1837  ;;  %v14314_v63 = vrot.slane %v14275_v4, 6  ;;  %v14315_v27 = vrot.slane %v14262_v40, 6  ;;  %v14319_v20 = vld [vmem:[#allocation82_spill] sm:$0xff]  ;;  %v14326_v40 = vld [vmem:[#allocation68_spill] sm:$0xff]  ;;  %v14328_v10 = vld [vmem:[#allocation93_spill] sm:$0xff] }
 0x2b4   : > { %v5090_v54 = vsel %vm1683_vm3, %v5087_v13, %v5089_v38  ;;  %7443 = vmatmul.mubr.msk.bf16.gmra.mxu0 %vm3041_vm10, %v3037_v58  ;;  %v13776_v17 = vrot.slane %v14300_v15, 7  ;;  %v14316_v5 = vmax.f32 %v11464_v59, 0.0  ;;  %v3585_v6 = vsel %vm3140_vm11, %v3464_v29, %v2620_v19  ;;  %v2903_v13 = vpop.permute.xlu0 %2902  ;;  %v11604_v21 = vpop.f32.mrf.mxu0  ;;  %v14320_v19 = vld [vmem:[#allocation5_spill] sm:$0xff] }
 0x2b5   : > { %v1956_v2 = vsel %vm1881_vm6, %v14315_v27, %v14314_v63  ;;  %v13775_v28 = vmax.f32 %v11581_v41, 0.0  ;;  %14317 = vst [vmem:[#allocation77_spill] sm:$0xff] %v11604_v21  ;;  %7446 = vmatprep.mubr.msk.bf16.mxu0 %vm7647_vm0, %v13839_v61  ;;  %v14318_v58 = vmov 0   ;;  %v3192_v34 = vsel %vm3140_vm11, %v3093_v14, %v11352_v49  ;;  %v14321_v27 = vld [vmem:[#allocation81_spill] sm:$0xff] }
 0x2b6   : > { %v11600_v26 = vmax.f32 %v14316_v5, %v5090_v54  ;;  %v11609_v57 = vrot.slane %v14318_v58, 5  ;;  %v2186_v59 = vrot.slane %v14319_v20, 6  ;;  %v3706_v54 = vsel %vm3239_vm12, %v3585_v6, %v2903_v13  ;;  %2052 = vrot.lane.b32.xlu1 %v1956_v2, %s7651_s17  ;;  %v7348_v14 = vpop.f32.mrf.mxu0  ;;  %v4173_v6 = vpop.f32.mrf.mxu1 }
 0x2b7   : > { %v2814_v29 = vsel %vm2663_vm5, %v14320_v19, %v11569_v7  ;;  %v3316_v63 = vsel %vm3239_vm12, %v3192_v34, %v11430_v24  ;;  %v2187_v5 = vrot.slane %v14321_v27, 7  ;;  %v5091_v49 = vrot.slane %v13775_v28, 1  ;;  %4299 = vmatprep.mubr.bf16.mxu1 %v3706_v54  ;;  %v11627_v20 = vpop.permute.xlu1 %1589 }
 0x2b8   : > { %v5504_v37 = vrot.slane %v11600_v26, 4  ;;  %2924 = vrot.lane.b32.xlu0 %v2814_v29, %s7651_s17  ;;  %v4174_v13 = vadd.f32 %v11436_v30, %v4173_v6  ;;  %4300 = vmatmul.mubr.bf16.gmra.mxu1 %v3316_v63  ;;  %v14322_v24 = vrot.slane %v14275_v4, 7  ;;  %v14323_v34 = vrot.slane %v14275_v4, 1  ;;  %v2622_v27 = vpop.permute.xlu0 %2621  ;;  %v11639_v14 = vpop.f32.mrf.mxu0 }
 0x2b9   : > { %v5092_v29 = vsel %vm1683_vm3, %v5089_v38, %v5091_v49  ;;  %14324 = vst [vmem:[#allocation79_spill] sm:$0xff] %v11639_v14  ;;  %v14325_v63 = vrot.slane %v14225_v9, 5  ;;  %v14327_v38 = vld [vmem:[#allocation94_spill] sm:$0xff]  ;;  %v2816_v14 = vrot.slane %v14328_v10, 5  ;;  %v11655_v21 = vor.u32 %v2187_v5, %v2186_v59 }
 0x2ba   : > { %v2354_v2 = vsel %vm2277_vm7, %v14322_v24, %v13776_v17  ;;  %v1760_v19 = vsel %vm1683_vm3, %v1757_v25, %v14323_v34  ;;  %v5505_v24 = vsel %vm2474_vm2, %v5502_v42, %v5504_v37  ;;  %v11647_v17 = vmax.f32 %v4907_v0, %v5092_v29  ;;  %v4175_v34 = vpop.f32.mrf.mxu1 }
 0x2bb   : > { %v3039_v6 = vsel %vm2946_vm9, %v14325_v63, %v11609_v57  ;;  %v11650_v25 = vadd.f32 %v14326_v40, %v4174_v13  ;;  %1857 = vrot.lane.b32.xlu1 %v1760_v19, %s7649_s11  ;;  %v2815_v54 = vrot.slane %v14327_v38, 4  ;;  %v7349_v63 = vpop.f32.mrf.mxu0  ;;  %v5733_v28 = vmax.f32 %v11363_v31, %v5505_v24  ;;  %v11661_v13 = vpop.permute.xlu1 %2034 }
 0x2bc   : > { %2450 = vrot.lane.b32.xlu0 %v2354_v2, %s7650_s14  ;;  %v5506_v42 = vrot.slane %v11647_v17, 4  ;;  %v4176_v40 = vpop.f32.mrf.mxu1  ;;  %7447 = vmatmul.mubr.msk.bf16.gmra.mxu0 %vm3041_vm10, %v3039_v6  ;;  %v11665_v29 = vpop.permute.xlu0 %2432  ;;  %v14330_v5 = vrot.slane %v14300_v15, 6  ;;  %v14331_v2 = vrot.slane %v14275_v4, 6  ;;  %v14333_v6 = vrot.slane %v14106_v11, 4 }
 0x2bd   : > { %v4909_v0 = vmax.f32 %v11650_v25, 0.0  ;;  %v4177_v19 = vadd.f32 %v11436_v30, %v4176_v40  ;;  %v11667_v59 = vpop.f32.mrf.mxu0  ;;  %v11674_v24 = vpack.c.bf16 %v5733_v28, %v5732_v46  ;;  %7450 = vmatprep.mubr.msk.bf16.mxu0 %vm7647_vm0, %v13839_v61  ;;  %v14334_v63 = vrot.slane %v14094_v3, 4  ;;  %v14335_v28 = vld [vmem:[#allocation37_spill] sm:$0xff] }
 0x2be   : > { %14329 = vst [vmem:[#allocation63_spill] sm:$0xff] %v11667_v59  ;;  %v1958_v31 = vsel %vm1881_vm6, %v14331_v2, %v14330_v5  ;;  %v4178_v34 = vpop.f32.mrf.mxu1  ;;  %v11684_v59 = vor.u32 %v2816_v14, %v2815_v54  ;;  %v5507_v1 = vsel %vm2474_vm2, %v5504_v37, %v5506_v42  ;;  %v2189_v46 = vsel %vm2078_vm8, %v11539_v36, %v11655_v21  ;;  %v14336_v2 = vld [vmem:[#allocation69_spill] sm:$0xff] }
 0x2bf   : > { %14332 = vst [vmem:[#allocation45_spill] sm:$0xff] %v11674_v24  ;;  %v5093_v25 = vrot.slane %v4909_v0, 1  ;;  %v2551_v40 = vsel %vm2474_vm2, %v14334_v63, %v14333_v6  ;;  %2054 = vrot.lane.b32.xlu1 %v1958_v31, %s7651_s17  ;;  %v3095_v5 = vsel %vm3041_vm10, %v14335_v28, %v11511_v33  ;;  %v11694_v34 = vadd.f32 %v14336_v2, %v4177_v19  ;;  %v7352_v6 = vpop.f32.mrf.mxu0  ;;  %v11701_v14 = vpop.permute.xlu1 %1839 }
 0x2c0   : > { %2643 = vrot.lane.b32.xlu0 %v2551_v40, %s7649_s11  ;;  %v5734_v31 = vmax.f32 %v11409_v51, %v5507_v1  ;;  %v3467_v54 = vsel %vm3041_vm10, %v2189_v46, %v11439_v53  ;;  %v13779_v36 = vrot.slane %v14094_v3, 7  ;;  %v13778_v63 = vrot.slane %v14300_v15, 1  ;;  %v2905_v51 = vpop.permute.xlu0 %2904 }
 0x2c1   : > { %v5094_v37 = vsel %vm1683_vm3, %v5091_v49, %v5093_v25  ;;  %v14337_v33 = vmax.f32 %v11581_v41, 0.0  ;;  %v3587_v40 = vsel %vm3140_vm11, %v3467_v54, %v2622_v27  ;;  %v13780_v28 = vmax.f32 %v11694_v34, 0.0  ;;  %v11711_v1 = vpop.f32.mrf.mxu0  ;;  %v14339_v41 = vld [vmem:[#allocation8_spill] sm:$0xff] }
 0x2c2   : > { %14338 = vst [vmem:[#allocation92_spill] sm:$0xff] %v11711_v1  ;;  %v3194_v53 = vsel %vm3140_vm11, %v3095_v5, %v11474_v16  ;;  %v3709_v49 = vsel %vm3239_vm12, %v3587_v40, %v2905_v51  ;;  %v2818_v46 = vsel %vm2663_vm5, %v11569_v7, %v11684_v59  ;;  %v4181_v5 = vpop.f32.mrf.mxu1 }
 0x2c3   : > { %v11707_v19 = vmax.f32 %v14337_v33, %v5094_v37  ;;  %1611 = vrot.lane.b32.xlu1 %v14339_v41, %s7650_s14  ;;  %v3319_v27 = vsel %vm3239_vm12, %v3194_v53, %v11546_v39  ;;  %v5095_v6 = vrot.slane %v13780_v28, 1  ;;  %4307 = vmatprep.mubr.bf16.mxu1 %v3709_v49  ;;  %v7353_v16 = vpop.f32.mrf.mxu0  ;;  %v4182_v54 = vadd.f32 %v11436_v30, %v4181_v5  ;;  %v11728_v7 = vpop.permute.xlu1 %1591  ;;  %v14343_v5 = vld [vmem:[#allocation27_spill] sm:$0xff] }
 0x2c4   : > { %2926 = vrot.lane.b32.xlu0 %v2818_v46, %s7651_s17  ;;  %4308 = vmatmul.mubr.bf16.gmra.mxu1 %v3319_v27  ;;  %v14340_v37 = vrot.slane %v14300_v15, 7  ;;  %v14341_v33 = vrot.slane %v14275_v4, 1  ;;  %v2624_v53 = vpop.permute.xlu0 %2623  ;;  %v14349_v4 = vrot.slane %v14125_v44, 4 }
 0x2c5   : > { %v5508_v2 = vrot.slane %v11707_v19, 4  ;;  %7451 = vmatmul.mubr.msk.bf16.gmra.mxu0 %vm3041_vm10, %v11609_v57  ;;  %v5096_v51 = vsel %vm1683_vm3, %v5093_v25, %v5095_v6  ;;  %v11743_v49 = vpop.f32.mrf.mxu0  ;;  %v14344_v25 = vld [vmem:[#allocation53_spill] sm:$0xff] }
 0x2c6   : > { %v2356_v39 = vsel %vm2277_vm7, %v14340_v37, %v13779_v36  ;;  %v1762_v40 = vsel %vm1683_vm3, %v14341_v33, %v13778_v63  ;;  %14342 = vst [vmem:[#allocation62_spill] sm:$0xff] %v11743_v49  ;;  %7454 = vmatprep.mubr.msk.bf16.mxu0 %vm7647_vm0, %v13839_v61  ;;  %v11750_v16 = vmax.f32 %v4909_v0, %v5096_v51  ;;  %v4183_v33 = vpop.f32.mrf.mxu1  ;;  %v2819_v63 = vrot.slane %v14344_v25, 4  ;;  %v14345_v36 = vld [vmem:[#allocation30_spill] sm:$0xff] }
 0x2c7   : > { %v5509_v27 = vsel %vm2474_vm2, %v5506_v42, %v5508_v2  ;;  %v11753_v37 = vadd.f32 %v14343_v5, %v4182_v54  ;;  %1859 = vrot.lane.b32.xlu1 %v1762_v40, %s7649_s11  ;;  %v2820_v28 = vrot.slane %v14345_v36, 5  ;;  %v7356_v46 = vpop.f32.mrf.mxu0  ;;  %v11762_v49 = vpop.permute.xlu1 %2036  ;;  %v14347_v33 = vrot.slane %v14094_v3, 6 }
 0x2c8   : > { %2452 = vrot.lane.b32.xlu0 %v2356_v39, %s7650_s14  ;;  %v5735_v42 = vmax.f32 %v11484_v60, %v5509_v27  ;;  %v5510_v41 = vrot.slane %v11750_v16, 4  ;;  %v4184_v51 = vpop.f32.mrf.mxu1  ;;  %v11765_v5 = vpop.permute.xlu0 %2434  ;;  %v14348_v39 = vrot.slane %v14300_v15, 6  ;;  %v13784_v60 = vrot.slane %v14305_v56, 1 }
 0x2c9   : > { %v4911_v0 = vmax.f32 %v11753_v37, 0.0  ;;  %v4185_v54 = vadd.f32 %v11436_v30, %v4184_v51  ;;  %v11767_v40 = vpop.f32.mrf.mxu0  ;;  %v14350_v51 = vrot.slane %v14106_v11, 4 }
 0x2ca   : > { %14346 = vst [vmem:[#allocation4_spill] sm:$0xff] %v11767_v40  ;;  %v1960_v46 = vsel %vm1881_vm6, %v14348_v39, %v14347_v33  ;;  %v11775_v27 = vpack.c.bf16 %v5735_v42, %v5734_v31  ;;  %v4186_v1 = vpop.f32.mrf.mxu1  ;;  %v11783_v40 = vor.u32 %v2820_v28, %v2819_v63  ;;  %v5511_v58 = vsel %vm2474_vm2, %v5508_v2, %v5510_v41  ;;  %v14352_v31 = vld [vmem:[#allocation9_spill] sm:$0xff] }
 0x2cb   : > { %v5097_v37 = vrot.slane %v4911_v0, 1  ;;  %v2553_v24 = vsel %vm2474_vm2, %v14350_v51, %v14349_v4  ;;  %2056 = vrot.lane.b32.xlu1 %v1960_v46, %s7651_s17  ;;  %v2193_v33 = vsel %vm2078_vm8, %v11655_v21, %v14351_v12  ;;  %v3097_v1 = vsel %vm3041_vm10, %v14352_v31, %v11627_v20  ;;  %v14353_v42 = vld [vmem:[#allocation57_spill] sm:$0xff]  ;;  %v7357_v4 = vpop.f32.mrf.mxu0  ;;  %v11800_v2 = vpop.permute.xlu1 %1841  ;;  %v14357_v51 = vld [vmem:[#allocation10_spill] sm:$0xff] }
 0x2cc   : > { %v11793_v39 = vadd.f32 %v14353_v42, %v4185_v54  ;;  %2645 = vrot.lane.b32.xlu0 %v2553_v24, %s7649_s11  ;;  %v5736_v46 = vmax.f32 %v11529_v50, %v5511_v58  ;;  %v3470_v63 = vsel %vm3041_vm10, %v2193_v33, %v11551_v47  ;;  %v13782_v12 = vrot.slane %v14106_v11, 7  ;;  %v2907_v58 = vpop.permute.xlu0 %2906 }
 0x2cd   : > { %v5098_v28 = vsel %vm1683_vm3, %v5095_v6, %v5097_v37  ;;  %v14354_v21 = vrot.slane %v14285_v48, 1  ;;  %7455 = vmatmul.mubr.msk.bf16.gmra.mxu0 %vm3041_vm10, %v11609_v57  ;;  %v14355_v24 = vmax.f32 %v11694_v34, 0.0  ;;  %v3589_v50 = vsel %vm3140_vm11, %v3470_v63, %v2624_v53  ;;  %v11814_v6 = vpop.f32.mrf.mxu0 }
 0x2ce   : > { %v13783_v47 = vmax.f32 %v11793_v39, 0.0  ;;  %14356 = vst [vmem:[#allocation40_spill] sm:$0xff] %v11814_v6  ;;  %v1462_v48 = vsel %vm1138_vm4, %v14357_v51, %v13784_v60  ;;  %7458 = vmatprep.mubr.msk.bf16.mxu0 %vm7647_vm0, %v13839_v61  ;;  %v3712_v34 = vsel %vm3239_vm12, %v3589_v50, %v2907_v58  ;;  %v2822_v53 = vsel %vm2663_vm5, %v11684_v59, %v11783_v40 }
 0x2cf   : > { %v1441_v20 = vor.u32 %v14284_v55, %v14354_v21  ;;  %v11810_v54 = vmax.f32 %v14355_v24, %v5098_v28  ;;  %v3196_v55 = vsel %vm3140_vm11, %v3097_v1, %v11589_v22  ;;  %1613 = vrot.lane.b32.xlu1 %v1462_v48, %s7650_s14  ;;  %4315 = vmatprep.mubr.bf16.mxu1 %v3712_v34  ;;  %v7360_v22 = vpop.f32.mrf.mxu0  ;;  %v4189_v1 = vpop.f32.mrf.mxu1  ;;  %v14358_v59 = vrot.slane %v14094_v3, 7 }
 0x2d0   : > { %v3322_v33 = vsel %vm3239_vm12, %v3196_v55, %v11661_v13  ;;  %v5099_v42 = vrot.slane %v13783_v47, 1  ;;  %2928 = vrot.lane.b32.xlu0 %v2822_v53, %s7651_s17  ;;  %v11835_v4 = vpop.permute.xlu1 %1593  ;;  %v14359_v13 = vld [vmem:[#allocation3_spill] sm:$0xff]  ;;  %v13786_v24 = vrot.slane %v14094_v3, 1  ;;  %v4190_v50 = vadd.f32 %v11436_v30, %v4189_v1  ;;  %v2626_v58 = vpop.permute.xlu0 %2625  ;;  %v14364_v1 = vld [vmem:[#allocation73_spill] sm:$0xff] }
 0x2d1   : > { %v5512_v31 = vrot.slane %v11810_v54, 4  ;;  %4316 = vmatmul.mubr.bf16.gmra.mxu1 %v3322_v33  ;;  %v2358_v63 = vsel %vm2277_vm7, %v14358_v59, %v13782_v12  ;;  %v14360_v28 = vrot.slane %v14359_v13, 1  ;;  %v11847_v51 = vpop.f32.mrf.mxu0  ;;  %v13789_v48 = vrot.slane %v14213_v45, 4  ;;  %v4191_v53 = vpop.f32.mrf.mxu1  ;;  %v14362_v33 = vld [vmem:[#allocation67_spill] sm:$0xff]  ;;  %v14363_v59 = vld [vmem:[#allocation21_spill] sm:$0xff] }
 0x2d2   : > { %14361 = vst [vmem:[#allocation17_spill] sm:$0xff] %v11847_v51  ;;  %v5100_v34 = vsel %vm1683_vm3, %v5097_v37, %v5099_v42  ;;  %v2823_v22 = vrot.slane %v14362_v33, 4  ;;  %v11859_v12 = vadd.f32 %v14364_v1, %v4190_v50 }
 0x2d3   : > { %v1446_v21 = vsel %vm1138_vm4, %v1441_v20, %v14360_v28  ;;  %v5513_v55 = vsel %vm2474_vm2, %v5510_v41, %v5512_v31  ;;  %v2824_v20 = vrot.slane %v14363_v59, 5  ;;  %v11856_v28 = vmax.f32 %v4911_v0, %v5100_v34  ;;  %v7361_v47 = vpop.f32.mrf.mxu0  ;;  %v4192_v41 = vpop.f32.mrf.mxu1 }
 0x2d4   : > { %1609 = vrot.lane.b32.xlu1 %v1446_v21, %s7650_s14  ;;  %v5737_v13 = vmax.f32 %v11600_v26, %v5513_v55  ;;  %2454 = vrot.lane.b32.xlu0 %v2358_v63, %s7650_s14  ;;  %v11862_v60 = vpop.permute.xlu1 %2038  ;;  %v4913_v26 = vmax.f32 %v11859_v12, 0.0  ;;  %v4193_v0 = vadd.f32 %v11436_v30, %v4192_v41  ;;  %v11872_v50 = vpop.permute.xlu0 %2436  ;;  %v14366_v47 = vrot.slane %v14300_v15, 1  ;;  %v14368_v41 = vld [vmem:[#allocation11_spill] sm:$0xff] }
 0x2d5   : > { %v5514_v53 = vrot.slane %v11856_v28, 4  ;;  %7459 = vmatmul.mubr.msk.bf16.gmra.mxu0 %vm3041_vm10, %v11609_v57  ;;  %v11874_v63 = vpop.f32.mrf.mxu0  ;;  %v4194_v55 = vpop.f32.mrf.mxu1  ;;  %v14367_v34 = vrot.slane %v14125_v44, 4  ;;  %v11887_v12 = vor.u32 %v2824_v20, %v2823_v22  ;;  %v3099_v37 = vsel %vm3041_vm10, %v14368_v41, %v11728_v7 }
 0x2d6   : > { %v11865_v21 = vpack.c.bf16 %v5737_v13, %v5736_v46  ;;  %14365 = vst [vmem:[#allocation16_spill] sm:$0xff] %v11874_v63  ;;  %v1764_v46 = vsel %vm1683_vm3, %v14366_v47, %v13786_v24  ;;  %v5101_v61 = vrot.slane %v4913_v26, 1  ;;  %v14369_v63 = vld [vmem:[#allocation32_spill] sm:$0xff] }
 0x2d7   : > { %v2555_v13 = vsel %vm2474_vm2, %v14367_v34, %v13789_v48  ;;  %v5515_v1 = vsel %vm2474_vm2, %v5512_v31, %v5514_v53  ;;  %v11894_v47 = vadd.f32 %v14369_v63, %v4193_v0  ;;  %v7364_v55 = vpop.f32.mrf.mxu0  ;;  %v14370_v34 = vld [vmem:[#allocation75_spill] sm:$0xff]  ;;  %v14371_v31 = vrot.slane %v14106_v11, 6  ;;  %v14380_v48 = vld [vmem:[#allocation78_spill] sm:$0xff] }
 0x2d8   : > { %1861 = vrot.lane.b32.xlu1 %v1764_v46, %s7649_s11  ;;  %2647 = vrot.lane.b32.xlu0 %v2555_v13, %s7649_s11  ;;  %v5738_v24 = vmax.f32 %v11647_v17, %v5515_v1  ;;  %v3473_v22 = vsel %vm3041_vm10, %v14370_v34, %v11665_v29  ;;  %v11901_v20 = vpop.permute.xlu1 %1843  ;;  %v14372_v46 = vrot.slane %v14094_v3, 6  ;;  %v14373_v0 = vrot.slane %v14305_v56, 1  ;;  %v2909_v41 = vpop.permute.xlu0 %2908 }
 0x2d9   : > { %v13788_v13 = vrot.slane %v14328_v10, 1  ;;  %v3591_v17 = vsel %vm3140_vm11, %v3473_v22, %v2626_v58  ;;  %v13787_v1 = vmax.f32 %v11894_v47, 0.0  ;;  %v11914_v29 = vpop.f32.mrf.mxu0  ;;  %v13790_v55 = vrot.slane %v14125_v44, 7 }
 0x2da   : > { %v1962_v7 = vsel %vm1881_vm6, %v14372_v46, %v14371_v31  ;;  %v1465_v63 = vor.u32 %v14304_v8, %v14373_v0  ;;  %14374 = vst [vmem:[#allocation7_spill] sm:$0xff] %v11914_v29  ;;  %v5102_v34 = vsel %vm1683_vm3, %v5099_v42, %v5101_v61  ;;  %v3198_v31 = vsel %vm3140_vm11, %v3099_v37, %v11701_v14  ;;  %v4197_v37 = vpop.f32.mrf.mxu1  ;;  %v14386_v29 = vld [vmem:[#allocation22_spill] sm:$0xff] }
 0x2db   : > { %v3715_v56 = vsel %vm3239_vm12, %v3591_v17, %v2909_v41  ;;  %v2826_v8 = vsel %vm2663_vm5, %v11783_v40, %v11887_v12  ;;  %v14375_v58 = vmax.f32 %v11793_v39, 0.0  ;;  %v3325_v46 = vsel %vm3239_vm12, %v3198_v31, %v11762_v49  ;;  %v7365_v14 = vpop.f32.mrf.mxu0 }
 0x2dc   : > { %2058 = vrot.lane.b32.xlu1 %v1962_v7, %s7651_s17  ;;  %v5103_v42 = vrot.slane %v13787_v1, 1  ;;  %4323 = vmatprep.mubr.bf16.mxu1 %v3715_v56  ;;  %v11934_v0 = vpop.permute.xlu1 %1595  ;;  %v1470_v40 = vsel %vm1138_vm4, %v1465_v63, %v13788_v13  ;;  %v4198_v49 = vadd.f32 %v11436_v30, %v4197_v37  ;;  %v2628_v17 = vpop.permute.xlu0 %2627  ;;  %v14379_v14 = vld [vmem:[#allocation70_spill] sm:$0xff]  ;;  %v3101_v51 = vsel %vm3041_vm10, %v14386_v29, %v11835_v4 }
 0x2dd   : > { %v11927_v22 = vmax.f32 %v14375_v58, %v5102_v34  ;;  %2930 = vrot.lane.b32.xlu0 %v2826_v8, %s7651_s17  ;;  %4324 = vmatmul.mubr.bf16.gmra.mxu1 %v3325_v46  ;;  %v11942_v41 = vpop.f32.mrf.mxu0  ;;  %v14377_v34 = vrot.slane %v14106_v11, 7  ;;  %v4199_v63 = vpop.f32.mrf.mxu1  ;;  %v14378_v58 = vld [vmem:[#allocation26_spill] sm:$0xff]  ;;  %v2828_v37 = vrot.slane %v14379_v14, 5  ;;  %v14391_v29 = vrot.slane %v14328_v10, 1 }
 0x2de   : > { %14376 = vst [vmem:[#allocation47_spill] sm:$0xff] %v11942_v41  ;;  %v5104_v8 = vsel %vm1683_vm3, %v5101_v61, %v5103_v42  ;;  %v2827_v46 = vrot.slane %v14378_v58, 4  ;;  %v11958_v39 = vadd.f32 %v14380_v48, %v4198_v49  ;;  %v14382_v49 = vrot.slane %v14106_v11, 1 }
 0x2df   : > { %v5516_v7 = vrot.slane %v11927_v22, 4  ;;  %v2360_v31 = vsel %vm2277_vm7, %v14377_v34, %v13790_v55  ;;  %v11954_v1 = vmax.f32 %v4913_v26, %v5104_v8  ;;  %v7368_v34 = vpop.f32.mrf.mxu0  ;;  %v4200_v61 = vpop.f32.mrf.mxu1  ;;  %v14385_v41 = vrot.slane %v14213_v45, 4 }
 0x2e0   : > { %1615 = vrot.lane.b32.xlu1 %v1470_v40, %s7650_s14  ;;  %v11962_v63 = vpop.permute.xlu1 %2040  ;;  %v4915_v26 = vmax.f32 %v11958_v39, 0.0  ;;  %v4201_v8 = vadd.f32 %v11436_v30, %v4200_v61  ;;  %v14384_v40 = vrot.slane %v14232_v23, 4  ;;  %v11985_v61 = vor.u32 %v2828_v37, %v2827_v46 }
 0x2e1   : > { %v5517_v13 = vsel %vm2474_vm2, %v5514_v53, %v5516_v7  ;;  %2456 = vrot.lane.b32.xlu0 %v2360_v31, %s7650_s14  ;;  %v5518_v56 = vrot.slane %v11954_v1, 4  ;;  %v11968_v53 = vpop.permute.xlu0 %2438  ;;  %v11970_v48 = vpop.f32.mrf.mxu0  ;;  %v14383_v31 = vrot.slane %v14094_v3, 1 }
 0x2e2   : > { %v5739_v55 = vmax.f32 %v11707_v19, %v5517_v13  ;;  %14381 = vst [vmem:[#allocation54_spill] sm:$0xff] %v11970_v48  ;;  %v4202_v34 = vpop.f32.mrf.mxu1  ;;  %v2557_v39 = vsel %vm2474_vm2, %v14385_v41, %v14384_v40  ;;  %v14388_v41 = vld [vmem:[#allocation80_spill] sm:$0xff]  ;;  %v14390_v40 = vrot.slane %v14106_v11, 6 }
 0x2e3   : > { %v1766_v19 = vsel %vm1683_vm3, %v14383_v31, %v14382_v49  ;;  %v5519_v48 = vsel %vm2474_vm2, %v5516_v7, %v5518_v56  ;;  %v5105_v49 = vrot.slane %v4915_v26, 1  ;;  %v7369_v31 = vpop.f32.mrf.mxu0  ;;  %v3476_v46 = vsel %vm3041_vm10, %v14388_v41, %v11765_v5 }
 0x2e4   : > { %v11977_v13 = vpack.c.bf16 %v5739_v55, %v5738_v24  ;;  %1863 = vrot.lane.b32.xlu1 %v1766_v19, %s7649_s11  ;;  %v14387_v24 = vld [vmem:[#allocation39_spill] sm:$0xff]  ;;  %v5740_v34 = vmax.f32 %v11750_v16, %v5519_v48  ;;  %v11999_v37 = vpop.permute.xlu1 %1845  ;;  %v14389_v7 = vrot.slane %v14125_v44, 6  ;;  %v13792_v19 = vrot.slane %v14345_v36, 1 }
 0x2e5   : > { %v11992_v55 = vadd.f32 %v14387_v24, %v4201_v8  ;;  %2649 = vrot.lane.b32.xlu0 %v2557_v39, %s7649_s11  ;;  %v1473_v8 = vor.u32 %v14327_v38, %v14391_v29  ;;  %v3593_v16 = vsel %vm3140_vm11, %v3476_v46, %v2628_v17  ;;  %v2911_v39 = vpop.permute.xlu0 %2910  ;;  %v12012_v5 = vpop.f32.mrf.mxu0  ;;  %v13793_v24 = vrot.slane %v14213_v45, 7 }
 0x2e6   : > { %v1964_v4 = vsel %vm1881_vm6, %v14390_v40, %v14389_v7  ;;  %14392 = vst [vmem:[#allocation82_spill] sm:$0xff] %v12012_v5  ;;  %v5106_v31 = vsel %vm1683_vm3, %v5103_v42, %v5105_v49  ;;  %v3200_v41 = vsel %vm3140_vm11, %v3101_v51, %v11800_v2  ;;  %v3718_v10 = vsel %vm3239_vm12, %v3593_v16, %v2911_v39  ;;  %v4205_v51 = vpop.f32.mrf.mxu1  ;;  %v14404_v5 = vld [vmem:[#allocation50_spill] sm:$0xff] }
 0x2e7   : > { %v13791_v48 = vmax.f32 %v11992_v55, 0.0  ;;  %v2830_v38 = vsel %vm2663_vm5, %v11887_v12, %v11985_v61  ;;  %v14393_v17 = vmax.f32 %v11894_v47, 0.0  ;;  %v3328_v7 = vsel %vm3239_vm12, %v3200_v41, %v11862_v60  ;;  %4331 = vmatprep.mubr.bf16.mxu1 %v3718_v10  ;;  %v7372_v2 = vpop.f32.mrf.mxu0 }
 0x2e8   : > { %2060 = vrot.lane.b32.xlu1 %v1964_v4, %s7651_s17  ;;  %4332 = vmatmul.mubr.bf16.gmra.mxu1 %v3328_v7  ;;  %v12032_v40 = vpop.permute.xlu1 %1597  ;;  %v1478_v12 = vsel %vm1138_vm4, %v1473_v8, %v13792_v19  ;;  %v4206_v60 = vadd.f32 %v11436_v30, %v4205_v51  ;;  %v14395_v39 = vrot.slane %v14125_v44, 7  ;;  %v4207_v8 = vpop.f32.mrf.mxu1  ;;  %v14397_v7 = vld [vmem:[#allocation72_spill] sm:$0xff]  ;;  %v14398_v19 = vld [vmem:[#allocation95_spill] sm:$0xff] }
 0x2e9   : > { %v12025_v46 = vmax.f32 %v14393_v17, %v5106_v31  ;;  %v5107_v42 = vrot.slane %v13791_v48, 1  ;;  %2932 = vrot.lane.b32.xlu0 %v2830_v38, %s7651_s17  ;;  %v2630_v29 = vpop.permute.xlu0 %2629  ;;  %v12040_v16 = vpop.f32.mrf.mxu0  ;;  %v14396_v38 = vld [vmem:[#allocation52_spill] sm:$0xff]  ;;  %v2832_v2 = vrot.slane %v14397_v7, 5 }
 0x2ea   : > { %14394 = vst [vmem:[#allocation5_spill] sm:$0xff] %v12040_v16  ;;  %v2362_v31 = vsel %vm2277_vm7, %v14395_v39, %v13793_v24  ;;  %v2831_v17 = vrot.slane %v14396_v38, 4  ;;  %v12056_v47 = vadd.f32 %v14398_v19, %v4206_v60  ;;  %v14400_v60 = vrot.slane %v14125_v44, 1 }
 0x2eb   : > { %v5520_v4 = vrot.slane %v12025_v46, 4  ;;  %v5108_v10 = vsel %vm1683_vm3, %v5105_v49, %v5107_v42  ;;  %v7373_v39 = vpop.f32.mrf.mxu0  ;;  %v4208_v49 = vpop.f32.mrf.mxu1  ;;  %v14403_v16 = vrot.slane %v14232_v23, 4 }
 0x2ec   : > { %1617 = vrot.lane.b32.xlu1 %v1478_v12, %s7650_s14  ;;  %v12052_v51 = vmax.f32 %v4915_v26, %v5108_v10  ;;  %v12060_v8 = vpop.permute.xlu1 %2042  ;;  %v4917_v26 = vmax.f32 %v12056_v47, 0.0  ;;  %v4209_v10 = vadd.f32 %v11436_v30, %v4208_v49  ;;  %v14402_v12 = vrot.slane %v14186_v32, 4 }
 0x2ed   : > { %v5521_v48 = vsel %vm2474_vm2, %v5518_v56, %v5520_v4  ;;  %2458 = vrot.lane.b32.xlu0 %v2362_v31, %s7650_s14  ;;  %v12066_v56 = vpop.permute.xlu0 %2440  ;;  %v12068_v19 = vpop.f32.mrf.mxu0  ;;  %v14401_v31 = vrot.slane %v14106_v11, 1  ;;  %v12083_v49 = vor.u32 %v2832_v2, %v2831_v17  ;;  %v3103_v11 = vsel %vm3041_vm10, %v14404_v5, %v11934_v0 }
 0x2ee   : > { %v5741_v24 = vmax.f32 %v11810_v54, %v5521_v48  ;;  %v5522_v41 = vrot.slane %v12052_v51, 4  ;;  %14399 = vst [vmem:[#allocation81_spill] sm:$0xff] %v12068_v19  ;;  %v4210_v39 = vpop.f32.mrf.mxu1  ;;  %v2559_v47 = vsel %vm2474_vm2, %v14403_v16, %v14402_v12  ;;  %v14406_v16 = vld [vmem:[#allocation83_spill] sm:$0xff]  ;;  %v14408_v12 = vrot.slane %v14125_v44, 6 }
 0x2ef   : > { %v1768_v54 = vsel %vm1683_vm3, %v14401_v31, %v14400_v60  ;;  %v5109_v60 = vrot.slane %v4917_v26, 1  ;;  %v7376_v31 = vpop.f32.mrf.mxu0  ;;  %v3479_v17 = vsel %vm3041_vm10, %v14406_v16, %v11872_v50  ;;  %v14409_v5 = vrot.slane %v14345_v36, 1 }
 0x2f0   : > { %v12075_v48 = vpack.c.bf16 %v5741_v24, %v5740_v34  ;;  %1865 = vrot.lane.b32.xlu1 %v1768_v54, %s7649_s11  ;;  %v5523_v19 = vsel %vm2474_vm2, %v5520_v4, %v5522_v41  ;;  %v14405_v34 = vld [vmem:[#allocation97_spill] sm:$0xff]  ;;  %v12097_v2 = vpop.permute.xlu1 %1847  ;;  %v14407_v4 = vrot.slane %v14213_v45, 6  ;;  %v13796_v54 = vrot.slane %v14363_v59, 1 }
 0x2f1   : > { %v12090_v24 = vadd.f32 %v14405_v34, %v4209_v10  ;;  %2651 = vrot.lane.b32.xlu0 %v2559_v47, %s7649_s11  ;;  %v5742_v39 = vmax.f32 %v11856_v28, %v5523_v19  ;;  %v1481_v10 = vor.u32 %v14344_v25, %v14409_v5  ;;  %v3595_v28 = vsel %vm3140_vm11, %v3479_v17, %v2630_v29  ;;  %v2913_v47 = vpop.permute.xlu0 %2912  ;;  %v12110_v50 = vpop.f32.mrf.mxu0 }
 0x2f2   : > { %v1966_v0 = vsel %vm1881_vm6, %v14408_v12, %v14407_v4  ;;  %14410 = vst [vmem:[#allocation68_spill] sm:$0xff] %v12110_v50  ;;  %v13797_v34 = vrot.slane %v14232_v23, 7  ;;  %v5110_v31 = vsel %vm1683_vm3, %v5107_v42, %v5109_v60  ;;  %v3202_v16 = vsel %vm3140_vm11, %v3103_v11, %v11901_v20  ;;  %v4213_v20 = vpop.f32.mrf.mxu1  ;;  %v14422_v50 = vld [vmem:[#allocation15_spill] sm:$0xff] }
 0x2f3   : > { %v13795_v19 = vmax.f32 %v12090_v24, 0.0  ;;  %v3721_v36 = vsel %vm3239_vm12, %v3595_v28, %v2913_v47  ;;  %v2834_v25 = vsel %vm2663_vm5, %v11985_v61, %v12083_v49  ;;  %v14411_v29 = vmax.f32 %v11992_v55, 0.0  ;;  %v7377_v11 = vpop.f32.mrf.mxu0 }
 0x2f4   : > { %2062 = vrot.lane.b32.xlu1 %v1966_v0, %s7651_s17  ;;  %v3331_v4 = vsel %vm3239_vm12, %v3202_v16, %v11962_v63  ;;  %4339 = vmatprep.mubr.bf16.mxu1 %v3721_v36  ;;  %v12130_v12 = vpop.permute.xlu1 %1599  ;;  %v1486_v61 = vsel %vm1138_vm4, %v1481_v10, %v13796_v54  ;;  %v4214_v63 = vadd.f32 %v11436_v30, %v4213_v20  ;;  %v14413_v47 = vrot.slane %v14213_v45, 7  ;;  %v4215_v10 = vpop.f32.mrf.mxu1  ;;  %v14416_v54 = vld [vmem:[#allocation88_spill] sm:$0xff] }
 0x2f5   : > { %v12123_v17 = vmax.f32 %v14411_v29, %v5110_v31  ;;  %v5111_v42 = vrot.slane %v13795_v19, 1  ;;  %2934 = vrot.lane.b32.xlu0 %v2834_v25, %s7651_s17  ;;  %4340 = vmatmul.mubr.bf16.gmra.mxu1 %v3331_v4  ;;  %v2632_v5 = vpop.permute.xlu0 %2631  ;;  %v12138_v28 = vpop.f32.mrf.mxu0  ;;  %v14414_v25 = vld [vmem:[#allocation48_spill] sm:$0xff]  ;;  %v14415_v4 = vld [vmem:[#allocation49_spill] sm:$0xff] }
 0x2f6   : > { %14412 = vst [vmem:[#allocation94_spill] sm:$0xff] %v12138_v28  ;;  %v2364_v31 = vsel %vm2277_vm7, %v14413_v47, %v13797_v34  ;;  %v2835_v29 = vrot.slane %v14414_v25, 4  ;;  %v2836_v11 = vrot.slane %v14415_v4, 5  ;;  %v12154_v55 = vadd.f32 %v14416_v54, %v4214_v63 }
 0x2f7   : > { %v5524_v0 = vrot.slane %v12123_v17, 4  ;;  %v5112_v36 = vsel %vm1683_vm3, %v5109_v60, %v5111_v42  ;;  %v7380_v47 = vpop.f32.mrf.mxu0  ;;  %v4216_v60 = vpop.f32.mrf.mxu1  ;;  %v14418_v63 = vrot.slane %v14213_v45, 1  ;;  %v14421_v28 = vrot.slane %v14186_v32, 4 }
 0x2f8   : > { %1619 = vrot.lane.b32.xlu1 %v1486_v61, %s7650_s14  ;;  %v12150_v20 = vmax.f32 %v4917_v26, %v5112_v36  ;;  %v12158_v10 = vpop.permute.xlu1 %2044  ;;  %v4919_v26 = vmax.f32 %v12154_v55, 0.0  ;;  %v4217_v36 = vadd.f32 %v11436_v30, %v4216_v60  ;;  %v14420_v61 = vrot.slane %v14192_v35, 4 }
 0x2f9   : > { %v5525_v19 = vsel %vm2474_vm2, %v5522_v41, %v5524_v0  ;;  %2460 = vrot.lane.b32.xlu0 %v2364_v31, %s7650_s14  ;;  %v12164_v41 = vpop.permute.xlu0 %2442  ;;  %v12166_v54 = vpop.f32.mrf.mxu0  ;;  %v14419_v31 = vrot.slane %v14125_v44, 1  ;;  %v12181_v60 = vor.u32 %v2836_v11, %v2835_v29  ;;  %v3105_v44 = vsel %vm3041_vm10, %v14422_v50, %v12032_v40 }
 0x2fa   : > { %v5743_v34 = vmax.f32 %v11927_v22, %v5525_v19  ;;  %v5526_v16 = vrot.slane %v12150_v20, 4  ;;  %14417 = vst [vmem:[#allocation93_spill] sm:$0xff] %v12166_v54  ;;  %v4218_v47 = vpop.f32.mrf.mxu1  ;;  %v2561_v55 = vsel %vm2474_vm2, %v14421_v28, %v14420_v61  ;;  %v14424_v28 = vld [vmem:[#allocation84_spill] sm:$0xff]  ;;  %v14426_v61 = vrot.slane %v14213_v45, 6 }
 0x2fb   : > { %v1770_v22 = vsel %vm1683_vm3, %v14419_v31, %v14418_v63  ;;  %v5113_v63 = vrot.slane %v4919_v26, 1  ;;  %v7381_v31 = vpop.f32.mrf.mxu0  ;;  %v3482_v29 = vsel %vm3041_vm10, %v14424_v28, %v11968_v53  ;;  %v14427_v50 = vrot.slane %v14363_v59, 1 }
 0x2fc   : > { %v12173_v19 = vpack.c.bf16 %v5743_v34, %v5742_v39  ;;  %1867 = vrot.lane.b32.xlu1 %v1770_v22, %s7649_s11  ;;  %v5527_v54 = vsel %vm2474_vm2, %v5524_v0, %v5526_v16  ;;  %v14423_v39 = vld [vmem:[#allocation28_spill] sm:$0xff]  ;;  %v12195_v11 = vpop.permute.xlu1 %1849  ;;  %v14425_v0 = vrot.slane %v14232_v23, 6  ;;  %v13800_v22 = vrot.slane %v14379_v14, 1 }
 0x2fd   : > { %v12188_v34 = vadd.f32 %v14423_v39, %v4217_v36  ;;  %2653 = vrot.lane.b32.xlu0 %v2561_v55, %s7649_s11  ;;  %v5744_v47 = vmax.f32 %v11954_v1, %v5527_v54  ;;  %v1489_v36 = vor.u32 %v14362_v33, %v14427_v50  ;;  %v3597_v1 = vsel %vm3140_vm11, %v3482_v29, %v2632_v5  ;;  %v2915_v55 = vpop.permute.xlu0 %2914  ;;  %v12208_v53 = vpop.f32.mrf.mxu0 }
 0x2fe   : > { %v1968_v40 = vsel %vm1881_vm6, %v14426_v61, %v14425_v0  ;;  %14428 = vst [vmem:[#allocation37_spill] sm:$0xff] %v12208_v53  ;;  %v13801_v39 = vrot.slane %v14186_v32, 7  ;;  %v5114_v31 = vsel %vm1683_vm3, %v5111_v42, %v5113_v63  ;;  %v3204_v28 = vsel %vm3140_vm11, %v3105_v44, %v11999_v37  ;;  %v4221_v37 = vpop.f32.mrf.mxu1  ;;  %v14439_v53 = vld [vmem:[#allocation56_spill] sm:$0xff] }
 0x2ff   : > { %v13799_v54 = vmax.f32 %v12188_v34, 0.0  ;;  %v3724_v59 = vsel %vm3239_vm12, %v3597_v1, %v2915_v55  ;;  %v2838_v33 = vsel %vm2663_vm5, %v12083_v49, %v12181_v60  ;;  %v14429_v5 = vmax.f32 %v12090_v24, 0.0  ;;  %v7384_v44 = vpop.f32.mrf.mxu0 }
 0x300   : > { %2064 = vrot.lane.b32.xlu1 %v1968_v40, %s7651_s17  ;;  %v3334_v0 = vsel %vm3239_vm12, %v3204_v28, %v12060_v8  ;;  %4347 = vmatprep.mubr.bf16.mxu1 %v3724_v59  ;;  %v12228_v61 = vpop.permute.xlu1 %1601  ;;  %v1494_v49 = vsel %vm1138_vm4, %v1489_v36, %v13800_v22  ;;  %v1771_v24 = vrot.slane %v14232_v23, 1  ;;  %v4222_v8 = vadd.f32 %v11436_v30, %v4221_v37  ;;  %v4223_v36 = vpop.f32.mrf.mxu1 }
 0x301   : > { %v12221_v29 = vmax.f32 %v14429_v5, %v5114_v31  ;;  %v5115_v42 = vrot.slane %v13799_v54, 1  ;;  %2936 = vrot.lane.b32.xlu0 %v2838_v33, %s7651_s17  ;;  %4348 = vmatmul.mubr.bf16.gmra.mxu1 %v3334_v0  ;;  %v2634_v50 = vpop.permute.xlu0 %2633  ;;  %v12236_v1 = vpop.f32.mrf.mxu0  ;;  %v14431_v55 = vrot.slane %v14232_v23, 7  ;;  %v14432_v33 = vld [vmem:[#allocation96_spill] sm:$0xff]  ;;  %v14433_v0 = vld [vmem:[#allocation13_spill] sm:$0xff]  ;;  %v14434_v54 = vld [vmem:[#allocation38_spill] sm:$0xff] }
 0x302   : > { %14430 = vst [vmem:[#allocation69_spill] sm:$0xff] %v12236_v1  ;;  %v2839_v5 = vrot.slane %v14432_v33, 4  ;;  %v2840_v30 = vrot.slane %v14433_v0, 5  ;;  %v12252_v22 = vadd.f32 %v14434_v54, %v4222_v8 }
 0x303   : > { %v5528_v40 = vrot.slane %v12221_v29, 4  ;;  %v2366_v31 = vsel %vm2277_vm7, %v14431_v55, %v13801_v39  ;;  %v5116_v59 = vsel %vm1683_vm3, %v5113_v63, %v5115_v42  ;;  %v7385_v55 = vpop.f32.mrf.mxu0  ;;  %v4224_v63 = vpop.f32.mrf.mxu1 }
 0x304   : > { %1621 = vrot.lane.b32.xlu1 %v1494_v49, %s7650_s14  ;;  %v12248_v44 = vmax.f32 %v4919_v26, %v5116_v59  ;;  %v12256_v36 = vpop.permute.xlu1 %2046  ;;  %v4921_v26 = vmax.f32 %v12252_v22, 0.0  ;;  %v14437_v55 = vrot.slane %v14202_v18, 4  ;;  %v14438_v49 = vrot.slane %v14192_v35, 4 }
 0x305   : > { %v5529_v37 = vsel %vm2474_vm2, %v5526_v16, %v5528_v40  ;;  %2462 = vrot.lane.b32.xlu0 %v2366_v31, %s7650_s14  ;;  %v12264_v16 = vld [vmem:[%s13572_s4] ss:$0 sm:$0xff]  ;;  %v12267_v8 = vpop.permute.xlu0 %2444  ;;  %v12269_v31 = vpop.f32.mrf.mxu0 }
 0x306   : > { %v5745_v39 = vmax.f32 %v12025_v46, %v5529_v37  ;;  %v5530_v28 = vrot.slane %v12248_v44, 4  ;;  %v4225_v54 = vadd.f32 %v12264_v16, %v4224_v63  ;;  %14435 = vst [vmem:[#allocation8_spill] sm:$0xff] %v12269_v31  ;;  %v14436_v46 = vrot.slane %v14213_v45, 1  ;;  %v4226_v22 = vpop.f32.mrf.mxu1 }
 0x307   : > { %v2563_v1 = vsel %vm2474_vm2, %v14438_v49, %v14437_v55  ;;  %v12284_v63 = vor.u32 %v2840_v30, %v2839_v5  ;;  %v3107_v45 = vsel %vm3041_vm10, %v14439_v53, %v12130_v12  ;;  %v14440_v49 = vld [vmem:[#allocation85_spill] sm:$0xff]  ;;  %v13803_v55 = vrot.slane %v14192_v35, 7 }
 0x308   : > { %v1772_v59 = vsel %vm1683_vm3, %v14436_v46, %v1771_v24  ;;  %v12276_v37 = vpack.c.bf16 %v5745_v39, %v5744_v47  ;;  %v5531_v31 = vsel %vm2474_vm2, %v5528_v40, %v5530_v28  ;;  %v5117_v46 = vrot.slane %v4921_v26, 1  ;;  %v7388_v39 = vpop.f32.mrf.mxu0  ;;  %v12298_v30 = vpop.permute.xlu1 %1851 }
 0x309   : > { %1869 = vrot.lane.b32.xlu1 %v1772_v59, %s7649_s11  ;;  %v12291_v47 = vadd.f32 %v11240_v52, %v4225_v54  ;;  %2655 = vrot.lane.b32.xlu0 %v2563_v1, %s7649_s11  ;;  %v5746_v22 = vmax.f32 %v12052_v51, %v5531_v31  ;;  %v3485_v5 = vsel %vm3041_vm10, %v14440_v49, %v12066_v56  ;;  %v14441_v40 = vrot.slane %v14186_v32, 6  ;;  %v2917_v31 = vpop.permute.xlu0 %2916 }
 0x30a   : > { %v14442_v59 = vrot.slane %v14232_v23, 6  ;;  %v14443_v52 = vrot.slane %v14379_v14, 1  ;;  %v1501_v1 = vrot.slane %v14397_v7, 1  ;;  %v3599_v51 = vsel %vm3140_vm11, %v3485_v5, %v2634_v50  ;;  %v12311_v56 = vpop.f32.mrf.mxu0  ;;  %v14463_v23 = vld [vmem:[#allocation89_spill] sm:$0xff] }
 0x30b   : > { %v13804_v54 = vmax.f32 %v12291_v47, 0.0  ;;  %14444 = vst [vmem:[#allocation27_spill] sm:$0xff] %v12311_v56  ;;  %v5118_v39 = vsel %vm1683_vm3, %v5115_v42, %v5117_v46  ;;  %v3206_v49 = vsel %vm3140_vm11, %v3107_v45, %v12097_v2  ;;  %v3727_v14 = vsel %vm3239_vm12, %v3599_v51, %v2917_v31  ;;  %v4229_v2 = vpop.f32.mrf.mxu1 }
 0x30c   : > { %v1970_v12 = vsel %vm1881_vm6, %v14442_v59, %v14441_v40  ;;  %v1497_v53 = vor.u32 %v14378_v58, %v14443_v52  ;;  %v2842_v58 = vsel %vm2663_vm5, %v12181_v60, %v12284_v63  ;;  %v14445_v7 = vmax.f32 %v12188_v34, 0.0  ;;  %4355 = vmatprep.mubr.bf16.mxu1 %v3727_v14  ;;  %v7389_v45 = vpop.f32.mrf.mxu0  ;;  %v12331_v40 = vpop.permute.xlu1 %1603 }
 0x30d   : > { %2066 = vrot.lane.b32.xlu1 %v1970_v12, %s7651_s17  ;;  %v3337_v5 = vsel %vm3239_vm12, %v3206_v49, %v12158_v10  ;;  %v5119_v42 = vrot.slane %v13804_v54, 1  ;;  %2938 = vrot.lane.b32.xlu0 %v2842_v58, %s7651_s17  ;;  %v13805_v60 = vrot.slane %v14186_v32, 1  ;;  %v4230_v59 = vadd.f32 %v12264_v16, %v4229_v2  ;;  %v12336_v12 = vpop.permute.xlu0 %2635  ;;  %v4231_v49 = vpop.f32.mrf.mxu1  ;;  %v14448_v45 = vld [vmem:[#allocation74_spill] sm:$0xff] }
 0x30e   : > { %v12324_v50 = vmax.f32 %v14445_v7, %v5118_v39  ;;  %4356 = vmatmul.mubr.bf16.gmra.mxu1 %v3337_v5  ;;  %v12338_v10 = vpop.f32.mrf.mxu0  ;;  %v14447_v52 = vrot.slane %v14186_v32, 7  ;;  %v1502_v31 = vsel %vm1138_vm4, %v1497_v53, %v1501_v1  ;;  %v2843_v58 = vrot.slane %v11159_v43, 4 }
 0x30f   : > { %14446 = vst [vmem:[#allocation53_spill] sm:$0xff] %v12338_v10  ;;  %v5120_v39 = vsel %vm1683_vm3, %v5117_v46, %v5119_v42  ;;  %v2844_v7 = vrot.slane %v11173_v62, 5  ;;  %v12353_v2 = vadd.f32 %v14448_v45, %v4230_v59  ;;  %v4232_v46 = vpop.f32.mrf.mxu1  ;;  %v13807_v59 = vrot.slane %v14192_v35, 6 }
 0x310   : > { %v5532_v34 = vrot.slane %v12324_v50, 4  ;;  %v2368_v51 = vsel %vm2277_vm7, %v14447_v52, %v13803_v55  ;;  %v7392_v52 = vpop.f32.mrf.mxu0  ;;  %v12357_v49 = vpop.permute.xlu1 %2048 }
 0x311   : > { %1623 = vrot.lane.b32.xlu1 %v1502_v31, %s7650_s14  ;;  %2464 = vrot.lane.b32.xlu0 %v2368_v51, %s7650_s14  ;;  %v12359_v31 = vmax.f32 %v4921_v26, %v5120_v39  ;;  %v13806_v55 = vmax.f32 %v12353_v2, 0.0  ;;  %v12362_v54 = vpop.permute.xlu0 %2637  ;;  %v4234_v51 = vpop.f32.mrf.mxu1  ;;  %v14450_v26 = vrot.slane %v14225_v9, 4  ;;  %v14451_v39 = vrot.slane %v14202_v18, 4 }
 0x312   : > { %v5533_v5 = vsel %vm2474_vm2, %v5530_v28, %v5532_v34  ;;  %v12364_v14 = vpop.f32.mrf.mxu0  ;;  %v1774_v28 = vsel %vm1683_vm3, %v1771_v24, %v13805_v60  ;;  %v12380_v45 = vor.u32 %v2844_v7, %v2843_v58  ;;  %v14453_v58 = vrot.slane %v14186_v32, 6 }
 0x313   : > { %v5747_v53 = vmax.f32 %v12123_v17, %v5533_v5  ;;  %14449 = vst [vmem:[#allocation30_spill] sm:$0xff] %v12364_v14  ;;  %v2565_v5 = vsel %vm2474_vm2, %v14451_v39, %v14450_v26  ;;  %v12384_v52 = vrot.slane %v13806_v55, 1  ;;  %v1509_v26 = vrot.slane %v14415_v4, 1  ;;  %v14461_v14 = vld [vmem:[#allocation58_spill] sm:$0xff] }
 0x314   : > { %v7393_v24 = vpop.f32.mrf.mxu0  ;;  %v1972_v7 = vsel %vm1881_vm6, %v14453_v58, %v13807_v59  ;;  %v14454_v55 = vmax.f32 %v12291_v47, 0.0  ;;  %v4233_v4 = vadd.f32 %v12264_v16, %v4232_v46 }
 0x315   : > { %v12372_v17 = vpack.c.bf16 %v5747_v53, %v5746_v22  ;;  %1871 = vrot.lane.b32.xlu1 %v1774_v28, %s7649_s11  ;;  %2657 = vrot.lane.b32.xlu0 %v2565_v5, %s7649_s11  ;;  %v12387_v22 = vpop.permute.xlu1 %1853  ;;  %v5534_v53 = vrot.slane %v12359_v31, 4  ;;  %v12390_v51 = vpop.permute.xlu0 %2446  ;;  %v1505_v28 = vor.u32 %v14396_v38, %v1501_v1  ;;  %v5122_v39 = vsel %vm1683_vm3, %v5119_v42, %v12384_v52 }
 0x316   : > { %v12392_v60 = vpop.f32.mrf.mxu0  ;;  %v2846_v5 = vsel %vm2663_vm5, %v12284_v63, %v12380_v45  ;;  %v4237_v1 = vpop.f32.mrf.mxu1  ;;  %v14458_v42 = vrot.slane %v14192_v35, 7 }
 0x317   : > { %14452 = vst [vmem:[#allocation66_spill] sm:$0xff] %v12392_v60  ;;  %v12410_v60 = vmax.f32 %v14454_v55, %v5122_v39  ;;  %v4238_v59 = vadd.f32 %v12264_v16, %v4237_v1  ;;  %v1510_v55 = vsel %vm1138_vm4, %v1505_v28, %v1509_v26  ;;  %v14456_v39 = vmov 0  }
 0x318   : > { %v7396_v38 = vpop.f32.mrf.mxu0  ;;  %v4239_v46 = vpop.f32.mrf.mxu1 }
 0x319   : > { %2068 = vrot.lane.b32.xlu1 %v1972_v7, %s7651_s17  ;;  %2940 = vrot.lane.b32.xlu0 %v2846_v5, %s7651_s17  ;;  %v12414_v58 = vpop.permute.xlu1 %1605  ;;  %v5535_v7 = vsel %vm2474_vm2, %v5532_v34, %v5534_v53  ;;  %v12420_v24 = vpop.permute.xlu0 %2448  ;;  %v12426_v5 = vrot.slane %v14456_v39, 4  ;;  %v14457_v38 = vrot.slane %v14202_v18, 7  ;;  %v14459_v34 = vrot.slane %v12410_v60, 4 }
 0x31a   : > { %v12422_v47 = vpop.f32.mrf.mxu0  ;;  %v12441_v10 = vadd.f32 %v14461_v14, %v4238_v59  ;;  %v5748_v56 = vmax.f32 %v12150_v20, %v5535_v7  ;;  %v14465_v14 = vrot.slane %v14186_v32, 1  ;;  %v13810_v20 = vrot.slane %v14202_v18, 6 }
 0x31b   : > { %14455 = vst [vmem:[#allocation9_spill] sm:$0xff] %v12422_v47  ;;  %v2370_v63 = vsel %vm2277_vm7, %v14458_v42, %v14457_v38  ;;  %v5537_v1 = vsel %vm2474_vm2, %v5534_v53, %v14459_v34  ;;  %v14460_v47 = vld [vmem:[#allocation19_spill] sm:$0xff]  ;;  %v12450_v53 = vadd.f32 %v14463_v23, %v4233_v4  ;;  %v4240_v34 = vpop.f32.mrf.mxu1  ;;  %v14466_v23 = vrot.slane %v14225_v9, 4 }
 0x31c   : > { %v3109_v28 = vsel %vm3041_vm10, %v14460_v47, %v12228_v61  ;;  %v7397_v46 = vpop.f32.mrf.mxu0  ;;  %v5749_v42 = vmax.f32 %v12221_v29, %v5537_v1  ;;  %v14464_v61 = vrot.slane %v14192_v35, 1 }
 0x31d   : > { %1625 = vrot.lane.b32.xlu1 %v1510_v55, %s7650_s14  ;;  %2466 = vrot.lane.b32.xlu0 %v2370_v63, %s7650_s14  ;;  %v14462_v55 = vld [vmem:[#allocation86_spill] sm:$0xff]  ;;  %v12452_v6 = vpop.permute.xlu1 %2050  ;;  %v4241_v63 = vadd.f32 %v12264_v16, %v4240_v34  ;;  %v2567_v4 = vsel %vm2474_vm2, %v14466_v23, %v12426_v5  ;;  %v3208_v1 = vsel %vm3140_vm11, %v3109_v28, %v12195_v11  ;;  %v4925_v46 = vmax.f32 %v12441_v10, 0.0 }
 0x31e   : > { %v3488_v38 = vsel %vm3041_vm10, %v14462_v55, %v12164_v41  ;;  %v1776_v59 = vsel %vm1683_vm3, %v14465_v14, %v14464_v61  ;;  %v2919_v41 = vpop.permute.xlu0 %2918  ;;  %v12463_v7 = vpop.f32.mrf.mxu0  ;;  %v12469_v47 = vpack.c.bf16 %v5749_v42, %v5748_v56  ;;  %v3340_v34 = vsel %vm3239_vm12, %v3208_v1, %v12256_v36  ;;  %v14467_v61 = vld [vmem:[#allocation90_spill] sm:$0xff] }
 0x31f   : > { %v3601_v29 = vsel %vm3140_vm11, %v3488_v38, %v12336_v12  ;;  %v4242_v55 = vpop.f32.mrf.mxu1  ;;  %v12478_v38 = vor.u32 %v11609_v57, %v12426_v5  ;;  %v12483_v56 = vadd.f32 %v14467_v61, %v4241_v63  ;;  %v4924_v10 = vmax.f32 %v12450_v53, 0.0 }
 0x320   : > { %v3730_v12 = vsel %vm3239_vm12, %v3601_v29, %v2919_v41  ;;  %v7400_v11 = vpop.f32.mrf.mxu0  ;;  %v13811_v42 = vrot.slane %v14225_v9, 7  ;;  %v1513_v57 = vor.u32 %v14414_v25, %v1509_v26  ;;  %v1517_v14 = vrot.slane %v14433_v0, 1  ;;  %v14469_v41 = vld [vmem:[#allocation87_spill] sm:$0xff] }
 0x321   : > { %1873 = vrot.lane.b32.xlu1 %v1776_v59, %s7649_s11  ;;  %2659 = vrot.lane.b32.xlu0 %v2567_v4, %s7649_s11  ;;  %v12487_v28 = vpop.permute.xlu1 %1607  ;;  %v13809_v36 = vmax.f32 %v12483_v56, 0.0  ;;  %v14468_v63 = vrot.slane %v14192_v35, 6  ;;  %v3494_v23 = vsel %vm3041_vm10, %v14469_v41, %v12390_v51  ;;  %v5125_v4 = vrot.slane %v4925_v46, 1  ;;  %v14470_v0 = vld [vmem:[#allocation23_spill] sm:$0xff]  ;;  %v14471_v51 = vld [vmem:[#allocation34_spill] sm:$0xff] }
 0x322   : > { %4363 = vmatprep.mubr.bf16.mxu1 %v3730_v12  ;;  %v12493_v59 = vpop.permute.xlu0 %2641  ;;  %v12495_v29 = vpop.f32.mrf.mxu0  ;;  %v2850_v25 = vsel %vm2663_vm5, %v12380_v45, %v12478_v38  ;;  %v3111_v26 = vsel %vm3041_vm10, %v14470_v0, %v12331_v40  ;;  %v1777_v12 = vrot.slane %v14202_v18, 1  ;;  %v5123_v61 = vrot.slane %v4924_v10, 1 }
 0x323   : > { %4364 = vmatmul.mubr.bf16.gmra.mxu1 %v3340_v34  ;;  %v1974_v53 = vsel %vm1881_vm6, %v14468_v63, %v13810_v20  ;;  %v5127_v1 = vrot.slane %v13809_v36, 1  ;;  %v3491_v34 = vsel %vm3041_vm10, %v14471_v51, %v12267_v8  ;;  %v4245_v45 = vpop.f32.mrf.mxu1  ;;  %v14472_v40 = vrot.slane %v14202_v18, 7  ;;  %v14474_v51 = vld [vmem:[#allocation31_spill] sm:$0xff] }
 0x324   : > { %v7401_v55 = vpop.f32.mrf.mxu0  ;;  %v3603_v41 = vsel %vm3140_vm11, %v3491_v34, %v12362_v54  ;;  %v4246_v0 = vadd.f32 %v12264_v16, %v4245_v45  ;;  %v3605_v36 = vsel %vm3140_vm11, %v3494_v23, %v14474_v51  ;;  %v3210_v20 = vsel %vm3140_vm11, %v3111_v26, %v12298_v30  ;;  %v14475_v45 = vld [vmem:[#allocation35_spill] sm:$0xff]  ;;  %v14476_v26 = vld [vmem:[#allocation33_spill] sm:$0xff] }
 0x325   : > { %2070 = vrot.lane.b32.xlu1 %v1974_v53, %s7651_s17  ;;  %2942 = vrot.lane.b32.xlu0 %v2850_v25, %s7651_s17  ;;  %v12519_v11 = vpop.permute.xlu1 %1855  ;;  %v2372_v63 = vsel %vm2277_vm7, %v14472_v40, %v13811_v42  ;;  %v1518_v53 = vsel %vm1138_vm4, %v1513_v57, %v1517_v14  ;;  %v5128_v25 = vsel %vm1683_vm3, %v5125_v4, %v5127_v1  ;;  %v4247_v42 = vpop.f32.mrf.mxu1  ;;  %v1975_v54 = vrot.slane %v14225_v9, 6 }
 0x326   : > { %v2921_v8 = vpop.permute.xlu0 %2920  ;;  %v12531_v55 = vpop.f32.mrf.mxu0  ;;  %v5126_v40 = vsel %vm1683_vm3, %v5123_v61, %v5125_v4  ;;  %v3343_v34 = vsel %vm3239_vm12, %v3210_v20, %v12357_v49  ;;  %v5124_v30 = vsel %vm1683_vm3, %v12384_v52, %v5123_v61  ;;  %v12549_v42 = vmax.f32 %v4925_v46, %v5128_v25 }
 0x327   : > { %14473 = vst [vmem:[#allocation57_spill] sm:$0xff] %v12531_v55  ;;  %v3733_v57 = vsel %vm3239_vm12, %v3603_v41, %v2921_v8  ;;  %v12544_v55 = vadd.f32 %v14475_v45, %v4246_v0  ;;  %v4248_v4 = vpop.f32.mrf.mxu1  ;;  %v13812_v49 = vrot.slane %v14225_v9, 1  ;;  %v12556_v20 = vmax.f32 %v4924_v10, %v5126_v40  ;;  %v14480_v40 = vld [vmem:[#allocation59_spill] sm:$0xff] }
 0x328   : > { %4371 = vmatprep.mubr.bf16.mxu1 %v3733_v57  ;;  %v7404_v23 = vpop.f32.mrf.mxu0  ;;  %v4249_v0 = vadd.f32 %v12264_v16, %v4248_v4  ;;  %v14477_v46 = vrot.slane %v14192_v35, 1  ;;  %v14478_v10 = vrot.slane %v14202_v18, 6  ;;  %v3113_v57 = vsel %vm3041_vm10, %v14480_v40, %v12414_v58  ;;  %v14481_v45 = vld [vmem:[#allocation43_spill] sm:$0xff] }
 0x329   : > { %1627 = vrot.lane.b32.xlu1 %v1518_v53, %s7650_s14  ;;  %2468 = vrot.lane.b32.xlu0 %v2372_v63, %s7650_s14  ;;  %v3736_v53 = vsel %vm3239_vm12, %v3605_v36, %v14476_v26  ;;  %v12553_v41 = vpop.permute.xlu1 %2052  ;;  %v4927_v63 = vmax.f32 %v12544_v55, 0.0  ;;  %v4250_v25 = vpop.f32.mrf.mxu1  ;;  %v14479_v55 = vmax.f32 %v12353_v2, 0.0  ;;  %v1525_v2 = vrot.slane %v11173_v62, 1  ;;  %v14482_v62 = vld [vmem:[#allocation12_spill] sm:$0xff] }
 0x32a   : > { %v2925_v8 = vpop.permute.xlu0 %2924  ;;  %v12560_v52 = vpop.f32.mrf.mxu0  ;;  %v1778_v61 = vsel %vm1683_vm3, %v14477_v46, %v1777_v12  ;;  %v1976_v36 = vsel %vm1881_vm6, %v14478_v10, %v1975_v54  ;;  %v12579_v23 = vadd.f32 %v14481_v45, %v4249_v0  ;;  %v5542_v58 = vrot.slane %v12549_v42, 4 }
 0x32b   : > { %4372 = vmatmul.mubr.bf16.gmra.mxu1 %v3343_v34  ;;  %v12573_v51 = vmax.f32 %v14479_v55, %v5124_v30  ;;  %v5129_v34 = vrot.slane %v4927_v63, 1  ;;  %v12590_v30 = vsel %vm1683_vm3, %v1777_v12, %v13812_v49  ;;  %v12598_v25 = vrot.slane %v14456_v39, 7 }
 0x32c   : > { %4379 = vmatprep.mubr.bf16.mxu1 %v3736_v53  ;;  %v7405_v4 = vpop.f32.mrf.mxu0  ;;  %v1521_v53 = vor.u32 %v14432_v33, %v1517_v14  ;;  %v13813_v46 = vmax.f32 %v12579_v23, 0.0  ;;  %v5540_v33 = vrot.slane %v12556_v20, 4  ;;  %v3497_v14 = vsel %vm3041_vm10, %v14482_v62, %v12420_v24 }
 0x32d   : > { %1875 = vrot.lane.b32.xlu1 %v1778_v61, %s7649_s11  ;;  %2661 = vrot.lane.b32.xlu0 %v12426_v5, %s7649_s11  ;;  %v12583_v26 = vpop.permute.xlu1 %1857  ;;  %v5130_v0 = vsel %vm1683_vm3, %v5127_v1, %v5129_v34  ;;  %v3212_v12 = vsel %vm3140_vm11, %v3113_v57, %v12387_v22  ;;  %v14483_v10 = vmax.f32 %v12483_v56, 0.0  ;;  %v12612_v55 = vrot.slane %v14456_v39, 6  ;;  %v4253_v57 = vpop.f32.mrf.mxu1 }
 0x32e   : > { %v2451_v61 = vpop.permute.xlu0 %2450  ;;  %v12595_v5 = vpop.f32.mrf.mxu0  ;;  %v3346_v40 = vsel %vm3239_vm12, %v3212_v12, %v12452_v6  ;;  %v3607_v45 = vsel %vm3140_vm11, %v3497_v14, %v12493_v59  ;;  %v5131_v24 = vrot.slane %v13813_v46, 1  ;;  %v5538_v56 = vrot.slane %v12573_v51, 4 }
 0x32f   : > { %v12608_v1 = vmax.f32 %v14483_v10, %v5130_v0  ;;  %v1526_v6 = vsel %vm1138_vm4, %v1521_v53, %v1525_v2  ;;  %v5543_v0 = vsel %vm2474_vm2, %v5540_v33, %v5542_v58  ;;  %v4254_v14 = vadd.f32 %v12264_v16, %v4253_v57  ;;  %v4255_v53 = vpop.f32.mrf.mxu1  ;;  %v14485_v57 = vld [vmem:[#allocation60_spill] sm:$0xff] }
 0x330   : > { %v7408_v22 = vpop.f32.mrf.mxu0  ;;  %v5132_v62 = vsel %vm1683_vm3, %v5129_v34, %v5131_v24  ;;  %v5541_v10 = vsel %vm2474_vm2, %v5538_v56, %v5540_v33  ;;  %v1978_v34 = vsel %vm1881_vm6, %v1975_v54, %v12612_v55  ;;  %v14486_v53 = vrot.slane %v12410_v60, 4 }
 0x331   : > { %2072 = vrot.lane.b32.xlu1 %v1976_v36, %s7651_s17  ;;  %2944 = vrot.lane.b32.xlu0 %v12478_v38, %s7651_s17  ;;  %v3739_v36 = vsel %vm3239_vm12, %v3607_v45, %v2925_v8  ;;  %v12624_v4 = vpop.permute.xlu1 %2054  ;;  %v5544_v59 = vrot.slane %v12608_v1, 4  ;;  %v12635_v8 = vrot.slane %v14456_v39, 1  ;;  %v14484_v45 = vrot.slane %v14225_v9, 7 }
 0x332   : > { %v2644_v38 = vpop.permute.xlu0 %2643  ;;  %v12631_v12 = vpop.f32.mrf.mxu0  ;;  %v4666_v39 = vadd.f32 %v14485_v57, %v4254_v14  ;;  %v5751_v14 = vmax.f32 %v12324_v50, %v5541_v10 }
 0x333   : > { %4380 = vmatmul.mubr.bf16.gmra.mxu1 %v3346_v40  ;;  %v12637_v40 = vmax.f32 %v4927_v63, %v5132_v62  ;;  %v2374_v22 = vsel %vm2277_vm7, %v14484_v45, %v12598_v25  ;;  %v5545_v33 = vsel %vm2474_vm2, %v5542_v58, %v5544_v59  ;;  %v14487_v45 = vld [vmem:[#allocation29_spill] sm:$0xff]  ;;  %v4256_v58 = vpop.f32.mrf.mxu1 }
 0x334   : > { %4387 = vmatprep.mubr.bf16.mxu1 %v3739_v36  ;;  %v7409_v63 = vpop.f32.mrf.mxu0  ;;  %v5752_v36 = vmax.f32 %v12359_v31, %v5543_v0  ;;  %v5753_v62 = vmax.f32 %v12410_v60, %v5545_v33  ;;  %v3115_v49 = vsel %vm3041_vm10, %v14487_v45, %v12487_v28  ;;  %v4929_v0 = vmax.f32 %v4666_v39, 0.0 }
 0x335   : > { %1629 = vrot.lane.b32.xlu1 %v1526_v6, %s7650_s14  ;;  %2470 = vrot.lane.b32.xlu0 %v2374_v22, %s7650_s14  ;;  %v5539_v6 = vsel %vm2474_vm2, %v14486_v53, %v5538_v56  ;;  %v5546_v54 = vrot.slane %v12637_v40, 4  ;;  %v12660_v46 = vpop.permute.xlu1 %1611  ;;  %v1529_v22 = vor.u32 %v11159_v43, %v1525_v2  ;;  %v3214_v31 = vsel %vm3140_vm11, %v3115_v49, %v12519_v11  ;;  %v14488_v63 = vld [vmem:[#allocation20_spill] sm:$0xff]  ;;  %v4258_v45 = vpop.f32.mrf.mxu1  ;;  %v14489_v2 = vld [vmem:[#allocation91_spill] sm:$0xff] }
 0x336   : > { %v4257_v60 = vadd.f32 %v12264_v16, %v4256_v58  ;;  %v2927_v56 = vpop.permute.xlu0 %2926  ;;  %v12667_v33 = vpop.f32.mrf.mxu0  ;;  %v5817_v57 = vpack.c.bf16 %v5753_v62, %v5752_v36  ;;  %v3349_v28 = vsel %vm3239_vm12, %v3214_v31, %v12553_v41  ;;  %v3500_v53 = vsel %vm3041_vm10, %v14488_v63, %v2451_v61 }
 0x337   : > { %v5750_v43 = vmax.f32 %v12248_v44, %v5539_v6  ;;  %v5547_v50 = vsel %vm2474_vm2, %v5544_v59, %v5546_v54  ;;  %v5133_v11 = vrot.slane %v4929_v0, 1  ;;  %v3609_v49 = vsel %vm3140_vm11, %v3500_v53, %v2644_v38 }
 0x338   : > { %v12678_v10 = vadd.f32 %v14489_v2, %v4257_v60  ;;  %v7412_v41 = vpop.f32.mrf.mxu0  ;;  %6907 = vmatprep.subr.bf16.mxu1 %v5817_v57  ;;  %v5754_v61 = vmax.f32 %v12573_v51, %v5547_v50  ;;  %v14490_v51 = vmax.f32 %v12579_v23, 0.0  ;;  %v14491_v63 = vrot.slane %v14225_v9, 1 }
 0x339   : > { %2074 = vrot.lane.b32.xlu1 %v1978_v34, %s7651_s17  ;;  %1877 = vrot.lane.b32.xlu0 %v12590_v30, %s7649_s11  ;;  %v3742_v34 = vsel %vm3239_vm12, %v3609_v49, %v2927_v56  ;;  %v12684_v39 = vpop.permute.xlu1 %1859  ;;  %v5816_v44 = vpack.c.bf16 %v5751_v14, %v5750_v43  ;;  %v5134_v59 = vsel %vm1683_vm3, %v5131_v24, %v5133_v11  ;;  %v4261_v14 = vpop.f32.mrf.mxu1  ;;  %v14492_v43 = vld [vmem:[#allocation77_spill] sm:$0xff] }
 0x33a   : > { %v4930_v38 = vmax.f32 %v12678_v10, 0.0  ;;  %6908 = vmatpush3.bf16.msra.mxu1 %v11865_v21  ;;  %v2453_v36 = vpop.permute.xlu0 %2452  ;;  %v12689_v62 = vpop.f32.mrf.mxu0  ;;  %v1534_v30 = vsel %vm1138_vm4, %v1529_v22, %v12635_v8  ;;  %v12695_v6 = vmax.f32 %v14490_v51, %v5134_v59  ;;  %v4262_v22 = vadd.f32 %v12264_v16, %v4261_v14  ;;  %v14493_v10 = vld [vmem:[#allocation45_spill] sm:$0xff] }
 0x33b   : > { %4388 = vmatmul.mubr.bf16.gmra.mxu1 %v3349_v28  ;;  %6909 = vmatprep.subr.bf16.mxu1 %v5816_v44  ;;  %v4263_v28 = vpop.f32.mrf.mxu1  ;;  %v1782_v53 = vsel %vm1683_vm3, %v14491_v63, %v12635_v8  ;;  %v14495_v63 = vld [vmem:[#allocation6_spill] sm:$0xff] }
 0x33c   : > { %4395 = vmatprep.mubr.bf16.mxu1 %v3742_v34  ;;  %v5135_v58 = vrot.slane %v4930_v38, 1  ;;  %v7413_v24 = vpop.f32.mrf.mxu0  ;;  %v5548_v21 = vrot.slane %v12695_v6, 4 }
 0x33d   : > { %1631 = vrot.lane.b32.xlu1 %v1534_v30, %s7650_s14  ;;  %2472 = vrot.lane.b32.xlu0 %v12598_v25, %s7650_s14  ;;  %v12701_v31 = vpop.permute.xlu1 %2056  ;;  %v14494_v30 = vld [vmem:[#allocation79_spill] sm:$0xff] }
 0x33e   : > { %v5136_v60 = vsel %vm1683_vm3, %v5133_v11, %v5135_v58  ;;  %6910 = vmatpush3.bf16.msra.mxu1 %v11775_v27  ;;  %v2646_v23 = vpop.permute.xlu0 %2645  ;;  %v12706_v56 = vpop.f32.mrf.mxu0  ;;  %v5549_v45 = vsel %vm2474_vm2, %v5546_v54, %v5548_v21  ;;  %v4674_v27 = vadd.f32 %v14492_v43, %v4262_v22 }
 0x33f   : > { %v12708_v57 = vmax.f32 %v4929_v0, %v5136_v60  ;;  %6911 = vmatprep.subr.bf16.mxu1 %v12469_v47  ;;  %v5755_v0 = vmax.f32 %v12556_v20, %v5549_v45  ;;  %v4264_v11 = vpop.f32.mrf.mxu1 }
 0x340   : > { %v7416_v50 = vpop.f32.mrf.mxu0  ;;  %v4931_v2 = vmax.f32 %v4674_v27, 0.0  ;;  %v4265_v8 = vadd.f32 %v12264_v16, %v4264_v11 }
 0x341   : > { %2076 = vrot.lane.b32.xlu1 %v12612_v55, %s7651_s17  ;;  %1879 = vrot.lane.b32.xlu0 %v1782_v53, %s7649_s11  ;;  %v5550_v47 = vrot.slane %v12708_v57, 4  ;;  %v12722_v49 = vpop.permute.xlu1 %1613  ;;  %v12728_v54 = vpack.c.bf16 %v5755_v0, %v5754_v61  ;;  %v4266_v44 = vpop.f32.mrf.mxu1  ;;  %v14496_v53 = vld [vmem:[#allocation64_spill] sm:$0xff] }
 0x342   : > { %6912 = vmatpush3.bf16.msra.mxu1 %v14493_v10  ;;  %v2929_v41 = vpop.permute.xlu0 %2928  ;;  %v12726_v34 = vpop.f32.mrf.mxu0  ;;  %v5137_v59 = vrot.slane %v4931_v2, 1  ;;  %v12733_v51 = vadd.f32 %v14494_v30, %v4265_v8 }
 0x343   : > { %6913 = vmatprep.subr.bf16.mxu1 %v12372_v17  ;;  %v5551_v20 = vsel %vm2474_vm2, %v5548_v21, %v5550_v47  ;;  %v14497_v21 = vld [vmem:[#allocation24_spill] sm:$0xff]  ;;  %v4269_v10 = vpop.f32.mrf.mxu1 }
 0x344   : > { %v7417_v24 = vpop.f32.mrf.mxu0  ;;  %v5756_v14 = vmax.f32 %v12549_v42, %v5551_v20  ;;  %v5138_v22 = vsel %vm1683_vm3, %v5135_v58, %v5137_v59  ;;  %v4932_v28 = vmax.f32 %v12733_v51, 0.0  ;;  %v3503_v43 = vsel %vm3041_vm10, %v14497_v21, %v2453_v36  ;;  %v14498_v20 = vld [vmem:[#allocation61_spill] sm:$0xff] }
 0x345   : > { %v12745_v27 = vmax.f32 %v4930_v38, %v5138_v22  ;;  %v3611_v58 = vsel %vm3140_vm11, %v3503_v43, %v2646_v23  ;;  %v14499_v24 = vld [vmem:[#allocation63_spill] sm:$0xff]  ;;  %v14500_v22 = vld [vmem:[#allocation2_spill] sm:$0xff] }
 0x346   : > { %v1610_v60 = vpop.permute.xlu1 %1609  ;;  %6914 = vmatpush3.bf16.msra.mxu1 %v14495_v63  ;;  %v2455_v61 = vpop.permute.xlu0 %2454  ;;  %v5139_v50 = vrot.slane %v4932_v28, 1  ;;  %v3745_v38 = vsel %vm3239_vm12, %v3611_v58, %v2929_v41  ;;  %v3119_v63 = vsel %vm3041_vm10, %v14500_v22, %v12660_v46 }
 0x347   : > { %v3117_v17 = vsel %vm3041_vm10, %v14496_v53, %v1610_v60  ;;  %v12741_v45 = vpop.f32.mrf.mxu0  ;;  %6915 = vmatprep.subr.bf16.mxu1 %v12276_v37  ;;  %v5552_v8 = vrot.slane %v12745_v27, 4 }
 0x348   : > { %v3216_v42 = vsel %vm3140_vm11, %v3117_v17, %v12583_v26  ;;  %v5140_v36 = vsel %vm1683_vm3, %v5137_v59, %v5139_v50  ;;  %v4270_v26 = vadd.f32 %v12264_v16, %v4269_v10 }
 0x349   : > { %v7420_v0 = vpop.f32.mrf.mxu0  ;;  %v3352_v11 = vsel %vm3239_vm12, %v3216_v42, %v12624_v4  ;;  %v12760_v30 = vmax.f32 %v4931_v2, %v5140_v36  ;;  %v4271_v4 = vpop.f32.mrf.mxu1  ;;  %v5553_v51 = vsel %vm2474_vm2, %v5550_v47, %v5552_v8  ;;  %v3218_v2 = vsel %vm3140_vm11, %v3119_v63, %v12684_v39  ;;  %v14501_v47 = vld [vmem:[#allocation71_spill] sm:$0xff] }
 0x34a   : > { %4396 = vmatmul.mubr.bf16.gmra.mxu1 %v3352_v11  ;;  %v1862_v44 = vpop.permute.xlu1 %1861  ;;  %v2648_v37 = vpop.permute.xlu0 %2647  ;;  %v4682_v60 = vadd.f32 %v14499_v24, %v4270_v26  ;;  %v5757_v59 = vmax.f32 %v12608_v1, %v5553_v51  ;;  %v3355_v46 = vsel %vm3239_vm12, %v3218_v2, %v12701_v31  ;;  %v14502_v0 = vld [vmem:[#allocation65_spill] sm:$0xff]  ;;  %v14503_v26 = vld [vmem:[#allocation92_spill] sm:$0xff] }
 0x34b   : > { %6916 = vmatpush3.bf16.msra.mxu1 %v14498_v20  ;;  %v12758_v23 = vpop.f32.mrf.mxu0  ;;  %4403 = vmatprep.mubr.bf16.mxu1 %v3745_v38  ;;  %v5554_v53 = vrot.slane %v12760_v30, 4  ;;  %v4272_v17 = vpop.f32.mrf.mxu1  ;;  %v3506_v11 = vsel %vm3041_vm10, %v14502_v0, %v2455_v61 }
 0x34c   : > { %6917 = vmatprep.subr.bf16.mxu1 %v12173_v19  ;;  %v4933_v19 = vmax.f32 %v4682_v60, 0.0  ;;  %v4273_v43 = vadd.f32 %v12264_v16, %v4272_v17  ;;  %v12776_v1 = vpack.c.bf16 %v5757_v59, %v5756_v14  ;;  %v3613_v36 = vsel %vm3140_vm11, %v3506_v11, %v2648_v37  ;;  %v14504_v60 = vld [vmem:[#allocation51_spill] sm:$0xff] }
 0x34d   : > { %v7421_v41 = vpop.f32.mrf.mxu0  ;;  %v4274_v10 = vpop.f32.mrf.mxu1  ;;  %v5555_v39 = vsel %vm2474_vm2, %v5552_v8, %v5554_v53 }
 0x34e   : > { %v2059_v21 = vpop.permute.xlu1 %2058  ;;  %v5141_v38 = vrot.slane %v4933_v19, 1  ;;  %v4685_v20 = vadd.f32 %v14503_v26, %v4273_v43  ;;  %v5758_v14 = vmax.f32 %v12637_v40, %v5555_v39  ;;  %v14505_v43 = vld [vmem:[#allocation98_spill] sm:$0xff] }
 0x34f   : > { %6918 = vmatpush3.bf16.msra.mxu1 %v14501_v47  ;;  %v2931_v42 = vpop.permute.xlu0 %2930  ;;  %v12774_v58 = vpop.f32.mrf.mxu0  ;;  %v14506_v10 = vld [vmem:[#allocation62_spill] sm:$0xff] }
 0x350   : > { %6919 = vmatprep.subr.bf16.mxu1 %v12075_v48  ;;  %v3748_v31 = vsel %vm3239_vm12, %v3613_v36, %v2931_v42  ;;  %v5142_v24 = vsel %vm1683_vm3, %v5139_v50, %v5141_v38  ;;  %v4934_v61 = vmax.f32 %v4685_v20, 0.0  ;;  %v4277_v22 = vpop.f32.mrf.mxu1  ;;  %v3121_v50 = vsel %vm3041_vm10, %v14300_v15, %v12722_v49  ;;  %v14507_v36 = vld [vmem:[#allocation25_spill] sm:$0xff] }
 0x351   : > { %v7424_v4 = vpop.f32.mrf.mxu0  ;;  %v12792_v8 = vmax.f32 %v4932_v28, %v5142_v24  ;;  %v4278_v2 = vadd.f32 %v12264_v16, %v4277_v22 }
 0x352   : > { %4404 = vmatmul.mubr.bf16.gmra.mxu1 %v3355_v46  ;;  %v1616_v51 = vpop.permute.xlu1 %1615  ;;  %v5143_v37 = vrot.slane %v4934_v61, 1  ;;  %v4279_v46 = vpop.f32.mrf.mxu1 }
 0x353   : > { %6920 = vmatpush3.bf16.msra.mxu1 %v14504_v60  ;;  %v2457_v48 = vpop.permute.xlu0 %2456  ;;  %v12790_v41 = vpop.f32.mrf.mxu0  ;;  %4411 = vmatprep.mubr.bf16.mxu1 %v3748_v31  ;;  %v5556_v40 = vrot.slane %v12792_v8, 4  ;;  %v4690_v15 = vadd.f32 %v14506_v10, %v4278_v2 }
 0x354   : > { %6921 = vmatprep.subr.bf16.mxu1 %v11977_v13  ;;  %v5144_v17 = vsel %vm1683_vm3, %v5141_v38, %v5143_v37  ;;  %v3220_v13 = vsel %vm3140_vm11, %v3121_v50, %v1862_v44  ;;  %v3509_v26 = vsel %vm3041_vm10, %v14507_v36, %v2457_v48  ;;  %v4280_v20 = vpop.f32.mrf.mxu1  ;;  %v14508_v48 = vld [vmem:[#allocation4_spill] sm:$0xff] }
 0x355   : > { %v7425_v59 = vpop.f32.mrf.mxu0  ;;  %v12805_v42 = vmax.f32 %v4933_v19, %v5144_v17  ;;  %v5557_v0 = vsel %vm2474_vm2, %v5554_v53, %v5556_v40  ;;  %v3358_v11 = vsel %vm3239_vm12, %v3220_v13, %v2059_v21  ;;  %v4935_v19 = vmax.f32 %v4690_v15, 0.0 }
 0x356   : > { %v1864_v63 = vpop.permute.xlu1 %1863  ;;  %v5759_v39 = vmax.f32 %v12695_v6, %v5557_v0  ;;  %v4281_v53 = vadd.f32 %v12264_v16, %v4280_v20  ;;  %v4282_v60 = vpop.f32.mrf.mxu1 }
 0x357   : > { %6922 = vmatpush3.bf16.msra.mxu1 %v14505_v43  ;;  %v2650_v28 = vpop.permute.xlu0 %2649  ;;  %v12802_v47 = vpop.f32.mrf.mxu0  ;;  %v5558_v38 = vrot.slane %v12805_v42, 4  ;;  %v5145_v22 = vrot.slane %v4935_v19, 1 }
 0x358   : > { %v3615_v4 = vsel %vm3140_vm11, %v3509_v26, %v2650_v28  ;;  %v12818_v24 = vpack.c.bf16 %v5759_v39, %v5758_v14  ;;  %v4693_v50 = vadd.f32 %v14508_v48, %v4281_v53  ;;  %v3123_v28 = vsel %vm3041_vm10, %v14094_v3, %v1616_v51 }
 0x359   : > { %v7428_v49 = vpop.f32.mrf.mxu0  ;;  %v5559_v59 = vsel %vm2474_vm2, %v5556_v40, %v5558_v38  ;;  %v5146_v13 = vsel %vm1683_vm3, %v5143_v37, %v5145_v22  ;;  %v3222_v40 = vsel %vm3140_vm11, %v3123_v28, %v1864_v63 }
 0x35a   : > { %4412 = vmatmul.mubr.bf16.gmra.mxu1 %v3358_v11  ;;  %v2061_v44 = vpop.permute.xlu1 %2060  ;;  %v5760_v2 = vmax.f32 %v12708_v57, %v5559_v59  ;;  %v4936_v14 = vmax.f32 %v4693_v50, 0.0  ;;  %v12829_v11 = vmax.f32 %v4934_v61, %v5146_v13 }
 0x35b   : > { %v2933_v31 = vpop.permute.xlu0 %2932  ;;  %v12816_v21 = vpop.f32.mrf.mxu0  ;;  %v3361_v15 = vsel %vm3239_vm12, %v3222_v40, %v2061_v44 }
 0x35c   : > { %v3751_v6 = vsel %vm3239_vm12, %v3615_v4, %v2933_v31  ;;  %v5147_v10 = vrot.slane %v4936_v14, 1  ;;  %v5560_v57 = vrot.slane %v12829_v11, 4  ;;  %v14509_v4 = vld [vmem:[#allocation40_spill] sm:$0xff] }
 0x35d   : > { %4419 = vmatprep.mubr.bf16.mxu1 %v3751_v6  ;;  %v7429_v17 = vpop.f32.mrf.mxu0  ;;  %v4285_v39 = vpop.f32.mrf.mxu1  ;;  %v14510_v6 = vld [vmem:[#allocation36_spill] sm:$0xff] }
 0x35e   : > { %v1618_v43 = vpop.permute.xlu1 %1617  ;;  %v5148_v3 = vsel %vm1683_vm3, %v5145_v22, %v5147_v10  ;;  %v4286_v51 = vadd.f32 %v12264_v16, %v4285_v39  ;;  %v5561_v63 = vsel %vm2474_vm2, %v5558_v38, %v5560_v57  ;;  %v14511_v22 = vld [vmem:[#allocation44_spill] sm:$0xff] }
 0x35f   : > { %v2459_v46 = vpop.permute.xlu0 %2458  ;;  %v12827_v0 = vpop.f32.mrf.mxu0  ;;  %v12838_v61 = vmax.f32 %v4935_v19, %v5148_v3  ;;  %v5761_v31 = vmax.f32 %v12745_v27, %v5561_v63  ;;  %v3125_v48 = vsel %vm3041_vm10, %v14511_v22, %v1618_v43  ;;  %v14512_v3 = vld [vmem:[#allocation17_spill] sm:$0xff] }
 0x360   : > { %v4287_v20 = vpop.f32.mrf.mxu1  ;;  %v4698_v44 = vadd.f32 %v14509_v4, %v4286_v51  ;;  %v3512_v59 = vsel %vm3041_vm10, %v14510_v6, %v2459_v46 }
 0x361   : > { %v7432_v49 = vpop.f32.mrf.mxu0  ;;  %v5562_v60 = vrot.slane %v12838_v61, 4 }
 0x362   : > { %4420 = vmatmul.mubr.bf16.gmra.mxu1 %v3361_v15  ;;  %v1866_v36 = vpop.permute.xlu1 %1865  ;;  %v4288_v50 = vpop.f32.mrf.mxu1  ;;  %v4937_v19 = vmax.f32 %v4698_v44, 0.0  ;;  %v12852_v15 = vpack.c.bf16 %v5761_v31, %v5760_v2 }
 0x363   : > { %v2652_v37 = vpop.permute.xlu0 %2651  ;;  %v12836_v26 = vpop.f32.mrf.mxu0  ;;  %v4289_v38 = vadd.f32 %v12264_v16, %v4288_v50  ;;  %v3224_v27 = vsel %vm3140_vm11, %v3125_v48, %v1866_v36  ;;  %v5563_v39 = vsel %vm2474_vm2, %v5560_v57, %v5562_v60 }
 0x364   : > { %v3617_v28 = vsel %vm3140_vm11, %v3512_v59, %v2652_v37  ;;  %v4290_v49 = vpop.f32.mrf.mxu1  ;;  %v5149_v43 = vrot.slane %v4937_v19, 1  ;;  %v5762_v63 = vmax.f32 %v12760_v30, %v5563_v39  ;;  %v14515_v39 = vld [vmem:[#allocation16_spill] sm:$0xff] }
 0x365   : > { %v7433_v53 = vpop.f32.mrf.mxu0  ;;  %v4701_v51 = vadd.f32 %v14512_v3, %v4289_v38  ;;  %v14514_v49 = vld [vmem:[#allocation46_spill] sm:$0xff] }
 0x366   : > { %v2063_v17 = vpop.permute.xlu1 %2062  ;;  %v5150_v2 = vsel %vm1683_vm3, %v5147_v10, %v5149_v43 }
 0x367   : > { %v2935_v13 = vpop.permute.xlu0 %2934  ;;  %v12850_v40 = vpop.f32.mrf.mxu0  ;;  %v3364_v20 = vsel %vm3239_vm12, %v3224_v27, %v2063_v17  ;;  %v4938_v44 = vmax.f32 %v4701_v51, 0.0  ;;  %v12861_v31 = vmax.f32 %v4936_v14, %v5150_v2  ;;  %v14513_v27 = vld [vmem:[#allocation55_spill] sm:$0xff] }
 0x368   : > { %v3754_v46 = vsel %vm3239_vm12, %v3617_v28, %v2935_v13 }
 0x369   : > { %4427 = vmatprep.mubr.bf16.mxu1 %v3754_v46  ;;  %v7436_v37 = vpop.f32.mrf.mxu0  ;;  %v5151_v6 = vrot.slane %v4938_v44, 1  ;;  %v5564_v59 = vrot.slane %v12861_v31, 4 }
 0x36a   : > { %4428 = vmatmul.mubr.bf16.gmra.mxu1 %v3364_v20  ;;  %v1620_v4 = vpop.permute.xlu1 %1619 }
 0x36b   : > { %v2461_v36 = vpop.permute.xlu0 %2460  ;;  %v4852_v53 = vpop.f32.mrf.mxu0  ;;  %v5152_v50 = vsel %vm1683_vm3, %v5149_v43, %v5151_v6  ;;  %v5565_v13 = vsel %vm2474_vm2, %v5562_v60, %v5564_v59  ;;  %v3127_v46 = vsel %vm3041_vm10, %v14514_v49, %v1620_v4 }
 0x36c   : > { %v4293_v22 = vpop.f32.mrf.mxu1  ;;  %v12866_v38 = vmax.f32 %v4937_v19, %v5152_v50  ;;  %v3515_v14 = vsel %vm3041_vm10, %v14513_v27, %v2461_v36  ;;  %v5763_v43 = vmax.f32 %v12792_v8, %v5565_v13 }
 0x36d   : > { %v7437_v57 = vpop.f32.mrf.mxu0  ;;  %v4294_v17 = vadd.f32 %v12264_v16, %v4293_v22 }
 0x36e   : > { %v1868_v48 = vpop.permute.xlu1 %1867  ;;  %v4295_v10 = vpop.f32.mrf.mxu1  ;;  %v5566_v20 = vrot.slane %v12866_v38, 4  ;;  %v12880_v50 = vpack.c.bf16 %v5763_v43, %v5762_v63 }
 0x36f   : > { %v2654_v30 = vpop.permute.xlu0 %2653  ;;  %v4856_v28 = vpop.f32.mrf.mxu0  ;;  %v4706_v3 = vadd.f32 %v14515_v39, %v4294_v17  ;;  %v3226_v19 = vsel %vm3140_vm11, %v3127_v46, %v1868_v48 }
 0x370   : > { %v3619_v37 = vsel %vm3140_vm11, %v3515_v14, %v2654_v30  ;;  %v4296_v2 = vpop.f32.mrf.mxu1  ;;  %v5567_v28 = vsel %vm2474_vm2, %v5564_v59, %v5566_v20  ;;  %v14516_v30 = vld [vmem:[#allocation7_spill] sm:$0xff] }
 0x371   : > { %v7440_v51 = vpop.f32.mrf.mxu0  ;;  %v4939_v60 = vmax.f32 %v4706_v3, 0.0  ;;  %v4297_v57 = vadd.f32 %v12264_v16, %v4296_v2  ;;  %v5764_v27 = vmax.f32 %v12805_v42, %v5567_v28  ;;  %v12894_v42 = vld [vmem:[%s13572_s4] ss:$0 sm:$0xff]  ;;  %v14519_v28 = vld [vmem:[#allocation47_spill] sm:$0xff] }
 0x372   : > { %v2065_v53 = vpop.permute.xlu1 %2064  ;;  %v4298_v17 = vpop.f32.mrf.mxu1 }
 0x373   : > { %v2937_v36 = vpop.permute.xlu0 %2936  ;;  %v3367_v22 = vsel %vm3239_vm12, %v3226_v19, %v2065_v53  ;;  %v4858_v4 = vpop.f32.mrf.mxu0  ;;  %v5153_v10 = vrot.slane %v4939_v60, 1  ;;  %v4709_v13 = vadd.f32 %v14516_v30, %v4297_v57  ;;  %v14518_v17 = vld [vmem:[#allocation14_spill] sm:$0xff] }
 0x374   : > { %v3757_v8 = vsel %vm3239_vm12, %v3619_v37, %v2937_v36 }
 0x375   : > { %4435 = vmatprep.mubr.bf16.mxu1 %v3757_v8  ;;  %v7441_v48 = vpop.f32.mrf.mxu0  ;;  %v5154_v14 = vsel %vm1683_vm3, %v5151_v6, %v5153_v10  ;;  %v4940_v49 = vmax.f32 %v4709_v13, 0.0 }
 0x376   : > { %4436 = vmatmul.mubr.bf16.gmra.mxu1 %v3367_v22  ;;  %v1622_v16 = vpop.permute.xlu1 %1621  ;;  %v12887_v39 = vmax.f32 %v4938_v44, %v5154_v14  ;;  %v14517_v22 = vld [vmem:[#allocation99_spill] sm:$0xff] }
 0x377   : > { %v2463_v46 = vpop.permute.xlu0 %2462  ;;  %v4862_v63 = vpop.f32.mrf.mxu0  ;;  %v5155_v3 = vrot.slane %v4940_v49, 1  ;;  %v3129_v8 = vsel %vm3041_vm10, %v14518_v17, %v1622_v16 }
 0x378   : > { %v5568_v59 = vrot.slane %v12887_v39, 4  ;;  %v4301_v43 = vpop.f32.mrf.mxu1  ;;  %v3518_v4 = vsel %vm3041_vm10, %v14517_v22, %v2463_v46 }
 0x379   : > { %v7444_v51 = vpop.f32.mrf.mxu0  ;;  %v5156_v19 = vsel %vm1683_vm3, %v5153_v10, %v5155_v3  ;;  %v4302_v6 = vadd.f32 %v12894_v42, %v4301_v43 }
 0x37a   : > { %v12897_v57 = vmax.f32 %v4939_v60, %v5156_v19  ;;  %v4303_v44 = vpop.f32.mrf.mxu1  ;;  %v5569_v36 = vsel %vm2474_vm2, %v5566_v20, %v5568_v59 }
 0x37b   : > { %v1870_v37 = vpop.permute.xlu1 %1869  ;;  %v2656_v2 = vpop.permute.xlu0 %2655  ;;  %v4714_v10 = vadd.f32 %v14519_v28, %v4302_v6  ;;  %v5765_v13 = vmax.f32 %v12829_v11, %v5569_v36 }
 0x37c   : > { %v4864_v53 = vpop.f32.mrf.mxu0  ;;  %v5570_v48 = vrot.slane %v12897_v57, 4  ;;  %v3621_v14 = vsel %vm3140_vm11, %v3518_v4, %v2656_v2  ;;  %v3228_v60 = vsel %vm3140_vm11, %v3129_v8, %v1870_v37  ;;  %v4304_v63 = vpop.f32.mrf.mxu1  ;;  %v14520_v2 = vld [vmem:[#allocation54_spill] sm:$0xff] }
 0x37d   : > { %v4941_v20 = vmax.f32 %v4714_v10, 0.0  ;;  %v4305_v43 = vadd.f32 %v12894_v42, %v4304_v63  ;;  %v12911_v53 = vpack.c.bf16 %v5765_v13, %v5764_v27 }
 0x37e   : > { %v7445_v30 = vpop.f32.mrf.mxu0  ;;  %v4306_v6 = vpop.f32.mrf.mxu1  ;;  %v5571_v44 = vsel %vm2474_vm2, %v5568_v59, %v5570_v48 }
 0x37f   : > { %v2067_v51 = vpop.permute.xlu1 %2066  ;;  %v2939_v46 = vpop.permute.xlu0 %2938  ;;  %v5157_v36 = vrot.slane %v4941_v20, 1  ;;  %v4717_v22 = vadd.f32 %v14520_v2, %v4305_v43  ;;  %v5766_v4 = vmax.f32 %v12838_v61, %v5571_v44  ;;  %v14521_v6 = vld [vmem:[#allocation41_spill] sm:$0xff]  ;;  %v14523_v2 = vld [vmem:[#allocation82_spill] sm:$0xff] }
 0x380   : > { %v3370_v19 = vsel %vm3239_vm12, %v3228_v60, %v2067_v51  ;;  %v4868_v16 = vpop.f32.mrf.mxu0  ;;  %v3760_v11 = vsel %vm3239_vm12, %v3621_v14, %v2939_v46 }
 0x381   : > { %4442 = vmatprep.mubr.bf16.mxu1 %v3760_v11  ;;  %v5158_v8 = vsel %vm1683_vm3, %v5155_v3, %v5157_v36  ;;  %v4942_v28 = vmax.f32 %v4717_v22, 0.0  ;;  %v14522_v11 = vld [vmem:[#allocation18_spill] sm:$0xff] }
 0x382   : > { %v7448_v37 = vpop.f32.mrf.mxu0  ;;  %4443 = vmatmul.mubr.bf16.gmra.mxu1 %v3370_v19  ;;  %v12918_v30 = vmax.f32 %v4940_v49, %v5158_v8 }
 0x383   : > { %v1624_v17 = vpop.permute.xlu1 %1623  ;;  %v2465_v10 = vpop.permute.xlu0 %2464  ;;  %v5159_v13 = vrot.slane %v4942_v28, 1 }
 0x384   : > { %v4870_v27 = vpop.f32.mrf.mxu0  ;;  %v5572_v59 = vrot.slane %v12918_v30, 4  ;;  %v4309_v60 = vpop.f32.mrf.mxu1  ;;  %v3521_v49 = vsel %vm3041_vm10, %v14521_v6, %v2465_v10  ;;  %v3131_v44 = vsel %vm3041_vm10, %v14522_v11, %v1624_v17 }
 0x385   : > { %v5160_v51 = vsel %vm1683_vm3, %v5157_v36, %v5159_v13  ;;  %v4310_v43 = vadd.f32 %v12894_v42, %v4309_v60 }
 0x386   : > { %v7449_v14 = vpop.f32.mrf.mxu0  ;;  %v12923_v19 = vmax.f32 %v4941_v20, %v5160_v51  ;;  %v4311_v3 = vpop.f32.mrf.mxu1  ;;  %v5573_v16 = vsel %vm2474_vm2, %v5570_v48, %v5572_v59 }
 0x387   : > { %v1872_v63 = vpop.permute.xlu1 %1871  ;;  %v2658_v61 = vpop.permute.xlu0 %2657  ;;  %v4722_v22 = vadd.f32 %v14523_v2, %v4310_v43  ;;  %v5767_v37 = vmax.f32 %v12861_v31, %v5573_v16 }
 0x388   : > { %v4874_v46 = vpop.f32.mrf.mxu0  ;;  %v5574_v8 = vrot.slane %v12923_v19, 4  ;;  %v3623_v27 = vsel %vm3140_vm11, %v3521_v49, %v2658_v61  ;;  %v3230_v20 = vsel %vm3140_vm11, %v3131_v44, %v1872_v63  ;;  %v4312_v14 = vpop.f32.mrf.mxu1  ;;  %v14524_v61 = vld [vmem:[#allocation5_spill] sm:$0xff] }
 0x389   : > { %v4943_v48 = vmax.f32 %v4722_v22, 0.0  ;;  %v4313_v51 = vadd.f32 %v12894_v42, %v4312_v14  ;;  %v12937_v17 = vpack.c.bf16 %v5767_v37, %v5766_v4 }
 0x38a   : > { %v7452_v36 = vpop.f32.mrf.mxu0  ;;  %v4314_v3 = vpop.f32.mrf.mxu1  ;;  %v5575_v16 = vsel %vm2474_vm2, %v5572_v59, %v5574_v8 }
 0x38b   : > { %v2069_v60 = vpop.permute.xlu1 %2068  ;;  %v2941_v10 = vpop.permute.xlu0 %2940  ;;  %v5161_v6 = vrot.slane %v4943_v48, 1  ;;  %v4725_v49 = vadd.f32 %v14524_v61, %v4313_v51  ;;  %v5768_v63 = vmax.f32 %v12866_v38, %v5575_v16  ;;  %v14526_v61 = vld [vmem:[#allocation81_spill] sm:$0xff] }
 0x38c   : > { %v3373_v46 = vsel %vm3239_vm12, %v3230_v20, %v2069_v60  ;;  %v4876_v43 = vpop.f32.mrf.mxu0  ;;  %v3763_v31 = vsel %vm3239_vm12, %v3623_v27, %v2941_v10 }
 0x38d   : > { %4448 = vmatprep.mubr.bf16.mxu1 %v3763_v31  ;;  %v5162_v2 = vsel %vm1683_vm3, %v5159_v13, %v5161_v6  ;;  %v4944_v22 = vmax.f32 %v4725_v49, 0.0  ;;  %v14525_v31 = vld [vmem:[#allocation100_spill] sm:$0xff] }
 0x38e   : > { %v7453_v11 = vpop.f32.mrf.mxu0  ;;  %4449 = vmatmul.mubr.bf16.gmra.mxu1 %v3373_v46  ;;  %v12944_v36 = vmax.f32 %v4942_v28, %v5162_v2 }
 0x38f   : > { %v1626_v44 = vpop.permute.xlu1 %1625  ;;  %v2467_v4 = vpop.permute.xlu0 %2466  ;;  %v5163_v20 = vrot.slane %v4944_v22, 1 }
 0x390   : > { %v4880_v37 = vpop.f32.mrf.mxu0  ;;  %v5576_v59 = vrot.slane %v12944_v36, 4  ;;  %v3524_v28 = vsel %vm3041_vm10, %v14525_v31, %v2467_v4  ;;  %v3133_v16 = vsel %vm3041_vm10, %v14186_v32, %v1626_v44 }
 0x391   : > { %v4317_v14 = vpop.f32.mrf.mxu1  ;;  %v5164_v38 = vsel %vm1683_vm3, %v5161_v6, %v5163_v20 }
 0x392   : > { %v7456_v27 = vpop.f32.mrf.mxu0  ;;  %v4318_v51 = vadd.f32 %v12894_v42, %v4317_v14  ;;  %v5577_v13 = vsel %vm2474_vm2, %v5574_v8, %v5576_v59  ;;  %v12950_v3 = vmax.f32 %v4943_v48, %v5164_v38 }
 0x393   : > { %v1874_v60 = vpop.permute.xlu1 %1873  ;;  %v2660_v10 = vpop.permute.xlu0 %2659  ;;  %v5769_v11 = vmax.f32 %v12887_v39, %v5577_v13 }
 0x394   : > { %v4882_v46 = vpop.f32.mrf.mxu0  ;;  %v4319_v43 = vpop.f32.mrf.mxu1  ;;  %v4730_v49 = vadd.f32 %v14526_v61, %v4318_v51  ;;  %v3625_v37 = vsel %vm3140_vm11, %v3524_v28, %v2660_v10  ;;  %v3232_v6 = vsel %vm3140_vm11, %v3133_v16, %v1874_v60  ;;  %v5578_v8 = vrot.slane %v12950_v3, 4  ;;  %v14527_v60 = vld [vmem:[#allocation68_spill] sm:$0xff] }
 0x395   : > { %v12963_v32 = vpack.c.bf16 %v5769_v11, %v5768_v63 }
 0x396   : > { %v7457_v2 = vpop.f32.mrf.mxu0  ;;  %v4320_v27 = vpop.f32.mrf.mxu1  ;;  %v4945_v48 = vmax.f32 %v4730_v49, 0.0  ;;  %v5579_v10 = vsel %vm2474_vm2, %v5576_v59, %v5578_v8 }
 0x397   : > { %v2071_v14 = vpop.permute.xlu1 %2070  ;;  %v4321_v38 = vadd.f32 %v12894_v42, %v4320_v27  ;;  %v2943_v4 = vpop.permute.xlu0 %2942  ;;  %v5770_v31 = vmax.f32 %v12897_v57, %v5579_v10  ;;  %v14529_v10 = vld [vmem:[#allocation94_spill] sm:$0xff] }
 0x398   : > { %v3376_v46 = vsel %vm3239_vm12, %v3232_v6, %v2071_v14  ;;  %v4886_v44 = vpop.f32.mrf.mxu0  ;;  %v4322_v51 = vpop.f32.mrf.mxu1  ;;  %v3766_v39 = vsel %vm3239_vm12, %v3625_v37, %v2943_v4  ;;  %v5165_v43 = vrot.slane %v4945_v48, 1 }
 0x399   : > { %v4733_v13 = vadd.f32 %v14527_v60, %v4321_v38  ;;  %4454 = vmatprep.mubr.bf16.mxu1 %v3766_v39  ;;  %v14528_v51 = vld [vmem:[#allocation42_spill] sm:$0xff] }
 0x39a   : > { %v7460_v28 = vpop.f32.mrf.mxu0  ;;  %4455 = vmatmul.mubr.bf16.gmra.mxu1 %v3376_v46  ;;  %v5166_v63 = vsel %vm1683_vm3, %v5163_v20, %v5165_v43 }
 0x39b   : > { %v1628_v16 = vpop.permute.xlu1 %1627  ;;  %v4946_v61 = vmax.f32 %v4733_v13, 0.0  ;;  %v2469_v49 = vpop.permute.xlu0 %2468  ;;  %v12970_v2 = vmax.f32 %v4944_v22, %v5166_v63 }
 0x39c   : > { %v4888_v11 = vpop.f32.mrf.mxu0  ;;  %v3527_v22 = vsel %vm3041_vm10, %v14528_v51, %v2469_v49  ;;  %v3135_v39 = vsel %vm3041_vm10, %v14192_v35, %v1628_v16 }
 0x39d   : > { %v5167_v6 = vrot.slane %v4946_v61, 1  ;;  %v4325_v27 = vpop.f32.mrf.mxu1  ;;  %v5580_v14 = vrot.slane %v12970_v2, 4 }
 0x39e   : > { %v7461_v37 = vpop.f32.mrf.mxu0  ;;  %v4326_v38 = vadd.f32 %v12894_v42, %v4325_v27 }
 0x39f   : > { %v1876_v59 = vpop.permute.xlu1 %1875  ;;  %v12974_v4 = vpop.permute.xlu0 %2661  ;;  %v5168_v57 = vsel %vm1683_vm3, %v5165_v43, %v5167_v6  ;;  %v5581_v20 = vsel %vm2474_vm2, %v5578_v8, %v5580_v14  ;;  %v2274_v8 = vor.u32 %v12598_v25, %v12612_v55 }
 0x3a0   : > { %v4327_v46 = vpop.f32.mrf.mxu1  ;;  %v12977_v44 = vmax.f32 %v4945_v48, %v5168_v57  ;;  %v4738_v60 = vadd.f32 %v14529_v10, %v4326_v38  ;;  %v5771_v13 = vmax.f32 %v12918_v30, %v5581_v20  ;;  %v3627_v28 = vsel %vm3140_vm11, %v3527_v22, %v12974_v4  ;;  %v14531_v22 = vld [vmem:[#allocation76_spill] sm:$0xff] }
 0x3a1   : > { %v3234_v43 = vsel %vm3140_vm11, %v3135_v39, %v1876_v59  ;;  %v14530_v46 = vld [vmem:[#allocation93_spill] sm:$0xff]  ;;  %v2275_v39 = vsel %vm2078_vm8, %v14531_v22, %v2274_v8 }
 0x3a2   : > { %v4328_v63 = vpop.f32.mrf.mxu1  ;;  %v5582_v11 = vrot.slane %v12977_v44, 4  ;;  %v4947_v49 = vmax.f32 %v4738_v60, 0.0  ;;  %v12994_v27 = vpack.c.bf16 %v5771_v13, %v5770_v31 }
 0x3a3   : > { %v2073_v48 = vpop.permute.xlu1 %2072  ;;  %v4329_v37 = vadd.f32 %v12894_v42, %v4328_v63  ;;  %v2945_v35 = vpop.permute.xlu0 %2944 }
 0x3a4   : > { %v3379_v16 = vsel %vm3239_vm12, %v3234_v43, %v2073_v48  ;;  %v4330_v30 = vpop.f32.mrf.mxu1  ;;  %v3769_v38 = vsel %vm3239_vm12, %v3627_v28, %v2945_v35  ;;  %v5583_v59 = vsel %vm2474_vm2, %v5580_v14, %v5582_v11  ;;  %v5169_v57 = vrot.slane %v4947_v49, 1 }
 0x3a5   : > { %v4741_v20 = vadd.f32 %v14530_v46, %v4329_v37  ;;  %4460 = vmatprep.mubr.bf16.mxu1 %v3769_v38  ;;  %v5772_v25 = vmax.f32 %v12923_v19, %v5583_v59 }
 0x3a6   : > { %4461 = vmatmul.mubr.bf16.gmra.mxu1 %v3379_v16  ;;  %v5170_v31 = vsel %vm1683_vm3, %v5167_v6, %v5169_v57 }
 0x3a7   : > { %v1630_v55 = vpop.permute.xlu1 %1629  ;;  %v4948_v51 = vmax.f32 %v4741_v20, 0.0  ;;  %v2471_v10 = vpop.permute.xlu0 %2470  ;;  %v13004_v13 = vmax.f32 %v4946_v61, %v5170_v31  ;;  %v14532_v20 = vld [vmem:[#allocation37_spill] sm:$0xff] }
 0x3a8   : > { %v3530_v60 = vsel %vm3041_vm10, %v2275_v39, %v2471_v10  ;;  %v4333_v43 = vpop.f32.mrf.mxu1  ;;  %v3137_v37 = vsel %vm3041_vm10, %v14202_v18, %v1630_v55 }
 0x3a9   : > { %v5171_v14 = vrot.slane %v4948_v51, 1  ;;  %v3628_v28 = vsel %vm3140_vm11, %v3530_v60, %v12974_v4  ;;  %v5584_v48 = vrot.slane %v13004_v13, 4  ;;  %v4334_v16 = vadd.f32 %v12894_v42, %v4333_v43 }
 0x3aa   : > { %v3771_v19 = vsel %vm3239_vm12, %v3628_v28, %v2945_v35  ;;  %v4335_v38 = vpop.f32.mrf.mxu1 }
 0x3ab   : > { %v2075_v63 = vpop.permute.xlu1 %2074  ;;  %v1878_v6 = vpop.permute.xlu0 %1877  ;;  %4466 = vmatprep.mubr.bf16.mxu1 %v3771_v19  ;;  %v5172_v61 = vsel %vm1683_vm3, %v5169_v57, %v5171_v14  ;;  %v5585_v46 = vsel %vm2474_vm2, %v5582_v11, %v5584_v48  ;;  %v4746_v22 = vadd.f32 %v14532_v20, %v4334_v16 }
 0x3ac   : > { %v3236_v30 = vsel %vm3140_vm11, %v3137_v37, %v1878_v6  ;;  %v13015_v59 = vmax.f32 %v4947_v49, %v5172_v61  ;;  %v5773_v10 = vmax.f32 %v12944_v36, %v5585_v46  ;;  %v4336_v18 = vpop.f32.mrf.mxu1 }
 0x3ad   : > { %v3382_v39 = vsel %vm3239_vm12, %v3236_v30, %v2075_v63  ;;  %v4949_v60 = vmax.f32 %v4746_v22, 0.0  ;;  %v4337_v57 = vadd.f32 %v12894_v42, %v4336_v18  ;;  %v14533_v63 = vld [vmem:[#allocation69_spill] sm:$0xff] }
 0x3ae   : > { %4467 = vmatmul.mubr.bf16.gmra.mxu1 %v3382_v39  ;;  %v5586_v31 = vrot.slane %v13015_v59, 4  ;;  %v13023_v43 = vpack.c.bf16 %v5773_v10, %v5772_v25  ;;  %v4338_v11 = vpop.f32.mrf.mxu1 }
 0x3af   : > { %v1632_v55 = vpop.permute.xlu1 %1631  ;;  %v2473_v28 = vpop.permute.xlu0 %2472  ;;  %v5173_v37 = vrot.slane %v4949_v60, 1  ;;  %v4749_v16 = vadd.f32 %v14533_v63, %v4337_v57  ;;  %v14534_v57 = vld [vmem:[#allocation8_spill] sm:$0xff] }
 0x3b0   : > { %v3533_v49 = vsel %vm3041_vm10, %v2274_v8, %v2473_v28  ;;  %v5587_v19 = vsel %vm2474_vm2, %v5584_v48, %v5586_v31  ;;  %v3139_v25 = vsel %vm3041_vm10, %v14225_v9, %v1632_v55  ;;  %v7571_v8 = vld [vmem:[%s13573_s5 + $0x4] ss:$20 sps:$4 sm:$0xff]   ;;  %v7569_v11 = vld [vmem:[%s13573_s5] ss:$20 sps:$4 sm:$0xff]  }
 0x3b1   : > { %v3629_v36 = vsel %vm3140_vm11, %v3533_v49, %v12974_v4  ;;  %v5774_v6 = vmax.f32 %v12950_v3, %v5587_v19  ;;  %v4950_v38 = vmax.f32 %v4749_v16, 0.0  ;;  %v5174_v48 = vsel %vm1683_vm3, %v5171_v14, %v5173_v37 }
 0x3b2   : > { %v3773_v30 = vsel %vm3239_vm12, %v3629_v36, %v2945_v35  ;;  %v13039_v4 = vmax.f32 %v4948_v51, %v5174_v48 }
 0x3b3   : > { %v2077_v61 = vpop.permute.xlu1 %2076  ;;  %v1880_v46 = vpop.permute.xlu0 %1879  ;;  %4472 = vmatprep.mubr.bf16.mxu1 %v3773_v30  ;;  %v5175_v3 = vrot.slane %v4950_v38, 1 }
 0x3b4   : > { %v3238_v20 = vsel %vm3140_vm11, %v3139_v25, %v1880_v46  ;;  %v5588_v39 = vrot.slane %v13039_v4, 4 }
 0x3b5   : > { %v3385_v22 = vsel %vm3239_vm12, %v3238_v20, %v2077_v61  ;;  %v4341_v35 = vpop.f32.mrf.mxu1  ;;  %v5176_v10 = vsel %vm1683_vm3, %v5173_v37, %v5175_v3  ;;  %v14535_v61 = vld [vmem:[#allocation27_spill] sm:$0xff] }
 0x3b6   : > { %4473 = vmatmul.mubr.bf16.gmra.mxu1 %v3385_v22  ;;  %v4342_v9 = vadd.f32 %v12894_v42, %v4341_v35  ;;  %v13045_v55 = vmax.f32 %v4949_v60, %v5176_v10  ;;  %v5589_v14 = vsel %vm2474_vm2, %v5586_v31, %v5588_v39  ;;  %v7574_v60 = vld [vmem:[%s13573_s5 + $0x2c] ss:$20 sps:$4 sm:$0xff]  }
 0x3b7   : > { %6162 = vmatprep.mubr.bf16.mxu1 %v7571_v8  ;;  %v4343_v18 = vpop.f32.mrf.mxu1  ;;  %v5775_v28 = vmax.f32 %v12970_v2, %v5589_v14 }
 0x3b8   : > { %v4754_v51 = vadd.f32 %v14534_v57, %v4342_v9  ;;  %v5590_v19 = vrot.slane %v13045_v55, 4  ;;  %v14536_v18 = vld [vmem:[#allocation53_spill] sm:$0xff] }
 0x3b9   : > { %v4344_v49 = vpop.f32.mrf.mxu1  ;;  %v13058_v37 = vpack.c.bf16 %v5775_v28, %v5774_v6  ;;  %v7572_v6 = vld [vmem:[%s13573_s5 + $0x28] ss:$20 sps:$4 sm:$0xff]  }
 0x3ba   : > { %v4951_v63 = vmax.f32 %v4754_v51, 0.0  ;;  %v4345_v16 = vadd.f32 %v12894_v42, %v4344_v49  ;;  %v5591_v36 = vsel %vm2474_vm2, %v5588_v39, %v5590_v19 }
 0x3bb   : > { %v4346_v31 = vpop.f32.mrf.mxu1  ;;  %v5776_v25 = vmax.f32 %v12977_v44, %v5591_v36  ;;  %v7577_v44 = vld [vmem:[%s13573_s5 + $0x54] ss:$20 sps:$4 sm:$0xff]   ;;  %v14537_v36 = vld [vmem:[#allocation30_spill] sm:$0xff] }
 0x3bc   : > { %v5177_v2 = vrot.slane %v4951_v63, 1  ;;  %v4757_v30 = vadd.f32 %v14535_v61, %v4345_v16 }
 0x3be   : > { %6163 = vmatmul.mubr.bf16.vlgmr.msra.gmra.mxu1 %v7569_v11  ;;  %v4952_v46 = vmax.f32 %v4757_v30, 0.0  ;;  %v5178_v8 = vsel %vm1683_vm3, %v5175_v3, %v5177_v2  ;;  %v7580_v30 = vld [vmem:[%s13573_s5 + $0x7c] ss:$20 sps:$4 sm:$0xff]  }
 0x3bf   : > { %6170 = vmatprep.mubr.bf16.mxu1 %v7574_v60  ;;  %v13064_v48 = vmax.f32 %v4950_v38, %v5178_v8 }
 0x3c0   : > { %v5179_v20 = vrot.slane %v4952_v46, 1 }
 0x3c1   : > { %v4349_v22 = vpop.f32.mrf.mxu1  ;;  %v5592_v35 = vrot.slane %v13064_v48, 4 }
 0x3c2   : > { %v4350_v39 = vadd.f32 %v12894_v42, %v4349_v22  ;;  %v5180_v9 = vsel %vm1683_vm3, %v5177_v2, %v5179_v20 }
 0x3c3   : > { %v4351_v10 = vpop.f32.mrf.mxu1  ;;  %v13075_v3 = vmax.f32 %v4951_v63, %v5180_v9  ;;  %v5593_v38 = vsel %vm2474_vm2, %v5590_v19, %v5592_v35 }
 0x3c4   : > { %v4762_v14 = vadd.f32 %v14536_v18, %v4350_v39  ;;  %v5777_v57 = vmax.f32 %v13004_v13, %v5593_v38  ;;  %v7575_v13 = vld [vmem:[%s13573_s5 + $0x50] ss:$20 sps:$4 sm:$0xff]  }
 0x3c5   : > { %v4352_v51 = vpop.f32.mrf.mxu1  ;;  %v5594_v28 = vrot.slane %v13075_v3, 4  ;;  %v14538_v10 = vld [vmem:[#allocation66_spill] sm:$0xff] }
 0x3c6   : > { %6171 = vmatmul.mubr.bf16.gmra.mxu1 %v7572_v6  ;;  %v4953_v49 = vmax.f32 %v4762_v14, 0.0  ;;  %v4353_v11 = vadd.f32 %v12894_v42, %v4352_v51  ;;  %v13082_v16 = vpack.c.bf16 %v5777_v57, %v5776_v25  ;;  %v7583_v51 = vld [vmem:[%s13573_s5 + $0xa4] ss:$20 sps:$4 sm:$0xff]  }
 0x3c7   : > { %6178 = vmatprep.mubr.bf16.mxu1 %v7577_v44  ;;  %v4354_v60 = vpop.f32.mrf.mxu1  ;;  %v5595_v63 = vsel %vm2474_vm2, %v5592_v35, %v5594_v28 }
 0x3c8   : > { %v5181_v31 = vrot.slane %v4953_v49, 1  ;;  %v4765_v19 = vadd.f32 %v14537_v36, %v4353_v11  ;;  %v5778_v2 = vmax.f32 %v13015_v59, %v5595_v63 }
 0x3ca   : > { %v4954_v61 = vmax.f32 %v4765_v19, 0.0  ;;  %v5182_v25 = vsel %vm1683_vm3, %v5179_v20, %v5181_v31 }
 0x3cb   : > { %v13094_v8 = vmax.f32 %v4952_v46, %v5182_v25  ;;  %v7578_v46 = vld [vmem:[%s13573_s5 + $0x78] ss:$20 sps:$4 sm:$0xff]  }
 0x3cc   : > { %v5183_v22 = vrot.slane %v4954_v61, 1 }
 0x3cd   : > { %v5596_v35 = vrot.slane %v13094_v8, 4 }
 0x3ce   : > { %v4357_v6 = vpop.f32.mrf.mxu1  ;;  %6179 = vmatmul.mubr.bf16.gmra.mxu1 %v7575_v13  ;;  %v5184_v39 = vsel %vm1683_vm3, %v5181_v31, %v5183_v22 }
 0x3cf   : > { %v4358_v59 = vadd.f32 %v12894_v42, %v4357_v6  ;;  %6186 = vmatprep.mubr.bf16.mxu1 %v7580_v30  ;;  %v5597_v9 = vsel %vm2474_vm2, %v5594_v28, %v5596_v35  ;;  %v13105_v14 = vmax.f32 %v4953_v49, %v5184_v39  ;;  %v7581_v49 = vld [vmem:[%s13573_s5 + $0xa0] ss:$20 sps:$4 sm:$0xff]   ;;  %v14539_v6 = vld [vmem:[#allocation9_spill] sm:$0xff] }
 0x3d0   : > { %v4359_v44 = vpop.f32.mrf.mxu1  ;;  %v5779_v18 = vmax.f32 %v13039_v4, %v5597_v9  ;;  %v7584_v39 = vld [vmem:[%s13573_s5 + $0xc8] ss:$20 sps:$4 sm:$0xff]  }
 0x3d1   : > { %v4770_v38 = vadd.f32 %v14538_v10, %v4358_v59  ;;  %v5598_v63 = vrot.slane %v13105_v14, 4  ;;  %v7589_v9 = vld [vmem:[%s13573_s5 + $0xf4] ss:$20 sps:$4 sm:$0xff]  }
 0x3d2   : > { %v4360_v20 = vpop.f32.mrf.mxu1  ;;  %v13110_v11 = vpack.c.bf16 %v5779_v18, %v5778_v2  ;;  %v7586_v2 = vld [vmem:[%s13573_s5 + $0xcc] ss:$20 sps:$4 sm:$0xff]  }
 0x3d3   : > { %v4955_v57 = vmax.f32 %v4770_v38, 0.0  ;;  %v5599_v19 = vsel %vm2474_vm2, %v5596_v35, %v5598_v63  ;;  %v4361_v13 = vadd.f32 %v12894_v42, %v4360_v20 }
 0x3d4   : > { %v4362_v60 = vpop.f32.mrf.mxu1 }
 0x3d5   : > { %v5185_v28 = vrot.slane %v4955_v57, 1  ;;  %v4773_v35 = vadd.f32 %v14539_v6, %v4361_v13  ;;  %v7592_v13 = vld [vmem:[%s13573_s5 + $0x11c] ss:$20 sps:$4 sm:$0xff]  }
 0x3d6   : > { %6187 = vmatmul.mubr.bf16.gmra.mxu1 %v7578_v46  ;;  %v14540_v6 = vld [vmem:[#allocation57_spill] sm:$0xff] }
 0x3d7   : > { %6194 = vmatprep.mubr.bf16.mxu1 %v7583_v51  ;;  %v5186_v4 = vsel %vm1683_vm3, %v5183_v22, %v5185_v28 }
 0x3d8   : > { %v13114_v31 = vmax.f32 %v4954_v61, %v5186_v4  ;;  %v5780_v61 = vmax.f32 %v13045_v55, %v5599_v19  ;;  %v4956_v55 = vmax.f32 %v4773_v35, 0.0 }
 0x3da   : > { %v5600_v36 = vrot.slane %v13114_v31, 4  ;;  %v5187_v46 = vrot.slane %v4956_v55, 1 }
 0x3dc   : > { %v5601_v30 = vsel %vm2474_vm2, %v5598_v63, %v5600_v36 }
 0x3dd   : > { %v5781_v25 = vmax.f32 %v13064_v48, %v5601_v30  ;;  %v5188_v30 = vsel %vm1683_vm3, %v5185_v28, %v5187_v46 }
 0x3de   : > { %6195 = vmatmul.mubr.bf16.gmra.mxu1 %v7581_v49  ;;  %v7587_v49 = vld [vmem:[%s13573_s5 + $0xf0] ss:$20 sps:$4 sm:$0xff]  }
 0x3df   : > { %6202 = vmatprep.mubr.bf16.mxu1 %v7586_v2  ;;  %v13130_v22 = vpack.c.bf16 %v5781_v25, %v5780_v61 }
 0x3e3   : > { %v4365_v59 = vpop.f32.mrf.mxu1 }
 0x3e4   : > { %v4366_v44 = vadd.f32 %v12894_v42, %v4365_v59 }
 0x3e5   : > { %v4367_v10 = vpop.f32.mrf.mxu1 }
 0x3e6   : > { %v4778_v48 = vadd.f32 %v12463_v7, %v4366_v44  ;;  %6203 = vmatmul.mubr.bf16.gmra.mxu1 %v7584_v39  ;;  %v13155_v39 = vmax.f32 %v4955_v57, %v5188_v30  ;;  %v7590_v57 = vld [vmem:[%s13573_s5 + $0x118] ss:$20 sps:$4 sm:$0xff]  }
 0x3e7   : > { %v4368_v38 = vpop.f32.mrf.mxu1  ;;  %6210 = vmatprep.mubr.bf16.mxu1 %v7589_v9 }
 0x3e8   : > { %v4957_v18 = vmax.f32 %v4778_v48, 0.0  ;;  %v4369_v20 = vadd.f32 %v12894_v42, %v4368_v38 }
 0x3e9   : > { %v4370_v51 = vpop.f32.mrf.mxu1 }
 0x3ea   : > { %v5189_v60 = vrot.slane %v4957_v18, 1  ;;  %v4781_v63 = vadd.f32 %v12495_v29, %v4369_v20 }
 0x3eb   : > { %v4373_v4 = vpop.f32.mrf.mxu1 }
 0x3ec   : > { %v5190_v19 = vsel %vm1683_vm3, %v5187_v46, %v5189_v60  ;;  %v4958_v2 = vmax.f32 %v4781_v63, 0.0  ;;  %v4374_v7 = vadd.f32 %v12894_v42, %v4373_v4 }
 0x3ed   : > { %v4375_v61 = vpop.f32.mrf.mxu1  ;;  %v13152_v25 = vmax.f32 %v4956_v55, %v5190_v19 }
 0x3ee   : > { %v5191_v29 = vrot.slane %v4958_v2, 1  ;;  %v4786_v35 = vadd.f32 %v14540_v6, %v4374_v7  ;;  %6211 = vmatmul.mubr.bf16.gmra.mxu1 %v7587_v49 }
 0x3ef   : > { %v4376_v59 = vpop.f32.mrf.mxu1  ;;  %6218 = vmatprep.mubr.bf16.mxu1 %v7592_v13  ;;  %v5604_v20 = vrot.slane %v13152_v25, 4 }
 0x3f0   : > { %v5192_v44 = vsel %vm1683_vm3, %v5189_v60, %v5191_v29  ;;  %v4959_v9 = vmax.f32 %v4786_v35, 0.0  ;;  %v4377_v10 = vadd.f32 %v12894_v42, %v4376_v59 }
 0x3f1   : > { %v13159_v48 = vmax.f32 %v4957_v18, %v5192_v44  ;;  %v4378_v38 = vpop.f32.mrf.mxu1  ;;  %v5602_v18 = vrot.slane %v13155_v39, 4 }
 0x3f2   : > { %v5193_v28 = vrot.slane %v4959_v9, 1  ;;  %v4789_v55 = vadd.f32 %v12560_v52, %v4377_v10  ;;  %v7595_v52 = vld [vmem:[%s13573_s5 + $0x144] ss:$20 sps:$4 sm:$0xff]  }
 0x3f3   : > { %v4381_v46 = vpop.f32.mrf.mxu1  ;;  %v5606_v51 = vrot.slane %v13159_v48, 4  ;;  %v5605_v30 = vsel %vm2474_vm2, %v5602_v18, %v5604_v20 }
 0x3f4   : > { %v5194_v60 = vsel %vm1683_vm3, %v5191_v29, %v5193_v28  ;;  %v4960_v63 = vmax.f32 %v4789_v55, 0.0  ;;  %v4382_v4 = vadd.f32 %v12894_v42, %v4381_v46  ;;  %v5783_v55 = vmax.f32 %v13094_v8, %v5605_v30  ;;  %v7593_v8 = vld [vmem:[%s13573_s5 + $0x140] ss:$20 sps:$4 sm:$0xff]  }
 0x3f5   : > { %v13173_v49 = vmax.f32 %v4958_v2, %v5194_v60  ;;  %v4383_v19 = vpop.f32.mrf.mxu1  ;;  %v5607_v29 = vsel %vm2474_vm2, %v5604_v20, %v5606_v51  ;;  %v5603_v2 = vsel %vm2474_vm2, %v5600_v36, %v5602_v18 }
 0x3f6   : > { %v5195_v7 = vrot.slane %v4960_v63, 1  ;;  %v4794_v13 = vadd.f32 %v12595_v5, %v4382_v4  ;;  %6219 = vmatmul.mubr.bf16.gmra.mxu1 %v7590_v57  ;;  %v5782_v36 = vmax.f32 %v13075_v3, %v5603_v2 }
 0x3f7   : > { %v4384_v61 = vpop.f32.mrf.mxu1  ;;  %v5608_v6 = vrot.slane %v13173_v49, 4  ;;  %6226 = vmatprep.mubr.bf16.mxu1 %v7595_v52 }
 0x3f8   : > { %v5196_v35 = vsel %vm1683_vm3, %v5193_v28, %v5195_v7  ;;  %v4961_v59 = vmax.f32 %v4794_v13, 0.0  ;;  %v4385_v44 = vadd.f32 %v12894_v42, %v4384_v61  ;;  %v5784_v28 = vmax.f32 %v13105_v14, %v5607_v29 }
 0x3f9   : > { %v13184_v10 = vmax.f32 %v4959_v9, %v5196_v35  ;;  %v4386_v5 = vpop.f32.mrf.mxu1  ;;  %v5609_v38 = vsel %vm2474_vm2, %v5606_v51, %v5608_v6  ;;  %v5832_v13 = vpack.c.bf16 %v5783_v55, %v5782_v36 }
 0x3fa   : > { %v5197_v20 = vrot.slane %v4961_v59, 1  ;;  %v4797_v46 = vadd.f32 %v12631_v12, %v4385_v44  ;;  %v5785_v57 = vmax.f32 %v13114_v31, %v5609_v38  ;;  %v7598_v31 = vld [vmem:[%s13573_s5 + $0xc] ss:$20 sps:$4 sm:$0xff]  }
 0x3fb   : > { %v5610_v60 = vrot.slane %v13184_v10, 4  ;;  %v4389_v4 = vpop.f32.mrf.mxu1 }
 0x3fc   : > { %v5198_v9 = vsel %vm1683_vm3, %v5195_v7, %v5197_v20  ;;  %v4962_v18 = vmax.f32 %v4797_v46, 0.0  ;;  %v4390_v52 = vadd.f32 %v12894_v42, %v4389_v4  ;;  %v5833_v51 = vpack.c.bf16 %v5785_v57, %v5784_v28 }
 0x3fd   : > { %v13198_v12 = vmax.f32 %v4960_v63, %v5198_v9  ;;  %v4391_v14 = vpop.f32.mrf.mxu1  ;;  %v5611_v19 = vsel %vm2474_vm2, %v5608_v6, %v5610_v60 }
 0x3fe   : > { %v5199_v3 = vrot.slane %v4962_v18, 1  ;;  %v4802_v7 = vadd.f32 %v12667_v33, %v4390_v52  ;;  %6977 = vmatprep.subr.bf16.mxu1 %v5833_v51  ;;  %v5786_v30 = vmax.f32 %v13155_v39, %v5611_v19  ;;  %6227 = vmatmul.mubr.bf16.gmra.mxu1 %v7593_v8 }
 0x3ff   : > { %v5612_v61 = vrot.slane %v13198_v12, 4  ;;  %v4392_v29 = vpop.f32.mrf.mxu1  ;;  %6978 = vmatpush3.bf16.msra.mxu1 %v12963_v32  ;;  %6267 = vmatprep.mubr.bf16.mxu1 %v7598_v31 }
 0x400   : > { %v5200_v63 = vsel %vm1683_vm3, %v5197_v20, %v5199_v3  ;;  %v4963_v35 = vmax.f32 %v4802_v7, 0.0  ;;  %v4393_v44 = vadd.f32 %v12894_v42, %v4392_v29  ;;  %6979 = vmatprep.subr.bf16.mxu1 %v5832_v13 }
 0x401   : > { %v13210_v6 = vmax.f32 %v4961_v59, %v5200_v63  ;;  %v4394_v2 = vpop.f32.mrf.mxu1  ;;  %v5613_v33 = vsel %vm2474_vm2, %v5610_v60, %v5612_v61 }
 0x402   : > { %v5201_v5 = vrot.slane %v4963_v35, 1  ;;  %v4805_v39 = vadd.f32 %v12689_v62, %v4393_v44  ;;  %v5787_v38 = vmax.f32 %v13152_v25, %v5613_v33 }
 0x403   : > { %v5614_v32 = vrot.slane %v13210_v6, 4  ;;  %6980 = vmatpush3.bf16.msra.mxu1 %v12937_v17 }
 0x404   : > { %v5202_v55 = vsel %vm1683_vm3, %v5199_v3, %v5201_v5  ;;  %v4964_v20 = vmax.f32 %v4805_v39, 0.0  ;;  %6981 = vmatprep.subr.bf16.mxu1 %v13130_v22  ;;  %v13219_v59 = vpack.c.bf16 %v5787_v38, %v5786_v30 }
 0x405   : > { %v13221_v46 = vmax.f32 %v4962_v18, %v5202_v55  ;;  %v5615_v28 = vsel %vm2474_vm2, %v5612_v61, %v5614_v32 }
 0x406   : > { %v5203_v57 = vrot.slane %v4964_v20, 1  ;;  %v5788_v62 = vmax.f32 %v13159_v48, %v5615_v28 }
 0x407   : > { %v5616_v25 = vrot.slane %v13221_v46, 4  ;;  %6982 = vmatpush3.bf16.msra.mxu1 %v12911_v53 }
 0x408   : > { %v5204_v17 = vsel %vm1683_vm3, %v5201_v5, %v5203_v57  ;;  %6983 = vmatprep.subr.bf16.mxu1 %v13110_v11 }
 0x409   : > { %v13229_v60 = vmax.f32 %v4963_v35, %v5204_v17  ;;  %v5617_v22 = vsel %vm2474_vm2, %v5614_v32, %v5616_v25  ;;  %v14541_v32 = vmov 0.0  }
 0x40a   : > { %v5789_v4 = vmax.f32 %v13173_v49, %v5617_v22  ;;  %v4397_v9 = vpop.f32.mrf.mxu1 }
 0x40b   : > { %v5618_v36 = vrot.slane %v13229_v60, 4  ;;  %6984 = vmatpush3.bf16.msra.mxu1 %v12880_v50  ;;  %v4398_v48 = vadd.f32 %v12894_v42, %v4397_v9 }
 0x40c   : > { %6985 = vmatprep.subr.bf16.mxu1 %v13082_v16  ;;  %v13237_v53 = vpack.c.bf16 %v5789_v4, %v5788_v62  ;;  %v4399_v18 = vpop.f32.mrf.mxu1 }
 0x40d   : > { %v5619_v11 = vsel %vm2474_vm2, %v5616_v25, %v5618_v36  ;;  %v4810_v52 = vadd.f32 %v12706_v56, %v4398_v48 }
 0x40e   : > { %v5790_v51 = vmax.f32 %v13184_v10, %v5619_v11  ;;  %v4400_v49 = vpop.f32.mrf.mxu1 }
 0x40f   : > { %6986 = vmatpush3.bf16.msra.mxu1 %v12852_v15  ;;  %v4965_v8 = vmax.f32 %v4810_v52, 0.0  ;;  %v4401_v50 = vadd.f32 %v12894_v42, %v4400_v49 }
 0x410   : > { %6987 = vmatprep.subr.bf16.mxu1 %v13058_v37  ;;  %v4402_v14 = vpop.f32.mrf.mxu1 }
 0x411   : > { %v5205_v31 = vrot.slane %v4965_v8, 1  ;;  %v4813_v16 = vadd.f32 %v12726_v34, %v4401_v50 }
 0x412   : > { %v4405_v19 = vpop.f32.mrf.mxu1 }
 0x413   : > { %6988 = vmatpush3.bf16.msra.mxu1 %v12818_v24  ;;  %v5206_v3 = vsel %vm1683_vm3, %v5203_v57, %v5205_v31  ;;  %v4966_v56 = vmax.f32 %v4813_v16, 0.0  ;;  %v4406_v10 = vadd.f32 %v12894_v42, %v4405_v19 }
 0x414   : > { %6989 = vmatprep.subr.bf16.mxu1 %v13023_v43  ;;  %v13250_v15 = vmax.f32 %v4964_v20, %v5206_v3  ;;  %v4407_v7 = vpop.f32.mrf.mxu1 }
 0x415   : > { %v5207_v13 = vrot.slane %v4966_v56, 1  ;;  %v4818_v37 = vadd.f32 %v12741_v45, %v4406_v10 }
 0x416   : > { %v5620_v30 = vrot.slane %v13250_v15, 4  ;;  %v4408_v34 = vpop.f32.mrf.mxu1 }
 0x417   : > { %6990 = vmatpush3.bf16.msra.mxu1 %v12776_v1  ;;  %v5208_v24 = vsel %vm1683_vm3, %v5205_v31, %v5207_v13  ;;  %v4967_v61 = vmax.f32 %v4818_v37, 0.0  ;;  %v4409_v29 = vadd.f32 %v12894_v42, %v4408_v34  ;;  %v7596_v1 = vld [vmem:[%s13573_s5 + $0x8] ss:$20 sps:$4 sm:$0xff]   ;;  %v7607_v37 = vld [vmem:[%s13573_s5 + $0x84] ss:$20 sps:$4 sm:$0xff]  }
 0x418   : > { %6991 = vmatprep.subr.bf16.mxu1 %v12994_v27  ;;  %v13258_v63 = vmax.f32 %v4965_v8, %v5208_v24  ;;  %v4410_v43 = vpop.f32.mrf.mxu1  ;;  %v5621_v35 = vsel %vm2474_vm2, %v5618_v36, %v5620_v30  ;;  %v7601_v27 = vld [vmem:[%s13573_s5 + $0x34] ss:$20 sps:$4 sm:$0xff]  }
 0x419   : > { %v5209_v44 = vrot.slane %v4967_v61, 1  ;;  %v4821_v45 = vadd.f32 %v12758_v23, %v4409_v29  ;;  %v5791_v2 = vmax.f32 %v13198_v12, %v5621_v35  ;;  %v7637_v29 = vld [vmem:[%s13572_s4] ss:$0 sm:$0xff] }
 0x41a   : > { %v5622_v33 = vrot.slane %v13258_v63, 4  ;;  %v4413_v5 = vpop.f32.mrf.mxu1 }
 0x41b   : > { %6992 = vmatpush3.bf16.msra.mxu1 %v12728_v54  ;;  %v5210_v39 = vsel %vm1683_vm3, %v5207_v13, %v5209_v44  ;;  %v4968_v38 = vmax.f32 %v4821_v45, 0.0  ;;  %v4414_v23 = vadd.f32 %v12894_v42, %v4413_v5  ;;  %v13274_v55 = vpack.c.bf16 %v5791_v2, %v5790_v51  ;;  %v7604_v51 = vld [vmem:[%s13573_s5 + $0x5c] ss:$20 sps:$4 sm:$0xff]   ;;  %v7605_v5 = vld [vmem:[%s13573_s5 + $0x80] ss:$20 sps:$4 sm:$0xff]  }
 0x41c   : > { %7462 = vmatprep.subr.bf16.mxu1 %v14541_v32  ;;  %v13276_v20 = vmax.f32 %v4966_v56, %v5210_v39  ;;  %v4415_v12 = vpop.f32.mrf.mxu1  ;;  %v5623_v28 = vsel %vm2474_vm2, %v5620_v30, %v5622_v33  ;;  %v7602_v56 = vld [vmem:[%s13573_s5 + $0x58] ss:$20 sps:$4 sm:$0xff]  }
 0x41d   : > { %v5211_v54 = vrot.slane %v4968_v38, 1  ;;  %v13280_v57 = vadd.f32 %v12774_v58, %v4414_v23  ;;  %v5792_v62 = vmax.f32 %v13210_v6, %v5623_v28  ;;  %v7599_v6 = vld [vmem:[%s13573_s5 + $0x30] ss:$20 sps:$4 sm:$0xff]  }
 0x41e   : > { %6268 = vmatmul.mubr.bf16.vlgmr.msra.gmra.mxu1 %v7596_v1  ;;  %v5624_v25 = vrot.slane %v13276_v20, 4  ;;  %v4416_v17 = vpop.f32.mrf.mxu1 }
 0x41f   : > { %6275 = vmatprep.mubr.bf16.mxu1 %v7601_v27  ;;  %v5212_v22 = vsel %vm1683_vm3, %v5209_v44, %v5211_v54  ;;  %v4969_v4 = vmax.f32 %v13280_v57, 0.0  ;;  %v4417_v35 = vadd.f32 %v7637_v29, %v4416_v17 }
 0x420   : > { %v13286_v36 = vmax.f32 %v4967_v61, %v5212_v22  ;;  %v4418_v9 = vpop.f32.mrf.mxu1  ;;  %v5625_v48 = vsel %vm2474_vm2, %v5622_v33, %v5624_v25 }
 0x421   : > { %v13291_v58 = vrot.slane %v4969_v4, 1  ;;  %v5793_v18 = vmax.f32 %v13221_v46, %v5625_v48  ;;  %v4829_v27 = vadd.f32 %v12790_v41, %v4417_v35  ;;  %v7608_v41 = vld [vmem:[%s13573_s5 + $0xa8] ss:$20 sps:$4 sm:$0xff]  }
 0x422   : > { %v5626_v11 = vrot.slane %v13286_v36, 4  ;;  %v4421_v52 = vpop.f32.mrf.mxu1 }
 0x423   : > { %v5214_v49 = vsel %vm1683_vm3, %v5211_v54, %v13291_v58  ;;  %v13303_v8 = vpack.c.bf16 %v5793_v18, %v5792_v62  ;;  %v4422_v43 = vadd.f32 %v7637_v29, %v4421_v52  ;;  %v4970_v28 = vmax.f32 %v4829_v27, 0.0  ;;  %v7613_v18 = vld [vmem:[%s13573_s5 + $0xd4] ss:$20 sps:$4 sm:$0xff]  }
 0x424   : > { %v13305_v50 = vmax.f32 %v4968_v38, %v5214_v49  ;;  %v4423_v14 = vpop.f32.mrf.mxu1  ;;  %v5627_v46 = vsel %vm2474_vm2, %v5624_v25, %v5626_v11 }
 0x425   : > { %v5794_v10 = vmax.f32 %v13229_v60, %v5627_v46 }
 0x426   : > { %6276 = vmatmul.mubr.bf16.gmra.mxu1 %v7599_v6  ;;  %v5628_v31 = vrot.slane %v13305_v50, 4  ;;  %v4424_v16 = vpop.f32.mrf.mxu1 }
 0x427   : > { %6283 = vmatprep.mubr.bf16.mxu1 %v7604_v51  ;;  %v4425_v30 = vadd.f32 %v12894_v42, %v4424_v16 }
 0x428   : > { %v4426_v19 = vpop.f32.mrf.mxu1  ;;  %v5629_v3 = vsel %vm2474_vm2, %v5626_v11, %v5628_v31  ;;  %v5215_v11 = vrot.slane %v4970_v28, 1 }
 0x429   : > { %v5795_v7 = vmax.f32 %v13250_v15, %v5629_v3  ;;  %v4837_v44 = vadd.f32 %v12816_v21, %v4425_v30 }
 0x42a   : > { %v4429_v13 = vpop.f32.mrf.mxu1  ;;  %v5216_v3 = vsel %vm1683_vm3, %v13291_v58, %v5215_v11  ;;  %v7616_v58 = vld [vmem:[%s13573_s5 + $0xfc] ss:$20 sps:$4 sm:$0xff]  }
 0x42b   : > { %v4430_v34 = vadd.f32 %v12894_v42, %v4429_v13  ;;  %v13322_v24 = vpack.c.bf16 %v5795_v7, %v5794_v10  ;;  %v4834_v42 = vadd.f32 %v12802_v47, %v4422_v43  ;;  %v4972_v39 = vmax.f32 %v4837_v44, 0.0 }
 0x42c   : > { %v4431_v61 = vpop.f32.mrf.mxu1  ;;  %v5377_v30 = vmax.f32 %v4969_v4, %v5216_v3 }
 0x42d   : > { %v4842_v60 = vadd.f32 %v12827_v0, %v4430_v34  ;;  %v7610_v0 = vld [vmem:[%s13573_s5 + $0xac] ss:$20 sps:$4 sm:$0xff]   ;;  %v4971_v21 = vmax.f32 %v4834_v42, 0.0 }
 0x42e   : > { %6284 = vmatmul.mubr.bf16.gmra.mxu1 %v7602_v56  ;;  %v4432_v15 = vpop.f32.mrf.mxu1  ;;  %v5630_v57 = vrot.slane %v5377_v30, 4 }
 0x42f   : > { %6291 = vmatprep.mubr.bf16.mxu1 %v7607_v37  ;;  %v4433_v45 = vadd.f32 %v7637_v29, %v4432_v15  ;;  %v4973_v2 = vmax.f32 %v4842_v60, 0.0  ;;  %v5217_v17 = vrot.slane %v4971_v21, 1  ;;  %v7611_v37 = vld [vmem:[%s13573_s5 + $0xd0] ss:$20 sps:$4 sm:$0xff]  }
 0x430   : > { %v4434_v1 = vpop.f32.mrf.mxu1 }
 0x431   : > { %v4845_v33 = vadd.f32 %v12836_v26, %v4433_v45  ;;  %v5385_v23 = vrot.slane %v4973_v2, 1  ;;  %v5383_v26 = vrot.slane %v4972_v39, 1  ;;  %v5218_v16 = vsel %vm1683_vm3, %v5215_v11, %v5217_v17  ;;  %v7625_v11 = vld [vmem:[%s13573_s5 + $0x60] ss:$20 sps:$4 sm:$0xff]  }
 0x432   : > { %v5378_v10 = vmax.f32 %v4970_v28, %v5218_v16  ;;  %v7626_v16 = vld [vmem:[%s13573_s5 + $0x88] ss:$20 sps:$4 sm:$0xff]  }
 0x433   : > { %v4974_v38 = vmax.f32 %v4845_v33, 0.0  ;;  %v5386_v22 = vsel %vm1683_vm3, %v5383_v26, %v5385_v23  ;;  %v5384_v52 = vsel %vm1683_vm3, %v5217_v17, %v5383_v26 }
 0x434   : > { %v5396_v49 = vmax.f32 %v4972_v39, %v5386_v22  ;;  %v5632_v60 = vrot.slane %v5378_v10, 4  ;;  %v7614_v39 = vld [vmem:[%s13573_s5 + $0xf8] ss:$20 sps:$4 sm:$0xff]  }
 0x435   : > { %v5387_v12 = vrot.slane %v4974_v38, 1 }
 0x436   : > { %6292 = vmatmul.mubr.bf16.gmra.mxu1 %v7605_v5  ;;  %v4437_v47 = vpop.f32.mrf.mxu1  ;;  %v5636_v7 = vrot.slane %v5396_v49, 4 }
 0x437   : > { %6299 = vmatprep.mubr.bf16.mxu1 %v7610_v0  ;;  %v5388_v54 = vsel %vm1683_vm3, %v5385_v23, %v5387_v12  ;;  %v4438_v62 = vadd.f32 %v7637_v29, %v4437_v47  ;;  %v5633_v0 = vsel %vm2474_vm2, %v5630_v57, %v5632_v60 }
 0x438   : > { %v4439_v25 = vpop.f32.mrf.mxu1  ;;  %v5397_v48 = vmax.f32 %v4973_v2, %v5388_v54  ;;  %v5797_v23 = vmax.f32 %v13276_v20, %v5633_v0  ;;  %v7617_v20 = vld [vmem:[%s13573_s5 + $0x120] ss:$20 sps:$4 sm:$0xff]  }
 0x439   : > { %v4850_v9 = vadd.f32 %v12850_v40, %v4438_v62  ;;  %v5395_v40 = vmax.f32 %v4971_v21, %v5384_v52  ;;  %v7620_v62 = vld [vmem:[%s13573_s5 + $0x148] ss:$20 sps:$4 sm:$0xff]  }
 0x43a   : > { %v4440_v6 = vpop.f32.mrf.mxu1  ;;  %v5638_v19 = vrot.slane %v5397_v48, 4 }
 0x43b   : > { %v4975_v51 = vmax.f32 %v4850_v9, 0.0  ;;  %v5634_v34 = vrot.slane %v5395_v40, 4 }
 0x43c   : > { %v4441_v14 = vpop.f32.mrf.mxu1  ;;  %v5639_v43 = vsel %vm2474_vm2, %v5636_v7, %v5638_v19 }
 0x43d   : > { %v5389_v46 = vrot.slane %v4975_v51, 1  ;;  %v5637_v44 = vsel %vm2474_vm2, %v5634_v34, %v5636_v7  ;;  %v5800_v45 = vmax.f32 %v5377_v30, %v5639_v43  ;;  %v5635_v42 = vsel %vm2474_vm2, %v5632_v60, %v5634_v34 }
 0x43e   : > { %6300 = vmatmul.mubr.bf16.gmra.mxu1 %v7608_v41  ;;  %v5799_v33 = vmax.f32 %v13305_v50, %v5637_v44  ;;  %v5798_v27 = vmax.f32 %v13286_v36, %v5635_v42  ;;  %v7629_v44 = vld [vmem:[%s13573_s5 + $0x100] ss:$20 sps:$4 sm:$0xff]  }
 0x43f   : > { %6307 = vmatprep.mubr.bf16.mxu1 %v7613_v18  ;;  %v5390_v56 = vsel %vm1683_vm3, %v5387_v12, %v5389_v46  ;;  %v7619_v12 = vld [vmem:[%s13573_s5 + $0x124] ss:$20 sps:$4 sm:$0xff]  }
 0x440   : > { %v5398_v13 = vmax.f32 %v4974_v38, %v5390_v56  ;;  %v5631_v38 = vsel %vm2474_vm2, %v5628_v31, %v5630_v57  ;;  %v5840_v21 = vpack.c.bf16 %v5799_v33, %v5798_v27  ;;  %v7622_v31 = vld [vmem:[%s13573_s5 + $0x14c] ss:$20 sps:$4 sm:$0xff]   ;;  %v7627_v56 = vld [vmem:[%s13573_s5 + $0xb0] ss:$20 sps:$4 sm:$0xff]   ;;  %v7630_v33 = vld [vmem:[%s13573_s5 + $0x128] ss:$20 sps:$4 sm:$0xff]  }
 0x441   : > { %v5796_v36 = vmax.f32 %v13258_v63, %v5631_v38 }
 0x442   : > { %v5640_v61 = vrot.slane %v5398_v13, 4  ;;  %v4444_v29 = vpop.f32.mrf.mxu1 }
 0x443   : > { %v5839_v28 = vpack.c.bf16 %v5797_v23, %v5796_v36  ;;  %v7631_v23 = vld [vmem:[%s13573_s5 + $0x150] ss:$20 sps:$4 sm:$0xff]  }
 0x444   : > { %v4445_v15 = vpop.f32.mrf.mxu1  ;;  %v5641_v35 = vsel %vm2474_vm2, %v5638_v19, %v5640_v61  ;;  %v7628_v61 = vld [vmem:[%s13573_s5 + $0xd8] ss:$20 sps:$4 sm:$0xff]  }
 0x445   : > { %v5801_v1 = vmax.f32 %v5378_v10, %v5641_v35 }
 0x446   : > { %6308 = vmatmul.mubr.bf16.gmra.mxu1 %v7611_v37  ;;  %v4446_v4 = vpop.f32.mrf.mxu1 }
 0x447   : > { %6315 = vmatprep.mubr.bf16.mxu1 %v7616_v58  ;;  %v5841_v2 = vpack.c.bf16 %v5801_v1, %v5800_v45 }
 0x448   : > { %v4447_v5 = vpop.f32.mrf.mxu1 }
 0x449   : > { %7463 = vmatpush3.bf16.msra.mxu1 %v5841_v2 }
 0x44a   : > { %7464 = vmatprep.subr.bf16.mxu1 %v14541_v32 }
 0x44d   : > { %7465 = vmatpush3.bf16.msra.mxu1 %v5840_v21 }
 0x44e   : > { %v4450_v47 = vpop.f32.mrf.mxu1  ;;  %6316 = vmatmul.mubr.bf16.gmra.mxu1 %v7614_v39  ;;  %7466 = vmatprep.subr.bf16.mxu1 %v14541_v32 }
 0x44f   : > { %6323 = vmatprep.mubr.bf16.mxu1 %v7619_v12 }
 0x450   : > { %v4451_v26 = vpop.f32.mrf.mxu1 }
 0x451   : > { %7467 = vmatpush3.bf16.msra.mxu1 %v5839_v28 }
 0x452   : > { %v4452_v50 = vpop.f32.mrf.mxu1  ;;  %7468 = vmatprep.subr.bf16.mxu1 %v14541_v32 }
 0x454   : > { %v4453_v63 = vpop.f32.mrf.mxu1 }
 0x455   : > { %7469 = vmatpush3.bf16.msra.mxu1 %v13322_v24 }
 0x456   : > { %6324 = vmatmul.mubr.bf16.gmra.mxu1 %v7617_v20  ;;  %7470 = vmatprep.subr.bf16.mxu1 %v14541_v32 }
 0x457   : > { %6331 = vmatprep.mubr.bf16.mxu1 %v7622_v31 }
 0x459   : > { %7471 = vmatpush3.bf16.msra.mxu1 %v13303_v8  ;;  %v7623_v8 = vld [vmem:[%s13573_s5 + $0x10] ss:$20 sps:$4 sm:$0xff]  }
 0x45a   : > { %v4456_v54 = vpop.f32.mrf.mxu1  ;;  %7472 = vmatprep.subr.bf16.mxu1 %v14541_v32 }
 0x45c   : > { %v4457_v25 = vpop.f32.mrf.mxu1 }
 0x45d   : > { %7473 = vmatpush3.bf16.msra.mxu1 %v13274_v55 }
 0x45e   : > { %v4458_v17 = vpop.f32.mrf.mxu1  ;;  %6332 = vmatmul.mubr.bf16.gmra.mxu1 %v7620_v62  ;;  %7474 = vmatprep.subr.bf16.mxu1 %v14541_v32 }
 0x45f   : > { %7478 = vmatprep.mubr.msk.bf16.mxu1 %vm7647_vm0, %v14541_v32 }
 0x460   : > { %v4459_v24 = vpop.f32.mrf.mxu1 }
 0x461   : > { %7475 = vmatpush3.bf16.msra.mxu1 %v13237_v53  ;;  %v7624_v53 = vld [vmem:[%s13573_s5 + $0x38] ss:$20 sps:$4 sm:$0xff]  }
 0x462   : > { %7476 = vmatprep.subr.bf16.mxu1 %v14541_v32 }
 0x465   : > { %7477 = vmatpush3.bf16.msra.mxu1 %v13219_v59 }
 0x466   : > { %v4462_v22 = vpop.f32.mrf.mxu1 }
 0x468   : > { %v4463_v55 = vpop.f32.mrf.mxu1  ;;  %7479 = vmatmul.mubr.bf16.vlgmr.msra.gmra.mxu1 %v7623_v8 }
 0x469   : > { %7482 = vmatprep.mubr.msk.bf16.mxu1 %vm7647_vm0, %v14541_v32 }
 0x46a   : > { %v4464_v9 = vpop.f32.mrf.mxu1 }
 0x46c   : > { %v4465_v41 = vpop.f32.mrf.mxu1 }
 0x46e   : > { %v4468_v48 = vpop.f32.mrf.mxu1 }
 0x470   : > { %v4469_v6 = vpop.f32.mrf.mxu1  ;;  %7483 = vmatmul.mubr.bf16.gmra.mxu1 %v7624_v53 }
 0x471   : > { %7486 = vmatprep.mubr.msk.bf16.mxu1 %vm7647_vm0, %v14541_v32 }
 0x472   : > { %v4470_v18 = vpop.f32.mrf.mxu1 }
 0x474   : > { %v4471_v59 = vpop.f32.mrf.mxu1 }
 0x476   : > { %v4474_v52 = vpop.f32.mrf.mxu1 }
 0x478   : > { %v4475_v51 = vpop.f32.mrf.mxu1  ;;  %7487 = vmatmul.mubr.bf16.gmra.mxu1 %v7625_v11 }
 0x479   : > { %7490 = vmatprep.mubr.msk.bf16.mxu1 %vm7647_vm0, %v14541_v32 }
 0x47a   : > { %v4476_v49 = vpop.f32.mrf.mxu1 }
 0x47c   : > { %v4477_v14 = vpop.f32.mrf.mxu1 }
 0x47e   : > { %v6923_v46 = vpop.f32.mrf.mxu1 }
 0x480   : > { %7491 = vmatmul.mubr.bf16.gmra.mxu1 %v7626_v16  ;;  %v6924_v40 = vpop.f32.mrf.mxu1 }
 0x481   : > { %7494 = vmatprep.mubr.msk.bf16.mxu1 %vm7647_vm0, %v14541_v32  ;;  %v13421_v19 = vadd.f32 %v6924_v40, %v6923_v46 }
 0x482   : > { %v6926_v3 = vpop.f32.mrf.mxu1 }
 0x484   : > { %v6927_v10 = vpop.f32.mrf.mxu1 }
 0x485   : > { %v13426_v7 = vadd.f32 %v6927_v10, %v6926_v3 }
 0x486   : > { %v6929_v13 = vpop.f32.mrf.mxu1 }
 0x488   : > { %7495 = vmatmul.mubr.bf16.gmra.mxu1 %v7627_v56  ;;  %v6930_v37 = vpop.f32.mrf.mxu1 }
 0x489   : > { %7498 = vmatprep.mubr.msk.bf16.mxu1 %vm7647_vm0, %v14541_v32  ;;  %v13430_v30 = vadd.f32 %v6930_v37, %v6929_v13 }
 0x48a   : > { %v6932_v34 = vpop.f32.mrf.mxu1 }
 0x48c   : > { %v6933_v29 = vpop.f32.mrf.mxu1 }
 0x48d   : > { %v13435_v43 = vadd.f32 %v6933_v29, %v6932_v34 }
 0x48e   : > { %v6935_v58 = vpop.f32.mrf.mxu1 }
 0x490   : > { %7499 = vmatmul.mubr.bf16.gmra.mxu1 %v7628_v61  ;;  %v6936_v60 = vpop.f32.mrf.mxu1 }
 0x491   : > { %7502 = vmatprep.mubr.msk.bf16.mxu1 %vm7647_vm0, %v14541_v32  ;;  %v13439_v15 = vadd.f32 %v6936_v60, %v6935_v58 }
 0x492   : > { %v6938_v35 = vpop.f32.mrf.mxu1 }
 0x494   : > { %v6939_v45 = vpop.f32.mrf.mxu1 }
 0x495   : > { %v13444_v1 = vadd.f32 %v6939_v45, %v6938_v35 }
 0x496   : > { %v6941_v57 = vpop.f32.mrf.mxu1 }
 0x498   : > { %7503 = vmatmul.mubr.bf16.gmra.mxu1 %v7629_v44  ;;  %v6942_v4 = vpop.f32.mrf.mxu1 }
 0x499   : > { %7506 = vmatprep.mubr.msk.bf16.mxu1 %vm7647_vm0, %v14541_v32  ;;  %v13448_v42 = vadd.f32 %v6942_v4, %v6941_v57 }
 0x49a   : > { %v6944_v2 = vpop.f32.mrf.mxu1 }
 0x49c   : > { %v6945_v5 = vpop.f32.mrf.mxu1 }
 0x49d   : > { %v13453_v0 = vadd.f32 %v6945_v5, %v6944_v2 }
 0x49e   : > { %v6947_v27 = vpop.f32.mrf.mxu1 }
 0x4a0   : > { %7507 = vmatmul.mubr.bf16.gmra.mxu1 %v7630_v33  ;;  %v6948_v39 = vpop.f32.mrf.mxu1 }
 0x4a1   : > { %7510 = vmatprep.mubr.msk.bf16.mxu1 %vm7647_vm0, %v14541_v32  ;;  %v13457_v38 = vadd.f32 %v6948_v39, %v6947_v27 }
 0x4a2   : > { %v6950_v21 = vpop.f32.mrf.mxu1 }
 0x4a4   : > { %v6951_v12 = vpop.f32.mrf.mxu1 }
 0x4a5   : > { %v13462_v36 = vadd.f32 %v6951_v12, %v6950_v21 }
 0x4a6   : > { %v6953_v47 = vpop.f32.mrf.mxu1 }
 0x4a8   : > { %7511 = vmatmul.mubr.bf16.gmra.mxu1 %v7631_v23  ;;  %v6954_v28 = vpop.f32.mrf.mxu1 }
 0x4a9   : > { %v13464_v26 = vadd.f32 %v6954_v28, %v6953_v47 }
 0x4aa   : > { %v6956_v50 = vpop.f32.mrf.mxu1 }
 0x4ac   : > { %v6957_v20 = vpop.f32.mrf.mxu1 }
 0x4ad   : > { %v13466_v31 = vadd.f32 %v6957_v20, %v6956_v50 }
 0x4ae   : > { %v6959_v32 = vpop.f32.mrf.mxu1 }
 0x4b0   : > { %v6960_v63 = vpop.f32.mrf.mxu1 }
 0x4b1   : > { %v13468_v54 = vadd.f32 %v6960_v63, %v6959_v32 }
 0x4b2   : > { %v6962_v62 = vpop.f32.mrf.mxu1 }
 0x4b4   : > { %v6963_v25 = vpop.f32.mrf.mxu1 }
 0x4b5   : > { %v13470_v17 = vadd.f32 %v6963_v25, %v6962_v62 }
 0x4b6   : > { %v6965_v24 = vpop.f32.mrf.mxu1 }
 0x4b8   : > { %v6966_v8 = vpop.f32.mrf.mxu1 }
 0x4b9   : > { %v13472_v22 = vadd.f32 %v6966_v8, %v6965_v24 }
 0x4ba   : > { %v6968_v55 = vpop.f32.mrf.mxu1 }
 0x4bc   : > { %v6969_v9 = vpop.f32.mrf.mxu1 }
 0x4bd   : > { %v13474_v41 = vadd.f32 %v6969_v9, %v6968_v55 }
 0x4be   : > { %v6971_v53 = vpop.f32.mrf.mxu1 }
 0x4c0   : > { %v6972_v48 = vpop.f32.mrf.mxu1 }
 0x4c1   : > { %v13476_v6 = vadd.f32 %v6972_v48, %v6971_v53 }
 0x4c2   : > { %v6974_v18 = vpop.f32.mrf.mxu1 }
 0x4c4   : > { %v6975_v59 = vpop.f32.mrf.mxu1 }
 0x4c5   : > { %v13478_v11 = vadd.f32 %v6975_v59, %v6974_v18 }
 0x4de   : > { %v6993_v52 = vpop.f32.mrf.mxu1 }
 0x4e0   : > { %v6994_v51 = vpop.f32.mrf.mxu1 }
 0x4e1   : > { %v6995_v49 = vadd.f32 %v6994_v51, %v6993_v52 }
 0x4e2   : > { %v6996_v14 = vpop.f32.mrf.mxu1 }
 0x4e3   : > { %v13481_v16 = vadd.f32 %v6995_v49, %v13421_v19 }
 0x4e4   : > { %v6997_v46 = vpop.f32.mrf.mxu1 }
 0x4e5   : > { %v6998_v40 = vadd.f32 %v6997_v46, %v6996_v14 }
 0x4e6   : > { %v6999_v3 = vpop.f32.mrf.mxu1 }
 0x4e7   : > { %v13484_v56 = vadd.f32 %v6998_v40, %v13426_v7 }
 0x4e8   : > { %v7000_v10 = vpop.f32.mrf.mxu1 }
 0x4e9   : > { %v7001_v13 = vadd.f32 %v7000_v10, %v6999_v3 }
 0x4ea   : > { %v7002_v37 = vpop.f32.mrf.mxu1 }
 0x4eb   : > { %v13487_v34 = vadd.f32 %v7001_v13, %v13430_v30 }
 0x4ec   : > { %v7003_v61 = vpop.f32.mrf.mxu1 }
 0x4ed   : > { %v7004_v29 = vadd.f32 %v7003_v61, %v7002_v37 }
 0x4ee   : > { %v7005_v58 = vpop.f32.mrf.mxu1 }
 0x4ef   : > { %v13490_v60 = vadd.f32 %v7004_v29, %v13435_v43 }
 0x4f0   : > { %v7006_v19 = vpop.f32.mrf.mxu1 }
 0x4f1   : > { %v7007_v35 = vadd.f32 %v7006_v19, %v7005_v58 }
 0x4f2   : > { %v7008_v44 = vpop.f32.mrf.mxu1 }
 0x4f3   : > { %v13493_v45 = vadd.f32 %v7007_v35, %v13439_v15 }
 0x4f4   : > { %v7009_v7 = vpop.f32.mrf.mxu1 }
 0x4f5   : > { %v7010_v57 = vadd.f32 %v7009_v7, %v7008_v44 }
 0x4f6   : > { %v7011_v4 = vpop.f32.mrf.mxu1 }
 0x4f7   : > { %v13496_v2 = vadd.f32 %v7010_v57, %v13444_v1 }
 0x4f8   : > { %v7012_v30 = vpop.f32.mrf.mxu1 }
 0x4f9   : > { %v7013_v33 = vadd.f32 %v7012_v30, %v7011_v4 }
 0x4fa   : > { %v7014_v5 = vpop.f32.mrf.mxu1 }
 0x4fb   : > { %v13499_v27 = vadd.f32 %v7013_v33, %v13448_v42 }
 0x4fc   : > { %v7015_v43 = vpop.f32.mrf.mxu1 }
 0x4fd   : > { %v7016_v39 = vadd.f32 %v7015_v43, %v7014_v5 }
 0x4fe   : > { %v7017_v21 = vpop.f32.mrf.mxu1 }
 0x4ff   : > { %v6297_v23 = vadd.f32 %v7016_v39, %v13453_v0 }
 0x500   : > { %v7018_v12 = vpop.f32.mrf.mxu1 }
 0x501   : > { %v7019_v15 = vadd.f32 %v7018_v12, %v7017_v21 }
 0x502   : > { %v7020_v47 = vpop.f32.mrf.mxu1 }
 0x503   : > { %v6302_v28 = vadd.f32 %v7019_v15, %v13457_v38 }
 0x504   : > { %v7021_v50 = vpop.f32.mrf.mxu1 }
 0x505   : > { %v7022_v20 = vadd.f32 %v7021_v50, %v7020_v47 }
 0x506   : > { %v7023_v1 = vpop.f32.mrf.mxu1 }
 0x507   : > { %v6305_v32 = vadd.f32 %v7022_v20, %v13462_v36 }
 0x508   : > { %v7024_v63 = vpop.f32.mrf.mxu1 }
 0x509   : > { %v7025_v62 = vadd.f32 %v7024_v63, %v7023_v1 }
 0x50a   : > { %v7026_v25 = vpop.f32.mrf.mxu1 }
 0x50b   : > { %v6310_v42 = vadd.f32 %v7025_v62, %v13464_v26 }
 0x50c   : > { %v7027_v24 = vpop.f32.mrf.mxu1 }
 0x50d   : > { %v7028_v8 = vadd.f32 %v7027_v24, %v7026_v25 }
 0x50e   : > { %v7029_v55 = vpop.f32.mrf.mxu1 }
 0x50f   : > { %v6313_v0 = vadd.f32 %v7028_v8, %v13466_v31 }
 0x510   : > { %v7030_v9 = vpop.f32.mrf.mxu1 }
 0x511   : > { %v7031_v53 = vadd.f32 %v7030_v9, %v7029_v55 }
 0x512   : > { %v7032_v48 = vpop.f32.mrf.mxu1 }
 0x513   : > { %v6318_v38 = vadd.f32 %v7031_v53, %v13468_v54 }
 0x514   : > { %v7033_v18 = vpop.f32.mrf.mxu1 }
 0x515   : > { %v7034_v59 = vadd.f32 %v7033_v18, %v7032_v48 }
 0x516   : > { %v7035_v52 = vpop.f32.mrf.mxu1 }
 0x517   : > { %v6321_v36 = vadd.f32 %v7034_v59, %v13470_v17 }
 0x518   : > { %v7036_v51 = vpop.f32.mrf.mxu1 }
 0x519   : > { %v7037_v49 = vadd.f32 %v7036_v51, %v7035_v52 }
 0x51a   : > { %v7038_v14 = vpop.f32.mrf.mxu1 }
 0x51b   : > { %v6326_v26 = vadd.f32 %v7037_v49, %v13472_v22 }
 0x51c   : > { %v7039_v46 = vpop.f32.mrf.mxu1 }
 0x51d   : > { %v7040_v40 = vadd.f32 %v7039_v46, %v7038_v14 }
 0x51e   : > { %v7041_v3 = vpop.f32.mrf.mxu1 }
 0x51f   : > { %v6329_v31 = vadd.f32 %v7040_v40, %v13474_v41 }
 0x520   : > { %v7042_v10 = vpop.f32.mrf.mxu1 }
 0x521   : > { %v7043_v13 = vadd.f32 %v7042_v10, %v7041_v3 }
 0x522   : > { %v7044_v37 = vpop.f32.mrf.mxu1 }
 0x523   : > { %v6334_v54 = vadd.f32 %v7043_v13, %v13476_v6 }
 0x524   : > { %v7045_v61 = vpop.f32.mrf.mxu1 }
 0x525   : > { %v7046_v29 = vadd.f32 %v7045_v61, %v7044_v37 }
 0x527   : > { %v6337_v58 = vadd.f32 %v7046_v29, %v13478_v11 }
 0x528   : > { %v6374_v17 = vpop.f32.mrf.mxu1 }
 0x529   : > { %v13513_v19 = vadd.f32 %v6374_v17, %v13481_v16 }
 0x52a   : > { %v7480_v35 = vpop.f32.mrf.mxu1 }
 0x52c   : > { %v6377_v22 = vpop.f32.mrf.mxu1 }
 0x52d   : > { %v13516_v44 = vadd.f32 %v6377_v22, %v13484_v56 }
 0x52e   : > { %v7481_v7 = vpop.f32.mrf.mxu1 }
 0x530   : > { %v6382_v41 = vpop.f32.mrf.mxu1 }
 0x531   : > { %v13519_v57 = vadd.f32 %v6382_v41, %v13487_v34 }
 0x532   : > { %v7484_v4 = vpop.f32.mrf.mxu1 }
 0x534   : > { %v6385_v6 = vpop.f32.mrf.mxu1 }
 0x535   : > { %v13522_v30 = vadd.f32 %v6385_v6, %v13490_v60 }
 0x536   : > { %v7485_v11 = vpop.f32.mrf.mxu1 }
 0x538   : > { %v6390_v33 = vpop.f32.mrf.mxu1 }
 0x539   : > { %v13525_v16 = vadd.f32 %v6390_v33, %v13493_v45 }
 0x53a   : > { %v7488_v5 = vpop.f32.mrf.mxu1 }
 0x53c   : > { %v6393_v43 = vpop.f32.mrf.mxu1 }
 0x53d   : > { %v13528_v56 = vadd.f32 %v6393_v43, %v13496_v2 }
 0x53e   : > { %v7489_v39 = vpop.f32.mrf.mxu1 }
 0x540   : > { %v6398_v21 = vpop.f32.mrf.mxu1 }
 0x541   : > { %v13531_v34 = vadd.f32 %v6398_v21, %v13499_v27 }
 0x542   : > { %v7492_v12 = vpop.f32.mrf.mxu1 }
 0x544   : > { %v6401_v15 = vpop.f32.mrf.mxu1 }
 0x545   : > { %v13533_v47 = vadd.f32 %v6401_v15, %v6297_v23 }
 0x546   : > { %v7493_v60 = vpop.f32.mrf.mxu1 }
 0x548   : > { %v6406_v50 = vpop.f32.mrf.mxu1 }
 0x549   : > { %v13535_v20 = vadd.f32 %v6406_v50, %v6302_v28 }
 0x54a   : > { %v7496_v45 = vpop.f32.mrf.mxu1 }
 0x54c   : > { %v6409_v1 = vpop.f32.mrf.mxu1 }
 0x54d   : > { %v6410_v25 = vadd.f32 %v6409_v1, %v6305_v32 }
 0x54e   : > { %v7497_v63 = vpop.f32.mrf.mxu1 }
 0x550   : > { %v6414_v62 = vpop.f32.mrf.mxu1 }
 0x551   : > { %v6415_v2 = vadd.f32 %v6414_v62, %v6310_v42 }
 0x552   : > { %v7500_v24 = vpop.f32.mrf.mxu1 }
 0x553   : > { %v7530_v8 = vpack.i.bf16 %v6415_v2, %v6410_v25 }
 0x554   : > { %v6417_v55 = vpop.f32.mrf.mxu1 }
 0x555   : > { %7531 = vrot.lane.b32.xlu0 %v7530_v8, %s7649_s11  ;;  %v6418_v53 = vadd.f32 %v6417_v55, %v6313_v0 }
 0x556   : > { %v7501_v27 = vpop.f32.mrf.mxu1 }
 0x558   : > { %v6422_v9 = vpop.f32.mrf.mxu1 }
 0x559   : > { %v6423_v23 = vadd.f32 %v6422_v9, %v6318_v38 }
 0x55a   : > { %v7504_v48 = vpop.f32.mrf.mxu1 }
 0x55b   : > { %v7535_v18 = vpack.i.bf16 %v6423_v23, %v6418_v53 }
 0x55c   : > { %v6425_v59 = vpop.f32.mrf.mxu1 }
 0x55d   : > { %7536 = vrot.lane.b32.xlu1 %v7535_v18, %s7649_s11  ;;  %v6426_v51 = vadd.f32 %v6425_v59, %v6321_v36 }
 0x55e   : > { %v7505_v28 = vpop.f32.mrf.mxu1 }
 0x560   : > { %v6430_v52 = vpop.f32.mrf.mxu1 }
 0x561   : > { %v6431_v49 = vadd.f32 %v6430_v52, %v6326_v26 }
 0x562   : > { %v7508_v32 = vpop.f32.mrf.mxu1 }
 0x563   : > { %v7540_v42 = vpack.i.bf16 %v6431_v49, %v6426_v51 }
 0x564   : > { %v6433_v14 = vpop.f32.mrf.mxu1 }
 0x565   : > { %7541 = vrot.lane.b32.xlu0 %v7540_v42, %s7649_s11  ;;  %v6434_v3 = vadd.f32 %v6433_v14, %v6329_v31 }
 0x566   : > { %v7509_v46 = vpop.f32.mrf.mxu1 }
 0x568   : > { %v6438_v40 = vpop.f32.mrf.mxu1 }
 0x569   : > { %v6439_v0 = vadd.f32 %v6438_v40, %v6334_v54 }
 0x56a   : > { %v7512_v38 = vpop.f32.mrf.mxu1 }
 0x56b   : > { %v7545_v10 = vpack.i.bf16 %v6439_v0, %v6434_v3 }
 0x56c   : > { %v6441_v13 = vpop.f32.mrf.mxu1 }
 0x56d   : > { %v6442_v37 = vadd.f32 %v6441_v13, %v6337_v58  ;;  %7546 = vrot.lane.b32.xlu1 %v7545_v10, %s7649_s11 }
 0x56e   : > { %v7513_v61 = vpop.f32.mrf.mxu1 }
 0x56f   : > { %6470 = vrot.lane.b32.xlu0 %v6442_v37, %s7649_s11 }
 0x5c7   : > { %v7532_v36 = vpop.permute.xlu0 %7531 }
 0x5c8   : > { %v7534_v26 = vunpack.i.h.bf16 %v7532_v36  ;;  %v7533_v29 = vunpack.i.l.bf16 %v7532_v36 }
 0x5ca   : > { %v6482_v31 = vsel %vm3140_vm11, %v13516_v44, %v7534_v26  ;;  %v6481_v54 = vsel %vm3140_vm11, %v13513_v19, %v7533_v29 }
 0x5cb   : > { %v6786_v58 = vpack.c.bf16 %v6482_v31, %v6481_v54 }
 0x5cd   : > { %6787 = vst [vmem:[%s253_s7] sm:$0xff] %v6786_v58  }
 0x5cf   : > { %v7537_v17 = vpop.permute.xlu1 %7536 }
 0x5d0   : > { %v7539_v35 = vunpack.i.h.bf16 %v7537_v17  ;;  %v7538_v22 = vunpack.i.l.bf16 %v7537_v17 }
 0x5d2   : > { %v6484_v7 = vsel %vm3140_vm11, %v13522_v30, %v7539_v35  ;;  %v6483_v41 = vsel %vm3140_vm11, %v13519_v57, %v7538_v22 }
 0x5d3   : > { %v6791_v4 = vpack.c.bf16 %v6484_v7, %v6483_v41 }
 0x5d5   : > { %6803 = vst [vmem:[%s253_s7 + $0x8] sm:$0xff] %v6791_v4  }
 0x5d7   : > { %v7542_v6 = vpop.permute.xlu0 %7541 }
 0x5d8   : > { %v7544_v11 = vunpack.i.h.bf16 %v7542_v6  ;;  %v7543_v33 = vunpack.i.l.bf16 %v7542_v6 }
 0x5da   : > { %v6486_v44 = vsel %vm3140_vm11, %v13528_v56, %v7544_v11  ;;  %v6485_v19 = vsel %vm3140_vm11, %v13525_v16, %v7543_v33 }
 0x5db   : > { %v6796_v5 = vpack.c.bf16 %v6486_v44, %v6485_v19 }
 0x5dd   : > { %6804 = vst [vmem:[%s253_s7 + $0x10] sm:$0xff] %v6796_v5  }
 0x5df   : > { %v7547_v43 = vpop.permute.xlu1 %7546 }
 0x5e0   : > { %v7549_v39 = vunpack.i.h.bf16 %v7547_v43  ;;  %v7548_v21 = vunpack.i.l.bf16 %v7547_v43 }
 0x5e1   : > { %v6471_v30 = vpop.permute.xlu0 %6470 }
 0x5e2   : > { %v6488_v57 = vsel %vm3140_vm11, %v13533_v47, %v7549_v39  ;;  %v6487_v12 = vsel %vm3140_vm11, %v13531_v34, %v7548_v21  ;;  %v6489_v15 = vsel %vm3140_vm11, %v13535_v20, %v6471_v30 }
 0x5e3   : > { %v6801_v60 = vpack.c.bf16 %v6488_v57, %v6487_v12  ;;  %v6782_v56 = vpack.c.bf16 %v6489_v15, %v6489_v15 }
 0x5e5   : > { %6805 = vst [vmem:[%s253_s7 + $0x18] sm:$0xff] %v6801_v60   ;;  %6535 = vst [vmem:[%s253_s7 + $0x20] sm:$0xf] %v6782_v56 }
 0x5e6 PF: > { %s16_s21 = sadd.s32 1, %s7644_s21  }
 0x5e7   : > { %p13_p5 = scmp.ge.s32.totalorder %s16_s21, 4  }
 0x5e9   :  { %15 = sbr.rel (!%p13_p5) target bundleno = 1 (0x1), region = 74 }

// kernel: mnist_net_forward.3
= control target key start
LH: loop header
LB: loop body
LE: loop exit
PB: predicated region body
PF: predicated region fallthrough
CT: control target
= control target key end

     0   :  { %vm8731_vm0 = vmmov 0   ;;  %s11015_s1 = inlined_call_operand.vmem [shape: bf16[9216,128], index: 1, kind: input, shape index: {}]   ;;  %s11016_s0 = inlined_call_operand.vmem [shape: bf16[16,9216], index: 0, kind: input, shape index: {}]   ;;  %s11017_s2 = inlined_call_operand.vmem [shape: f32[1,128], index: 2, kind: input, shape index: {}]   ;;  %s11018_s3 = inlined_call_operand.vmem [shape: bf16[128,128], index: 3, kind: input, shape index: {}]   ;;  %s11019_s4 = inlined_call_operand.vmem [shape: f32[1,128], index: 4, kind: input, shape index: {}]   ;;  %s11020_s5 = inlined_call_operand.vmem [shape: f32[16,128], index: 5, kind: output, shape index: {}]  }
   0x1   :  { %v8146_v0 = vld [vmem:[%s11015_s1 + $0x78] sm:$0xff]   ;;  %v8150_v4 = vld [vmem:[%s11015_s1 + $0x70] sm:$0xff]   ;;  %v8154_v8 = vld [vmem:[%s11015_s1 + $0x68] sm:$0xff]  }
   0x2   :  { %v8147_v1 = vld [vmem:[%s11015_s1 + $0xf8] sm:$0xff]   ;;  %7323 = vmatprep.subr.bf16.mxu0 %v8146_v0  ;;  %v8151_v5 = vld [vmem:[%s11015_s1 + $0xf0] sm:$0xff]   ;;  %v8155_v9 = vld [vmem:[%s11015_s1 + $0xe8] sm:$0xff]  }
   0x3   :  { %v8148_v2 = vld [vmem:[%s11015_s1 + $0x38] sm:$0xff]   ;;  %7345 = vmatprep.subr.bf16.mxu1 %v8147_v1  ;;  %v8152_v6 = vld [vmem:[%s11015_s1 + $0x30] sm:$0xff]   ;;  %v8156_v10 = vld [vmem:[%s11015_s1 + $0x28] sm:$0xff]  }
   0x4   :  { %v8149_v3 = vld [vmem:[%s11015_s1 + $0xb8] sm:$0xff]   ;;  %7324 = vmatpush3.bf16.msra.mxu0 %v8148_v2  ;;  %v8153_v7 = vld [vmem:[%s11015_s1 + $0xb0] sm:$0xff]   ;;  %v8157_v11 = vld [vmem:[%s11015_s1 + $0xa8] sm:$0xff]  }
   0x5   :  { %7346 = vmatpush3.bf16.msra.mxu1 %v8149_v3  ;;  %7325 = vmatprep.subr.bf16.mxu0 %v8150_v4  ;;  %v8158_v12 = vld [vmem:[%s11015_s1 + $0x60] sm:$0xff]   ;;  %v8162_v16 = vld [vmem:[%s11015_s1 + $0x58] sm:$0xff]   ;;  %v8166_v20 = vld [vmem:[%s11015_s1 + $0x50] sm:$0xff]  }
   0x6   :  { %7347 = vmatprep.subr.bf16.mxu1 %v8151_v5  ;;  %v8159_v13 = vld [vmem:[%s11015_s1 + $0xe0] sm:$0xff]   ;;  %v8163_v17 = vld [vmem:[%s11015_s1 + $0xd8] sm:$0xff]   ;;  %v8167_v21 = vld [vmem:[%s11015_s1 + $0xd0] sm:$0xff]  }
   0x7   :  { %v8160_v14 = vld [vmem:[%s11015_s1 + $0x20] sm:$0xff]   ;;  %v8164_v18 = vld [vmem:[%s11015_s1 + $0x18] sm:$0xff]   ;;  %v8168_v22 = vld [vmem:[%s11015_s1 + $0x10] sm:$0xff]  }
   0x8   :  { %7326 = vmatpush3.bf16.msra.mxu0 %v8152_v6  ;;  %v8161_v15 = vld [vmem:[%s11015_s1 + $0xa0] sm:$0xff]   ;;  %v8165_v19 = vld [vmem:[%s11015_s1 + $0x98] sm:$0xff]   ;;  %v8169_v23 = vld [vmem:[%s11015_s1 + $0x90] sm:$0xff]  }
   0x9   :  { %7348 = vmatpush3.bf16.msra.mxu1 %v8153_v7  ;;  %7327 = vmatprep.subr.bf16.mxu0 %v8154_v8  ;;  %v8170_v24 = vld [vmem:[%s11015_s1 + $0x48] sm:$0xff]   ;;  %v8174_v28 = vld [vmem:[%s11015_s1 + $0x40] sm:$0xff]   ;;  %v8178_v40 = vld [vmem:[%s11015_s1 + $0x178] sm:$0xff]  }
   0xa   :  { %7349 = vmatprep.subr.bf16.mxu1 %v8155_v9  ;;  %v8171_v25 = vld [vmem:[%s11015_s1 + $0xc8] sm:$0xff]   ;;  %v8175_v29 = vld [vmem:[%s11015_s1 + $0xc0] sm:$0xff]   ;;  %v8179_v41 = vld [vmem:[%s11015_s1 + $0x1f8] sm:$0xff]  }
   0xb   :  { %v8172_v26 = vld [vmem:[%s11015_s1 + $0x8] sm:$0xff]   ;;  %v8176_v30 = vld [vmem:[%s11015_s1] sm:$0xff]   ;;  %v8180_v42 = vld [vmem:[%s11015_s1 + $0x138] sm:$0xff]  }
   0xc   :  { %7328 = vmatpush3.bf16.msra.mxu0 %v8156_v10  ;;  %v8173_v27 = vld [vmem:[%s11015_s1 + $0x88] sm:$0xff]   ;;  %v8177_v31 = vld [vmem:[%s11015_s1 + $0x80] sm:$0xff]   ;;  %v8181_v43 = vld [vmem:[%s11015_s1 + $0x1b8] sm:$0xff]  }
   0xd   :  { %7350 = vmatpush3.bf16.msra.mxu1 %v8157_v11  ;;  %7329 = vmatprep.subr.bf16.mxu0 %v8158_v12  ;;  %v21_v32 = vld [vmem:[%s11016_s0] sm:$0xff]  ;;  %v22_v34 = vld [vmem:[%s11016_s0 + $0x8] sm:$0xff]  ;;  %v8182_v44 = vld [vmem:[%s11015_s1 + $0x170] sm:$0xff]  }
   0xe   :  { %7351 = vmatprep.subr.bf16.mxu1 %v8159_v13  ;;  %v57_v33 = vld [vmem:[%s11016_s0 + $0x120] sm:$0xff]  ;;  %v58_v37 = vld [vmem:[%s11016_s0 + $0x128] sm:$0xff]  ;;  %v8183_v45 = vld [vmem:[%s11015_s1 + $0x1f0] sm:$0xff]  }
   0xf   :  { %v6666_v35 = vcombine.low %v21_v32, %v57_v33  ;;  %v6667_v36 = vcombine.high %v21_v32, %v57_v33  ;;  %v6668_v38 = vcombine.low %v22_v34, %v58_v37  ;;  %v6669_v39 = vcombine.high %v22_v34, %v58_v37  ;;  %v8184_v46 = vld [vmem:[%s11015_s1 + $0x130] sm:$0xff]   ;;  %v8186_v48 = vld [vmem:[%s11015_s1 + $0x168] sm:$0xff]   ;;  %v8190_v52 = vld [vmem:[%s11015_s1 + $0x160] sm:$0xff]  }
  0x10   :  { %7330 = vmatpush3.bf16.msra.mxu0 %v8160_v14  ;;  %v8185_v47 = vld [vmem:[%s11015_s1 + $0x1b0] sm:$0xff]   ;;  %v8187_v49 = vld [vmem:[%s11015_s1 + $0x1e8] sm:$0xff]   ;;  %v8191_v53 = vld [vmem:[%s11015_s1 + $0x1e0] sm:$0xff]  }
  0x11   :  { %7352 = vmatpush3.bf16.msra.mxu1 %v8161_v15  ;;  %7331 = vmatprep.subr.bf16.mxu0 %v8162_v16  ;;  %v8188_v50 = vld [vmem:[%s11015_s1 + $0x128] sm:$0xff]   ;;  %v8192_v54 = vld [vmem:[%s11015_s1 + $0x120] sm:$0xff]   ;;  %v8194_v56 = vld [vmem:[%s11015_s1 + $0x158] sm:$0xff]  }
  0x12   :  { %7353 = vmatprep.subr.bf16.mxu1 %v8163_v17  ;;  %5100 = vmatprep.mubr.bf16.mxu0 %v6667_v36  ;;  %v8189_v51 = vld [vmem:[%s11015_s1 + $0x1a8] sm:$0xff]   ;;  %v8193_v55 = vld [vmem:[%s11015_s1 + $0x1a0] sm:$0xff]   ;;  %v8195_v57 = vld [vmem:[%s11015_s1 + $0x1d8] sm:$0xff]  }
  0x13   :  { %5141 = vmatprep.mubr.bf16.mxu1 %v6669_v39  ;;  %v8196_v58 = vld [vmem:[%s11015_s1 + $0x118] sm:$0xff]   ;;  %v8198_v60 = vld [vmem:[%s11015_s1 + $0x150] sm:$0xff]   ;;  %v8202_v0 = vld [vmem:[%s11015_s1 + $0x148] sm:$0xff]  }
  0x14   :  { %7332 = vmatpush3.bf16.msra.mxu0 %v8164_v18  ;;  %v8197_v59 = vld [vmem:[%s11015_s1 + $0x198] sm:$0xff]   ;;  %v8199_v61 = vld [vmem:[%s11015_s1 + $0x1d0] sm:$0xff]   ;;  %v8203_v1 = vld [vmem:[%s11015_s1 + $0x1c8] sm:$0xff]  }
  0x15   :  { %7354 = vmatpush3.bf16.msra.mxu1 %v8165_v19  ;;  %7333 = vmatprep.subr.bf16.mxu0 %v8166_v20  ;;  %v8200_v62 = vld [vmem:[%s11015_s1 + $0x110] sm:$0xff]   ;;  %v8204_v2 = vld [vmem:[%s11015_s1 + $0x108] sm:$0xff]   ;;  %v8206_v4 = vld [vmem:[%s11015_s1 + $0x140] sm:$0xff]  }
  0x16   :  { %7355 = vmatprep.subr.bf16.mxu1 %v8167_v21  ;;  %v8201_v63 = vld [vmem:[%s11015_s1 + $0x190] sm:$0xff]   ;;  %v8205_v3 = vld [vmem:[%s11015_s1 + $0x188] sm:$0xff]   ;;  %v8207_v5 = vld [vmem:[%s11015_s1 + $0x1c0] sm:$0xff]  }
  0x17   :  { %v8208_v6 = vld [vmem:[%s11015_s1 + $0x100] sm:$0xff]   ;;  %v23_v8 = vld [vmem:[%s11016_s0 + $0x10] sm:$0xff]  ;;  %v24_v12 = vld [vmem:[%s11016_s0 + $0x18] sm:$0xff] }
  0x18   :  { %7334 = vmatpush3.bf16.msra.mxu0 %v8168_v22  ;;  %v8209_v7 = vld [vmem:[%s11015_s1 + $0x180] sm:$0xff]   ;;  %v59_v9 = vld [vmem:[%s11016_s0 + $0x130] sm:$0xff]  ;;  %v60_v13 = vld [vmem:[%s11016_s0 + $0x138] sm:$0xff] }
  0x19   :  { %7356 = vmatpush3.bf16.msra.mxu1 %v8169_v23  ;;  %7335 = vmatprep.subr.bf16.mxu0 %v8170_v24  ;;  %v6670_v10 = vcombine.low %v23_v8, %v59_v9  ;;  %v6671_v11 = vcombine.high %v23_v8, %v59_v9  ;;  %v6672_v14 = vcombine.low %v24_v12, %v60_v13  ;;  %v8210_v16 = vld [vmem:[%s11015_s1 + $0x278] sm:$0xff]   ;;  %v8214_v20 = vld [vmem:[%s11015_s1 + $0x270] sm:$0xff]   ;;  %v8218_v24 = vld [vmem:[%s11015_s1 + $0x268] sm:$0xff]  }
  0x1a   :  { %7357 = vmatprep.subr.bf16.mxu1 %v8171_v25  ;;  %v6673_v15 = vcombine.high %v24_v12, %v60_v13  ;;  %v8211_v17 = vld [vmem:[%s11015_s1 + $0x2f8] sm:$0xff]   ;;  %v8215_v21 = vld [vmem:[%s11015_s1 + $0x2f0] sm:$0xff]   ;;  %v8219_v25 = vld [vmem:[%s11015_s1 + $0x2e8] sm:$0xff]  }
  0x1b   :  { %v8212_v18 = vld [vmem:[%s11015_s1 + $0x238] sm:$0xff]   ;;  %v8216_v22 = vld [vmem:[%s11015_s1 + $0x230] sm:$0xff]  }
  0x1c   :  { %7336 = vmatpush3.bf16.msra.mxu0 %v8172_v26  ;;  %v8213_v19 = vld [vmem:[%s11015_s1 + $0x2b8] sm:$0xff]   ;;  %v8217_v23 = vld [vmem:[%s11015_s1 + $0x2b0] sm:$0xff]   ;;  %v8220_v26 = vld [vmem:[%s11015_s1 + $0x228] sm:$0xff]  }
  0x1d   :  { %7358 = vmatpush3.bf16.msra.mxu1 %v8173_v27  ;;  %7337 = vmatprep.subr.bf16.mxu0 %v8174_v28  ;;  %v8221_v27 = vld [vmem:[%s11015_s1 + $0x2a8] sm:$0xff]   ;;  %v8222_v28 = vld [vmem:[%s11015_s1 + $0x260] sm:$0xff]   ;;  %v8226_v32 = vld [vmem:[%s11015_s1 + $0x258] sm:$0xff]  }
  0x1e   :  { %7359 = vmatprep.subr.bf16.mxu1 %v8175_v29  ;;  %v8223_v29 = vld [vmem:[%s11015_s1 + $0x2e0] sm:$0xff]   ;;  %v8227_v33 = vld [vmem:[%s11015_s1 + $0x2d8] sm:$0xff]   ;;  %v8230_v36 = vld [vmem:[%s11015_s1 + $0x250] sm:$0xff]  }
  0x1f   :  { %v8228_v34 = vld [vmem:[%s11015_s1 + $0x218] sm:$0xff]   ;;  %v8231_v37 = vld [vmem:[%s11015_s1 + $0x2d0] sm:$0xff]  }
  0x20   :  { %7338 = vmatpush3.bf16.msra.mxu0 %v8176_v30  ;;  %v8224_v30 = vld [vmem:[%s11015_s1 + $0x220] sm:$0xff]   ;;  %v8233_v39 = vld [vmem:[%s11015_s1 + $0x290] sm:$0xff]   ;;  %v8258_v8 = vld [vmem:[%s11015_s1 + $0x358] sm:$0xff]  }
  0x21   :  { %7360 = vmatpush3.bf16.msra.mxu1 %v8177_v31  ;;  %7367 = vmatprep.subr.bf16.mxu0 %v8178_v40  ;;  %v8225_v31 = vld [vmem:[%s11015_s1 + $0x2a0] sm:$0xff]   ;;  %v8234_v40 = vld [vmem:[%s11015_s1 + $0x248] sm:$0xff]   ;;  %v8259_v9 = vld [vmem:[%s11015_s1 + $0x3d8] sm:$0xff]  }
  0x22   :  { %7389 = vmatprep.subr.bf16.mxu1 %v8179_v41  ;;  %v8235_v41 = vld [vmem:[%s11015_s1 + $0x2c8] sm:$0xff]   ;;  %v8262_v12 = vld [vmem:[%s11015_s1 + $0x350] sm:$0xff]  }
  0x23   :  { %5101 = vmatmul.mubr.bf16.vlgmr.msra.gmra.mxu0 %v6666_v35  ;;  %v8229_v35 = vld [vmem:[%s11015_s1 + $0x298] sm:$0xff]   ;;  %v8263_v13 = vld [vmem:[%s11015_s1 + $0x3d0] sm:$0xff]  }
  0x24   :  { %5142 = vmatmul.mubr.bf16.vlgmr.msra.gmra.mxu1 %v6668_v38  ;;  %7368 = vmatpush3.bf16.msra.mxu0 %v8180_v42  ;;  %v8232_v38 = vld [vmem:[%s11015_s1 + $0x210] sm:$0xff]   ;;  %v8236_v42 = vld [vmem:[%s11015_s1 + $0x208] sm:$0xff]  }
  0x25   :  { %7390 = vmatpush3.bf16.msra.mxu1 %v8181_v43  ;;  %7369 = vmatprep.subr.bf16.mxu0 %v8182_v44  ;;  %v8237_v43 = vld [vmem:[%s11015_s1 + $0x288] sm:$0xff]   ;;  %v8238_v44 = vld [vmem:[%s11015_s1 + $0x240] sm:$0xff]  }
  0x26   :  { %7391 = vmatprep.subr.bf16.mxu1 %v8183_v45  ;;  %5182 = vmatprep.mubr.bf16.mxu0 %v6671_v11  ;;  %v8239_v45 = vld [vmem:[%s11015_s1 + $0x2c0] sm:$0xff]   ;;  %v8261_v11 = vld [vmem:[%s11015_s1 + $0x398] sm:$0xff]  }
  0x27   :  { %5223 = vmatprep.mubr.bf16.mxu1 %v6673_v15  ;;  %v8265_v15 = vld [vmem:[%s11015_s1 + $0x390] sm:$0xff]  }
  0x28   :  { %7370 = vmatpush3.bf16.msra.mxu0 %v8184_v46  ;;  %v8240_v46 = vld [vmem:[%s11015_s1 + $0x200] sm:$0xff]  }
  0x29   :  { %7392 = vmatpush3.bf16.msra.mxu1 %v8185_v47  ;;  %7371 = vmatprep.subr.bf16.mxu0 %v8186_v48  ;;  %v8241_v47 = vld [vmem:[%s11015_s1 + $0x280] sm:$0xff]  }
  0x2a   :  { %7393 = vmatprep.subr.bf16.mxu1 %v8187_v49  ;;  %v25_v48 = vld [vmem:[%s11016_s0 + $0x20] sm:$0xff] }
  0x2b   :  { %v61_v49 = vld [vmem:[%s11016_s0 + $0x140] sm:$0xff] }
  0x2c   :  { %7372 = vmatpush3.bf16.msra.mxu0 %v8188_v50  ;;  %v26_v50 = vld [vmem:[%s11016_s0 + $0x28] sm:$0xff] }
  0x2d   :  { %7394 = vmatpush3.bf16.msra.mxu1 %v8189_v51  ;;  %7373 = vmatprep.subr.bf16.mxu0 %v8190_v52  ;;  %v62_v51 = vld [vmem:[%s11016_s0 + $0x148] sm:$0xff]  ;;  %v6674_v52 = vcombine.low %v25_v48, %v61_v49 }
  0x2e   :  { %7395 = vmatprep.subr.bf16.mxu1 %v8191_v53  ;;  %v6675_v53 = vcombine.high %v25_v48, %v61_v49  ;;  %v8290_v48 = vld [vmem:[%s11015_s1 + $0x458] sm:$0xff]  }
  0x2f   :  { %v8291_v49 = vld [vmem:[%s11015_s1 + $0x4d8] sm:$0xff]  }
  0x30   :  { %7374 = vmatpush3.bf16.msra.mxu0 %v8192_v54  ;;  %v6676_v54 = vcombine.low %v26_v50, %v62_v51 }
  0x31   :  { %7396 = vmatpush3.bf16.msra.mxu1 %v8193_v55  ;;  %7375 = vmatprep.subr.bf16.mxu0 %v8194_v56  ;;  %v6677_v55 = vcombine.high %v26_v50, %v62_v51  ;;  %v8242_v56 = vld [vmem:[%s11015_s1 + $0x378] sm:$0xff]  }
  0x32   :  { %7397 = vmatprep.subr.bf16.mxu1 %v8195_v57  ;;  %v8243_v57 = vld [vmem:[%s11015_s1 + $0x3f8] sm:$0xff]  }
  0x33   :  { %v8292_v50 = vld [vmem:[%s11015_s1 + $0x418] sm:$0xff]  }
  0x34   :  { %7376 = vmatpush3.bf16.msra.mxu0 %v8196_v58  ;;  %v8244_v58 = vld [vmem:[%s11015_s1 + $0x338] sm:$0xff]  }
  0x35   :  { %7398 = vmatpush3.bf16.msra.mxu1 %v8197_v59  ;;  %7377 = vmatprep.subr.bf16.mxu0 %v8198_v60  ;;  %v8245_v59 = vld [vmem:[%s11015_s1 + $0x3b8] sm:$0xff]   ;;  %v8246_v60 = vld [vmem:[%s11015_s1 + $0x370] sm:$0xff]  }
  0x36   :  { %7399 = vmatprep.subr.bf16.mxu1 %v8199_v61  ;;  %v8247_v61 = vld [vmem:[%s11015_s1 + $0x3f0] sm:$0xff]   ;;  %v8293_v51 = vld [vmem:[%s11015_s1 + $0x498] sm:$0xff]  }
  0x38   :  { %7378 = vmatpush3.bf16.msra.mxu0 %v8200_v62  ;;  %v8248_v62 = vld [vmem:[%s11015_s1 + $0x330] sm:$0xff]  }
  0x39   :  { %7400 = vmatpush3.bf16.msra.mxu1 %v8201_v63  ;;  %7379 = vmatprep.subr.bf16.mxu0 %v8202_v0  ;;  %v8249_v63 = vld [vmem:[%s11015_s1 + $0x3b0] sm:$0xff]   ;;  %v8250_v0 = vld [vmem:[%s11015_s1 + $0x368] sm:$0xff]  }
  0x3a   :  { %7401 = vmatprep.subr.bf16.mxu1 %v8203_v1  ;;  %v8251_v1 = vld [vmem:[%s11015_s1 + $0x3e8] sm:$0xff]  }
  0x3c   :  { %7380 = vmatpush3.bf16.msra.mxu0 %v8204_v2  ;;  %v8252_v2 = vld [vmem:[%s11015_s1 + $0x328] sm:$0xff]  }
  0x3d   :  { %7402 = vmatpush3.bf16.msra.mxu1 %v8205_v3  ;;  %7381 = vmatprep.subr.bf16.mxu0 %v8206_v4  ;;  %v8253_v3 = vld [vmem:[%s11015_s1 + $0x3a8] sm:$0xff]   ;;  %v8254_v4 = vld [vmem:[%s11015_s1 + $0x360] sm:$0xff]  }
  0x3e   :  { %7403 = vmatprep.subr.bf16.mxu1 %v8207_v5  ;;  %v8255_v5 = vld [vmem:[%s11015_s1 + $0x3e0] sm:$0xff]  }
  0x40   :  { %7382 = vmatpush3.bf16.msra.mxu0 %v8208_v6  ;;  %v8256_v6 = vld [vmem:[%s11015_s1 + $0x320] sm:$0xff]  }
  0x41   :  { %7404 = vmatpush3.bf16.msra.mxu1 %v8209_v7  ;;  %7411 = vmatprep.subr.bf16.mxu0 %v8210_v16  ;;  %v8257_v7 = vld [vmem:[%s11015_s1 + $0x3a0] sm:$0xff]   ;;  %v8266_v16 = vld [vmem:[%s11015_s1 + $0x348] sm:$0xff]  }
  0x42   :  { %7433 = vmatprep.subr.bf16.mxu1 %v8211_v17  ;;  %v8267_v17 = vld [vmem:[%s11015_s1 + $0x3c8] sm:$0xff]  }
  0x43   :  { %5183 = vmatmul.mubr.bf16.vlgmr.msra.gmra.mxu0 %v6670_v10  ;;  %v8260_v10 = vld [vmem:[%s11015_s1 + $0x318] sm:$0xff]  }
  0x44   :  { %5224 = vmatmul.mubr.bf16.vlgmr.msra.gmra.mxu1 %v6672_v14  ;;  %7412 = vmatpush3.bf16.msra.mxu0 %v8212_v18  ;;  %v8264_v14 = vld [vmem:[%s11015_s1 + $0x310] sm:$0xff]   ;;  %v8268_v18 = vld [vmem:[%s11015_s1 + $0x308] sm:$0xff]  }
  0x45   :  { %7434 = vmatpush3.bf16.msra.mxu1 %v8213_v19  ;;  %7413 = vmatprep.subr.bf16.mxu0 %v8214_v20  ;;  %v8269_v19 = vld [vmem:[%s11015_s1 + $0x388] sm:$0xff]   ;;  %v8270_v20 = vld [vmem:[%s11015_s1 + $0x340] sm:$0xff]  }
  0x46   :  { %7435 = vmatprep.subr.bf16.mxu1 %v8215_v21  ;;  %5264 = vmatprep.mubr.bf16.mxu0 %v6675_v53  ;;  %v8271_v21 = vld [vmem:[%s11015_s1 + $0x3c0] sm:$0xff]   ;;  %v8295_v53 = vld [vmem:[%s11015_s1 + $0x4d0] sm:$0xff]  }
  0x47   :  { %5305 = vmatprep.mubr.bf16.mxu1 %v6677_v55  ;;  %v8297_v55 = vld [vmem:[%s11015_s1 + $0x490] sm:$0xff]  }
  0x48   :  { %7414 = vmatpush3.bf16.msra.mxu0 %v8216_v22  ;;  %v8272_v22 = vld [vmem:[%s11015_s1 + $0x300] sm:$0xff]  }
  0x49   :  { %7436 = vmatpush3.bf16.msra.mxu1 %v8217_v23  ;;  %7415 = vmatprep.subr.bf16.mxu0 %v8218_v24  ;;  %v8273_v23 = vld [vmem:[%s11015_s1 + $0x380] sm:$0xff]   ;;  %v27_v24 = vld [vmem:[%s11016_s0 + $0x30] sm:$0xff] }
  0x4a   :  { %7437 = vmatprep.subr.bf16.mxu1 %v8219_v25  ;;  %v63_v25 = vld [vmem:[%s11016_s0 + $0x150] sm:$0xff] }
  0x4c   :  { %7416 = vmatpush3.bf16.msra.mxu0 %v8220_v26  ;;  %v28_v26 = vld [vmem:[%s11016_s0 + $0x38] sm:$0xff] }
  0x4d   :  { %7438 = vmatpush3.bf16.msra.mxu1 %v8221_v27  ;;  %7417 = vmatprep.subr.bf16.mxu0 %v8222_v28  ;;  %v6678_v27 = vcombine.low %v27_v24, %v63_v25  ;;  %v6679_v28 = vcombine.high %v27_v24, %v63_v25  ;;  %v8322_v24 = vld [vmem:[%s11015_s1 + $0x558] sm:$0xff]  }
  0x4e   :  { %7439 = vmatprep.subr.bf16.mxu1 %v8223_v29  ;;  %v64_v29 = vld [vmem:[%s11016_s0 + $0x158] sm:$0xff] }
  0x4f   :  { %v8323_v25 = vld [vmem:[%s11015_s1 + $0x5d8] sm:$0xff]  }
  0x50   :  { %7418 = vmatpush3.bf16.msra.mxu0 %v8224_v30  ;;  %v6680_v30 = vcombine.low %v28_v26, %v64_v29 }
  0x51   :  { %7440 = vmatpush3.bf16.msra.mxu1 %v8225_v31  ;;  %7419 = vmatprep.subr.bf16.mxu0 %v8226_v32  ;;  %v6681_v31 = vcombine.high %v28_v26, %v64_v29  ;;  %v8274_v32 = vld [vmem:[%s11015_s1 + $0x478] sm:$0xff]   ;;  %v8327_v29 = vld [vmem:[%s11015_s1 + $0x5d0] sm:$0xff]  }
  0x52   :  { %7441 = vmatprep.subr.bf16.mxu1 %v8227_v33  ;;  %v8275_v33 = vld [vmem:[%s11015_s1 + $0x4f8] sm:$0xff]  }
  0x53   :  { %v8324_v26 = vld [vmem:[%s11015_s1 + $0x518] sm:$0xff]  }
  0x54   :  { %7420 = vmatpush3.bf16.msra.mxu0 %v8228_v34  ;;  %v8276_v34 = vld [vmem:[%s11015_s1 + $0x438] sm:$0xff]  }
  0x55   :  { %7442 = vmatpush3.bf16.msra.mxu1 %v8229_v35  ;;  %7421 = vmatprep.subr.bf16.mxu0 %v8230_v36  ;;  %v8277_v35 = vld [vmem:[%s11015_s1 + $0x4b8] sm:$0xff]   ;;  %v8278_v36 = vld [vmem:[%s11015_s1 + $0x470] sm:$0xff]  }
  0x56   :  { %7443 = vmatprep.subr.bf16.mxu1 %v8231_v37  ;;  %v8279_v37 = vld [vmem:[%s11015_s1 + $0x4f0] sm:$0xff]  }
  0x58   :  { %7422 = vmatpush3.bf16.msra.mxu0 %v8232_v38  ;;  %v8280_v38 = vld [vmem:[%s11015_s1 + $0x430] sm:$0xff]  }
  0x59   :  { %7444 = vmatpush3.bf16.msra.mxu1 %v8233_v39  ;;  %7423 = vmatprep.subr.bf16.mxu0 %v8234_v40  ;;  %v8281_v39 = vld [vmem:[%s11015_s1 + $0x4b0] sm:$0xff]   ;;  %v8282_v40 = vld [vmem:[%s11015_s1 + $0x468] sm:$0xff]  }
  0x5a   :  { %7445 = vmatprep.subr.bf16.mxu1 %v8235_v41  ;;  %v8283_v41 = vld [vmem:[%s11015_s1 + $0x4e8] sm:$0xff]  }
  0x5c   :  { %7424 = vmatpush3.bf16.msra.mxu0 %v8236_v42  ;;  %v8284_v42 = vld [vmem:[%s11015_s1 + $0x428] sm:$0xff]  }
  0x5d   :  { %7446 = vmatpush3.bf16.msra.mxu1 %v8237_v43  ;;  %7425 = vmatprep.subr.bf16.mxu0 %v8238_v44  ;;  %v8285_v43 = vld [vmem:[%s11015_s1 + $0x4a8] sm:$0xff]   ;;  %v8286_v44 = vld [vmem:[%s11015_s1 + $0x460] sm:$0xff]  }
  0x5e   :  { %7447 = vmatprep.subr.bf16.mxu1 %v8239_v45  ;;  %v8287_v45 = vld [vmem:[%s11015_s1 + $0x4e0] sm:$0xff]  }
  0x60   :  { %7426 = vmatpush3.bf16.msra.mxu0 %v8240_v46  ;;  %v8288_v46 = vld [vmem:[%s11015_s1 + $0x420] sm:$0xff]  }
  0x61   :  { %7448 = vmatpush3.bf16.msra.mxu1 %v8241_v47  ;;  %7455 = vmatprep.subr.bf16.mxu0 %v8242_v56  ;;  %v8289_v47 = vld [vmem:[%s11015_s1 + $0x4a0] sm:$0xff]   ;;  %v8298_v56 = vld [vmem:[%s11015_s1 + $0x448] sm:$0xff]  }
  0x62   :  { %7477 = vmatprep.subr.bf16.mxu1 %v8243_v57  ;;  %v8299_v57 = vld [vmem:[%s11015_s1 + $0x4c8] sm:$0xff]  }
  0x63   :  { %5265 = vmatmul.mubr.bf16.vlgmr.msra.gmra.mxu0 %v6674_v52  ;;  %v8294_v52 = vld [vmem:[%s11015_s1 + $0x450] sm:$0xff]  }
  0x64   :  { %5306 = vmatmul.mubr.bf16.vlgmr.msra.gmra.mxu1 %v6676_v54  ;;  %7456 = vmatpush3.bf16.msra.mxu0 %v8244_v58  ;;  %v8296_v54 = vld [vmem:[%s11015_s1 + $0x410] sm:$0xff]   ;;  %v8300_v58 = vld [vmem:[%s11015_s1 + $0x408] sm:$0xff]  }
  0x65   :  { %7478 = vmatpush3.bf16.msra.mxu1 %v8245_v59  ;;  %7457 = vmatprep.subr.bf16.mxu0 %v8246_v60  ;;  %v8301_v59 = vld [vmem:[%s11015_s1 + $0x488] sm:$0xff]   ;;  %v8302_v60 = vld [vmem:[%s11015_s1 + $0x440] sm:$0xff]  }
  0x66   :  { %7479 = vmatprep.subr.bf16.mxu1 %v8247_v61  ;;  %5346 = vmatprep.mubr.bf16.mxu0 %v6679_v28  ;;  %v8303_v61 = vld [vmem:[%s11015_s1 + $0x4c0] sm:$0xff]   ;;  %v8326_v28 = vld [vmem:[%s11015_s1 + $0x550] sm:$0xff]  }
  0x67   :  { %5387 = vmatprep.mubr.bf16.mxu1 %v6681_v31  ;;  %v8329_v31 = vld [vmem:[%s11015_s1 + $0x590] sm:$0xff]  }
  0x68   :  { %7458 = vmatpush3.bf16.msra.mxu0 %v8248_v62  ;;  %v8304_v62 = vld [vmem:[%s11015_s1 + $0x400] sm:$0xff]  }
  0x69   :  { %7480 = vmatpush3.bf16.msra.mxu1 %v8249_v63  ;;  %7459 = vmatprep.subr.bf16.mxu0 %v8250_v0  ;;  %v8305_v63 = vld [vmem:[%s11015_s1 + $0x480] sm:$0xff]  }
  0x6a   :  { %7481 = vmatprep.subr.bf16.mxu1 %v8251_v1  ;;  %v29_v0 = vld [vmem:[%s11016_s0 + $0x40] sm:$0xff] }
  0x6b   :  { %v65_v1 = vld [vmem:[%s11016_s0 + $0x160] sm:$0xff] }
  0x6c   :  { %7460 = vmatpush3.bf16.msra.mxu0 %v8252_v2  ;;  %v6682_v2 = vcombine.low %v29_v0, %v65_v1 }
  0x6d   :  { %7482 = vmatpush3.bf16.msra.mxu1 %v8253_v3  ;;  %7461 = vmatprep.subr.bf16.mxu0 %v8254_v4  ;;  %v6683_v3 = vcombine.high %v29_v0, %v65_v1  ;;  %v30_v4 = vld [vmem:[%s11016_s0 + $0x48] sm:$0xff]  ;;  %v8354_v0 = vld [vmem:[%s11015_s1 + $0x658] sm:$0xff]  }
  0x6e   :  { %7483 = vmatprep.subr.bf16.mxu1 %v8255_v5  ;;  %v66_v5 = vld [vmem:[%s11016_s0 + $0x168] sm:$0xff]  ;;  %v8355_v1 = vld [vmem:[%s11015_s1 + $0x6d8] sm:$0xff]  }
  0x70   :  { %7462 = vmatpush3.bf16.msra.mxu0 %v8256_v6  ;;  %v6684_v6 = vcombine.low %v30_v4, %v66_v5 }
  0x71   :  { %7484 = vmatpush3.bf16.msra.mxu1 %v8257_v7  ;;  %7463 = vmatprep.subr.bf16.mxu0 %v8258_v8  ;;  %v6685_v7 = vcombine.high %v30_v4, %v66_v5  ;;  %v8306_v8 = vld [vmem:[%s11015_s1 + $0x578] sm:$0xff]   ;;  %v8358_v4 = vld [vmem:[%s11015_s1 + $0x650] sm:$0xff]  }
  0x72   :  { %7485 = vmatprep.subr.bf16.mxu1 %v8259_v9  ;;  %v8307_v9 = vld [vmem:[%s11015_s1 + $0x5f8] sm:$0xff]   ;;  %v8359_v5 = vld [vmem:[%s11015_s1 + $0x6d0] sm:$0xff]  }
  0x74   :  { %7464 = vmatpush3.bf16.msra.mxu0 %v8260_v10  ;;  %v8308_v10 = vld [vmem:[%s11015_s1 + $0x538] sm:$0xff]  }
  0x75   :  { %7486 = vmatpush3.bf16.msra.mxu1 %v8261_v11  ;;  %7465 = vmatprep.subr.bf16.mxu0 %v8262_v12  ;;  %v8309_v11 = vld [vmem:[%s11015_s1 + $0x5b8] sm:$0xff]   ;;  %v8310_v12 = vld [vmem:[%s11015_s1 + $0x570] sm:$0xff]  }
  0x76   :  { %7487 = vmatprep.subr.bf16.mxu1 %v8263_v13  ;;  %v8311_v13 = vld [vmem:[%s11015_s1 + $0x5f0] sm:$0xff]  }
  0x78   :  { %7466 = vmatpush3.bf16.msra.mxu0 %v8264_v14  ;;  %v8312_v14 = vld [vmem:[%s11015_s1 + $0x530] sm:$0xff]  }
  0x79   :  { %7488 = vmatpush3.bf16.msra.mxu1 %v8265_v15  ;;  %7467 = vmatprep.subr.bf16.mxu0 %v8266_v16  ;;  %v8313_v15 = vld [vmem:[%s11015_s1 + $0x5b0] sm:$0xff]   ;;  %v8314_v16 = vld [vmem:[%s11015_s1 + $0x568] sm:$0xff]  }
  0x7a   :  { %7489 = vmatprep.subr.bf16.mxu1 %v8267_v17  ;;  %v8315_v17 = vld [vmem:[%s11015_s1 + $0x5e8] sm:$0xff]  }
  0x7c   :  { %7468 = vmatpush3.bf16.msra.mxu0 %v8268_v18  ;;  %v8316_v18 = vld [vmem:[%s11015_s1 + $0x528] sm:$0xff]  }
  0x7d   :  { %7490 = vmatpush3.bf16.msra.mxu1 %v8269_v19  ;;  %7469 = vmatprep.subr.bf16.mxu0 %v8270_v20  ;;  %v8317_v19 = vld [vmem:[%s11015_s1 + $0x5a8] sm:$0xff]   ;;  %v8318_v20 = vld [vmem:[%s11015_s1 + $0x560] sm:$0xff]  }
  0x7e   :  { %7491 = vmatprep.subr.bf16.mxu1 %v8271_v21  ;;  %v8319_v21 = vld [vmem:[%s11015_s1 + $0x5e0] sm:$0xff]  }
  0x80   :  { %7470 = vmatpush3.bf16.msra.mxu0 %v8272_v22  ;;  %v8320_v22 = vld [vmem:[%s11015_s1 + $0x520] sm:$0xff]  }
  0x81   :  { %7492 = vmatpush3.bf16.msra.mxu1 %v8273_v23  ;;  %7499 = vmatprep.subr.bf16.mxu0 %v8274_v32  ;;  %v8321_v23 = vld [vmem:[%s11015_s1 + $0x5a0] sm:$0xff]   ;;  %v8330_v32 = vld [vmem:[%s11015_s1 + $0x548] sm:$0xff]  }
  0x82   :  { %7521 = vmatprep.subr.bf16.mxu1 %v8275_v33  ;;  %v8331_v33 = vld [vmem:[%s11015_s1 + $0x5c8] sm:$0xff]  }
  0x83   :  { %5347 = vmatmul.mubr.bf16.vlgmr.msra.gmra.mxu0 %v6678_v27  ;;  %v8325_v27 = vld [vmem:[%s11015_s1 + $0x598] sm:$0xff]  }
  0x84   :  { %5388 = vmatmul.mubr.bf16.vlgmr.msra.gmra.mxu1 %v6680_v30  ;;  %7500 = vmatpush3.bf16.msra.mxu0 %v8276_v34  ;;  %v8328_v30 = vld [vmem:[%s11015_s1 + $0x510] sm:$0xff]   ;;  %v8332_v34 = vld [vmem:[%s11015_s1 + $0x508] sm:$0xff]  }
  0x85   :  { %7522 = vmatpush3.bf16.msra.mxu1 %v8277_v35  ;;  %7501 = vmatprep.subr.bf16.mxu0 %v8278_v36  ;;  %v8333_v35 = vld [vmem:[%s11015_s1 + $0x588] sm:$0xff]   ;;  %v8334_v36 = vld [vmem:[%s11015_s1 + $0x540] sm:$0xff]  }
  0x86   :  { %7523 = vmatprep.subr.bf16.mxu1 %v8279_v37  ;;  %5428 = vmatprep.mubr.bf16.mxu0 %v6683_v3  ;;  %v8335_v37 = vld [vmem:[%s11015_s1 + $0x5c0] sm:$0xff]   ;;  %v8357_v3 = vld [vmem:[%s11015_s1 + $0x698] sm:$0xff]  }
  0x87   :  { %5469 = vmatprep.mubr.bf16.mxu1 %v6685_v7  ;;  %v8361_v7 = vld [vmem:[%s11015_s1 + $0x690] sm:$0xff]  }
  0x88   :  { %7502 = vmatpush3.bf16.msra.mxu0 %v8280_v38  ;;  %v8336_v38 = vld [vmem:[%s11015_s1 + $0x500] sm:$0xff]  }
  0x89   :  { %7524 = vmatpush3.bf16.msra.mxu1 %v8281_v39  ;;  %7503 = vmatprep.subr.bf16.mxu0 %v8282_v40  ;;  %v8337_v39 = vld [vmem:[%s11015_s1 + $0x580] sm:$0xff]   ;;  %v31_v40 = vld [vmem:[%s11016_s0 + $0x50] sm:$0xff] }
  0x8a   :  { %7525 = vmatprep.subr.bf16.mxu1 %v8283_v41  ;;  %v67_v41 = vld [vmem:[%s11016_s0 + $0x170] sm:$0xff] }
  0x8c   :  { %7504 = vmatpush3.bf16.msra.mxu0 %v8284_v42  ;;  %v32_v42 = vld [vmem:[%s11016_s0 + $0x58] sm:$0xff] }
  0x8d   :  { %7526 = vmatpush3.bf16.msra.mxu1 %v8285_v43  ;;  %7505 = vmatprep.subr.bf16.mxu0 %v8286_v44  ;;  %v68_v43 = vld [vmem:[%s11016_s0 + $0x178] sm:$0xff]  ;;  %v6686_v44 = vcombine.low %v31_v40, %v67_v41 }
  0x8e   :  { %7527 = vmatprep.subr.bf16.mxu1 %v8287_v45  ;;  %v6687_v45 = vcombine.high %v31_v40, %v67_v41  ;;  %v6665_v40 = vld [vmem:[%s11017_s2] ss:$0 sm:$0xff] }
  0x90   :  { %7506 = vmatpush3.bf16.msra.mxu0 %v8288_v46  ;;  %v6688_v46 = vcombine.low %v32_v42, %v68_v43 }
  0x91   :  { %7528 = vmatpush3.bf16.msra.mxu1 %v8289_v47  ;;  %7507 = vmatprep.subr.bf16.mxu0 %v8290_v48  ;;  %v6689_v47 = vcombine.high %v32_v42, %v68_v43  ;;  %v8338_v48 = vld [vmem:[%s11015_s1 + $0x678] sm:$0xff]   ;;  %v8374_v42 = vld [vmem:[%s11015_s1 + $0x770] sm:$0xff]  }
  0x92   :  { %7529 = vmatprep.subr.bf16.mxu1 %v8291_v49  ;;  %v8339_v49 = vld [vmem:[%s11015_s1 + $0x6f8] sm:$0xff]  }
  0x94   :  { %7508 = vmatpush3.bf16.msra.mxu0 %v8292_v50  ;;  %v8340_v50 = vld [vmem:[%s11015_s1 + $0x638] sm:$0xff]  }
  0x95   :  { %7530 = vmatpush3.bf16.msra.mxu1 %v8293_v51  ;;  %7509 = vmatprep.subr.bf16.mxu0 %v8294_v52  ;;  %v8341_v51 = vld [vmem:[%s11015_s1 + $0x6b8] sm:$0xff]   ;;  %v8342_v52 = vld [vmem:[%s11015_s1 + $0x670] sm:$0xff]  }
  0x96   :  { %7531 = vmatprep.subr.bf16.mxu1 %v8295_v53  ;;  %v8343_v53 = vld [vmem:[%s11015_s1 + $0x6f0] sm:$0xff]  }
  0x98   :  { %7510 = vmatpush3.bf16.msra.mxu0 %v8296_v54  ;;  %v8344_v54 = vld [vmem:[%s11015_s1 + $0x630] sm:$0xff]  }
  0x99   :  { %7532 = vmatpush3.bf16.msra.mxu1 %v8297_v55  ;;  %7511 = vmatprep.subr.bf16.mxu0 %v8298_v56  ;;  %v8345_v55 = vld [vmem:[%s11015_s1 + $0x6b0] sm:$0xff]   ;;  %v8346_v56 = vld [vmem:[%s11015_s1 + $0x668] sm:$0xff]  }
  0x9a   :  { %7533 = vmatprep.subr.bf16.mxu1 %v8299_v57  ;;  %v8347_v57 = vld [vmem:[%s11015_s1 + $0x6e8] sm:$0xff]  }
  0x9c   :  { %7512 = vmatpush3.bf16.msra.mxu0 %v8300_v58  ;;  %v8348_v58 = vld [vmem:[%s11015_s1 + $0x628] sm:$0xff]  }
  0x9d   :  { %7534 = vmatpush3.bf16.msra.mxu1 %v8301_v59  ;;  %7513 = vmatprep.subr.bf16.mxu0 %v8302_v60  ;;  %v8349_v59 = vld [vmem:[%s11015_s1 + $0x6a8] sm:$0xff]   ;;  %v8350_v60 = vld [vmem:[%s11015_s1 + $0x660] sm:$0xff]  }
  0x9e   :  { %7535 = vmatprep.subr.bf16.mxu1 %v8303_v61  ;;  %v8351_v61 = vld [vmem:[%s11015_s1 + $0x6e0] sm:$0xff]  }
  0xa0   :  { %7514 = vmatpush3.bf16.msra.mxu0 %v8304_v62  ;;  %v8352_v62 = vld [vmem:[%s11015_s1 + $0x620] sm:$0xff]  }
  0xa1   :  { %7536 = vmatpush3.bf16.msra.mxu1 %v8305_v63  ;;  %7543 = vmatprep.subr.bf16.mxu0 %v8306_v8  ;;  %v8353_v63 = vld [vmem:[%s11015_s1 + $0x6a0] sm:$0xff]   ;;  %v8362_v8 = vld [vmem:[%s11015_s1 + $0x648] sm:$0xff]  }
  0xa2   :  { %7565 = vmatprep.subr.bf16.mxu1 %v8307_v9  ;;  %v8363_v9 = vld [vmem:[%s11015_s1 + $0x6c8] sm:$0xff]  }
  0xa3   :  { %5429 = vmatmul.mubr.bf16.vlgmr.msra.gmra.mxu0 %v6682_v2  ;;  %v8356_v2 = vld [vmem:[%s11015_s1 + $0x618] sm:$0xff]  }
  0xa4   :  { %5470 = vmatmul.mubr.bf16.vlgmr.msra.gmra.mxu1 %v6684_v6  ;;  %7544 = vmatpush3.bf16.msra.mxu0 %v8308_v10  ;;  %v8360_v6 = vld [vmem:[%s11015_s1 + $0x610] sm:$0xff]   ;;  %v8364_v10 = vld [vmem:[%s11015_s1 + $0x608] sm:$0xff]  }
  0xa5   :  { %7566 = vmatpush3.bf16.msra.mxu1 %v8309_v11  ;;  %7545 = vmatprep.subr.bf16.mxu0 %v8310_v12  ;;  %v8365_v11 = vld [vmem:[%s11015_s1 + $0x688] sm:$0xff]   ;;  %v8366_v12 = vld [vmem:[%s11015_s1 + $0x640] sm:$0xff]  }
  0xa6   :  { %7567 = vmatprep.subr.bf16.mxu1 %v8311_v13  ;;  %5510 = vmatprep.mubr.bf16.mxu0 %v6687_v45 }
  0xa7   :  { %5551 = vmatprep.mubr.bf16.mxu1 %v6689_v47 }
  0xa8   :  { %7546 = vmatpush3.bf16.msra.mxu0 %v8312_v14  ;;  %v8367_v14 = vld [vmem:[%s11015_s1 + $0x6c0] sm:$0xff]  }
  0xa9   :  { %7568 = vmatpush3.bf16.msra.mxu1 %v8313_v15  ;;  %7547 = vmatprep.subr.bf16.mxu0 %v8314_v16  ;;  %v8368_v16 = vld [vmem:[%s11015_s1 + $0x600] sm:$0xff]  }
  0xaa   :  { %7569 = vmatprep.subr.bf16.mxu1 %v8315_v17 }
  0xac   :  { %7548 = vmatpush3.bf16.msra.mxu0 %v8316_v18  ;;  %v8369_v18 = vld [vmem:[%s11015_s1 + $0x680] sm:$0xff]  }
  0xad   :  { %7570 = vmatpush3.bf16.msra.mxu1 %v8317_v19  ;;  %7549 = vmatprep.subr.bf16.mxu0 %v8318_v20 }
  0xae   :  { %7571 = vmatprep.subr.bf16.mxu1 %v8319_v21  ;;  %v33_v21 = vld [vmem:[%s11016_s0 + $0x60] sm:$0xff] }
  0xb0   :  { %7550 = vmatpush3.bf16.msra.mxu0 %v8320_v22  ;;  %v69_v22 = vld [vmem:[%s11016_s0 + $0x180] sm:$0xff] }
  0xb1   :  { %7572 = vmatpush3.bf16.msra.mxu1 %v8321_v23  ;;  %7551 = vmatprep.subr.bf16.mxu0 %v8322_v24  ;;  %v34_v23 = vld [vmem:[%s11016_s0 + $0x68] sm:$0xff] }
  0xb2   :  { %7573 = vmatprep.subr.bf16.mxu1 %v8323_v25 }
  0xb4   :  { %7552 = vmatpush3.bf16.msra.mxu0 %v8324_v26  ;;  %v6690_v26 = vcombine.low %v33_v21, %v69_v22 }
  0xb5   :  { %7574 = vmatpush3.bf16.msra.mxu1 %v8325_v27  ;;  %7553 = vmatprep.subr.bf16.mxu0 %v8326_v28  ;;  %v6691_v27 = vcombine.high %v33_v21, %v69_v22  ;;  %v70_v28 = vld [vmem:[%s11016_s0 + $0x188] sm:$0xff] }
  0xb6   :  { %7575 = vmatprep.subr.bf16.mxu1 %v8327_v29 }
  0xb8   :  { %7554 = vmatpush3.bf16.msra.mxu0 %v8328_v30  ;;  %v6692_v30 = vcombine.low %v34_v23, %v70_v28 }
  0xb9   :  { %7576 = vmatpush3.bf16.msra.mxu1 %v8329_v31  ;;  %7555 = vmatprep.subr.bf16.mxu0 %v8330_v32  ;;  %v6693_v31 = vcombine.high %v34_v23, %v70_v28  ;;  %v8370_v32 = vld [vmem:[%s11015_s1 + $0x778] sm:$0xff]  }
  0xba   :  { %7577 = vmatprep.subr.bf16.mxu1 %v8331_v33  ;;  %v8403_v28 = vld [vmem:[%s11015_s1 + $0x8f8] sm:$0xff]  }
  0xbc   :  { %7556 = vmatpush3.bf16.msra.mxu0 %v8332_v34  ;;  %v8371_v34 = vld [vmem:[%s11015_s1 + $0x7f8] sm:$0xff]  }
  0xbd   :  { %7578 = vmatpush3.bf16.msra.mxu1 %v8333_v35  ;;  %7557 = vmatprep.subr.bf16.mxu0 %v8334_v36 }
  0xbe   :  { %7579 = vmatprep.subr.bf16.mxu1 %v8335_v37  ;;  %v8372_v37 = vld [vmem:[%s11015_s1 + $0x738] sm:$0xff]  }
  0xc0   :  { %7558 = vmatpush3.bf16.msra.mxu0 %v8336_v38 }
  0xc1   :  { %7580 = vmatpush3.bf16.msra.mxu1 %v8337_v39  ;;  %7587 = vmatprep.subr.bf16.mxu0 %v8338_v48  ;;  %v8373_v39 = vld [vmem:[%s11015_s1 + $0x7b8] sm:$0xff]   ;;  %v8377_v48 = vld [vmem:[%s11015_s1 + $0x7b0] sm:$0xff]  }
  0xc2   :  { %7609 = vmatprep.subr.bf16.mxu1 %v8339_v49  ;;  %v8378_v49 = vld [vmem:[%s11015_s1 + $0x768] sm:$0xff]  }
  0xc3   :  { %5511 = vmatmul.mubr.bf16.vlgmr.msra.gmra.mxu0 %v6686_v44  ;;  %v8375_v44 = vld [vmem:[%s11015_s1 + $0x7f0] sm:$0xff]  }
  0xc4   :  { %5552 = vmatmul.mubr.bf16.vlgmr.msra.gmra.mxu1 %v6688_v46  ;;  %7588 = vmatpush3.bf16.msra.mxu0 %v8340_v50  ;;  %v8376_v46 = vld [vmem:[%s11015_s1 + $0x730] sm:$0xff]   ;;  %v8379_v50 = vld [vmem:[%s11015_s1 + $0x7e8] sm:$0xff]  }
  0xc5   :  { %7610 = vmatpush3.bf16.msra.mxu1 %v8341_v51  ;;  %7589 = vmatprep.subr.bf16.mxu0 %v8342_v52  ;;  %v8380_v51 = vld [vmem:[%s11015_s1 + $0x728] sm:$0xff]  }
  0xc6   :  { %7611 = vmatprep.subr.bf16.mxu1 %v8343_v53  ;;  %5592 = vmatprep.mubr.bf16.mxu0 %v6691_v27  ;;  %v8381_v52 = vld [vmem:[%s11015_s1 + $0x7a8] sm:$0xff]   ;;  %v8382_v53 = vld [vmem:[%s11015_s1 + $0x760] sm:$0xff]  }
  0xc7   :  { %5633 = vmatprep.mubr.bf16.mxu1 %v6693_v31 }
  0xc8   :  { %7590 = vmatpush3.bf16.msra.mxu0 %v8344_v54  ;;  %v8383_v54 = vld [vmem:[%s11015_s1 + $0x7e0] sm:$0xff]  }
  0xc9   :  { %7612 = vmatpush3.bf16.msra.mxu1 %v8345_v55  ;;  %7591 = vmatprep.subr.bf16.mxu0 %v8346_v56  ;;  %v8384_v55 = vld [vmem:[%s11015_s1 + $0x720] sm:$0xff]  }
  0xca   :  { %7613 = vmatprep.subr.bf16.mxu1 %v8347_v57  ;;  %v8385_v56 = vld [vmem:[%s11015_s1 + $0x7a0] sm:$0xff]   ;;  %v8386_v57 = vld [vmem:[%s11015_s1 + $0x758] sm:$0xff]  }
  0xcc   :  { %7592 = vmatpush3.bf16.msra.mxu0 %v8348_v58  ;;  %v8387_v58 = vld [vmem:[%s11015_s1 + $0x7d8] sm:$0xff]  }
  0xcd   :  { %7614 = vmatpush3.bf16.msra.mxu1 %v8349_v59  ;;  %7593 = vmatprep.subr.bf16.mxu0 %v8350_v60  ;;  %v8388_v59 = vld [vmem:[%s11015_s1 + $0x718] sm:$0xff]  }
  0xce   :  { %7615 = vmatprep.subr.bf16.mxu1 %v8351_v61  ;;  %v8389_v60 = vld [vmem:[%s11015_s1 + $0x798] sm:$0xff]   ;;  %v8390_v61 = vld [vmem:[%s11015_s1 + $0x750] sm:$0xff]  }
  0xd0   :  { %7594 = vmatpush3.bf16.msra.mxu0 %v8352_v62  ;;  %v8391_v62 = vld [vmem:[%s11015_s1 + $0x7d0] sm:$0xff]  }
  0xd1   :  { %7616 = vmatpush3.bf16.msra.mxu1 %v8353_v63  ;;  %7595 = vmatprep.subr.bf16.mxu0 %v8354_v0  ;;  %v8392_v63 = vld [vmem:[%s11015_s1 + $0x710] sm:$0xff]  }
  0xd2   :  { %7617 = vmatprep.subr.bf16.mxu1 %v8355_v1  ;;  %v8393_v0 = vld [vmem:[%s11015_s1 + $0x790] sm:$0xff]   ;;  %v8394_v1 = vld [vmem:[%s11015_s1 + $0x748] sm:$0xff]  }
  0xd4   :  { %7596 = vmatpush3.bf16.msra.mxu0 %v8356_v2  ;;  %v8395_v2 = vld [vmem:[%s11015_s1 + $0x7c8] sm:$0xff]  }
  0xd5   :  { %7618 = vmatpush3.bf16.msra.mxu1 %v8357_v3  ;;  %7597 = vmatprep.subr.bf16.mxu0 %v8358_v4  ;;  %v8396_v3 = vld [vmem:[%s11015_s1 + $0x708] sm:$0xff]  }
  0xd6   :  { %7619 = vmatprep.subr.bf16.mxu1 %v8359_v5  ;;  %v8397_v4 = vld [vmem:[%s11015_s1 + $0x788] sm:$0xff]  }
  0xd8   :  { %7598 = vmatpush3.bf16.msra.mxu0 %v8360_v6  ;;  %v8398_v6 = vld [vmem:[%s11015_s1 + $0x740] sm:$0xff]  }
  0xd9   :  { %7620 = vmatpush3.bf16.msra.mxu1 %v8361_v7  ;;  %7599 = vmatprep.subr.bf16.mxu0 %v8362_v8  ;;  %v8399_v8 = vld [vmem:[%s11015_s1 + $0x7c0] sm:$0xff]  }
  0xda   :  { %7621 = vmatprep.subr.bf16.mxu1 %v8363_v9 }
  0xdc   :  { %7600 = vmatpush3.bf16.msra.mxu0 %v8364_v10  ;;  %v8400_v10 = vld [vmem:[%s11015_s1 + $0x700] sm:$0xff]  }
  0xdd   :  { %7622 = vmatpush3.bf16.msra.mxu1 %v8365_v11  ;;  %7601 = vmatprep.subr.bf16.mxu0 %v8366_v12 }
  0xde   :  { %7623 = vmatprep.subr.bf16.mxu1 %v8367_v14  ;;  %v35_v14 = vld [vmem:[%s11016_s0 + $0x70] sm:$0xff] }
  0xe0   :  { %7602 = vmatpush3.bf16.msra.mxu0 %v8368_v16 }
  0xe1   :  { %7624 = vmatpush3.bf16.msra.mxu1 %v8369_v18  ;;  %7631 = vmatprep.subr.bf16.mxu0 %v8370_v32  ;;  %v36_v18 = vld [vmem:[%s11016_s0 + $0x78] sm:$0xff] }
  0xe2   :  { %7653 = vmatprep.subr.bf16.mxu1 %v8371_v34  ;;  %v8404_v32 = vld [vmem:[%s11015_s1 + $0x838] sm:$0xff]  }
  0xe3   :  { %v7339_v13 = vpop.f32.mrf.mxu0  ;;  %5593 = vmatmul.mubr.bf16.vlgmr.msra.gmra.mxu0 %v6690_v26  ;;  %v8402_v26 = vld [vmem:[%s11015_s1 + $0x878] sm:$0xff]  }
  0xe4   :  { %v7361_v15 = vpop.f32.mrf.mxu1  ;;  %5634 = vmatmul.mubr.bf16.vlgmr.msra.gmra.mxu1 %v6692_v30  ;;  %7632 = vmatpush3.bf16.msra.mxu0 %v8372_v37  ;;  %v8405_v34 = vld [vmem:[%s11015_s1 + $0x8b8] sm:$0xff]   ;;  %v8407_v37 = vld [vmem:[%s11015_s1 + $0x8f0] sm:$0xff]  }
  0xe5   :  { %v7340_v17 = vpop.f32.mrf.mxu0  ;;  %7654 = vmatpush3.bf16.msra.mxu1 %v8373_v39  ;;  %7633 = vmatprep.subr.bf16.mxu0 %v8374_v42  ;;  %v8408_v39 = vld [vmem:[%s11015_s1 + $0x830] sm:$0xff]   ;;  %v8411_v42 = vld [vmem:[%s11015_s1 + $0x8e8] sm:$0xff]  }
  0xe6   :  { %v7341_v19 = vadd.f32 %v7340_v17, %v7339_v13  ;;  %v7362_v20 = vpop.f32.mrf.mxu1  ;;  %7655 = vmatprep.subr.bf16.mxu1 %v8375_v44  ;;  %v8401_v13 = vld [vmem:[%s11015_s1 + $0x780] sm:$0xff]   ;;  %v71_v17 = vld [vmem:[%s11016_s0 + $0x190] sm:$0xff]  ;;  %v8413_v44 = vld [vmem:[%s11015_s1 + $0x8a8] sm:$0xff]  }
  0xe7   :  { %v7363_v24 = vadd.f32 %v7362_v20, %v7361_v15  ;;  %v7342_v25 = vpop.f32.mrf.mxu0  ;;  %v6694_v22 = vcombine.low %v35_v14, %v71_v17  ;;  %v6695_v23 = vcombine.high %v35_v14, %v71_v17  ;;  %v8435_v17 = vld [vmem:[%s11015_s1 + $0x9f8] sm:$0xff]  }
  0xe8   :  { %v7364_v29 = vpop.f32.mrf.mxu1  ;;  %v5103_v41 = vadd.f32 %v7341_v19, %v6665_v40  ;;  %7634 = vmatpush3.bf16.msra.mxu0 %v8376_v46  ;;  %v72_v19 = vld [vmem:[%s11016_s0 + $0x198] sm:$0xff]  ;;  %v8415_v46 = vld [vmem:[%s11015_s1 + $0x8e0] sm:$0xff]  }
  0xe9   :  { %v7343_v33 = vpop.f32.mrf.mxu0  ;;  %7656 = vmatpush3.bf16.msra.mxu1 %v8377_v48  ;;  %7635 = vmatprep.subr.bf16.mxu0 %v8378_v49  ;;  %v8417_v48 = vld [vmem:[%s11015_s1 + $0x8a0] sm:$0xff]   ;;  %v8418_v49 = vld [vmem:[%s11015_s1 + $0x858] sm:$0xff]  }
  0xea   :  { %v7344_v35 = vadd.f32 %v7343_v33, %v7342_v25  ;;  %v7365_v36 = vpop.f32.mrf.mxu1  ;;  %v9539_v45 = vadd.f32 %v7363_v24, %v5103_v41  ;;  %7657 = vmatprep.subr.bf16.mxu1 %v8379_v50  ;;  %v6696_v24 = vcombine.low %v36_v18, %v72_v19  ;;  %v6697_v25 = vcombine.high %v36_v18, %v72_v19  ;;  %v8410_v41 = vld [vmem:[%s11015_s1 + $0x868] sm:$0xff]   ;;  %v8419_v50 = vld [vmem:[%s11015_s1 + $0x8d8] sm:$0xff]  }
  0xeb   :  { %v7366_v38 = vadd.f32 %v7365_v36, %v7364_v29  ;;  %5674 = vmatprep.mubr.bf16.mxu0 %v6695_v23  ;;  %v8406_v36 = vld [vmem:[%s11015_s1 + $0x870] sm:$0xff]   ;;  %v8436_v19 = vld [vmem:[%s11015_s1 + $0x938] sm:$0xff]  }
  0xec   :  { %v5106_v43 = vadd.f32 %v7344_v35, %v6665_v40  ;;  %7636 = vmatpush3.bf16.msra.mxu0 %v8380_v51  ;;  %5715 = vmatprep.mubr.bf16.mxu1 %v6697_v25  ;;  %v8409_v40 = vld [vmem:[%s11015_s1 + $0x8b0] sm:$0xff]   ;;  %v8420_v51 = vld [vmem:[%s11015_s1 + $0x818] sm:$0xff]   ;;  %v8442_v25 = vld [vmem:[%s11015_s1 + $0x968] sm:$0xff]  }
  0xed   :  { %7658 = vmatpush3.bf16.msra.mxu1 %v8381_v52  ;;  %7637 = vmatprep.subr.bf16.mxu0 %v8382_v53  ;;  %v8421_v52 = vld [vmem:[%s11015_s1 + $0x898] sm:$0xff]   ;;  %v8422_v53 = vld [vmem:[%s11015_s1 + $0x850] sm:$0xff]  }
  0xee   :  { %v9544_v47 = vadd.f32 %v7366_v38, %v5106_v43  ;;  %7659 = vmatprep.subr.bf16.mxu1 %v8383_v54  ;;  %v8412_v43 = vld [vmem:[%s11015_s1 + $0x828] sm:$0xff]   ;;  %v8423_v54 = vld [vmem:[%s11015_s1 + $0x8d0] sm:$0xff]  }
  0xef   :  { %v8440_v23 = vld [vmem:[%s11015_s1 + $0x930] sm:$0xff]  }
  0xf0   :  { %7638 = vmatpush3.bf16.msra.mxu0 %v8384_v55  ;;  %v8424_v55 = vld [vmem:[%s11015_s1 + $0x810] sm:$0xff]  }
  0xf1   :  { %7660 = vmatpush3.bf16.msra.mxu1 %v8385_v56  ;;  %7639 = vmatprep.subr.bf16.mxu0 %v8386_v57  ;;  %v8425_v56 = vld [vmem:[%s11015_s1 + $0x890] sm:$0xff]   ;;  %v8426_v57 = vld [vmem:[%s11015_s1 + $0x848] sm:$0xff]  }
  0xf2   :  { %7661 = vmatprep.subr.bf16.mxu1 %v8387_v58  ;;  %v8427_v58 = vld [vmem:[%s11015_s1 + $0x8c8] sm:$0xff]  }
  0xf4   :  { %7640 = vmatpush3.bf16.msra.mxu0 %v8388_v59  ;;  %v8428_v59 = vld [vmem:[%s11015_s1 + $0x808] sm:$0xff]  }
  0xf5   :  { %7662 = vmatpush3.bf16.msra.mxu1 %v8389_v60  ;;  %7641 = vmatprep.subr.bf16.mxu0 %v8390_v61  ;;  %v8429_v60 = vld [vmem:[%s11015_s1 + $0x888] sm:$0xff]   ;;  %v8430_v61 = vld [vmem:[%s11015_s1 + $0x840] sm:$0xff]  }
  0xf6   :  { %7663 = vmatprep.subr.bf16.mxu1 %v8391_v62 }
  0xf8   :  { %7642 = vmatpush3.bf16.msra.mxu0 %v8392_v63 }
  0xf9   :  { %7664 = vmatpush3.bf16.msra.mxu1 %v8393_v0  ;;  %7643 = vmatprep.subr.bf16.mxu0 %v8394_v1  ;;  %v8431_v0 = vld [vmem:[%s11015_s1 + $0x8c0] sm:$0xff]  }
  0xfa   :  { %7665 = vmatprep.subr.bf16.mxu1 %v8395_v2  ;;  %v8432_v1 = vld [vmem:[%s11015_s1 + $0x800] sm:$0xff]  }
  0xfc   :  { %7644 = vmatpush3.bf16.msra.mxu0 %v8396_v3 }
  0xfd   :  { %7666 = vmatpush3.bf16.msra.mxu1 %v8397_v4  ;;  %7645 = vmatprep.subr.bf16.mxu0 %v8398_v6  ;;  %v8433_v4 = vld [vmem:[%s11015_s1 + $0x880] sm:$0xff]  }
  0xfe   :  { %7667 = vmatprep.subr.bf16.mxu1 %v8399_v8  ;;  %v73_v8 = vld [vmem:[%s11016_s0 + $0x1a0] sm:$0xff] }
 0x100   :  { %7646 = vmatpush3.bf16.msra.mxu0 %v8400_v10 }
 0x101   :  { %7668 = vmatpush3.bf16.msra.mxu1 %v8401_v13  ;;  %7675 = vmatprep.subr.bf16.mxu0 %v8402_v26  ;;  %v8443_v26 = vld [vmem:[%s11015_s1 + $0x9e8] sm:$0xff]  }
 0x102   :  { %7697 = vmatprep.subr.bf16.mxu1 %v8403_v28  ;;  %v8445_v28 = vld [vmem:[%s11015_s1 + $0x9a8] sm:$0xff]  }
 0x103   :  { %v7383_v5 = vpop.f32.mrf.mxu0  ;;  %5675 = vmatmul.mubr.bf16.vlgmr.msra.gmra.mxu0 %v6694_v22  ;;  %v8439_v22 = vld [vmem:[%s11015_s1 + $0x9f0] sm:$0xff]  }
 0x104   :  { %v7405_v7 = vpop.f32.mrf.mxu1  ;;  %5716 = vmatmul.mubr.bf16.vlgmr.msra.gmra.mxu1 %v6696_v24  ;;  %7676 = vmatpush3.bf16.msra.mxu0 %v8404_v32  ;;  %v8441_v24 = vld [vmem:[%s11015_s1 + $0x9b0] sm:$0xff]   ;;  %v8449_v32 = vld [vmem:[%s11015_s1 + $0x9a0] sm:$0xff]  }
 0x105   :  { %v7384_v9 = vpop.f32.mrf.mxu0  ;;  %7698 = vmatpush3.bf16.msra.mxu1 %v8405_v34  ;;  %7677 = vmatprep.subr.bf16.mxu0 %v8406_v36  ;;  %v8451_v34 = vld [vmem:[%s11015_s1 + $0x9d8] sm:$0xff]  }
 0x106   :  { %v7385_v11 = vadd.f32 %v7384_v9, %v7383_v5  ;;  %v7406_v12 = vpop.f32.mrf.mxu1  ;;  %7699 = vmatprep.subr.bf16.mxu1 %v8407_v37  ;;  %v38_v9 = vld [vmem:[%s11016_s0 + $0x88] sm:$0xff]  ;;  %v8453_v36 = vld [vmem:[%s11015_s1 + $0x998] sm:$0xff]   ;;  %v8454_v37 = vld [vmem:[%s11015_s1 + $0x950] sm:$0xff]  }
 0x107   :  { %v7407_v15 = vadd.f32 %v7406_v12, %v7405_v7  ;;  %v7386_v16 = vpop.f32.mrf.mxu0  ;;  %v37_v7 = vld [vmem:[%s11016_s0 + $0x80] sm:$0xff]  ;;  %v74_v12 = vld [vmem:[%s11016_s0 + $0x1a8] sm:$0xff] }
 0x108   :  { %v5185_v20 = vadd.f32 %v7385_v11, %v9539_v45  ;;  %v7408_v21 = vpop.f32.mrf.mxu1  ;;  %7678 = vmatpush3.bf16.msra.mxu0 %v8408_v39  ;;  %v8414_v45 = vld [vmem:[%s11015_s1 + $0x860] sm:$0xff]   ;;  %v6698_v10 = vcombine.low %v37_v7, %v73_v8  ;;  %v6699_v11 = vcombine.high %v37_v7, %v73_v8  ;;  %v6700_v14 = vcombine.low %v38_v9, %v74_v12  ;;  %v8455_v39 = vld [vmem:[%s11015_s1 + $0x9d0] sm:$0xff]  }
 0x109   :  { %v7387_v27 = vpop.f32.mrf.mxu0  ;;  %7700 = vmatpush3.bf16.msra.mxu1 %v8409_v40  ;;  %7679 = vmatprep.subr.bf16.mxu0 %v8410_v41  ;;  %v8456_v40 = vld [vmem:[%s11015_s1 + $0x910] sm:$0xff]   ;;  %v8479_v7 = vld [vmem:[%s11015_s1 + $0xae0] sm:$0xff]  }
 0x10a   :  { %v9640_v29 = vadd.f32 %v7407_v15, %v5185_v20  ;;  %v7388_v30 = vadd.f32 %v7387_v27, %v7386_v16  ;;  %v7409_v31 = vpop.f32.mrf.mxu1  ;;  %7701 = vmatprep.subr.bf16.mxu1 %v8411_v42  ;;  %v6701_v15 = vcombine.high %v38_v9, %v74_v12  ;;  %v8434_v16 = vld [vmem:[%s11015_s1 + $0x978] sm:$0xff]   ;;  %5756 = vmatprep.mubr.bf16.mxu0 %v6699_v11  ;;  %v8444_v27 = vld [vmem:[%s11015_s1 + $0x928] sm:$0xff]   ;;  %v8457_v41 = vld [vmem:[%s11015_s1 + $0x990] sm:$0xff]  }
 0x10b   :  { %v7410_v33 = vadd.f32 %v7409_v31, %v7408_v21  ;;  %v8437_v20 = vld [vmem:[%s11015_s1 + $0x9b8] sm:$0xff]   ;;  %v8438_v21 = vld [vmem:[%s11015_s1 + $0x970] sm:$0xff]   ;;  %v8448_v31 = vld [vmem:[%s11015_s1 + $0x920] sm:$0xff]  }
 0x10c   :  { %v5188_v35 = vadd.f32 %v7388_v30, %v9544_v47  ;;  %7680 = vmatpush3.bf16.msra.mxu0 %v8412_v43  ;;  %v8416_v47 = vld [vmem:[%s11015_s1 + $0x820] sm:$0xff]   ;;  %5797 = vmatprep.mubr.bf16.mxu1 %v6701_v15  ;;  %v8458_v42 = vld [vmem:[%s11015_s1 + $0x948] sm:$0xff]   ;;  %v8483_v11 = vld [vmem:[%s11015_s1 + $0xad8] sm:$0xff]  }
 0x10d   :  { %7702 = vmatpush3.bf16.msra.mxu1 %v8413_v44  ;;  %7681 = vmatprep.subr.bf16.mxu0 %v8414_v45  ;;  %v8447_v30 = vld [vmem:[%s11015_s1 + $0x9e0] sm:$0xff]   ;;  %v8459_v43 = vld [vmem:[%s11015_s1 + $0x9c8] sm:$0xff]   ;;  %v8484_v12 = vld [vmem:[%s11015_s1 + $0xa18] sm:$0xff]  }
 0x10e   :  { %v9655_v38 = vadd.f32 %v7410_v33, %v5188_v35  ;;  %7703 = vmatprep.subr.bf16.mxu1 %v8415_v46  ;;  %v8450_v33 = vld [vmem:[%s11015_s1 + $0x958] sm:$0xff]   ;;  %v8460_v44 = vld [vmem:[%s11015_s1 + $0x908] sm:$0xff]   ;;  %v8462_v46 = vld [vmem:[%s11015_s1 + $0x940] sm:$0xff]  }
 0x10f   :  { %v8452_v35 = vld [vmem:[%s11015_s1 + $0x918] sm:$0xff]   ;;  %v8461_v45 = vld [vmem:[%s11015_s1 + $0x988] sm:$0xff]   ;;  %v8480_v8 = vld [vmem:[%s11015_s1 + $0xa20] sm:$0xff]  }
 0x110   :  { %7682 = vmatpush3.bf16.msra.mxu0 %v8416_v47  ;;  %v8463_v47 = vld [vmem:[%s11015_s1 + $0x9c0] sm:$0xff]   ;;  %v8487_v15 = vld [vmem:[%s11015_s1 + $0xad0] sm:$0xff]  }
 0x111   :  { %7704 = vmatpush3.bf16.msra.mxu1 %v8417_v48  ;;  %7683 = vmatprep.subr.bf16.mxu0 %v8418_v49  ;;  %v8464_v48 = vld [vmem:[%s11015_s1 + $0x900] sm:$0xff]  }
 0x112   :  { %7705 = vmatprep.subr.bf16.mxu1 %v8419_v50  ;;  %v8465_v49 = vld [vmem:[%s11015_s1 + $0x980] sm:$0xff]   ;;  %v39_v50 = vld [vmem:[%s11016_s0 + $0x90] sm:$0xff] }
 0x113   :  { %v8481_v9 = vld [vmem:[%s11015_s1 + $0xaa0] sm:$0xff]  }
 0x114   :  { %7684 = vmatpush3.bf16.msra.mxu0 %v8420_v51  ;;  %v75_v51 = vld [vmem:[%s11016_s0 + $0x1b0] sm:$0xff] }
 0x115   :  { %7706 = vmatpush3.bf16.msra.mxu1 %v8421_v52  ;;  %7685 = vmatprep.subr.bf16.mxu0 %v8422_v53  ;;  %v6702_v52 = vcombine.low %v39_v50, %v75_v51  ;;  %v6703_v53 = vcombine.high %v39_v50, %v75_v51  ;;  %v8512_v50 = vld [vmem:[%s11015_s1 + $0xb20] sm:$0xff]  }
 0x116   :  { %7707 = vmatprep.subr.bf16.mxu1 %v8423_v54  ;;  %v40_v54 = vld [vmem:[%s11016_s0 + $0x98] sm:$0xff]  ;;  %v8513_v51 = vld [vmem:[%s11015_s1 + $0xba0] sm:$0xff]  }
 0x118   :  { %7686 = vmatpush3.bf16.msra.mxu0 %v8424_v55  ;;  %v76_v55 = vld [vmem:[%s11016_s0 + $0x1b8] sm:$0xff] }
 0x119   :  { %7708 = vmatpush3.bf16.msra.mxu1 %v8425_v56  ;;  %7687 = vmatprep.subr.bf16.mxu0 %v8426_v57  ;;  %v6704_v56 = vcombine.low %v40_v54, %v76_v55  ;;  %v6705_v57 = vcombine.high %v40_v54, %v76_v55  ;;  %v8516_v54 = vld [vmem:[%s11015_s1 + $0xb18] sm:$0xff]  }
 0x11a   :  { %7709 = vmatprep.subr.bf16.mxu1 %v8427_v58  ;;  %v8466_v58 = vld [vmem:[%s11015_s1 + $0xa78] sm:$0xff]  }
 0x11b   :  { %v8517_v55 = vld [vmem:[%s11015_s1 + $0xb98] sm:$0xff]  }
 0x11c   :  { %7688 = vmatpush3.bf16.msra.mxu0 %v8428_v59  ;;  %v8467_v59 = vld [vmem:[%s11015_s1 + $0xaf8] sm:$0xff]  }
 0x11d   :  { %7710 = vmatpush3.bf16.msra.mxu1 %v8429_v60  ;;  %7689 = vmatprep.subr.bf16.mxu0 %v8430_v61  ;;  %v8468_v60 = vld [vmem:[%s11015_s1 + $0xa38] sm:$0xff]  }
 0x11e   :  { %7711 = vmatprep.subr.bf16.mxu1 %v8431_v0  ;;  %v8469_v61 = vld [vmem:[%s11015_s1 + $0xab8] sm:$0xff]   ;;  %v8472_v0 = vld [vmem:[%s11015_s1 + $0xa30] sm:$0xff]  }
 0x120   :  { %7690 = vmatpush3.bf16.msra.mxu0 %v8432_v1  ;;  %v8473_v1 = vld [vmem:[%s11015_s1 + $0xab0] sm:$0xff]  }
 0x121   :  { %7712 = vmatpush3.bf16.msra.mxu1 %v8433_v4  ;;  %7719 = vmatprep.subr.bf16.mxu0 %v8434_v16  ;;  %v8476_v4 = vld [vmem:[%s11015_s1 + $0xa28] sm:$0xff]   ;;  %v8488_v16 = vld [vmem:[%s11015_s1 + $0xa10] sm:$0xff]  }
 0x122   :  { %7741 = vmatprep.subr.bf16.mxu1 %v8435_v17  ;;  %v8489_v17 = vld [vmem:[%s11015_s1 + $0xa90] sm:$0xff]  }
 0x123   :  { %v7427_v62 = vpop.f32.mrf.mxu0  ;;  %5757 = vmatmul.mubr.bf16.vlgmr.msra.gmra.mxu0 %v6698_v10  ;;  %v8482_v10 = vld [vmem:[%s11015_s1 + $0xa58] sm:$0xff]  }
 0x124   :  { %v7449_v63 = vpop.f32.mrf.mxu1  ;;  %5798 = vmatmul.mubr.bf16.vlgmr.msra.gmra.mxu1 %v6700_v14  ;;  %7720 = vmatpush3.bf16.msra.mxu0 %v8436_v19  ;;  %v8486_v14 = vld [vmem:[%s11015_s1 + $0xa50] sm:$0xff]   ;;  %v8490_v19 = vld [vmem:[%s11015_s1 + $0xa48] sm:$0xff]  }
 0x125   :  { %v7428_v2 = vpop.f32.mrf.mxu0  ;;  %7742 = vmatpush3.bf16.msra.mxu1 %v8437_v20  ;;  %7721 = vmatprep.subr.bf16.mxu0 %v8438_v21  ;;  %v8491_v20 = vld [vmem:[%s11015_s1 + $0xac8] sm:$0xff]  }
 0x126   :  { %v7450_v3 = vpop.f32.mrf.mxu1  ;;  %v7429_v5 = vadd.f32 %v7428_v2, %v7427_v62  ;;  %7743 = vmatprep.subr.bf16.mxu1 %v8439_v22  ;;  %5838 = vmatprep.mubr.bf16.mxu0 %v6703_v53  ;;  %v8470_v62 = vld [vmem:[%s11015_s1 + $0xa70] sm:$0xff]   ;;  %v8474_v2 = vld [vmem:[%s11015_s1 + $0xa68] sm:$0xff]   ;;  %v8515_v53 = vld [vmem:[%s11015_s1 + $0xbd8] sm:$0xff]  }
 0x127   :  { %v7451_v6 = vadd.f32 %v7450_v3, %v7449_v63  ;;  %5879 = vmatprep.mubr.bf16.mxu1 %v6705_v57  ;;  %v8471_v63 = vld [vmem:[%s11015_s1 + $0xaf0] sm:$0xff]   ;;  %v8475_v3 = vld [vmem:[%s11015_s1 + $0xae8] sm:$0xff]  }
 0x128   :  { %v5267_v13 = vadd.f32 %v7429_v5, %v9640_v29  ;;  %7722 = vmatpush3.bf16.msra.mxu0 %v8440_v23  ;;  %v8446_v29 = vld [vmem:[%s11015_s1 + $0x960] sm:$0xff]   ;;  %v8477_v5 = vld [vmem:[%s11015_s1 + $0xaa8] sm:$0xff]   ;;  %v8519_v57 = vld [vmem:[%s11015_s1 + $0xbd0] sm:$0xff]  }
 0x129   :  { %7744 = vmatpush3.bf16.msra.mxu1 %v8441_v24  ;;  %7723 = vmatprep.subr.bf16.mxu0 %v8442_v25  ;;  %v8492_v21 = vld [vmem:[%s11015_s1 + $0xa08] sm:$0xff]   ;;  %v8494_v23 = vld [vmem:[%s11015_s1 + $0xa40] sm:$0xff]  }
 0x12a   :  { %v9754_v18 = vadd.f32 %v7451_v6, %v5267_v13  ;;  %7745 = vmatprep.subr.bf16.mxu1 %v8443_v26  ;;  %v8478_v6 = vld [vmem:[%s11015_s1 + $0xa60] sm:$0xff]   ;;  %v8485_v13 = vld [vmem:[%s11015_s1 + $0xa98] sm:$0xff]   ;;  %v8493_v22 = vld [vmem:[%s11015_s1 + $0xa88] sm:$0xff]  }
 0x12b   :  { %v8495_v24 = vld [vmem:[%s11015_s1 + $0xac0] sm:$0xff]  }
 0x12c   :  { %7724 = vmatpush3.bf16.msra.mxu0 %v8444_v27  ;;  %v8496_v25 = vld [vmem:[%s11015_s1 + $0xa00] sm:$0xff]  }
 0x12d   :  { %7746 = vmatpush3.bf16.msra.mxu1 %v8445_v28  ;;  %7725 = vmatprep.subr.bf16.mxu0 %v8446_v29  ;;  %v8497_v26 = vld [vmem:[%s11015_s1 + $0xa80] sm:$0xff]   ;;  %v42_v29 = vld [vmem:[%s11016_s0 + $0xa8] sm:$0xff] }
 0x12e   :  { %7747 = vmatprep.subr.bf16.mxu1 %v8447_v30  ;;  %v41_v27 = vld [vmem:[%s11016_s0 + $0xa0] sm:$0xff]  ;;  %v78_v30 = vld [vmem:[%s11016_s0 + $0x1c8] sm:$0xff] }
 0x12f   :  { %v77_v28 = vld [vmem:[%s11016_s0 + $0x1c0] sm:$0xff] }
 0x130   :  { %7726 = vmatpush3.bf16.msra.mxu0 %v8448_v31  ;;  %v6706_v31 = vcombine.low %v41_v27, %v77_v28 }
 0x131   :  { %7748 = vmatpush3.bf16.msra.mxu1 %v8449_v32  ;;  %7727 = vmatprep.subr.bf16.mxu0 %v8450_v33  ;;  %v6707_v32 = vcombine.high %v41_v27, %v77_v28  ;;  %v6708_v33 = vcombine.low %v42_v29, %v78_v30  ;;  %v8544_v27 = vld [vmem:[%s11015_s1 + $0xc20] sm:$0xff]  }
 0x132   :  { %7749 = vmatprep.subr.bf16.mxu1 %v8451_v34  ;;  %v6709_v34 = vcombine.high %v42_v29, %v78_v30  ;;  %v8545_v28 = vld [vmem:[%s11015_s1 + $0xca0] sm:$0xff]   ;;  %v8546_v29 = vld [vmem:[%s11015_s1 + $0xc58] sm:$0xff]  }
 0x133   :  { %v8547_v30 = vld [vmem:[%s11015_s1 + $0xcd8] sm:$0xff]  }
 0x134   :  { %7728 = vmatpush3.bf16.msra.mxu0 %v8452_v35  ;;  %v8498_v35 = vld [vmem:[%s11015_s1 + $0xb78] sm:$0xff]  }
 0x135   :  { %7750 = vmatpush3.bf16.msra.mxu1 %v8453_v36  ;;  %7729 = vmatprep.subr.bf16.mxu0 %v8454_v37  ;;  %v8499_v36 = vld [vmem:[%s11015_s1 + $0xbf8] sm:$0xff]  }
 0x136   :  { %7751 = vmatprep.subr.bf16.mxu1 %v8455_v39  ;;  %v8500_v37 = vld [vmem:[%s11015_s1 + $0xb38] sm:$0xff]  }
 0x137   :  { %v8501_v39 = vld [vmem:[%s11015_s1 + $0xbb8] sm:$0xff]  }
 0x138   :  { %7730 = vmatpush3.bf16.msra.mxu0 %v8456_v40  ;;  %v8502_v40 = vld [vmem:[%s11015_s1 + $0xb70] sm:$0xff]  }
 0x139   :  { %7752 = vmatpush3.bf16.msra.mxu1 %v8457_v41  ;;  %7731 = vmatprep.subr.bf16.mxu0 %v8458_v42  ;;  %v8503_v41 = vld [vmem:[%s11015_s1 + $0xbf0] sm:$0xff]  }
 0x13a   :  { %7753 = vmatprep.subr.bf16.mxu1 %v8459_v43  ;;  %v8504_v42 = vld [vmem:[%s11015_s1 + $0xb30] sm:$0xff]  }
 0x13b   :  { %v8505_v43 = vld [vmem:[%s11015_s1 + $0xbb0] sm:$0xff]  }
 0x13c   :  { %7732 = vmatpush3.bf16.msra.mxu0 %v8460_v44  ;;  %v8506_v44 = vld [vmem:[%s11015_s1 + $0xb68] sm:$0xff]  }
 0x13d   :  { %7754 = vmatpush3.bf16.msra.mxu1 %v8461_v45  ;;  %7733 = vmatprep.subr.bf16.mxu0 %v8462_v46  ;;  %v8507_v45 = vld [vmem:[%s11015_s1 + $0xbe8] sm:$0xff]  }
 0x13e   :  { %7755 = vmatprep.subr.bf16.mxu1 %v8463_v47  ;;  %v8508_v46 = vld [vmem:[%s11015_s1 + $0xb28] sm:$0xff]  }
 0x13f   :  { %v8509_v47 = vld [vmem:[%s11015_s1 + $0xba8] sm:$0xff]  }
 0x140   :  { %7734 = vmatpush3.bf16.msra.mxu0 %v8464_v48  ;;  %v8510_v48 = vld [vmem:[%s11015_s1 + $0xb60] sm:$0xff]  }
 0x141   :  { %7756 = vmatpush3.bf16.msra.mxu1 %v8465_v49  ;;  %7763 = vmatprep.subr.bf16.mxu0 %v8466_v58  ;;  %v8511_v49 = vld [vmem:[%s11015_s1 + $0xbe0] sm:$0xff]   ;;  %v8520_v58 = vld [vmem:[%s11015_s1 + $0xb10] sm:$0xff]  }
 0x142   :  { %7785 = vmatprep.subr.bf16.mxu1 %v8467_v59  ;;  %v8521_v59 = vld [vmem:[%s11015_s1 + $0xb90] sm:$0xff]  }
 0x143   :  { %5839 = vmatmul.mubr.bf16.vlgmr.msra.gmra.mxu0 %v6702_v52  ;;  %v8514_v52 = vld [vmem:[%s11015_s1 + $0xb58] sm:$0xff]  }
 0x144   :  { %5880 = vmatmul.mubr.bf16.vlgmr.msra.gmra.mxu1 %v6704_v56  ;;  %7764 = vmatpush3.bf16.msra.mxu0 %v8468_v60  ;;  %v8518_v56 = vld [vmem:[%s11015_s1 + $0xb50] sm:$0xff]   ;;  %v8522_v60 = vld [vmem:[%s11015_s1 + $0xb48] sm:$0xff]  }
 0x145   :  { %7786 = vmatpush3.bf16.msra.mxu1 %v8469_v61  ;;  %7765 = vmatprep.subr.bf16.mxu0 %v8470_v62  ;;  %v8523_v61 = vld [vmem:[%s11015_s1 + $0xbc8] sm:$0xff]  }
 0x146   :  { %7787 = vmatprep.subr.bf16.mxu1 %v8471_v63  ;;  %5920 = vmatprep.mubr.bf16.mxu0 %v6707_v32  ;;  %v8524_v62 = vld [vmem:[%s11015_s1 + $0xb08] sm:$0xff]   ;;  %v8549_v32 = vld [vmem:[%s11015_s1 + $0xc98] sm:$0xff]  }
 0x147   :  { %5961 = vmatprep.mubr.bf16.mxu1 %v6709_v34  ;;  %v8525_v63 = vld [vmem:[%s11015_s1 + $0xb88] sm:$0xff]   ;;  %v8551_v34 = vld [vmem:[%s11015_s1 + $0xcd0] sm:$0xff]  }
 0x148   :  { %7766 = vmatpush3.bf16.msra.mxu0 %v8472_v0  ;;  %v8526_v0 = vld [vmem:[%s11015_s1 + $0xb40] sm:$0xff]  }
 0x149   :  { %7788 = vmatpush3.bf16.msra.mxu1 %v8473_v1  ;;  %7767 = vmatprep.subr.bf16.mxu0 %v8474_v2  ;;  %v8527_v1 = vld [vmem:[%s11015_s1 + $0xbc0] sm:$0xff]  }
 0x14a   :  { %7789 = vmatprep.subr.bf16.mxu1 %v8475_v3  ;;  %v8528_v2 = vld [vmem:[%s11015_s1 + $0xb00] sm:$0xff]  }
 0x14b   :  { %v8529_v3 = vld [vmem:[%s11015_s1 + $0xb80] sm:$0xff]  }
 0x14c   :  { %7768 = vmatpush3.bf16.msra.mxu0 %v8476_v4  ;;  %v43_v4 = vld [vmem:[%s11016_s0 + $0xb0] sm:$0xff] }
 0x14d   :  { %7790 = vmatpush3.bf16.msra.mxu1 %v8477_v5  ;;  %7769 = vmatprep.subr.bf16.mxu0 %v8478_v6  ;;  %v79_v5 = vld [vmem:[%s11016_s0 + $0x1d0] sm:$0xff]  ;;  %v44_v6 = vld [vmem:[%s11016_s0 + $0xb8] sm:$0xff] }
 0x14e   :  { %7791 = vmatprep.subr.bf16.mxu1 %v8479_v7  ;;  %v6710_v7 = vcombine.low %v43_v4, %v79_v5 }
 0x150   :  { %7770 = vmatpush3.bf16.msra.mxu0 %v8480_v8  ;;  %v6711_v8 = vcombine.high %v43_v4, %v79_v5  ;;  %v8576_v4 = vld [vmem:[%s11015_s1 + $0xd20] sm:$0xff]  }
 0x151   :  { %7792 = vmatpush3.bf16.msra.mxu1 %v8481_v9  ;;  %7771 = vmatprep.subr.bf16.mxu0 %v8482_v10  ;;  %v80_v9 = vld [vmem:[%s11016_s0 + $0x1d8] sm:$0xff]  ;;  %v8577_v5 = vld [vmem:[%s11015_s1 + $0xda0] sm:$0xff]  }
 0x152   :  { %7793 = vmatprep.subr.bf16.mxu1 %v8483_v11  ;;  %v6712_v10 = vcombine.low %v44_v6, %v80_v9  ;;  %v6713_v11 = vcombine.high %v44_v6, %v80_v9  ;;  %v8578_v6 = vld [vmem:[%s11015_s1 + $0xd58] sm:$0xff]  }
 0x153   :  { %v8581_v9 = vld [vmem:[%s11015_s1 + $0xd98] sm:$0xff]  }
 0x154   :  { %7772 = vmatpush3.bf16.msra.mxu0 %v8484_v12  ;;  %v8530_v12 = vld [vmem:[%s11015_s1 + $0xc78] sm:$0xff]  }
 0x155   :  { %7794 = vmatpush3.bf16.msra.mxu1 %v8485_v13  ;;  %7773 = vmatprep.subr.bf16.mxu0 %v8486_v14  ;;  %v8531_v13 = vld [vmem:[%s11015_s1 + $0xcf8] sm:$0xff]  }
 0x156   :  { %7795 = vmatprep.subr.bf16.mxu1 %v8487_v15  ;;  %v8532_v14 = vld [vmem:[%s11015_s1 + $0xc38] sm:$0xff]  }
 0x157   :  { %v8533_v15 = vld [vmem:[%s11015_s1 + $0xcb8] sm:$0xff]  }
 0x158   :  { %7774 = vmatpush3.bf16.msra.mxu0 %v8488_v16  ;;  %v8534_v16 = vld [vmem:[%s11015_s1 + $0xc70] sm:$0xff]  }
 0x159   :  { %7796 = vmatpush3.bf16.msra.mxu1 %v8489_v17  ;;  %7775 = vmatprep.subr.bf16.mxu0 %v8490_v19  ;;  %v8535_v17 = vld [vmem:[%s11015_s1 + $0xcf0] sm:$0xff]  }
 0x15a   :  { %7797 = vmatprep.subr.bf16.mxu1 %v8491_v20  ;;  %v8536_v19 = vld [vmem:[%s11015_s1 + $0xc30] sm:$0xff]  }
 0x15b   :  { %v8537_v20 = vld [vmem:[%s11015_s1 + $0xcb0] sm:$0xff]  }
 0x15c   :  { %7776 = vmatpush3.bf16.msra.mxu0 %v8492_v21  ;;  %v8538_v21 = vld [vmem:[%s11015_s1 + $0xc68] sm:$0xff]  }
 0x15d   :  { %7798 = vmatpush3.bf16.msra.mxu1 %v8493_v22  ;;  %7777 = vmatprep.subr.bf16.mxu0 %v8494_v23  ;;  %v8539_v22 = vld [vmem:[%s11015_s1 + $0xce8] sm:$0xff]  }
 0x15e   :  { %7799 = vmatprep.subr.bf16.mxu1 %v8495_v24  ;;  %v8540_v23 = vld [vmem:[%s11015_s1 + $0xc28] sm:$0xff]  }
 0x15f   :  { %v8541_v24 = vld [vmem:[%s11015_s1 + $0xca8] sm:$0xff]  }
 0x160   :  { %7778 = vmatpush3.bf16.msra.mxu0 %v8496_v25  ;;  %v8542_v25 = vld [vmem:[%s11015_s1 + $0xc60] sm:$0xff]  }
 0x161   :  { %7800 = vmatpush3.bf16.msra.mxu1 %v8497_v26  ;;  %7807 = vmatprep.subr.bf16.mxu0 %v8498_v35  ;;  %v8543_v26 = vld [vmem:[%s11015_s1 + $0xce0] sm:$0xff]   ;;  %v8552_v35 = vld [vmem:[%s11015_s1 + $0xc10] sm:$0xff]  }
 0x162   :  { %7829 = vmatprep.subr.bf16.mxu1 %v8499_v36  ;;  %v8553_v36 = vld [vmem:[%s11015_s1 + $0xc90] sm:$0xff]  }
 0x163   :  { %5921 = vmatmul.mubr.bf16.vlgmr.msra.gmra.mxu0 %v6706_v31  ;;  %v8548_v31 = vld [vmem:[%s11015_s1 + $0xc18] sm:$0xff]  }
 0x164   :  { %5962 = vmatmul.mubr.bf16.vlgmr.msra.gmra.mxu1 %v6708_v33  ;;  %7808 = vmatpush3.bf16.msra.mxu0 %v8500_v37  ;;  %v8550_v33 = vld [vmem:[%s11015_s1 + $0xc50] sm:$0xff]   ;;  %v8554_v37 = vld [vmem:[%s11015_s1 + $0xc48] sm:$0xff]  }
 0x165   :  { %7830 = vmatpush3.bf16.msra.mxu1 %v8501_v39  ;;  %7809 = vmatprep.subr.bf16.mxu0 %v8502_v40  ;;  %v8555_v39 = vld [vmem:[%s11015_s1 + $0xcc8] sm:$0xff]  }
 0x166   :  { %7831 = vmatprep.subr.bf16.mxu1 %v8503_v41  ;;  %6002 = vmatprep.mubr.bf16.mxu0 %v6711_v8  ;;  %v8556_v40 = vld [vmem:[%s11015_s1 + $0xc08] sm:$0xff]   ;;  %v8580_v8 = vld [vmem:[%s11015_s1 + $0xd18] sm:$0xff]  }
 0x167   :  { %6043 = vmatprep.mubr.bf16.mxu1 %v6713_v11  ;;  %v8557_v41 = vld [vmem:[%s11015_s1 + $0xc88] sm:$0xff]   ;;  %v8583_v11 = vld [vmem:[%s11015_s1 + $0xdd0] sm:$0xff]  }
 0x168   :  { %7810 = vmatpush3.bf16.msra.mxu0 %v8504_v42  ;;  %v8558_v42 = vld [vmem:[%s11015_s1 + $0xc40] sm:$0xff]  }
 0x169   :  { %7832 = vmatpush3.bf16.msra.mxu1 %v8505_v43  ;;  %7811 = vmatprep.subr.bf16.mxu0 %v8506_v44  ;;  %v8559_v43 = vld [vmem:[%s11015_s1 + $0xcc0] sm:$0xff]  }
 0x16a   :  { %7833 = vmatprep.subr.bf16.mxu1 %v8507_v45  ;;  %v8560_v44 = vld [vmem:[%s11015_s1 + $0xc00] sm:$0xff]  }
 0x16b   :  { %v8561_v45 = vld [vmem:[%s11015_s1 + $0xc80] sm:$0xff]  }
 0x16c   :  { %7812 = vmatpush3.bf16.msra.mxu0 %v8508_v46  ;;  %v45_v46 = vld [vmem:[%s11016_s0 + $0xc0] sm:$0xff] }
 0x16d   :  { %7834 = vmatpush3.bf16.msra.mxu1 %v8509_v47  ;;  %7813 = vmatprep.subr.bf16.mxu0 %v8510_v48  ;;  %v81_v47 = vld [vmem:[%s11016_s0 + $0x1e0] sm:$0xff] }
 0x16e   :  { %7835 = vmatprep.subr.bf16.mxu1 %v8511_v49  ;;  %v6714_v48 = vcombine.low %v45_v46, %v81_v47  ;;  %v6715_v49 = vcombine.high %v45_v46, %v81_v47  ;;  %v8608_v46 = vld [vmem:[%s11015_s1 + $0xe20] sm:$0xff]  }
 0x16f   :  { %v8609_v47 = vld [vmem:[%s11015_s1 + $0xea0] sm:$0xff]  }
 0x170   :  { %7814 = vmatpush3.bf16.msra.mxu0 %v8512_v50  ;;  %v46_v50 = vld [vmem:[%s11016_s0 + $0xc8] sm:$0xff] }
 0x171   :  { %7836 = vmatpush3.bf16.msra.mxu1 %v8513_v51  ;;  %7815 = vmatprep.subr.bf16.mxu0 %v8514_v52  ;;  %v82_v51 = vld [vmem:[%s11016_s0 + $0x1e8] sm:$0xff] }
 0x172   :  { %7837 = vmatprep.subr.bf16.mxu1 %v8515_v53  ;;  %v6716_v52 = vcombine.low %v46_v50, %v82_v51  ;;  %v6717_v53 = vcombine.high %v46_v50, %v82_v51  ;;  %v8612_v50 = vld [vmem:[%s11015_s1 + $0xe18] sm:$0xff]  }
 0x173   :  { %v8613_v51 = vld [vmem:[%s11015_s1 + $0xe98] sm:$0xff]  }
 0x174   :  { %7816 = vmatpush3.bf16.msra.mxu0 %v8516_v54  ;;  %v8562_v54 = vld [vmem:[%s11015_s1 + $0xd78] sm:$0xff]  }
 0x175   :  { %7838 = vmatpush3.bf16.msra.mxu1 %v8517_v55  ;;  %7817 = vmatprep.subr.bf16.mxu0 %v8518_v56  ;;  %v8563_v55 = vld [vmem:[%s11015_s1 + $0xdf8] sm:$0xff]  }
 0x176   :  { %7839 = vmatprep.subr.bf16.mxu1 %v8519_v57  ;;  %v8564_v56 = vld [vmem:[%s11015_s1 + $0xd38] sm:$0xff]  }
 0x177   :  { %v8565_v57 = vld [vmem:[%s11015_s1 + $0xdb8] sm:$0xff]  }
 0x178   :  { %7818 = vmatpush3.bf16.msra.mxu0 %v8520_v58  ;;  %v8566_v58 = vld [vmem:[%s11015_s1 + $0xd70] sm:$0xff]  }
 0x179   :  { %7840 = vmatpush3.bf16.msra.mxu1 %v8521_v59  ;;  %7819 = vmatprep.subr.bf16.mxu0 %v8522_v60  ;;  %v8567_v59 = vld [vmem:[%s11015_s1 + $0xdf0] sm:$0xff]  }
 0x17a   :  { %7841 = vmatprep.subr.bf16.mxu1 %v8523_v61  ;;  %v8568_v60 = vld [vmem:[%s11015_s1 + $0xd30] sm:$0xff]  }
 0x17b   :  { %v8569_v61 = vld [vmem:[%s11015_s1 + $0xdb0] sm:$0xff]  }
 0x17c   :  { %7820 = vmatpush3.bf16.msra.mxu0 %v8524_v62  ;;  %v8570_v62 = vld [vmem:[%s11015_s1 + $0xd68] sm:$0xff]  }
 0x17d   :  { %7842 = vmatpush3.bf16.msra.mxu1 %v8525_v63  ;;  %7821 = vmatprep.subr.bf16.mxu0 %v8526_v0  ;;  %v8571_v63 = vld [vmem:[%s11015_s1 + $0xde8] sm:$0xff]  }
 0x17e   :  { %7843 = vmatprep.subr.bf16.mxu1 %v8527_v1  ;;  %v8572_v0 = vld [vmem:[%s11015_s1 + $0xd28] sm:$0xff]  }
 0x17f   :  { %v8573_v1 = vld [vmem:[%s11015_s1 + $0xda8] sm:$0xff]  }
 0x180   :  { %7822 = vmatpush3.bf16.msra.mxu0 %v8528_v2  ;;  %v8574_v2 = vld [vmem:[%s11015_s1 + $0xd60] sm:$0xff]  }
 0x181   :  { %7844 = vmatpush3.bf16.msra.mxu1 %v8529_v3  ;;  %7851 = vmatprep.subr.bf16.mxu0 %v8530_v12  ;;  %v8575_v3 = vld [vmem:[%s11015_s1 + $0xde0] sm:$0xff]   ;;  %v8584_v12 = vld [vmem:[%s11015_s1 + $0xd10] sm:$0xff]  }
 0x182   :  { %7873 = vmatprep.subr.bf16.mxu1 %v8531_v13  ;;  %v8585_v13 = vld [vmem:[%s11015_s1 + $0xd90] sm:$0xff]  }
 0x183   :  { %6003 = vmatmul.mubr.bf16.vlgmr.msra.gmra.mxu0 %v6710_v7  ;;  %v8579_v7 = vld [vmem:[%s11015_s1 + $0xdd8] sm:$0xff]  }
 0x184   :  { %6044 = vmatmul.mubr.bf16.vlgmr.msra.gmra.mxu1 %v6712_v10  ;;  %7852 = vmatpush3.bf16.msra.mxu0 %v8532_v14  ;;  %v8582_v10 = vld [vmem:[%s11015_s1 + $0xd50] sm:$0xff]   ;;  %v8586_v14 = vld [vmem:[%s11015_s1 + $0xd48] sm:$0xff]  }
 0x185   :  { %7874 = vmatpush3.bf16.msra.mxu1 %v8533_v15  ;;  %7853 = vmatprep.subr.bf16.mxu0 %v8534_v16  ;;  %v8587_v15 = vld [vmem:[%s11015_s1 + $0xdc8] sm:$0xff]  }
 0x186   :  { %7875 = vmatprep.subr.bf16.mxu1 %v8535_v17  ;;  %6084 = vmatprep.mubr.bf16.mxu0 %v6715_v49  ;;  %v8588_v16 = vld [vmem:[%s11015_s1 + $0xd08] sm:$0xff]   ;;  %v8611_v49 = vld [vmem:[%s11015_s1 + $0xed8] sm:$0xff]  }
 0x187   :  { %6125 = vmatprep.mubr.bf16.mxu1 %v6717_v53  ;;  %v8589_v17 = vld [vmem:[%s11015_s1 + $0xd88] sm:$0xff]   ;;  %v8615_v53 = vld [vmem:[%s11015_s1 + $0xed0] sm:$0xff]  }
 0x188   :  { %7854 = vmatpush3.bf16.msra.mxu0 %v8536_v19  ;;  %v8590_v19 = vld [vmem:[%s11015_s1 + $0xd40] sm:$0xff]  }
 0x189   :  { %7876 = vmatpush3.bf16.msra.mxu1 %v8537_v20  ;;  %7855 = vmatprep.subr.bf16.mxu0 %v8538_v21  ;;  %v8591_v20 = vld [vmem:[%s11015_s1 + $0xdc0] sm:$0xff]  }
 0x18a   :  { %7877 = vmatprep.subr.bf16.mxu1 %v8539_v22  ;;  %v8592_v21 = vld [vmem:[%s11015_s1 + $0xd00] sm:$0xff]  }
 0x18b   :  { %v8593_v22 = vld [vmem:[%s11015_s1 + $0xd80] sm:$0xff]  }
 0x18c   :  { %7856 = vmatpush3.bf16.msra.mxu0 %v8540_v23  ;;  %v47_v23 = vld [vmem:[%s11016_s0 + $0xd0] sm:$0xff] }
 0x18d   :  { %7878 = vmatpush3.bf16.msra.mxu1 %v8541_v24  ;;  %7857 = vmatprep.subr.bf16.mxu0 %v8542_v25  ;;  %v83_v24 = vld [vmem:[%s11016_s0 + $0x1f0] sm:$0xff]  ;;  %v48_v25 = vld [vmem:[%s11016_s0 + $0xd8] sm:$0xff] }
 0x18e   :  { %7879 = vmatprep.subr.bf16.mxu1 %v8543_v26  ;;  %v84_v26 = vld [vmem:[%s11016_s0 + $0x1f8] sm:$0xff] }
 0x190   :  { %7858 = vmatpush3.bf16.msra.mxu0 %v8544_v27  ;;  %v6718_v27 = vcombine.low %v47_v23, %v83_v24 }
 0x191   :  { %7880 = vmatpush3.bf16.msra.mxu1 %v8545_v28  ;;  %7859 = vmatprep.subr.bf16.mxu0 %v8546_v29  ;;  %v6719_v28 = vcombine.high %v47_v23, %v83_v24  ;;  %v6720_v29 = vcombine.low %v48_v25, %v84_v26  ;;  %v8640_v23 = vld [vmem:[%s11015_s1 + $0xf20] sm:$0xff]  }
 0x192   :  { %7881 = vmatprep.subr.bf16.mxu1 %v8547_v30  ;;  %v6721_v30 = vcombine.high %v48_v25, %v84_v26  ;;  %v8641_v24 = vld [vmem:[%s11015_s1 + $0xfa0] sm:$0xff]   ;;  %v8642_v25 = vld [vmem:[%s11015_s1 + $0xf58] sm:$0xff]  }
 0x193   :  { %v8643_v26 = vld [vmem:[%s11015_s1 + $0xfd8] sm:$0xff]  }
 0x194   :  { %7860 = vmatpush3.bf16.msra.mxu0 %v8548_v31  ;;  %v8594_v31 = vld [vmem:[%s11015_s1 + $0xe78] sm:$0xff]  }
 0x195   :  { %7882 = vmatpush3.bf16.msra.mxu1 %v8549_v32  ;;  %7861 = vmatprep.subr.bf16.mxu0 %v8550_v33  ;;  %v8595_v32 = vld [vmem:[%s11015_s1 + $0xef8] sm:$0xff]  }
 0x196   :  { %7883 = vmatprep.subr.bf16.mxu1 %v8551_v34  ;;  %v8596_v33 = vld [vmem:[%s11015_s1 + $0xe38] sm:$0xff]  }
 0x197   :  { %v8597_v34 = vld [vmem:[%s11015_s1 + $0xeb8] sm:$0xff]  }
 0x198   :  { %7862 = vmatpush3.bf16.msra.mxu0 %v8552_v35  ;;  %v8598_v35 = vld [vmem:[%s11015_s1 + $0xe70] sm:$0xff]  }
 0x199   :  { %7884 = vmatpush3.bf16.msra.mxu1 %v8553_v36  ;;  %7863 = vmatprep.subr.bf16.mxu0 %v8554_v37  ;;  %v8599_v36 = vld [vmem:[%s11015_s1 + $0xef0] sm:$0xff]  }
 0x19a   :  { %7885 = vmatprep.subr.bf16.mxu1 %v8555_v39  ;;  %v8600_v37 = vld [vmem:[%s11015_s1 + $0xe30] sm:$0xff]  }
 0x19b   :  { %v8601_v39 = vld [vmem:[%s11015_s1 + $0xeb0] sm:$0xff]  }
 0x19c   :  { %7864 = vmatpush3.bf16.msra.mxu0 %v8556_v40  ;;  %v8602_v40 = vld [vmem:[%s11015_s1 + $0xe68] sm:$0xff]  }
 0x19d   :  { %7886 = vmatpush3.bf16.msra.mxu1 %v8557_v41  ;;  %7865 = vmatprep.subr.bf16.mxu0 %v8558_v42  ;;  %v8603_v41 = vld [vmem:[%s11015_s1 + $0xee8] sm:$0xff]  }
 0x19e   :  { %7887 = vmatprep.subr.bf16.mxu1 %v8559_v43  ;;  %v8604_v42 = vld [vmem:[%s11015_s1 + $0xe28] sm:$0xff]  }
 0x19f   :  { %v8605_v43 = vld [vmem:[%s11015_s1 + $0xea8] sm:$0xff]  }
 0x1a0   :  { %7866 = vmatpush3.bf16.msra.mxu0 %v8560_v44  ;;  %v8606_v44 = vld [vmem:[%s11015_s1 + $0xe60] sm:$0xff]  }
 0x1a1   :  { %7888 = vmatpush3.bf16.msra.mxu1 %v8561_v45  ;;  %7895 = vmatprep.subr.bf16.mxu0 %v8562_v54  ;;  %v8607_v45 = vld [vmem:[%s11015_s1 + $0xee0] sm:$0xff]   ;;  %v8616_v54 = vld [vmem:[%s11015_s1 + $0xe10] sm:$0xff]  }
 0x1a2   :  { %7917 = vmatprep.subr.bf16.mxu1 %v8563_v55  ;;  %v8617_v55 = vld [vmem:[%s11015_s1 + $0xe90] sm:$0xff]  }
 0x1a3   :  { %6085 = vmatmul.mubr.bf16.vlgmr.msra.gmra.mxu0 %v6714_v48  ;;  %v8610_v48 = vld [vmem:[%s11015_s1 + $0xe58] sm:$0xff]  }
 0x1a4   :  { %6126 = vmatmul.mubr.bf16.vlgmr.msra.gmra.mxu1 %v6716_v52  ;;  %7896 = vmatpush3.bf16.msra.mxu0 %v8564_v56  ;;  %v8614_v52 = vld [vmem:[%s11015_s1 + $0xe50] sm:$0xff]   ;;  %v8618_v56 = vld [vmem:[%s11015_s1 + $0xe48] sm:$0xff]  }
 0x1a5   :  { %7918 = vmatpush3.bf16.msra.mxu1 %v8565_v57  ;;  %7897 = vmatprep.subr.bf16.mxu0 %v8566_v58  ;;  %v8619_v57 = vld [vmem:[%s11015_s1 + $0xec8] sm:$0xff]  }
 0x1a6   :  { %7919 = vmatprep.subr.bf16.mxu1 %v8567_v59  ;;  %6166 = vmatprep.mubr.bf16.mxu0 %v6719_v28  ;;  %v8620_v58 = vld [vmem:[%s11015_s1 + $0xe08] sm:$0xff]   ;;  %v8645_v28 = vld [vmem:[%s11015_s1 + $0xf98] sm:$0xff]  }
 0x1a7   :  { %6207 = vmatprep.mubr.bf16.mxu1 %v6721_v30  ;;  %v8621_v59 = vld [vmem:[%s11015_s1 + $0xe88] sm:$0xff]   ;;  %v8647_v30 = vld [vmem:[%s11015_s1 + $0xfd0] sm:$0xff]  }
 0x1a8   :  { %7898 = vmatpush3.bf16.msra.mxu0 %v8568_v60  ;;  %v8622_v60 = vld [vmem:[%s11015_s1 + $0xe40] sm:$0xff]  }
 0x1a9   :  { %7920 = vmatpush3.bf16.msra.mxu1 %v8569_v61  ;;  %7899 = vmatprep.subr.bf16.mxu0 %v8570_v62  ;;  %v8623_v61 = vld [vmem:[%s11015_s1 + $0xec0] sm:$0xff]  }
 0x1aa   :  { %7921 = vmatprep.subr.bf16.mxu1 %v8571_v63  ;;  %v8624_v62 = vld [vmem:[%s11015_s1 + $0xe00] sm:$0xff]  }
 0x1ab   :  { %v8625_v63 = vld [vmem:[%s11015_s1 + $0xe80] sm:$0xff]  }
 0x1ac   :  { %7900 = vmatpush3.bf16.msra.mxu0 %v8572_v0  ;;  %v49_v0 = vld [vmem:[%s11016_s0 + $0xe0] sm:$0xff] }
 0x1ad   :  { %7922 = vmatpush3.bf16.msra.mxu1 %v8573_v1  ;;  %7901 = vmatprep.subr.bf16.mxu0 %v8574_v2  ;;  %v85_v1 = vld [vmem:[%s11016_s0 + $0x200] sm:$0xff]  ;;  %v50_v2 = vld [vmem:[%s11016_s0 + $0xe8] sm:$0xff] }
 0x1ae   :  { %7923 = vmatprep.subr.bf16.mxu1 %v8575_v3  ;;  %v6722_v3 = vcombine.low %v49_v0, %v85_v1 }
 0x1b0   :  { %7902 = vmatpush3.bf16.msra.mxu0 %v8576_v4  ;;  %v6723_v4 = vcombine.high %v49_v0, %v85_v1  ;;  %v8672_v0 = vld [vmem:[%s11015_s1 + $0x1020] sm:$0xff]  }
 0x1b1   :  { %7924 = vmatpush3.bf16.msra.mxu1 %v8577_v5  ;;  %7903 = vmatprep.subr.bf16.mxu0 %v8578_v6  ;;  %v86_v5 = vld [vmem:[%s11016_s0 + $0x208] sm:$0xff]  ;;  %v8673_v1 = vld [vmem:[%s11015_s1 + $0x10a0] sm:$0xff]  }
 0x1b2   :  { %7925 = vmatprep.subr.bf16.mxu1 %v8579_v7  ;;  %v6724_v6 = vcombine.low %v50_v2, %v86_v5  ;;  %v6725_v7 = vcombine.high %v50_v2, %v86_v5  ;;  %v8674_v2 = vld [vmem:[%s11015_s1 + $0x1058] sm:$0xff]  }
 0x1b3   :  { %v8677_v5 = vld [vmem:[%s11015_s1 + $0x1098] sm:$0xff]  }
 0x1b4   :  { %7904 = vmatpush3.bf16.msra.mxu0 %v8580_v8  ;;  %v8626_v8 = vld [vmem:[%s11015_s1 + $0xf78] sm:$0xff]  }
 0x1b5   :  { %7926 = vmatpush3.bf16.msra.mxu1 %v8581_v9  ;;  %7905 = vmatprep.subr.bf16.mxu0 %v8582_v10  ;;  %v8627_v9 = vld [vmem:[%s11015_s1 + $0xff8] sm:$0xff]  }
 0x1b6   :  { %7927 = vmatprep.subr.bf16.mxu1 %v8583_v11  ;;  %v8628_v10 = vld [vmem:[%s11015_s1 + $0xf38] sm:$0xff]  }
 0x1b7   :  { %v8629_v11 = vld [vmem:[%s11015_s1 + $0xfb8] sm:$0xff]  }
 0x1b8   :  { %7906 = vmatpush3.bf16.msra.mxu0 %v8584_v12  ;;  %v8630_v12 = vld [vmem:[%s11015_s1 + $0xf70] sm:$0xff]  }
 0x1b9   :  { %7928 = vmatpush3.bf16.msra.mxu1 %v8585_v13  ;;  %7907 = vmatprep.subr.bf16.mxu0 %v8586_v14  ;;  %v8631_v13 = vld [vmem:[%s11015_s1 + $0xff0] sm:$0xff]  }
 0x1ba   :  { %7929 = vmatprep.subr.bf16.mxu1 %v8587_v15  ;;  %v8632_v14 = vld [vmem:[%s11015_s1 + $0xf30] sm:$0xff]  }
 0x1bb   :  { %v8633_v15 = vld [vmem:[%s11015_s1 + $0xfb0] sm:$0xff]  }
 0x1bc   :  { %7908 = vmatpush3.bf16.msra.mxu0 %v8588_v16  ;;  %v8634_v16 = vld [vmem:[%s11015_s1 + $0xf68] sm:$0xff]  }
 0x1bd   :  { %7930 = vmatpush3.bf16.msra.mxu1 %v8589_v17  ;;  %7909 = vmatprep.subr.bf16.mxu0 %v8590_v19  ;;  %v8635_v17 = vld [vmem:[%s11015_s1 + $0xfe8] sm:$0xff]  }
 0x1be   :  { %7931 = vmatprep.subr.bf16.mxu1 %v8591_v20  ;;  %v8636_v19 = vld [vmem:[%s11015_s1 + $0xf28] sm:$0xff]  }
 0x1bf   :  { %v8637_v20 = vld [vmem:[%s11015_s1 + $0xfa8] sm:$0xff]  }
 0x1c0   :  { %7910 = vmatpush3.bf16.msra.mxu0 %v8592_v21  ;;  %v8638_v21 = vld [vmem:[%s11015_s1 + $0xf60] sm:$0xff]  }
 0x1c1   :  { %7932 = vmatpush3.bf16.msra.mxu1 %v8593_v22  ;;  %7939 = vmatprep.subr.bf16.mxu0 %v8594_v31  ;;  %v8639_v22 = vld [vmem:[%s11015_s1 + $0xfe0] sm:$0xff]   ;;  %v8648_v31 = vld [vmem:[%s11015_s1 + $0xf10] sm:$0xff]  }
 0x1c2   :  { %7961 = vmatprep.subr.bf16.mxu1 %v8595_v32  ;;  %v8649_v32 = vld [vmem:[%s11015_s1 + $0xf90] sm:$0xff]  }
 0x1c3   :  { %6167 = vmatmul.mubr.bf16.vlgmr.msra.gmra.mxu0 %v6718_v27  ;;  %v8644_v27 = vld [vmem:[%s11015_s1 + $0xf18] sm:$0xff]  }
 0x1c4   :  { %6208 = vmatmul.mubr.bf16.vlgmr.msra.gmra.mxu1 %v6720_v29  ;;  %7940 = vmatpush3.bf16.msra.mxu0 %v8596_v33  ;;  %v8646_v29 = vld [vmem:[%s11015_s1 + $0xf50] sm:$0xff]   ;;  %v8650_v33 = vld [vmem:[%s11015_s1 + $0xf48] sm:$0xff]  }
 0x1c5   :  { %7962 = vmatpush3.bf16.msra.mxu1 %v8597_v34  ;;  %7941 = vmatprep.subr.bf16.mxu0 %v8598_v35  ;;  %v8651_v34 = vld [vmem:[%s11015_s1 + $0xfc8] sm:$0xff]  }
 0x1c6   :  { %7963 = vmatprep.subr.bf16.mxu1 %v8599_v36  ;;  %6248 = vmatprep.mubr.bf16.mxu0 %v6723_v4  ;;  %v8652_v35 = vld [vmem:[%s11015_s1 + $0xf08] sm:$0xff]   ;;  %v8676_v4 = vld [vmem:[%s11015_s1 + $0x1018] sm:$0xff]  }
 0x1c7   :  { %6289 = vmatprep.mubr.bf16.mxu1 %v6725_v7  ;;  %v8653_v36 = vld [vmem:[%s11015_s1 + $0xf88] sm:$0xff]   ;;  %v8679_v7 = vld [vmem:[%s11015_s1 + $0x10d0] sm:$0xff]  }
 0x1c8   :  { %7942 = vmatpush3.bf16.msra.mxu0 %v8600_v37  ;;  %v8654_v37 = vld [vmem:[%s11015_s1 + $0xf40] sm:$0xff]  }
 0x1c9   :  { %7964 = vmatpush3.bf16.msra.mxu1 %v8601_v39  ;;  %7943 = vmatprep.subr.bf16.mxu0 %v8602_v40  ;;  %v8655_v39 = vld [vmem:[%s11015_s1 + $0xfc0] sm:$0xff]  }
 0x1ca   :  { %7965 = vmatprep.subr.bf16.mxu1 %v8603_v41  ;;  %v8656_v40 = vld [vmem:[%s11015_s1 + $0xf00] sm:$0xff]  }
 0x1cb   :  { %v8657_v41 = vld [vmem:[%s11015_s1 + $0xf80] sm:$0xff]  }
 0x1cc   :  { %7944 = vmatpush3.bf16.msra.mxu0 %v8604_v42  ;;  %v51_v42 = vld [vmem:[%s11016_s0 + $0xf0] sm:$0xff] }
 0x1cd   :  { %7966 = vmatpush3.bf16.msra.mxu1 %v8605_v43  ;;  %7945 = vmatprep.subr.bf16.mxu0 %v8606_v44  ;;  %v87_v43 = vld [vmem:[%s11016_s0 + $0x210] sm:$0xff] }
 0x1ce   :  { %7967 = vmatprep.subr.bf16.mxu1 %v8607_v45  ;;  %v6726_v44 = vcombine.low %v51_v42, %v87_v43  ;;  %v6727_v45 = vcombine.high %v51_v42, %v87_v43  ;;  %v8704_v42 = vld [vmem:[%s11015_s1 + $0x1120] sm:$0xff]  }
 0x1cf   :  { %v8705_v43 = vld [vmem:[%s11015_s1 + $0x11a0] sm:$0xff]  }
 0x1d0   :  { %7946 = vmatpush3.bf16.msra.mxu0 %v8608_v46  ;;  %v52_v46 = vld [vmem:[%s11016_s0 + $0xf8] sm:$0xff] }
 0x1d1   :  { %7968 = vmatpush3.bf16.msra.mxu1 %v8609_v47  ;;  %7947 = vmatprep.subr.bf16.mxu0 %v8610_v48  ;;  %v88_v47 = vld [vmem:[%s11016_s0 + $0x218] sm:$0xff] }
 0x1d2   :  { %7969 = vmatprep.subr.bf16.mxu1 %v8611_v49  ;;  %v6728_v48 = vcombine.low %v52_v46, %v88_v47  ;;  %v6729_v49 = vcombine.high %v52_v46, %v88_v47  ;;  %v8708_v46 = vld [vmem:[%s11015_s1 + $0x1118] sm:$0xff]  }
 0x1d3   :  { %v8709_v47 = vld [vmem:[%s11015_s1 + $0x1198] sm:$0xff]  }
 0x1d4   :  { %7948 = vmatpush3.bf16.msra.mxu0 %v8612_v50  ;;  %v8658_v50 = vld [vmem:[%s11015_s1 + $0x1078] sm:$0xff]  }
 0x1d5   :  { %7970 = vmatpush3.bf16.msra.mxu1 %v8613_v51  ;;  %7949 = vmatprep.subr.bf16.mxu0 %v8614_v52  ;;  %v8659_v51 = vld [vmem:[%s11015_s1 + $0x10f8] sm:$0xff]  }
 0x1d6   :  { %7971 = vmatprep.subr.bf16.mxu1 %v8615_v53  ;;  %v8660_v52 = vld [vmem:[%s11015_s1 + $0x1038] sm:$0xff]  }
 0x1d7   :  { %v8661_v53 = vld [vmem:[%s11015_s1 + $0x10b8] sm:$0xff]  }
 0x1d8   :  { %7950 = vmatpush3.bf16.msra.mxu0 %v8616_v54  ;;  %v8662_v54 = vld [vmem:[%s11015_s1 + $0x1070] sm:$0xff]  }
 0x1d9   :  { %7972 = vmatpush3.bf16.msra.mxu1 %v8617_v55  ;;  %7951 = vmatprep.subr.bf16.mxu0 %v8618_v56  ;;  %v8663_v55 = vld [vmem:[%s11015_s1 + $0x10f0] sm:$0xff]  }
 0x1da   :  { %7973 = vmatprep.subr.bf16.mxu1 %v8619_v57  ;;  %v8664_v56 = vld [vmem:[%s11015_s1 + $0x1030] sm:$0xff]  }
 0x1db   :  { %v8665_v57 = vld [vmem:[%s11015_s1 + $0x10b0] sm:$0xff]  }
 0x1dc   :  { %7952 = vmatpush3.bf16.msra.mxu0 %v8620_v58  ;;  %v8666_v58 = vld [vmem:[%s11015_s1 + $0x1068] sm:$0xff]  }
 0x1dd   :  { %7974 = vmatpush3.bf16.msra.mxu1 %v8621_v59  ;;  %7953 = vmatprep.subr.bf16.mxu0 %v8622_v60  ;;  %v8667_v59 = vld [vmem:[%s11015_s1 + $0x10e8] sm:$0xff]  }
 0x1de   :  { %7975 = vmatprep.subr.bf16.mxu1 %v8623_v61  ;;  %v8668_v60 = vld [vmem:[%s11015_s1 + $0x1028] sm:$0xff]  }
 0x1df   :  { %v8669_v61 = vld [vmem:[%s11015_s1 + $0x10a8] sm:$0xff]  }
 0x1e0   :  { %7954 = vmatpush3.bf16.msra.mxu0 %v8624_v62  ;;  %v8670_v62 = vld [vmem:[%s11015_s1 + $0x1060] sm:$0xff]  }
 0x1e1   :  { %7976 = vmatpush3.bf16.msra.mxu1 %v8625_v63  ;;  %7983 = vmatprep.subr.bf16.mxu0 %v8626_v8  ;;  %v8671_v63 = vld [vmem:[%s11015_s1 + $0x10e0] sm:$0xff]   ;;  %v8680_v8 = vld [vmem:[%s11015_s1 + $0x1010] sm:$0xff]  }
 0x1e2   :  { %8005 = vmatprep.subr.bf16.mxu1 %v8627_v9  ;;  %v8681_v9 = vld [vmem:[%s11015_s1 + $0x1090] sm:$0xff]  }
 0x1e3   :  { %6249 = vmatmul.mubr.bf16.vlgmr.msra.gmra.mxu0 %v6722_v3  ;;  %v8675_v3 = vld [vmem:[%s11015_s1 + $0x10d8] sm:$0xff]  }
 0x1e4   :  { %6290 = vmatmul.mubr.bf16.vlgmr.msra.gmra.mxu1 %v6724_v6  ;;  %7984 = vmatpush3.bf16.msra.mxu0 %v8628_v10  ;;  %v8678_v6 = vld [vmem:[%s11015_s1 + $0x1050] sm:$0xff]   ;;  %v8682_v10 = vld [vmem:[%s11015_s1 + $0x1048] sm:$0xff]  }
 0x1e5   :  { %8006 = vmatpush3.bf16.msra.mxu1 %v8629_v11  ;;  %7985 = vmatprep.subr.bf16.mxu0 %v8630_v12  ;;  %v8683_v11 = vld [vmem:[%s11015_s1 + $0x10c8] sm:$0xff]  }
 0x1e6   :  { %8007 = vmatprep.subr.bf16.mxu1 %v8631_v13  ;;  %6330 = vmatprep.mubr.bf16.mxu0 %v6727_v45  ;;  %v8684_v12 = vld [vmem:[%s11015_s1 + $0x1008] sm:$0xff]   ;;  %v8707_v45 = vld [vmem:[%s11015_s1 + $0x11d8] sm:$0xff]  }
 0x1e7   :  { %6371 = vmatprep.mubr.bf16.mxu1 %v6729_v49  ;;  %v8685_v13 = vld [vmem:[%s11015_s1 + $0x1088] sm:$0xff]   ;;  %v8711_v49 = vld [vmem:[%s11015_s1 + $0x11d0] sm:$0xff]  }
 0x1e8   :  { %7986 = vmatpush3.bf16.msra.mxu0 %v8632_v14  ;;  %v8686_v14 = vld [vmem:[%s11015_s1 + $0x1040] sm:$0xff]  }
 0x1e9   :  { %8008 = vmatpush3.bf16.msra.mxu1 %v8633_v15  ;;  %7987 = vmatprep.subr.bf16.mxu0 %v8634_v16  ;;  %v8687_v15 = vld [vmem:[%s11015_s1 + $0x10c0] sm:$0xff]  }
 0x1ea   :  { %8009 = vmatprep.subr.bf16.mxu1 %v8635_v17  ;;  %v8688_v16 = vld [vmem:[%s11015_s1 + $0x1000] sm:$0xff]  }
 0x1eb   :  { %v8689_v17 = vld [vmem:[%s11015_s1 + $0x1080] sm:$0xff]  }
 0x1ec   :  { %7988 = vmatpush3.bf16.msra.mxu0 %v8636_v19  ;;  %v53_v19 = vld [vmem:[%s11016_s0 + $0x100] sm:$0xff] }
 0x1ed   :  { %8010 = vmatpush3.bf16.msra.mxu1 %v8637_v20  ;;  %7989 = vmatprep.subr.bf16.mxu0 %v8638_v21  ;;  %v89_v20 = vld [vmem:[%s11016_s0 + $0x220] sm:$0xff]  ;;  %v54_v21 = vld [vmem:[%s11016_s0 + $0x108] sm:$0xff] }
 0x1ee   :  { %8011 = vmatprep.subr.bf16.mxu1 %v8639_v22  ;;  %v90_v22 = vld [vmem:[%s11016_s0 + $0x228] sm:$0xff] }
 0x1f0   :  { %7990 = vmatpush3.bf16.msra.mxu0 %v8640_v23  ;;  %v6730_v23 = vcombine.low %v53_v19, %v89_v20 }
 0x1f1   :  { %8012 = vmatpush3.bf16.msra.mxu1 %v8641_v24  ;;  %7991 = vmatprep.subr.bf16.mxu0 %v8642_v25  ;;  %v6731_v24 = vcombine.high %v53_v19, %v89_v20  ;;  %v6732_v25 = vcombine.low %v54_v21, %v90_v22 }
 0x1f2   :  { %8013 = vmatprep.subr.bf16.mxu1 %v8643_v26  ;;  %v6733_v26 = vcombine.high %v54_v21, %v90_v22 }
 0x1f4   :  { %7992 = vmatpush3.bf16.msra.mxu0 %v8644_v27  ;;  %v8690_v27 = vld [vmem:[%s11015_s1 + $0x1178] sm:$0xff]  }
 0x1f5   :  { %8014 = vmatpush3.bf16.msra.mxu1 %v8645_v28  ;;  %7993 = vmatprep.subr.bf16.mxu0 %v8646_v29  ;;  %v8691_v28 = vld [vmem:[%s11015_s1 + $0x11f8] sm:$0xff]  }
 0x1f6   :  { %8015 = vmatprep.subr.bf16.mxu1 %v8647_v30  ;;  %v8692_v29 = vld [vmem:[%s11015_s1 + $0x1138] sm:$0xff]  }
 0x1f7   :  { %v8693_v30 = vld [vmem:[%s11015_s1 + $0x11b8] sm:$0xff]  }
 0x1f8   :  { %7994 = vmatpush3.bf16.msra.mxu0 %v8648_v31  ;;  %v8694_v31 = vld [vmem:[%s11015_s1 + $0x1170] sm:$0xff]  }
 0x1f9   :  { %8016 = vmatpush3.bf16.msra.mxu1 %v8649_v32  ;;  %7995 = vmatprep.subr.bf16.mxu0 %v8650_v33  ;;  %v8695_v32 = vld [vmem:[%s11015_s1 + $0x11f0] sm:$0xff]  }
 0x1fa   :  { %8017 = vmatprep.subr.bf16.mxu1 %v8651_v34  ;;  %v8696_v33 = vld [vmem:[%s11015_s1 + $0x1130] sm:$0xff]  }
 0x1fb   :  { %v8697_v34 = vld [vmem:[%s11015_s1 + $0x11b0] sm:$0xff]  }
 0x1fc   :  { %7996 = vmatpush3.bf16.msra.mxu0 %v8652_v35  ;;  %v8698_v35 = vld [vmem:[%s11015_s1 + $0x1168] sm:$0xff]  }
 0x1fd   :  { %8018 = vmatpush3.bf16.msra.mxu1 %v8653_v36  ;;  %7997 = vmatprep.subr.bf16.mxu0 %v8654_v37  ;;  %v8699_v36 = vld [vmem:[%s11015_s1 + $0x11e8] sm:$0xff]  }
 0x1fe   :  { %8019 = vmatprep.subr.bf16.mxu1 %v8655_v39  ;;  %v8700_v37 = vld [vmem:[%s11015_s1 + $0x1128] sm:$0xff]  }
 0x1ff   :  { %v8701_v39 = vld [vmem:[%s11015_s1 + $0x11a8] sm:$0xff]  }
 0x200   :  { %7998 = vmatpush3.bf16.msra.mxu0 %v8656_v40  ;;  %v8702_v40 = vld [vmem:[%s11015_s1 + $0x1160] sm:$0xff]  }
 0x201   :  { %8020 = vmatpush3.bf16.msra.mxu1 %v8657_v41  ;;  %8027 = vmatprep.subr.bf16.mxu0 %v8658_v50  ;;  %v8703_v41 = vld [vmem:[%s11015_s1 + $0x11e0] sm:$0xff]   ;;  %v8712_v50 = vld [vmem:[%s11015_s1 + $0x1110] sm:$0xff]  }
 0x202   :  { %8049 = vmatprep.subr.bf16.mxu1 %v8659_v51  ;;  %v8713_v51 = vld [vmem:[%s11015_s1 + $0x1190] sm:$0xff]  }
 0x203   :  { %6331 = vmatmul.mubr.bf16.vlgmr.msra.gmra.mxu0 %v6726_v44  ;;  %v8706_v44 = vld [vmem:[%s11015_s1 + $0x1158] sm:$0xff]  }
 0x204   :  { %6372 = vmatmul.mubr.bf16.vlgmr.msra.gmra.mxu1 %v6728_v48  ;;  %8028 = vmatpush3.bf16.msra.mxu0 %v8660_v52  ;;  %v8710_v48 = vld [vmem:[%s11015_s1 + $0x1150] sm:$0xff]   ;;  %v10686_v52 = vpop.f32.mrf.mxu0 }
 0x205   :  { %8050 = vmatpush3.bf16.msra.mxu1 %v8661_v53  ;;  %8029 = vmatprep.subr.bf16.mxu0 %v8662_v54  ;;  %v8714_v53 = vld [vmem:[%s11015_s1 + $0x1148] sm:$0xff]  }
 0x206   :  { %8051 = vmatprep.subr.bf16.mxu1 %v8663_v55  ;;  %6412 = vmatprep.mubr.bf16.mxu0 %v6731_v24  ;;  %v8715_v54 = vld [vmem:[%s11015_s1 + $0x11c8] sm:$0xff]  }
 0x207   :  { %6453 = vmatprep.mubr.bf16.mxu1 %v6733_v26  ;;  %v8716_v55 = vld [vmem:[%s11015_s1 + $0x1108] sm:$0xff]  }
 0x208   :  { %8030 = vmatpush3.bf16.msra.mxu0 %v8664_v56  ;;  %v10697_v56 = vpop.f32.mrf.mxu1 }
 0x209   :  { %8052 = vmatpush3.bf16.msra.mxu1 %v8665_v57  ;;  %8031 = vmatprep.subr.bf16.mxu0 %v8666_v58  ;;  %v8717_v57 = vld [vmem:[%s11015_s1 + $0x1188] sm:$0xff]   ;;  %v10702_v58 = vpop.f32.mrf.mxu0 }
 0x20a   :  { %8053 = vmatprep.subr.bf16.mxu1 %v8667_v59  ;;  %v8718_v59 = vld [vmem:[%s11015_s1 + $0x1140] sm:$0xff]  }
 0x20c   :  { %8032 = vmatpush3.bf16.msra.mxu0 %v8668_v60  ;;  %v8719_v60 = vld [vmem:[%s11015_s1 + $0x11c0] sm:$0xff]  }
 0x20d   :  { %8054 = vmatpush3.bf16.msra.mxu1 %v8669_v61  ;;  %8033 = vmatprep.subr.bf16.mxu0 %v8670_v62  ;;  %v10710_v61 = vpop.f32.mrf.mxu0  ;;  %v8720_v62 = vld [vmem:[%s11015_s1 + $0x1100] sm:$0xff]  }
 0x20e   :  { %8055 = vmatprep.subr.bf16.mxu1 %v8671_v63  ;;  %v10715_v63 = vpop.f32.mrf.mxu1 }
 0x210   :  { %8034 = vmatpush3.bf16.msra.mxu0 %v8672_v0  ;;  %v8721_v0 = vld [vmem:[%s11015_s1 + $0x1180] sm:$0xff]  }
 0x211   :  { %8056 = vmatpush3.bf16.msra.mxu1 %v8673_v1  ;;  %8035 = vmatprep.subr.bf16.mxu0 %v8674_v2  ;;  %v55_v1 = vld [vmem:[%s11016_s0 + $0x110] sm:$0xff] }
 0x212   :  { %8057 = vmatprep.subr.bf16.mxu1 %v8675_v3  ;;  %v91_v2 = vld [vmem:[%s11016_s0 + $0x230] sm:$0xff]  ;;  %v56_v3 = vld [vmem:[%s11016_s0 + $0x118] sm:$0xff] }
 0x214   :  { %8036 = vmatpush3.bf16.msra.mxu0 %v8676_v4  ;;  %v10729_v4 = vpop.f32.mrf.mxu1 }
 0x215   :  { %8058 = vmatpush3.bf16.msra.mxu1 %v8677_v5  ;;  %8037 = vmatprep.subr.bf16.mxu0 %v8678_v6  ;;  %v6734_v5 = vcombine.low %v55_v1, %v91_v2  ;;  %v6735_v6 = vcombine.high %v55_v1, %v91_v2 }
 0x216   :  { %8059 = vmatprep.subr.bf16.mxu1 %v8679_v7  ;;  %v92_v7 = vld [vmem:[%s11016_s0 + $0x238] sm:$0xff] }
 0x218   :  { %8038 = vmatpush3.bf16.msra.mxu0 %v8680_v8  ;;  %v10734_v8 = vpop.f32.mrf.mxu0 }
 0x219   :  { %8060 = vmatpush3.bf16.msra.mxu1 %v8681_v9  ;;  %8039 = vmatprep.subr.bf16.mxu0 %v8682_v10  ;;  %v6736_v9 = vcombine.low %v56_v3, %v92_v7  ;;  %v6737_v10 = vcombine.high %v56_v3, %v92_v7  ;;  %v8728_v3 = vld [vmem:[%s11018_s3 + $0x8] sm:$0xff]   ;;  %v8729_v7 = vld [vmem:[%s11018_s3] sm:$0xff]  }
 0x21a   :  { %8061 = vmatprep.subr.bf16.mxu1 %v8683_v11  ;;  %v10736_v11 = vpop.f32.mrf.mxu1 }
 0x21c   :  { %8040 = vmatpush3.bf16.msra.mxu0 %v8684_v12  ;;  %v10738_v12 = vpop.f32.mrf.mxu0 }
 0x21d   :  { %8062 = vmatpush3.bf16.msra.mxu1 %v8685_v13  ;;  %8041 = vmatprep.subr.bf16.mxu0 %v8686_v14  ;;  %v10740_v13 = vpop.f32.mrf.mxu1 }
 0x21e   :  { %8063 = vmatprep.subr.bf16.mxu1 %v8687_v15  ;;  %v10742_v14 = vpop.f32.mrf.mxu0 }
 0x220   :  { %8042 = vmatpush3.bf16.msra.mxu0 %v8688_v16  ;;  %v10744_v15 = vpop.f32.mrf.mxu0  ;;  %v10746_v16 = vpop.f32.mrf.mxu1 }
 0x221   :  { %8064 = vmatpush3.bf16.msra.mxu1 %v8689_v17  ;;  %8071 = vmatprep.subr.bf16.mxu0 %v8690_v27 }
 0x222   :  { %8093 = vmatprep.subr.bf16.mxu1 %v8691_v28  ;;  %v10748_v17 = vpop.f32.mrf.mxu1  ;;  %v10750_v19 = vpop.f32.mrf.mxu0 }
 0x223   :  { %6413 = vmatmul.mubr.bf16.vlgmr.msra.gmra.mxu0 %v6730_v23 }
 0x224   :  { %6454 = vmatmul.mubr.bf16.vlgmr.msra.gmra.mxu1 %v6732_v25  ;;  %8072 = vmatpush3.bf16.msra.mxu0 %v8692_v29  ;;  %v10752_v20 = vpop.f32.mrf.mxu1  ;;  %v10754_v21 = vpop.f32.mrf.mxu0 }
 0x225   :  { %8094 = vmatpush3.bf16.msra.mxu1 %v8693_v30  ;;  %8073 = vmatprep.subr.bf16.mxu0 %v8694_v31 }
 0x226   :  { %8095 = vmatprep.subr.bf16.mxu1 %v8695_v32  ;;  %6494 = vmatprep.mubr.bf16.mxu0 %v6735_v6  ;;  %v10756_v22 = vpop.f32.mrf.mxu1  ;;  %v10758_v23 = vpop.f32.mrf.mxu0 }
 0x227   :  { %6535 = vmatprep.mubr.bf16.mxu1 %v6737_v10 }
 0x228   :  { %8074 = vmatpush3.bf16.msra.mxu0 %v8696_v33  ;;  %v10760_v24 = vpop.f32.mrf.mxu0  ;;  %v10762_v25 = vpop.f32.mrf.mxu1 }
 0x229   :  { %8096 = vmatpush3.bf16.msra.mxu1 %v8697_v34  ;;  %8075 = vmatprep.subr.bf16.mxu0 %v8698_v35 }
 0x22a   :  { %8097 = vmatprep.subr.bf16.mxu1 %v8699_v36  ;;  %v10764_v26 = vpop.f32.mrf.mxu1  ;;  %v10766_v27 = vpop.f32.mrf.mxu0 }
 0x22c   :  { %8076 = vmatpush3.bf16.msra.mxu0 %v8700_v37  ;;  %v10768_v28 = vpop.f32.mrf.mxu1  ;;  %v10770_v29 = vpop.f32.mrf.mxu0  ;;  %v8730_v37 = vmov 0.0  }
 0x22d   :  { %8098 = vmatpush3.bf16.msra.mxu1 %v8701_v39  ;;  %8077 = vmatprep.subr.bf16.mxu0 %v8702_v40  ;;  %v8722_v39 = vld [vmem:[%s11018_s3 + $0x38] sm:$0xff]  }
 0x22e   :  { %8099 = vmatprep.subr.bf16.mxu1 %v8703_v41  ;;  %v10772_v30 = vpop.f32.mrf.mxu1  ;;  %v10774_v31 = vpop.f32.mrf.mxu0  ;;  %v8723_v41 = vld [vmem:[%s11018_s3 + $0x30] sm:$0xff]  }
 0x230   :  { %8078 = vmatpush3.bf16.msra.mxu0 %v8704_v42  ;;  %v10776_v32 = vpop.f32.mrf.mxu0  ;;  %v10778_v33 = vpop.f32.mrf.mxu1 }
 0x231   :  { %8100 = vmatpush3.bf16.msra.mxu1 %v8705_v43  ;;  %8079 = vmatprep.subr.bf16.mxu0 %v8706_v44  ;;  %v8724_v44 = vld [vmem:[%s11018_s3 + $0x28] sm:$0xff]  }
 0x232   :  { %8101 = vmatprep.subr.bf16.mxu1 %v8707_v45  ;;  %v10780_v34 = vpop.f32.mrf.mxu1  ;;  %v10782_v35 = vpop.f32.mrf.mxu0 }
 0x234   :  { %8080 = vmatpush3.bf16.msra.mxu0 %v8708_v46  ;;  %v10784_v36 = vpop.f32.mrf.mxu1  ;;  %v10789_v40 = vpop.f32.mrf.mxu0 }
 0x235   :  { %8102 = vmatpush3.bf16.msra.mxu1 %v8709_v47  ;;  %8081 = vmatprep.subr.bf16.mxu0 %v8710_v48  ;;  %v8725_v48 = vld [vmem:[%s11018_s3 + $0x20] sm:$0xff]  }
 0x236   :  { %8103 = vmatprep.subr.bf16.mxu1 %v8711_v49  ;;  %v10794_v42 = vpop.f32.mrf.mxu1  ;;  %v10796_v43 = vpop.f32.mrf.mxu0 }
 0x238   :  { %8082 = vmatpush3.bf16.msra.mxu0 %v8712_v50  ;;  %v10801_v45 = vpop.f32.mrf.mxu0  ;;  %v10803_v46 = vpop.f32.mrf.mxu1 }
 0x239   :  { %8104 = vmatpush3.bf16.msra.mxu1 %v8713_v51  ;;  %8083 = vmatprep.subr.bf16.mxu0 %v8714_v53 }
 0x23a   :  { %8105 = vmatprep.subr.bf16.mxu1 %v8715_v54  ;;  %v10805_v47 = vpop.f32.mrf.mxu1  ;;  %v10810_v49 = vpop.f32.mrf.mxu0 }
 0x23c   :  { %8084 = vmatpush3.bf16.msra.mxu0 %v8716_v55  ;;  %v10812_v50 = vpop.f32.mrf.mxu1  ;;  %v10814_v51 = vpop.f32.mrf.mxu0 }
 0x23d   :  { %8106 = vmatpush3.bf16.msra.mxu1 %v8717_v57  ;;  %8085 = vmatprep.subr.bf16.mxu0 %v8718_v59  ;;  %v8726_v59 = vld [vmem:[%s11018_s3 + $0x18] sm:$0xff]  }
 0x23e   :  { %8107 = vmatprep.subr.bf16.mxu1 %v8719_v60  ;;  %v10816_v53 = vpop.f32.mrf.mxu1  ;;  %v10818_v54 = vpop.f32.mrf.mxu0 }
 0x240   :  { %8086 = vmatpush3.bf16.msra.mxu0 %v8720_v62  ;;  %v10820_v55 = vpop.f32.mrf.mxu0  ;;  %v10822_v57 = vpop.f32.mrf.mxu1 }
 0x241   :  { %8108 = vmatpush3.bf16.msra.mxu1 %v8721_v0  ;;  %8124 = vmatprep.subr.bf16.mxu0 %v8730_v37  ;;  %v8727_v0 = vld [vmem:[%s11018_s3 + $0x10] sm:$0xff]  }
 0x242   :  { %v10827_v60 = vpop.f32.mrf.mxu1  ;;  %v10829_v62 = vpop.f32.mrf.mxu0 }
 0x243   :  { %6495 = vmatmul.mubr.bf16.vlgmr.msra.gmra.mxu0 %v6734_v5 }
 0x244   :  { %6536 = vmatmul.mubr.bf16.vlgmr.msra.gmra.mxu1 %v6736_v9  ;;  %8125 = vmatpush3.bf16.msra.mxu0 %v8722_v39  ;;  %v10834_v1 = vpop.f32.mrf.mxu1  ;;  %v10836_v2 = vpop.f32.mrf.mxu0 }
 0x245   :  { %8126 = vmatprep.subr.bf16.mxu0 %v8730_v37  ;;  %8140 = vmatprep.mubr.msk.bf16.mxu0 %vm8731_vm0, %v8730_v37 }
 0x246   :  { %v10841_v5 = vpop.f32.mrf.mxu1  ;;  %v10843_v6 = vpop.f32.mrf.mxu0 }
 0x247   :  { %11021 = vst [vmem:[#allocation2_spill] sm:$0xff] %v10841_v5 }
 0x248   :  { %8127 = vmatpush3.bf16.msra.mxu0 %v8723_v41  ;;  %v10848_v9 = vpop.f32.mrf.mxu0  ;;  %v10850_v10 = vpop.f32.mrf.mxu1 }
 0x249   :  { %8128 = vmatprep.subr.bf16.mxu0 %v8730_v37  ;;  %11022 = vst [vmem:[#allocation3_spill] sm:$0xff] %v10850_v10 }
 0x24a   :  { %v10852_v39 = vpop.f32.mrf.mxu1  ;;  %v10854_v41 = vpop.f32.mrf.mxu0 }
 0x24b   :  { %11023 = vst [vmem:[#allocation4_spill] sm:$0xff] %v10852_v39  ;;  %11024 = vst [vmem:[#allocation5_spill] sm:$0xff] %v10854_v41 }
 0x24c   :  { %8129 = vmatpush3.bf16.msra.mxu0 %v8724_v44  ;;  %v10856_v44 = vpop.f32.mrf.mxu1 }
 0x24d   :  { %8130 = vmatprep.subr.bf16.mxu0 %v8730_v37  ;;  %11025 = vst [vmem:[#allocation6_spill] sm:$0xff] %v10856_v44 }
 0x250   :  { %8131 = vmatpush3.bf16.msra.mxu0 %v8725_v48  ;;  %v10858_v48 = vpop.f32.mrf.mxu0 }
 0x251   :  { %8132 = vmatprep.subr.bf16.mxu0 %v8730_v37  ;;  %11026 = vst [vmem:[#allocation7_spill] sm:$0xff] %v10858_v48 }
 0x254   :  { %8133 = vmatpush3.bf16.msra.mxu0 %v8726_v59  ;;  %v10860_v59 = vpop.f32.mrf.mxu1 }
 0x255   :  { %8134 = vmatprep.subr.bf16.mxu0 %v8730_v37  ;;  %11027 = vst [vmem:[#allocation8_spill] sm:$0xff] %v10860_v59  ;;  %v7432_v59 = vadd.f32 %v10702_v58, %v10686_v52  ;;  %v7476_v52 = vadd.f32 %v10742_v14, %v10738_v12 }
 0x256   :  { %v10866_v5 = vpop.f32.mrf.mxu1 }
 0x257   :  { %11029 = vst [vmem:[#allocation10_spill] sm:$0xff] %v10866_v5 }
 0x258   :  { %8135 = vmatpush3.bf16.msra.mxu0 %v8727_v0  ;;  %v10862_v0 = vpop.f32.mrf.mxu0  ;;  %v10868_v10 = vpop.f32.mrf.mxu1 }
 0x259   :  { %8136 = vmatprep.subr.bf16.mxu0 %v8730_v37  ;;  %11030 = vst [vmem:[#allocation11_spill] sm:$0xff] %v10868_v10  ;;  %v7473_v10 = vadd.f32 %v10734_v8, %v10710_v61 }
 0x25c   :  { %8137 = vmatpush3.bf16.msra.mxu0 %v8728_v3  ;;  %v10864_v3 = vpop.f32.mrf.mxu0 }
 0x25d   :  { %8138 = vmatprep.subr.bf16.mxu0 %v8730_v37  ;;  %11028 = vst [vmem:[#allocation9_spill] sm:$0xff] %v10864_v3  ;;  %v10872_v37 = vpop.f32.mrf.mxu1 }
 0x25f   :  { %v10876_v41 = vpop.f32.mrf.mxu1 }
 0x260   :  { %8139 = vmatpush3.bf16.msra.mxu0 %v8729_v7  ;;  %v10870_v7 = vpop.f32.mrf.mxu0  ;;  %11033 = vst [vmem:[#allocation14_spill] sm:$0xff] %v10876_v41  ;;  %v7454_v41 = vadd.f32 %v10715_v63, %v10697_v56 }
 0x261   :  { %11031 = vst [vmem:[#allocation12_spill] sm:$0xff] %v10870_v7  ;;  %v10884_v3 = vpop.f32.mrf.mxu1 }
 0x262   :  { %v10874_v39 = vpop.f32.mrf.mxu0  ;;  %11036 = vst [vmem:[#allocation17_spill] sm:$0xff] %v10884_v3 }
 0x263   :  { %11032 = vst [vmem:[#allocation13_spill] sm:$0xff] %v10874_v39  ;;  %v10888_v5 = vpop.f32.mrf.mxu1  ;;  %v5270_v39 = vadd.f32 %v7432_v59, %v9655_v38 }
 0x264   :  { %v10878_v44 = vpop.f32.mrf.mxu0  ;;  %11037 = vst [vmem:[#allocation18_spill] sm:$0xff] %v10888_v5  ;;  %v7517_v5 = vadd.f32 %v10750_v19, %v10744_v15  ;;  %v7561_v15 = vadd.f32 %v10766_v27, %v10760_v24  ;;  %v7605_v24 = vadd.f32 %v10782_v35, %v10776_v32  ;;  %v7649_v35 = vadd.f32 %v10810_v49, %v10801_v45 }
 0x265   :  { %11034 = vst [vmem:[#allocation15_spill] sm:$0xff] %v10878_v44  ;;  %v5349_v44 = vadd.f32 %v7473_v10, %v9754_v18  ;;  %v10900_v58 = vpop.f32.mrf.mxu1  ;;  %v5311_v8 = vadd.f32 %v7454_v41, %v5270_v39  ;;  %v7498_v18 = vadd.f32 %v10746_v16, %v10740_v13  ;;  %v7542_v16 = vadd.f32 %v10762_v25, %v10756_v22 }
 0x266   :  { %v10880_v48 = vpop.f32.mrf.mxu0  ;;  %v7586_v22 = vadd.f32 %v10778_v33, %v10772_v30  ;;  %v7630_v33 = vadd.f32 %v10803_v46, %v10794_v42  ;;  %v7693_v49 = vadd.f32 %v10829_v62, %v10820_v55  ;;  %v7674_v42 = vadd.f32 %v10822_v57, %v10816_v53  ;;  %v11041_v57 = vld [vmem:[#allocation4_spill] sm:$0xff] }
 0x267   :  { %11035 = vst [vmem:[#allocation16_spill] sm:$0xff] %v10880_v48  ;;  %v7495_v48 = vadd.f32 %v10736_v11, %v10729_v4  ;;  %v5352_v59 = vadd.f32 %v7476_v52, %v5311_v8  ;;  %v10906_v3 = vpop.f32.mrf.mxu1  ;;  %v7539_v4 = vadd.f32 %v10752_v20, %v10748_v17  ;;  %v7520_v11 = vadd.f32 %v10758_v23, %v10754_v21 }
 0x268   :  { %v10890_v7 = vpop.f32.mrf.mxu0  ;;  %v7583_v20 = vadd.f32 %v10768_v28, %v10764_v26  ;;  %v7564_v21 = vadd.f32 %v10774_v31, %v10770_v29  ;;  %v7627_v26 = vadd.f32 %v10784_v36, %v10780_v34  ;;  %v7608_v28 = vadd.f32 %v10796_v43, %v10789_v40 }
 0x269   :  { %v5390_v38 = vadd.f32 %v7495_v48, %v5349_v44  ;;  %v5393_v14 = vadd.f32 %v7498_v18, %v5352_v59  ;;  %v10920_v19 = vpop.f32.mrf.mxu1  ;;  %v7671_v36 = vadd.f32 %v10812_v50, %v10805_v47  ;;  %v7652_v40 = vadd.f32 %v10818_v54, %v10814_v51  ;;  %v11038_v54 = vld [vmem:[#allocation5_spill] sm:$0xff] }
 0x26a   :  { %v10902_v61 = vpop.f32.mrf.mxu0  ;;  %v7715_v47 = vadd.f32 %v10834_v1, %v10827_v60  ;;  %v7696_v50 = vadd.f32 %v10843_v6, %v10836_v2  ;;  %v11043_v60 = vld [vmem:[#allocation7_spill] sm:$0xff] }
 0x26b   :  { %v5431_v63 = vadd.f32 %v7517_v5, %v5390_v38  ;;  %v5434_v39 = vadd.f32 %v7520_v11, %v5393_v14  ;;  %v10922_v41 = vpop.f32.mrf.mxu1  ;;  %v7737_v14 = vadd.f32 %v11038_v54, %v10848_v9  ;;  %v7740_v1 = vadd.f32 %v10862_v0, %v11043_v60  ;;  %v11053_v54 = vld [vmem:[#allocation17_spill] sm:$0xff] }
 0x26c   :  { %v10908_v56 = vpop.f32.mrf.mxu0 }
 0x26d   :  { %v5472_v10 = vadd.f32 %v7539_v4, %v5431_v63  ;;  %v5475_v23 = vadd.f32 %v7542_v16, %v5434_v39  ;;  %v10934_v27 = vpop.f32.mrf.mxu1  ;;  %v11039_v16 = vld [vmem:[#allocation2_spill] sm:$0xff] }
 0x26e   :  { %v10916_v12 = vpop.f32.mrf.mxu0 }
 0x26f   :  { %v5513_v17 = vadd.f32 %v7561_v15, %v5472_v10  ;;  %v5516_v48 = vadd.f32 %v7564_v21, %v5475_v23  ;;  %v10944_v29 = vpop.f32.mrf.mxu1  ;;  %v11042_v21 = vld [vmem:[#allocation6_spill] sm:$0xff] }
 0x270   :  { %v10924_v13 = vpop.f32.mrf.mxu0  ;;  %v7759_v23 = vadd.f32 %v11042_v21, %v11041_v57 }
 0x271   :  { %v5554_v44 = vadd.f32 %v7583_v20, %v5513_v17  ;;  %v5557_v32 = vadd.f32 %v7586_v22, %v5516_v48  ;;  %v10952_v30 = vpop.f32.mrf.mxu1  ;;  %v11040_v17 = vld [vmem:[#allocation3_spill] sm:$0xff] }
 0x272   :  { %v10936_v5 = vpop.f32.mrf.mxu0  ;;  %v7718_v20 = vadd.f32 %v11040_v17, %v11039_v16  ;;  %v7828_v16 = vadd.f32 %v10908_v56, %v10902_v61 }
 0x273   :  { %v5595_v25 = vadd.f32 %v7605_v24, %v5554_v44  ;;  %v5598_v38 = vadd.f32 %v7608_v28, %v5557_v32  ;;  %v11044_v24 = vld [vmem:[#allocation9_spill] sm:$0xff]  ;;  %v11045_v44 = vld [vmem:[#allocation12_spill] sm:$0xff]  ;;  %v11047_v32 = vld [vmem:[#allocation10_spill] sm:$0xff] }
 0x274   :  { %v10946_v31 = vpop.f32.mrf.mxu0  ;;  %v7781_v9 = vadd.f32 %v11045_v44, %v11044_v24  ;;  %v11046_v28 = vld [vmem:[#allocation8_spill] sm:$0xff] }
 0x275   :  { %v5636_v8 = vadd.f32 %v7627_v26, %v5595_v25  ;;  %v5639_v45 = vadd.f32 %v7630_v33, %v5598_v38  ;;  %v11048_v38 = vld [vmem:[#allocation11_spill] sm:$0xff]  ;;  %v7872_v61 = vadd.f32 %v10946_v31, %v10936_v5 }
 0x276   :  { %v7803_v33 = vadd.f32 %v10872_v37, %v11048_v38 }
 0x277   :  { %v5677_v34 = vadd.f32 %v7649_v35, %v5636_v8  ;;  %v5680_v63 = vadd.f32 %v7652_v40, %v5639_v45  ;;  %v7762_v35 = vadd.f32 %v11047_v32, %v11046_v28 }
 0x279   :  { %v5718_v18 = vadd.f32 %v7671_v36, %v5677_v34  ;;  %v5721_v51 = vadd.f32 %v7674_v42, %v5680_v63  ;;  %v11049_v34 = vld [vmem:[#allocation13_spill] sm:$0xff]  ;;  %v11050_v36 = vld [vmem:[#allocation15_spill] sm:$0xff] }
 0x27a   :  { %v7784_v40 = vadd.f32 %v11050_v36, %v11049_v34 }
 0x27b   :  { %v5759_v46 = vadd.f32 %v7693_v49, %v5718_v18  ;;  %v5762_v10 = vadd.f32 %v7696_v50, %v5721_v51  ;;  %v11051_v18 = vld [vmem:[#allocation16_spill] sm:$0xff]  ;;  %v11052_v51 = vld [vmem:[#allocation14_spill] sm:$0xff] }
 0x27c   :  { %v7825_v63 = vadd.f32 %v10890_v7, %v11051_v18 }
 0x27d   :  { %v5800_v62 = vadd.f32 %v7715_v47, %v5759_v46  ;;  %v5803_v6 = vadd.f32 %v7718_v20, %v5762_v10  ;;  %v11054_v10 = vld [vmem:[#allocation18_spill] sm:$0xff] }
 0x27e   :  { %v7847_v37 = vadd.f32 %v10900_v58, %v11054_v10  ;;  %v7891_v58 = vadd.f32 %v10934_v27, %v10922_v41 }
 0x27f   :  { %v5841_v53 = vadd.f32 %v7737_v14, %v5800_v62  ;;  %v5844_v26 = vadd.f32 %v7740_v1, %v5803_v6  ;;  %v7806_v14 = vadd.f32 %v11053_v54, %v11052_v51  ;;  %v7850_v1 = vadd.f32 %v10920_v19, %v10906_v3 }
 0x281   :  { %v5882_v25 = vadd.f32 %v7759_v23, %v5841_v53  ;;  %v5885_v49 = vadd.f32 %v7762_v35, %v5844_v26  ;;  %v7869_v53 = vadd.f32 %v10924_v13, %v10916_v12 }
 0x283   :  { %v10950_v52 = vpop.f32.mrf.mxu0  ;;  %v5923_v8 = vadd.f32 %v7781_v9, %v5882_v25  ;;  %v5926_v46 = vadd.f32 %v7784_v40, %v5885_v49  ;;  %v7894_v25 = vadd.f32 %v10952_v30, %v10944_v29 }
 0x284   :  { %v10960_v43 = vpop.f32.mrf.mxu1 }
 0x285   :  { %v7912_v59 = vpop.f32.mrf.mxu0  ;;  %v5964_v42 = vadd.f32 %v7803_v33, %v5923_v8  ;;  %v5967_v20 = vadd.f32 %v7806_v14, %v5926_v46 }
 0x286   :  { %v7934_v4 = vpop.f32.mrf.mxu1  ;;  %v7913_v24 = vadd.f32 %v7912_v59, %v10950_v52 }
 0x287   :  { %v7914_v11 = vpop.f32.mrf.mxu0  ;;  %v6005_v62 = vadd.f32 %v7825_v63, %v5964_v42  ;;  %v6008_v21 = vadd.f32 %v7828_v16, %v5967_v20  ;;  %v7935_v3 = vadd.f32 %v7934_v4, %v10960_v43 }
 0x288   :  { %v7936_v15 = vpop.f32.mrf.mxu1 }
 0x289   :  { %v7915_v55 = vpop.f32.mrf.mxu0  ;;  %v6046_v57 = vadd.f32 %v7847_v37, %v6005_v62  ;;  %v6049_v56 = vadd.f32 %v7850_v1, %v6008_v21 }
 0x28a   :  { %v7937_v2 = vpop.f32.mrf.mxu1  ;;  %v7916_v19 = vadd.f32 %v7915_v55, %v7914_v11 }
 0x28b   :  { %v6087_v6 = vadd.f32 %v7869_v53, %v6046_v57  ;;  %v6090_v9 = vadd.f32 %v7872_v61, %v6049_v56  ;;  %v7938_v52 = vadd.f32 %v7937_v2, %v7936_v15 }
 0x28d   :  { %v6128_v13 = vadd.f32 %v7891_v58, %v6087_v6  ;;  %v6131_v41 = vadd.f32 %v7894_v25, %v6090_v9  ;;  %v7314_v9 = vld [vmem:[%s11019_s4] ss:$0 sm:$0xff] }
 0x28f   :  { %v6169_v26 = vadd.f32 %v7913_v24, %v6128_v13  ;;  %v6172_v31 = vadd.f32 %v7916_v19, %v6131_v41 }
 0x291   :  { %v6210_v5 = vadd.f32 %v7935_v3, %v6169_v26  ;;  %v6213_v40 = vadd.f32 %v7938_v52, %v6172_v31 }
 0x2a3   :  { %v7955_v39 = vpop.f32.mrf.mxu0 }
 0x2a4   :  { %v7977_v48 = vpop.f32.mrf.mxu1 }
 0x2a5   :  { %v7956_v22 = vpop.f32.mrf.mxu0 }
 0x2a6   :  { %v7978_v0 = vpop.f32.mrf.mxu1  ;;  %v7957_v27 = vadd.f32 %v7956_v22, %v7955_v39 }
 0x2a7   :  { %v7958_v45 = vpop.f32.mrf.mxu0  ;;  %v7979_v38 = vadd.f32 %v7978_v0, %v7977_v48 }
 0x2a8   :  { %v7980_v47 = vpop.f32.mrf.mxu1  ;;  %v6251_v59 = vadd.f32 %v7957_v27, %v6210_v5 }
 0x2a9   :  { %v7959_v50 = vpop.f32.mrf.mxu0 }
 0x2aa   :  { %v7981_v7 = vpop.f32.mrf.mxu1  ;;  %v7960_v33 = vadd.f32 %v7959_v50, %v7958_v45  ;;  %v6292_v30 = vadd.f32 %v7979_v38, %v6251_v59 }
 0x2ab   :  { %v7982_v11 = vadd.f32 %v7981_v7, %v7980_v47 }
 0x2ac   :  { %v6254_v49 = vadd.f32 %v7960_v33, %v6213_v40 }
 0x2ae   :  { %v6295_v22 = vadd.f32 %v7982_v11, %v6254_v49 }
 0x2c3   :  { %v7999_v17 = vpop.f32.mrf.mxu0 }
 0x2c4   :  { %v8021_v23 = vpop.f32.mrf.mxu1 }
 0x2c5   :  { %v8000_v60 = vpop.f32.mrf.mxu0 }
 0x2c6   :  { %v8022_v44 = vpop.f32.mrf.mxu1  ;;  %v8001_v29 = vadd.f32 %v8000_v60, %v7999_v17 }
 0x2c7   :  { %v8002_v12 = vpop.f32.mrf.mxu0  ;;  %v8023_v18 = vadd.f32 %v8022_v44, %v8021_v23 }
 0x2c8   :  { %v8024_v28 = vpop.f32.mrf.mxu1  ;;  %v6333_v55 = vadd.f32 %v8001_v29, %v6292_v30 }
 0x2c9   :  { %v8003_v32 = vpop.f32.mrf.mxu0 }
 0x2ca   :  { %v8025_v8 = vpop.f32.mrf.mxu1  ;;  %v8004_v39 = vadd.f32 %v8003_v32, %v8002_v12  ;;  %v6374_v15 = vadd.f32 %v8023_v18, %v6333_v55 }
 0x2cb   :  { %v8026_v48 = vadd.f32 %v8025_v8, %v8024_v28 }
 0x2cc   :  { %v6336_v2 = vadd.f32 %v8004_v39, %v6295_v22 }
 0x2ce   :  { %v6377_v14 = vadd.f32 %v8026_v48, %v6336_v2 }
 0x2e3   :  { %v8043_v35 = vpop.f32.mrf.mxu0 }
 0x2e4   :  { %v8065_v34 = vpop.f32.mrf.mxu1 }
 0x2e5   :  { %v8044_v36 = vpop.f32.mrf.mxu0 }
 0x2e6   :  { %v8066_v43 = vpop.f32.mrf.mxu1  ;;  %v8045_v63 = vadd.f32 %v8044_v36, %v8043_v35 }
 0x2e7   :  { %v8046_v4 = vpop.f32.mrf.mxu0  ;;  %v8067_v45 = vadd.f32 %v8066_v43, %v8065_v34 }
 0x2e8   :  { %v8068_v42 = vpop.f32.mrf.mxu1  ;;  %v6415_v0 = vadd.f32 %v8045_v63, %v6374_v15 }
 0x2e9   :  { %v8047_v46 = vpop.f32.mrf.mxu0 }
 0x2ea   :  { %v8048_v50 = vadd.f32 %v8047_v46, %v8046_v4  ;;  %v8069_v51 = vpop.f32.mrf.mxu1  ;;  %v6456_v37 = vadd.f32 %v8067_v45, %v6415_v0 }
 0x2eb   :  { %v8070_v53 = vadd.f32 %v8069_v51, %v8068_v42 }
 0x2ec   :  { %v6418_v47 = vadd.f32 %v8048_v50, %v6377_v14 }
 0x2ee   :  { %v6459_v23 = vadd.f32 %v8070_v53, %v6418_v47 }
 0x303   :  { %v8087_v54 = vpop.f32.mrf.mxu0 }
 0x304   :  { %v8109_v62 = vpop.f32.mrf.mxu1 }
 0x305   :  { %v8088_v10 = vpop.f32.mrf.mxu0 }
 0x306   :  { %v8089_v16 = vadd.f32 %v8088_v10, %v8087_v54  ;;  %v8110_v17 = vpop.f32.mrf.mxu1 }
 0x307   :  { %v8090_v20 = vpop.f32.mrf.mxu0  ;;  %v8111_v60 = vadd.f32 %v8110_v17, %v8109_v62 }
 0x308   :  { %v6497_v7 = vadd.f32 %v8089_v16, %v6456_v37  ;;  %v8112_v57 = vpop.f32.mrf.mxu1 }
 0x309   :  { %v8091_v21 = vpop.f32.mrf.mxu0 }
 0x30a   :  { %v8092_v1 = vadd.f32 %v8091_v21, %v8090_v20  ;;  %v8113_v6 = vpop.f32.mrf.mxu1  ;;  %v6538_v58 = vadd.f32 %v8111_v60, %v6497_v7 }
 0x30b   :  { %v8114_v56 = vadd.f32 %v8113_v6, %v8112_v57 }
 0x30c   :  { %v6500_v61 = vadd.f32 %v8092_v1, %v6459_v23  ;;  %v6544_v44 = vmax.f32 %v6538_v58, 0.0 }
 0x30e   :  { %v6541_v24 = vadd.f32 %v8114_v56, %v6500_v61 }
 0x310   :  { %v6545_v12 = vmax.f32 %v6541_v24, 0.0 }
 0x312   :  { %v6546_v13 = vpack.c.bf16 %v6545_v12, %v6544_v44 }
 0x314   :  { %8141 = vmatmul.mubr.bf16.vlgmr.msra.gmra.mxu0 %v6546_v13 }
 0x3d4   :  { %v6652_v25 = vpop.f32.mrf.mxu0 }
 0x3d5   :  { %v6653_v26 = vadd.f32 %v7314_v9, %v6652_v25 }
 0x3d6   :  { %v8142_v3 = vpop.f32.mrf.mxu0 }
 0x3d7   :  { %6659 = vst [vmem:[%s11020_s5] sm:$0xff] %v6653_v26 }
 0x3d8   :  { %v6655_v19 = vpop.f32.mrf.mxu0 }
 0x3d9   :  { %v6656_v28 = vadd.f32 %v7314_v9, %v6655_v19 }
 0x3da   :  { %v8143_v32 = vpop.f32.mrf.mxu0 }
 0x3db   :  { %6660 = vst [vmem:[%s11020_s5 + $0x8] sm:$0xff] %v6656_v28 }

</bundles_post_ra>
